<compile_context>
chip_gen: v7x
topology: tpu7x:2x2x1
jax: 0.10.0
libtpu: 0.0.40
codegen_flags: <defaults>
</compile_context>

<pallas_src>
import functools
import math

import jax
import jax.numpy as jnp
from jax.experimental import pallas as pl
from jax.experimental.pallas import tpu as pltpu

EPS = 1e-5
_VMEM = pl.BlockSpec(memory_space=pltpu.MemorySpace.VMEM)
_VMEM_LIMIT = 32 * 1024 * 1024  # comfortably inside v7x's 64 MiB physical VMEM


# ----------------------------- tiling helpers -----------------------------

def _round_up(x, m):
    return (x + m - 1) // m * m


def _pick_tm(m, n):
    # small-N layers (e.g. 64 output channels) get a bigger M tile to keep the MXU fed
    cap = 512 if n <= 128 else 256
    return min(cap, _round_up(m, 8))


def _pick_tn(n):
    if n <= 256:
        return n                      # full dim (always a legal block extent)
    if n % 256 == 0:
        return 256
    if n % 128 == 0:
        return 128
    return n


def _pick_tk(kp, cap=1024):
    # kp is a multiple of 128; pick the largest <=cap multiple of 128 dividing kp
    if kp <= cap:
        return kp
    for t in range(cap - cap % 128, 127, -128):
        if kp % t == 0:
            return t
    return 128


# ----------------------------- Pallas kernels -----------------------------

def _fused_matmul_kernel(a_ref, w_ref, s_ref, t_ref, *refs, relu, has_shortcut):
    """Tiled (M,K)@(K,N) with K-grid accumulation and a fused epilogue:
       out = [relu](acc*scale + shift) [+ shortcut -> relu]."""
    if has_shortcut:
        sc_ref, o_ref, acc_ref = refs
    else:
        o_ref, acc_ref = refs
        sc_ref = None

    k = pl.program_id(2)

    @pl.when(k == 0)
    def _():
        acc_ref[...] = jnp.zeros_like(acc_ref)

    acc_ref[...] += jnp.dot(a_ref[...], w_ref[...],
                            preferred_element_type=jnp.float32)

    @pl.when(k == pl.num_programs(2) - 1)
    def _():
        out = acc_ref[...] * s_ref[...] + t_ref[...]
        if relu:
            out = jnp.maximum(out, 0.0)
        if has_shortcut:
            out = jnp.maximum(out + sc_ref[...], 0.0)
        o_ref[...] = out.astype(o_ref.dtype)


def _maxpool_bn_relu_kernel(*refs, n_wins):
    """out = relu(max(win_0..win_{n-1}) * scale + shift) — MaxPool -> BN -> ReLU."""
    win_refs = refs[:n_wins]
    s_ref, t_ref, o_ref = refs[n_wins:]
    m = win_refs[0][...]
    for r in win_refs[1:]:
        m = jnp.maximum(m, r[...])
    o_ref[...] = jnp.maximum(m * s_ref[...] + t_ref[...], 0.0)


def _gap_kernel(x_ref, o_ref):
    # x: [N, H*W, C] -> mean over spatial (AdaptiveAvgPool2d(1) + flatten)
    o_ref[...] = jnp.mean(x_ref[...], axis=1)


# ----------------------------- kernel wrappers -----------------------------

def fused_matmul(a, w, scale, shift, shortcut=None, relu=False):
    """o = epilogue(a @ w); a:[M,K] bf16, w:[K,N] bf16, scale/shift:[N] f32,
    optional shortcut:[M,N] f32 (adds after the inner ReLU, then final ReLU)."""
    M, K = a.shape
    K2, N = w.shape
    assert K == K2

    Kp = _round_up(K, 128)
    tn = _pick_tn(N)
    tm = _pick_tm(M, N)
    tk = _pick_tk(Kp)
    Mp = _round_up(M, tm)
    Np = _round_up(N, tn)

    a_p = jnp.pad(a, ((0, Mp - M), (0, Kp - K)))
    w_p = jnp.pad(w, ((0, Kp - K), (0, Np - N)))
    s_p = jnp.pad(scale.reshape(1, N).astype(jnp.float32), ((0, 0), (0, Np - N)))
    t_p = jnp.pad(shift.reshape(1, N).astype(jnp.float32), ((0, 0), (0, Np - N)))

    inputs = [a_p, w_p, s_p, t_p]
    in_specs = [
        pl.BlockSpec((tm, tk), lambda m, n, k: (m, k)),
        pl.BlockSpec((tk, tn), lambda m, n, k: (k, n)),
        pl.BlockSpec((1, tn), lambda m, n, k: (0, n)),
        pl.BlockSpec((1, tn), lambda m, n, k: (0, n)),
    ]
    has_shortcut = shortcut is not None
    if has_shortcut:
        sc_p = jnp.pad(shortcut.astype(jnp.float32), ((0, Mp - M), (0, Np - N)))
        inputs.append(sc_p)
        in_specs.append(pl.BlockSpec((tm, tn), lambda m, n, k: (m, n)))

    grid = (Mp // tm, Np // tn, Kp // tk)
    flops = 2 * Mp * Np * Kp
    bytes_accessed = (int(a_p.size) * 2 + int(w_p.size) * 2 + Mp * Np * 4
                      + (Mp * Np * 4 if has_shortcut else 0)
                      + (int(s_p.size) + int(t_p.size)) * 4)

    kern = functools.partial(_fused_matmul_kernel, relu=relu,
                             has_shortcut=has_shortcut)
    out = pl.pallas_call(
        kern,
        out_shape=jax.ShapeDtypeStruct((Mp, Np), jnp.float32),
        grid_spec=pltpu.PrefetchScalarGridSpec(
            num_scalar_prefetch=0,
            grid=grid,
            in_specs=in_specs,
            out_specs=pl.BlockSpec((tm, tn), lambda m, n, k: (m, n)),
            scratch_shapes=[pltpu.VMEM((tm, tn), jnp.float32)]),
        compiler_params=pltpu.CompilerParams(
            dimension_semantics=("parallel", "parallel", "arbitrary"),
            vmem_limit_bytes=_VMEM_LIMIT),
        cost_estimate=pl.CostEstimate(flops=flops, transcendentals=0,
                                      bytes_accessed=bytes_accessed),
    )(*inputs)
    return out[:M, :N]


def _im2col(x, kh, kw, stride, padding):
    """x: [N,H,W,C] -> patches [N*OH*OW, kh*kw*C] (taps ordered (kh, kw, cin))."""
    n, h, w, c = x.shape
    xp = jnp.pad(x, ((0, 0), (padding, padding), (padding, padding), (0, 0)))
    oh = (h + 2 * padding - kh) // stride + 1
    ow = (w + 2 * padding - kw) // stride + 1
    cols = []
    for i in range(kh):
        for j in range(kw):
            cols.append(xp[:, i:i + stride * oh:stride, j:j + stride * ow:stride, :])
    patches = jnp.concatenate(cols, axis=-1)
    return patches.reshape(n * oh * ow, kh * kw * c), (n, oh, ow)


def conv2d_fused(x, weight, bias, stride, padding, bn=None, relu=False,
                 shortcut=None):
    """Conv2d(+bias) [+BN] [+ReLU] [+residual add + ReLU];
    x NHWC f32, weight torch-layout [Cout,Cin,KH,KW]."""
    cout, cin, kh, kw = weight.shape
    # Align Cin to the sublane granule (only hits conv0: 3 -> 8).
    if cin % 8 != 0:
        cpad = _round_up(cin, 8) - cin
        x = jnp.pad(x, ((0, 0), (0, 0), (0, 0), (0, cpad)))
        weight = jnp.pad(weight, ((0, 0), (0, cpad), (0, 0), (0, 0)))
        cin = cin + cpad

    a, (n, oh, ow) = _im2col(x.astype(jnp.bfloat16), kh, kw, stride, padding)
    w2 = jnp.transpose(weight, (2, 3, 1, 0)).reshape(kh * kw * cin, cout)
    w2 = w2.astype(jnp.bfloat16)

    if bn is not None:
        gamma, beta, mean, var = bn
        s = gamma / jnp.sqrt(var + EPS)
        t = (bias - mean) * s + beta
    else:
        s = jnp.ones((cout,), jnp.float32)
        t = bias

    sc2d = None if shortcut is None else shortcut.reshape(n * oh * ow, cout)
    out = fused_matmul(a, w2, s, t, shortcut=sc2d, relu=relu)  # f32 [M, cout]
    return out.reshape(n, oh, ow, cout)


def maxpool_bn_relu(x, gamma, beta, mean, var, ksize=3, stride=2, padding=1):
    """MaxPool2d(ksize, stride, padding) -> BatchNorm -> ReLU, fused in one kernel.
    The ksize*ksize shifted window views are passed as separate inputs (no stacked
    [k*k, M, C] intermediate in HBM)."""
    n, h, w, c = x.shape
    neg = jnp.finfo(jnp.float32).min
    xp = jnp.pad(x, ((0, 0), (padding, padding), (padding, padding), (0, 0)),
                 constant_values=neg)
    oh = (h + 2 * padding - ksize) // stride + 1
    ow = (w + 2 * padding - ksize) // stride + 1
    M = n * oh * ow

    s = (gamma / jnp.sqrt(var + EPS)).reshape(1, c)
    t = (beta - mean * (gamma / jnp.sqrt(var + EPS))).reshape(1, c)

    tm = min(256, _round_up(M, 8))
    Mp = _round_up(M, tm)

    wins = []
    for i in range(ksize):
        for j in range(ksize):
            v = xp[:, i:i + stride * oh:stride, j:j + stride * ow:stride, :]
            wins.append(jnp.pad(v.reshape(M, c), ((0, Mp - M), (0, 0))))

    in_specs = [pl.BlockSpec((tm, c), lambda m: (m, 0)) for _ in wins]
    in_specs += [pl.BlockSpec((1, c), lambda m: (0, 0)),
                 pl.BlockSpec((1, c), lambda m: (0, 0))]

    out = pl.pallas_call(
        functools.partial(_maxpool_bn_relu_kernel, n_wins=len(wins)),
        out_shape=jax.ShapeDtypeStruct((Mp, c), jnp.float32),
        grid_spec=pltpu.PrefetchScalarGridSpec(
            num_scalar_prefetch=0,
            grid=(Mp // tm,),
            in_specs=in_specs,
            out_specs=pl.BlockSpec((tm, c), lambda m: (m, 0))),
        compiler_params=pltpu.CompilerParams(
            dimension_semantics=("parallel",),
            vmem_limit_bytes=_VMEM_LIMIT),
    )(*wins, s, t)
    return out[:M].reshape(n, oh, ow, c)


def global_avg_pool(x):
    n, h, w, c = x.shape
    return pl.pallas_call(
        _gap_kernel,
        out_shape=jax.ShapeDtypeStruct((n, c), jnp.float32),
        in_specs=[_VMEM],
        out_specs=_VMEM,
    )(x.reshape(n, h * w, c))


# ----------------------------- parameter init -----------------------------

def _conv_params(key, cin, cout, k):
    kw_key, kb_key = jax.random.split(key)
    fan_in = cin * k * k
    bound = 1.0 / math.sqrt(fan_in)
    w = jax.random.uniform(kw_key, (cout, cin, k, k), jnp.float32, -bound, bound)
    b = jax.random.uniform(kb_key, (cout,), jnp.float32, -bound, bound)
    return {"w": w, "b": b}


def _bn_params(c):
    return {"gamma": jnp.ones((c,), jnp.float32),
            "beta": jnp.zeros((c,), jnp.float32),
            "mean": jnp.zeros((c,), jnp.float32),
            "var": jnp.ones((c,), jnp.float32)}


def _bn_tuple(p):
    return (p["gamma"], p["beta"], p["mean"], p["var"])


def _resblock_params(key, cin, cout, downsample):
    k1, k2, k3 = jax.random.split(key, 3)
    p = {"downsample": downsample,
         "conv1": _conv_params(k1, cin, cout, 3), "bn1": _bn_params(cout),
         "conv2": _conv_params(k2, cout, cout, 3), "bn2": _bn_params(cout)}
    if downsample:
        p["conv_sc"] = _conv_params(k3, cin, cout, 1)
        p["bn_sc"] = _bn_params(cout)
    return p


def init_resnet_params(key, in_channels=3, repeat=(1, 1, 1, 1), useBottleneck=False):
    # NOTE: useBottleneck=True only swaps channel widths; the blocks stay 2-conv
    # basic blocks (matches the tutorial resblock assumption, not torchvision).
    filters = [64, 256, 512, 1024, 2048] if useBottleneck else [64, 64, 128, 256, 512]
    keys = iter(jax.random.split(key, 64))
    params = {"conv0": _conv_params(next(keys), in_channels, 64, 7),
              "bn0": _bn_params(64),
              "layers": []}
    specs = [(filters[0], filters[1], repeat[0], False),
             (filters[1], filters[2], repeat[1], True),
             (filters[2], filters[3], repeat[2], True),
             (filters[3], filters[4], repeat[3], True)]
    for cin, cout, rep, down_first in specs:
        blocks = [_resblock_params(next(keys), cin, cout, down_first)]
        for _ in range(1, rep):
            blocks.append(_resblock_params(next(keys), cout, cout, False))
        params["layers"].append(blocks)
    return params


# ----------------------------- forward pass -----------------------------

def resblock_forward(x, p):
    if p["downsample"]:
        shortcut = conv2d_fused(x, p["conv_sc"]["w"], p["conv_sc"]["b"],
                                stride=2, padding=0,
                                bn=_bn_tuple(p["bn_sc"]), relu=False)
        stride1 = 2
    else:
        shortcut = x
        stride1 = 1
    y = conv2d_fused(x, p["conv1"]["w"], p["conv1"]["b"], stride=stride1, padding=1,
                     bn=_bn_tuple(p["bn1"]), relu=True)
    # conv2 + BN2 + ReLU + residual add + final ReLU, all in one kernel epilogue
    y = conv2d_fused(y, p["conv2"]["w"], p["conv2"]["b"], stride=1, padding=1,
                     bn=_bn_tuple(p["bn2"]), relu=True, shortcut=shortcut)
    return y


def resnet_forward(params, x_nchw):
    x = jnp.transpose(x_nchw, (0, 2, 3, 1))  # NCHW (torch) -> NHWC (kernel layout)
    # layer0: Conv7x7/s2/p3 -> MaxPool3x3/s2/p1 -> BatchNorm -> ReLU
    x = conv2d_fused(x, params["conv0"]["w"], params["conv0"]["b"],
                     stride=2, padding=3, bn=None, relu=False)
    x = maxpool_bn_relu(x, *_bn_tuple(params["bn0"]))
    # layer1..layer4
    for blocks in params["layers"]:
        for bp in blocks:
            x = resblock_forward(x, bp)
    # AdaptiveAvgPool2d(1) + flatten(start_dim=1)
    return global_avg_pool(x)


if __name__ == "__main__":
    key = jax.random.PRNGKey(0)
    # NCHW input, matching nn.Conv2d conventions
    x = jax.random.normal(key, (2, 3, 32, 32), jnp.float32)
    params = init_resnet_params(jax.random.PRNGKey(42),
                                in_channels=3, repeat=(1, 1, 1, 1),
                                useBottleneck=False)
    fwd = jax.jit(lambda inp: resnet_forward(params, inp))
    out = jax.block_until_ready(fwd(x))
    assert out.shape == (2, 512), out.shape
    assert bool(jnp.all(jnp.isfinite(out)))
    print("KERNEL_OK")
</pallas_src>

<mosaic_0001>
module attributes {stable_mosaic.version = 11 : i64} {
  func.func @_fused_matmul_kernel(%arg0: i32, %arg1: i32, %arg2: i32, %arg3: memref<512x512xbf16, #tpu.memory_space<vmem>>, %arg4: memref<512x64xbf16, #tpu.memory_space<vmem>>, %arg5: memref<1x64xf32, #tpu.memory_space<vmem>>, %arg6: memref<1x64xf32, #tpu.memory_space<vmem>>, %arg7: memref<512x64xf32, #tpu.memory_space<vmem>>, %arg8: memref<512x64xf32, #tpu.memory_space<vmem>>) attributes {dimension_semantics = [#tpu.dimension_semantics<parallel>, #tpu.dimension_semantics<parallel>, #tpu.dimension_semantics<arbitrary>], iteration_bounds = array<i64: 1, 1, 1>, scalar_prefetch = 0 : i64, scratch_operands = 1 : i64, tpu.core_type = #tpu.core_type<tc>, window_params = [{transform_indices = @transform_0, window_bounds = array<i64: 512, 512>}, {transform_indices = @transform_1, window_bounds = array<i64: 512, 64>}, {transform_indices = @transform_2, window_bounds = array<i64: 1, 64>}, {transform_indices = @transform_3, window_bounds = array<i64: 1, 64>}, {transform_indices = @transform_4, window_bounds = array<i64: 512, 64>}]} {
    %c0_i32 = arith.constant 0 : i32
    %0 = arith.cmpi eq, %arg2, %c0_i32 : i32
    %1 = arith.extui %0 : i1 to i32
    %c0_i32_0 = arith.constant 0 : i32
    %2 = arith.cmpi ne, %1, %c0_i32_0 : i32
    scf.if %2 {
      %cst_10 = arith.constant 0.000000e+00 : f32
      %12 = vector.broadcast %cst_10 : f32 to vector<512x64xf32>
      %c0_11 = arith.constant 0 : index
      %c0_12 = arith.constant 0 : index
      %13 = vector.load %arg8[%c0_11, %c0_12] : memref<512x64xf32, #tpu.memory_space<vmem>>, vector<512x64xf32>
      tpu.vector_store %arg8[%c0_11, %c0_12], %12 {strides = array<i32>} : memref<512x64xf32, #tpu.memory_space<vmem>>, vector<512x64xf32>,
    } else {
    }
    %c0 = arith.constant 0 : index
    %c0_1 = arith.constant 0 : index
    %3 = vector.load %arg8[%c0, %c0_1] : memref<512x64xf32, #tpu.memory_space<vmem>>, vector<512x64xf32>
    %c0_2 = arith.constant 0 : index
    %c0_3 = arith.constant 0 : index
    %4 = vector.load %arg3[%c0_2, %c0_3] : memref<512x512xbf16, #tpu.memory_space<vmem>>, vector<512x512xbf16>
    %c0_4 = arith.constant 0 : index
    %c0_5 = arith.constant 0 : index
    %5 = vector.load %arg4[%c0_4, %c0_5] : memref<512x64xbf16, #tpu.memory_space<vmem>>, vector<512x64xbf16>
    %cst = arith.constant dense<0.000000e+00> : vector<512x64xf32>
    %6 = tpu.matmul %4, %5, %cst {dimension_numbers = #tpu.dot_dimension_numbers<[1], [0], [0], [1], [0, 0, 1, 1], [], []>} : vector<512x512xbf16>, vector<512x64xbf16>, vector<512x64xf32> -> vector<512x64xf32>
    %7 = arith.addf %3, %6 : vector<512x64xf32>
    %c0_6 = arith.constant 0 : index
    %c0_7 = arith.constant 0 : index
    %8 = vector.load %arg8[%c0_6, %c0_7] : memref<512x64xf32, #tpu.memory_space<vmem>>, vector<512x64xf32>
    tpu.vector_store %arg8[%c0_6, %c0_7], %7 {strides = array<i32>} : memref<512x64xf32, #tpu.memory_space<vmem>>, vector<512x64xf32>,
    %c0_i32_8 = arith.constant 0 : i32
    %9 = arith.cmpi eq, %arg2, %c0_i32_8 : i32
    %10 = arith.extui %9 : i1 to i32
    %c0_i32_9 = arith.constant 0 : i32
    %11 = arith.cmpi ne, %10, %c0_i32_9 : i32
    scf.if %11 {
      %c0_10 = arith.constant 0 : index
      %c0_11 = arith.constant 0 : index
      %12 = vector.load %arg8[%c0_10, %c0_11] : memref<512x64xf32, #tpu.memory_space<vmem>>, vector<512x64xf32>
      %c0_12 = arith.constant 0 : index
      %c0_13 = arith.constant 0 : index
      %13 = vector.load %arg5[%c0_12, %c0_13] : memref<1x64xf32, #tpu.memory_space<vmem>>, vector<1x64xf32>
      %14 = vector.broadcast %13 : vector<1x64xf32> to vector<512x64xf32>
      %15 = arith.mulf %12, %14 : vector<512x64xf32>
      %c0_14 = arith.constant 0 : index
      %c0_15 = arith.constant 0 : index
      %16 = vector.load %arg6[%c0_14, %c0_15] : memref<1x64xf32, #tpu.memory_space<vmem>>, vector<1x64xf32>
      %17 = vector.broadcast %16 : vector<1x64xf32> to vector<512x64xf32>
      %18 = arith.addf %15, %17 : vector<512x64xf32>
      %c0_16 = arith.constant 0 : index
      %c0_17 = arith.constant 0 : index
      %19 = vector.load %arg7[%c0_16, %c0_17] : memref<512x64xf32, #tpu.memory_space<vmem>>, vector<512x64xf32>
      tpu.vector_store %arg7[%c0_16, %c0_17], %18 {strides = array<i32>} : memref<512x64xf32, #tpu.memory_space<vmem>>, vector<512x64xf32>,
    } else {
    }
    return
  }
  func.func @transform_0(%arg0: i32, %arg1: i32, %arg2: i32) -> (i32, i32) {
    %c0_i32 = arith.constant 0 : i32
    return %arg0, %arg2 : i32, i32
  }
  func.func @transform_1(%arg0: i32, %arg1: i32, %arg2: i32) -> (i32, i32) {
    %c0_i32 = arith.constant 0 : i32
    return %arg2, %arg1 : i32, i32
  }
  func.func @transform_2(%arg0: i32, %arg1: i32, %arg2: i32) -> (i32, i32) {
    %c0_i32 = arith.constant 0 : i32
    %c0_i32_0 = arith.constant 0 : i32
    return %c0_i32, %arg1 : i32, i32
  }
  func.func @transform_3(%arg0: i32, %arg1: i32, %arg2: i32) -> (i32, i32) {
    %c0_i32 = arith.constant 0 : i32
    %c0_i32_0 = arith.constant 0 : i32
    return %c0_i32, %arg1 : i32, i32
  }
  func.func @transform_4(%arg0: i32, %arg1: i32, %arg2: i32) -> (i32, i32) {
    %c0_i32 = arith.constant 0 : i32
    return %arg0, %arg1 : i32, i32
  }
}

module attributes {stable_mosaic.version = 11 : i64} {
  func.func @_maxpool_bn_relu_kernel(%arg0: i32, %arg1: memref<128x64xf32, #tpu.memory_space<vmem>>, %arg2: memref<128x64xf32, #tpu.memory_space<vmem>>, %arg3: memref<128x64xf32, #tpu.memory_space<vmem>>, %arg4: memref<128x64xf32, #tpu.memory_space<vmem>>, %arg5: memref<128x64xf32, #tpu.memory_space<vmem>>, %arg6: memref<128x64xf32, #tpu.memory_space<vmem>>, %arg7: memref<128x64xf32, #tpu.memory_space<vmem>>, %arg8: memref<128x64xf32, #tpu.memory_space<vmem>>, %arg9: memref<128x64xf32, #tpu.memory_space<vmem>>, %arg10: memref<1x64xf32, #tpu.memory_space<vmem>>, %arg11: memref<1x64xf32, #tpu.memory_space<vmem>>, %arg12: memref<128x64xf32, #tpu.memory_space<vmem>>) attributes {dimension_semantics = [#tpu.dimension_semantics<parallel>], iteration_bounds = array<i64: 1>, scalar_prefetch = 0 : i64, scratch_operands = 0 : i64, tpu.core_type = #tpu.core_type<tc>, window_params = [{transform_indices = @transform_0, window_bounds = array<i64: 128, 64>}, {transform_indices = @transform_1, window_bounds = array<i64: 128, 64>}, {transform_indices = @transform_2, window_bounds = array<i64: 128, 64>}, {transform_indices = @transform_3, window_bounds = array<i64: 128, 64>}, {transform_indices = @transform_4, window_bounds = array<i64: 128, 64>}, {transform_indices = @transform_5, window_bounds = array<i64: 128, 64>}, {transform_indices = @transform_6, window_bounds = array<i64: 128, 64>}, {transform_indices = @transform_7, window_bounds = array<i64: 128, 64>}, {transform_indices = @transform_8, window_bounds = array<i64: 128, 64>}, {pipeline_mode = #tpu.pipeline_mode<synchronous>, transform_indices = @transform_9, window_bounds = array<i64: 1, 64>}, {pipeline_mode = #tpu.pipeline_mode<synchronous>, transform_indices = @transform_10, window_bounds = array<i64: 1, 64>}, {transform_indices = @transform_11, window_bounds = array<i64: 128, 64>}]} {
    %c0 = arith.constant 0 : index
    %c0_0 = arith.constant 0 : index
    %0 = vector.load %arg1[%c0, %c0_0] : memref<128x64xf32, #tpu.memory_space<vmem>>, vector<128x64xf32>
    %c0_1 = arith.constant 0 : index
    %c0_2 = arith.constant 0 : index
    %1 = vector.load %arg2[%c0_1, %c0_2] : memref<128x64xf32, #tpu.memory_space<vmem>>, vector<128x64xf32>
    %2 = arith.maximumf %0, %1 : vector<128x64xf32>
    %c0_3 = arith.constant 0 : index
    %c0_4 = arith.constant 0 : index
    %3 = vector.load %arg3[%c0_3, %c0_4] : memref<128x64xf32, #tpu.memory_space<vmem>>, vector<128x64xf32>
    %4 = arith.maximumf %2, %3 : vector<128x64xf32>
    %c0_5 = arith.constant 0 : index
    %c0_6 = arith.constant 0 : index
    %5 = vector.load %arg4[%c0_5, %c0_6] : memref<128x64xf32, #tpu.memory_space<vmem>>, vector<128x64xf32>
    %6 = arith.maximumf %4, %5 : vector<128x64xf32>
    %c0_7 = arith.constant 0 : index
    %c0_8 = arith.constant 0 : index
    %7 = vector.load %arg5[%c0_7, %c0_8] : memref<128x64xf32, #tpu.memory_space<vmem>>, vector<128x64xf32>
    %8 = arith.maximumf %6, %7 : vector<128x64xf32>
    %c0_9 = arith.constant 0 : index
    %c0_10 = arith.constant 0 : index
    %9 = vector.load %arg6[%c0_9, %c0_10] : memref<128x64xf32, #tpu.memory_space<vmem>>, vector<128x64xf32>
    %10 = arith.maximumf %8, %9 : vector<128x64xf32>
    %c0_11 = arith.constant 0 : index
    %c0_12 = arith.constant 0 : index
    %11 = vector.load %arg7[%c0_11, %c0_12] : memref<128x64xf32, #tpu.memory_space<vmem>>, vector<128x64xf32>
    %12 = arith.maximumf %10, %11 : vector<128x64xf32>
    %c0_13 = arith.constant 0 : index
    %c0_14 = arith.constant 0 : index
    %13 = vector.load %arg8[%c0_13, %c0_14] : memref<128x64xf32, #tpu.memory_space<vmem>>, vector<128x64xf32>
    %14 = arith.maximumf %12, %13 : vector<128x64xf32>
    %c0_15 = arith.constant 0 : index
    %c0_16 = arith.constant 0 : index
    %15 = vector.load %arg9[%c0_15, %c0_16] : memref<128x64xf32, #tpu.memory_space<vmem>>, vector<128x64xf32>
    %16 = arith.maximumf %14, %15 : vector<128x64xf32>
    %c0_17 = arith.constant 0 : index
    %c0_18 = arith.constant 0 : index
    %17 = vector.load %arg10[%c0_17, %c0_18] : memref<1x64xf32, #tpu.memory_space<vmem>>, vector<1x64xf32>
    %18 = vector.broadcast %17 : vector<1x64xf32> to vector<128x64xf32>
    %19 = arith.mulf %16, %18 : vector<128x64xf32>
    %c0_19 = arith.constant 0 : index
    %c0_20 = arith.constant 0 : index
    %20 = vector.load %arg11[%c0_19, %c0_20] : memref<1x64xf32, #tpu.memory_space<vmem>>, vector<1x64xf32>
    %21 = vector.broadcast %20 : vector<1x64xf32> to vector<128x64xf32>
    %22 = arith.addf %19, %21 : vector<128x64xf32>
    %cst = arith.constant 0.000000e+00 : f32
    %23 = vector.broadcast %cst : f32 to vector<128x64xf32>
    %24 = arith.maximumf %22, %23 : vector<128x64xf32>
    %c0_21 = arith.constant 0 : index
    %c0_22 = arith.constant 0 : index
    %25 = vector.load %arg12[%c0_21, %c0_22] : memref<128x64xf32, #tpu.memory_space<vmem>>, vector<128x64xf32>
    tpu.vector_store %arg12[%c0_21, %c0_22], %24 {strides = array<i32>} : memref<128x64xf32, #tpu.memory_space<vmem>>, vector<128x64xf32>,
    return
  }
  func.func @transform_0(%arg0: i32) -> (i32, i32) {
    %c0_i32 = arith.constant 0 : i32
    %c0_i32_0 = arith.constant 0 : i32
    return %arg0, %c0_i32 : i32, i32
  }
  func.func @transform_1(%arg0: i32) -> (i32, i32) {
    %c0_i32 = arith.constant 0 : i32
    %c0_i32_0 = arith.constant 0 : i32
    return %arg0, %c0_i32 : i32, i32
  }
  func.func @transform_2(%arg0: i32) -> (i32, i32) {
    %c0_i32 = arith.constant 0 : i32
    %c0_i32_0 = arith.constant 0 : i32
    return %arg0, %c0_i32 : i32, i32
  }
  func.func @transform_3(%arg0: i32) -> (i32, i32) {
    %c0_i32 = arith.constant 0 : i32
    %c0_i32_0 = arith.constant 0 : i32
    return %arg0, %c0_i32 : i32, i32
  }
  func.func @transform_4(%arg0: i32) -> (i32, i32) {
    %c0_i32 = arith.constant 0 : i32
    %c0_i32_0 = arith.constant 0 : i32
    return %arg0, %c0_i32 : i32, i32
  }
  func.func @transform_5(%arg0: i32) -> (i32, i32) {
    %c0_i32 = arith.constant 0 : i32
    %c0_i32_0 = arith.constant 0 : i32
    return %arg0, %c0_i32 : i32, i32
  }
  func.func @transform_6(%arg0: i32) -> (i32, i32) {
    %c0_i32 = arith.constant 0 : i32
    %c0_i32_0 = arith.constant 0 : i32
    return %arg0, %c0_i32 : i32, i32
  }
  func.func @transform_7(%arg0: i32) -> (i32, i32) {
    %c0_i32 = arith.constant 0 : i32
    %c0_i32_0 = arith.constant 0 : i32
    return %arg0, %c0_i32 : i32, i32
  }
  func.func @transform_8(%arg0: i32) -> (i32, i32) {
    %c0_i32 = arith.constant 0 : i32
    %c0_i32_0 = arith.constant 0 : i32
    return %arg0, %c0_i32 : i32, i32
  }
  func.func @transform_9(%arg0: i32) -> (i32, i32) {
    %c0_i32 = arith.constant 0 : i32
    %c0_i32_0 = arith.constant 0 : i32
    %c0_i32_1 = arith.constant 0 : i32
    return %c0_i32, %c0_i32_0 : i32, i32
  }
  func.func @transform_10(%arg0: i32) -> (i32, i32) {
    %c0_i32 = arith.constant 0 : i32
    %c0_i32_0 = arith.constant 0 : i32
    %c0_i32_1 = arith.constant 0 : i32
    return %c0_i32, %c0_i32_0 : i32, i32
  }
  func.func @transform_11(%arg0: i32) -> (i32, i32) {
    %c0_i32 = arith.constant 0 : i32
    %c0_i32_0 = arith.constant 0 : i32
    return %arg0, %c0_i32 : i32, i32
  }
}

module attributes {stable_mosaic.version = 11 : i64} {
  func.func @_fused_matmul_kernel(%arg0: i32, %arg1: i32, %arg2: i32, %arg3: memref<128x640xbf16, #tpu.memory_space<vmem>>, %arg4: memref<640x64xbf16, #tpu.memory_space<vmem>>, %arg5: memref<1x64xf32, #tpu.memory_space<vmem>>, %arg6: memref<1x64xf32, #tpu.memory_space<vmem>>, %arg7: memref<128x64xf32, #tpu.memory_space<vmem>>, %arg8: memref<128x64xf32, #tpu.memory_space<vmem>>) attributes {dimension_semantics = [#tpu.dimension_semantics<parallel>, #tpu.dimension_semantics<parallel>, #tpu.dimension_semantics<arbitrary>], iteration_bounds = array<i64: 1, 1, 1>, scalar_prefetch = 0 : i64, scratch_operands = 1 : i64, tpu.core_type = #tpu.core_type<tc>, window_params = [{transform_indices = @transform_0, window_bounds = array<i64: 128, 640>}, {transform_indices = @transform_1, window_bounds = array<i64: 640, 64>}, {transform_indices = @transform_2, window_bounds = array<i64: 1, 64>}, {transform_indices = @transform_3, window_bounds = array<i64: 1, 64>}, {transform_indices = @transform_4, window_bounds = array<i64: 128, 64>}]} {
    %c0_i32 = arith.constant 0 : i32
    %0 = arith.cmpi eq, %arg2, %c0_i32 : i32
    %1 = arith.extui %0 : i1 to i32
    %c0_i32_0 = arith.constant 0 : i32
    %2 = arith.cmpi ne, %1, %c0_i32_0 : i32
    scf.if %2 {
      %cst_10 = arith.constant 0.000000e+00 : f32
      %12 = vector.broadcast %cst_10 : f32 to vector<128x64xf32>
      %c0_11 = arith.constant 0 : index
      %c0_12 = arith.constant 0 : index
      %13 = vector.load %arg8[%c0_11, %c0_12] : memref<128x64xf32, #tpu.memory_space<vmem>>, vector<128x64xf32>
      tpu.vector_store %arg8[%c0_11, %c0_12], %12 {strides = array<i32>} : memref<128x64xf32, #tpu.memory_space<vmem>>, vector<128x64xf32>,
    } else {
    }
    %c0 = arith.constant 0 : index
    %c0_1 = arith.constant 0 : index
    %3 = vector.load %arg8[%c0, %c0_1] : memref<128x64xf32, #tpu.memory_space<vmem>>, vector<128x64xf32>
    %c0_2 = arith.constant 0 : index
    %c0_3 = arith.constant 0 : index
    %4 = vector.load %arg3[%c0_2, %c0_3] : memref<128x640xbf16, #tpu.memory_space<vmem>>, vector<128x640xbf16>
    %c0_4 = arith.constant 0 : index
    %c0_5 = arith.constant 0 : index
    %5 = vector.load %arg4[%c0_4, %c0_5] : memref<640x64xbf16, #tpu.memory_space<vmem>>, vector<640x64xbf16>
    %cst = arith.constant dense<0.000000e+00> : vector<128x64xf32>
    %6 = tpu.matmul %4, %5, %cst {dimension_numbers = #tpu.dot_dimension_numbers<[1], [0], [0], [1], [0, 0, 1, 1], [], []>} : vector<128x640xbf16>, vector<640x64xbf16>, vector<128x64xf32> -> vector<128x64xf32>
    %7 = arith.addf %3, %6 : vector<128x64xf32>
    %c0_6 = arith.constant 0 : index
    %c0_7 = arith.constant 0 : index
    %8 = vector.load %arg8[%c0_6, %c0_7] : memref<128x64xf32, #tpu.memory_space<vmem>>, vector<128x64xf32>
    tpu.vector_store %arg8[%c0_6, %c0_7], %7 {strides = array<i32>} : memref<128x64xf32, #tpu.memory_space<vmem>>, vector<128x64xf32>,
    %c0_i32_8 = arith.constant 0 : i32
    %9 = arith.cmpi eq, %arg2, %c0_i32_8 : i32
    %10 = arith.extui %9 : i1 to i32
    %c0_i32_9 = arith.constant 0 : i32
    %11 = arith.cmpi ne, %10, %c0_i32_9 : i32
    scf.if %11 {
      %c0_10 = arith.constant 0 : index
      %c0_11 = arith.constant 0 : index
      %12 = vector.load %arg8[%c0_10, %c0_11] : memref<128x64xf32, #tpu.memory_space<vmem>>, vector<128x64xf32>
      %c0_12 = arith.constant 0 : index
      %c0_13 = arith.constant 0 : index
      %13 = vector.load %arg5[%c0_12, %c0_13] : memref<1x64xf32, #tpu.memory_space<vmem>>, vector<1x64xf32>
      %14 = vector.broadcast %13 : vector<1x64xf32> to vector<128x64xf32>
      %15 = arith.mulf %12, %14 : vector<128x64xf32>
      %c0_14 = arith.constant 0 : index
      %c0_15 = arith.constant 0 : index
      %16 = vector.load %arg6[%c0_14, %c0_15] : memref<1x64xf32, #tpu.memory_space<vmem>>, vector<1x64xf32>
      %17 = vector.broadcast %16 : vector<1x64xf32> to vector<128x64xf32>
      %18 = arith.addf %15, %17 : vector<128x64xf32>
      %cst_16 = arith.constant 0.000000e+00 : f32
      %19 = vector.broadcast %cst_16 : f32 to vector<128x64xf32>
      %20 = arith.maximumf %18, %19 : vector<128x64xf32>
      %c0_17 = arith.constant 0 : index
      %c0_18 = arith.constant 0 : index
      %21 = vector.load %arg7[%c0_17, %c0_18] : memref<128x64xf32, #tpu.memory_space<vmem>>, vector<128x64xf32>
      tpu.vector_store %arg7[%c0_17, %c0_18], %20 {strides = array<i32>} : memref<128x64xf32, #tpu.memory_space<vmem>>, vector<128x64xf32>,
    } else {
    }
    return
  }
  func.func @transform_0(%arg0: i32, %arg1: i32, %arg2: i32) -> (i32, i32) {
    %c0_i32 = arith.constant 0 : i32
    return %arg0, %arg2 : i32, i32
  }
  func.func @transform_1(%arg0: i32, %arg1: i32, %arg2: i32) -> (i32, i32) {
    %c0_i32 = arith.constant 0 : i32
    return %arg2, %arg1 : i32, i32
  }
  func.func @transform_2(%arg0: i32, %arg1: i32, %arg2: i32) -> (i32, i32) {
    %c0_i32 = arith.constant 0 : i32
    %c0_i32_0 = arith.constant 0 : i32
    return %c0_i32, %arg1 : i32, i32
  }
  func.func @transform_3(%arg0: i32, %arg1: i32, %arg2: i32) -> (i32, i32) {
    %c0_i32 = arith.constant 0 : i32
    %c0_i32_0 = arith.constant 0 : i32
    return %c0_i32, %arg1 : i32, i32
  }
  func.func @transform_4(%arg0: i32, %arg1: i32, %arg2: i32) -> (i32, i32) {
    %c0_i32 = arith.constant 0 : i32
    return %arg0, %arg1 : i32, i32
  }
}

module attributes {stable_mosaic.version = 11 : i64} {
  func.func @_fused_matmul_kernel(%arg0: i32, %arg1: i32, %arg2: i32, %arg3: memref<128x640xbf16, #tpu.memory_space<vmem>>, %arg4: memref<640x64xbf16, #tpu.memory_space<vmem>>, %arg5: memref<1x64xf32, #tpu.memory_space<vmem>>, %arg6: memref<1x64xf32, #tpu.memory_space<vmem>>, %arg7: memref<128x64xf32, #tpu.memory_space<vmem>>, %arg8: memref<128x64xf32, #tpu.memory_space<vmem>>, %arg9: memref<128x64xf32, #tpu.memory_space<vmem>>) attributes {dimension_semantics = [#tpu.dimension_semantics<parallel>, #tpu.dimension_semantics<parallel>, #tpu.dimension_semantics<arbitrary>], iteration_bounds = array<i64: 1, 1, 1>, scalar_prefetch = 0 : i64, scratch_operands = 1 : i64, tpu.core_type = #tpu.core_type<tc>, window_params = [{transform_indices = @transform_0, window_bounds = array<i64: 128, 640>}, {transform_indices = @transform_1, window_bounds = array<i64: 640, 64>}, {transform_indices = @transform_2, window_bounds = array<i64: 1, 64>}, {transform_indices = @transform_3, window_bounds = array<i64: 1, 64>}, {transform_indices = @transform_4, window_bounds = array<i64: 128, 64>}, {transform_indices = @transform_5, window_bounds = array<i64: 128, 64>}]} {
    %c0_i32 = arith.constant 0 : i32
    %0 = arith.cmpi eq, %arg2, %c0_i32 : i32
    %1 = arith.extui %0 : i1 to i32
    %c0_i32_0 = arith.constant 0 : i32
    %2 = arith.cmpi ne, %1, %c0_i32_0 : i32
    scf.if %2 {
      %cst_10 = arith.constant 0.000000e+00 : f32
      %12 = vector.broadcast %cst_10 : f32 to vector<128x64xf32>
      %c0_11 = arith.constant 0 : index
      %c0_12 = arith.constant 0 : index
      %13 = vector.load %arg9[%c0_11, %c0_12] : memref<128x64xf32, #tpu.memory_space<vmem>>, vector<128x64xf32>
      tpu.vector_store %arg9[%c0_11, %c0_12], %12 {strides = array<i32>} : memref<128x64xf32, #tpu.memory_space<vmem>>, vector<128x64xf32>,
    } else {
    }
    %c0 = arith.constant 0 : index
    %c0_1 = arith.constant 0 : index
    %3 = vector.load %arg9[%c0, %c0_1] : memref<128x64xf32, #tpu.memory_space<vmem>>, vector<128x64xf32>
    %c0_2 = arith.constant 0 : index
    %c0_3 = arith.constant 0 : index
    %4 = vector.load %arg3[%c0_2, %c0_3] : memref<128x640xbf16, #tpu.memory_space<vmem>>, vector<128x640xbf16>
    %c0_4 = arith.constant 0 : index
    %c0_5 = arith.constant 0 : index
    %5 = vector.load %arg4[%c0_4, %c0_5] : memref<640x64xbf16, #tpu.memory_space<vmem>>, vector<640x64xbf16>
    %cst = arith.constant dense<0.000000e+00> : vector<128x64xf32>
    %6 = tpu.matmul %4, %5, %cst {dimension_numbers = #tpu.dot_dimension_numbers<[1], [0], [0], [1], [0, 0, 1, 1], [], []>} : vector<128x640xbf16>, vector<640x64xbf16>, vector<128x64xf32> -> vector<128x64xf32>
    %7 = arith.addf %3, %6 : vector<128x64xf32>
    %c0_6 = arith.constant 0 : index
    %c0_7 = arith.constant 0 : index
    %8 = vector.load %arg9[%c0_6, %c0_7] : memref<128x64xf32, #tpu.memory_space<vmem>>, vector<128x64xf32>
    tpu.vector_store %arg9[%c0_6, %c0_7], %7 {strides = array<i32>} : memref<128x64xf32, #tpu.memory_space<vmem>>, vector<128x64xf32>,
    %c0_i32_8 = arith.constant 0 : i32
    %9 = arith.cmpi eq, %arg2, %c0_i32_8 : i32
    %10 = arith.extui %9 : i1 to i32
    %c0_i32_9 = arith.constant 0 : i32
    %11 = arith.cmpi ne, %10, %c0_i32_9 : i32
    scf.if %11 {
      %c0_10 = arith.constant 0 : index
      %c0_11 = arith.constant 0 : index
      %12 = vector.load %arg9[%c0_10, %c0_11] : memref<128x64xf32, #tpu.memory_space<vmem>>, vector<128x64xf32>
      %c0_12 = arith.constant 0 : index
      %c0_13 = arith.constant 0 : index
      %13 = vector.load %arg5[%c0_12, %c0_13] : memref<1x64xf32, #tpu.memory_space<vmem>>, vector<1x64xf32>
      %14 = vector.broadcast %13 : vector<1x64xf32> to vector<128x64xf32>
      %15 = arith.mulf %12, %14 : vector<128x64xf32>
      %c0_14 = arith.constant 0 : index
      %c0_15 = arith.constant 0 : index
      %16 = vector.load %arg6[%c0_14, %c0_15] : memref<1x64xf32, #tpu.memory_space<vmem>>, vector<1x64xf32>
      %17 = vector.broadcast %16 : vector<1x64xf32> to vector<128x64xf32>
      %18 = arith.addf %15, %17 : vector<128x64xf32>
      %cst_16 = arith.constant 0.000000e+00 : f32
      %19 = vector.broadcast %cst_16 : f32 to vector<128x64xf32>
      %20 = arith.maximumf %18, %19 : vector<128x64xf32>
      %c0_17 = arith.constant 0 : index
      %c0_18 = arith.constant 0 : index
      %21 = vector.load %arg7[%c0_17, %c0_18] : memref<128x64xf32, #tpu.memory_space<vmem>>, vector<128x64xf32>
      %22 = arith.addf %20, %21 : vector<128x64xf32>
      %cst_19 = arith.constant 0.000000e+00 : f32
      %23 = vector.broadcast %cst_19 : f32 to vector<128x64xf32>
      %24 = arith.maximumf %22, %23 : vector<128x64xf32>
      %c0_20 = arith.constant 0 : index
      %c0_21 = arith.constant 0 : index
      %25 = vector.load %arg8[%c0_20, %c0_21] : memref<128x64xf32, #tpu.memory_space<vmem>>, vector<128x64xf32>
      tpu.vector_store %arg8[%c0_20, %c0_21], %24 {strides = array<i32>} : memref<128x64xf32, #tpu.memory_space<vmem>>, vector<128x64xf32>,
    } else {
    }
    return
  }
  func.func @transform_0(%arg0: i32, %arg1: i32, %arg2: i32) -> (i32, i32) {
    %c0_i32 = arith.constant 0 : i32
    return %arg0, %arg2 : i32, i32
  }
  func.func @transform_1(%arg0: i32, %arg1: i32, %arg2: i32) -> (i32, i32) {
    %c0_i32 = arith.constant 0 : i32
    return %arg2, %arg1 : i32, i32
  }
  func.func @transform_2(%arg0: i32, %arg1: i32, %arg2: i32) -> (i32, i32) {
    %c0_i32 = arith.constant 0 : i32
    %c0_i32_0 = arith.constant 0 : i32
    return %c0_i32, %arg1 : i32, i32
  }
  func.func @transform_3(%arg0: i32, %arg1: i32, %arg2: i32) -> (i32, i32) {
    %c0_i32 = arith.constant 0 : i32
    %c0_i32_0 = arith.constant 0 : i32
    return %c0_i32, %arg1 : i32, i32
  }
  func.func @transform_4(%arg0: i32, %arg1: i32, %arg2: i32) -> (i32, i32) {
    %c0_i32 = arith.constant 0 : i32
    return %arg0, %arg1 : i32, i32
  }
  func.func @transform_5(%arg0: i32, %arg1: i32, %arg2: i32) -> (i32, i32) {
    %c0_i32 = arith.constant 0 : i32
    return %arg0, %arg1 : i32, i32
  }
}

module attributes {stable_mosaic.version = 11 : i64} {
  func.func @_fused_matmul_kernel(%arg0: i32, %arg1: i32, %arg2: i32, %arg3: memref<32x640xbf16, #tpu.memory_space<vmem>>, %arg4: memref<640x128xbf16, #tpu.memory_space<vmem>>, %arg5: memref<1x128xf32, #tpu.memory_space<vmem>>, %arg6: memref<1x128xf32, #tpu.memory_space<vmem>>, %arg7: memref<32x128xf32, #tpu.memory_space<vmem>>, %arg8: memref<32x128xf32, #tpu.memory_space<vmem>>) attributes {dimension_semantics = [#tpu.dimension_semantics<parallel>, #tpu.dimension_semantics<parallel>, #tpu.dimension_semantics<arbitrary>], iteration_bounds = array<i64: 1, 1, 1>, scalar_prefetch = 0 : i64, scratch_operands = 1 : i64, tpu.core_type = #tpu.core_type<tc>, window_params = [{transform_indices = @transform_0, window_bounds = array<i64: 32, 640>}, {transform_indices = @transform_1, window_bounds = array<i64: 640, 128>}, {transform_indices = @transform_2, window_bounds = array<i64: 1, 128>}, {transform_indices = @transform_3, window_bounds = array<i64: 1, 128>}, {transform_indices = @transform_4, window_bounds = array<i64: 32, 128>}]} {
    %c0_i32 = arith.constant 0 : i32
    %0 = arith.cmpi eq, %arg2, %c0_i32 : i32
    %1 = arith.extui %0 : i1 to i32
    %c0_i32_0 = arith.constant 0 : i32
    %2 = arith.cmpi ne, %1, %c0_i32_0 : i32
    scf.if %2 {
      %cst_10 = arith.constant 0.000000e+00 : f32
      %12 = vector.broadcast %cst_10 : f32 to vector<32x128xf32>
      %c0_11 = arith.constant 0 : index
      %c0_12 = arith.constant 0 : index
      %13 = vector.load %arg8[%c0_11, %c0_12] : memref<32x128xf32, #tpu.memory_space<vmem>>, vector<32x128xf32>
      tpu.vector_store %arg8[%c0_11, %c0_12], %12 {strides = array<i32>} : memref<32x128xf32, #tpu.memory_space<vmem>>, vector<32x128xf32>,
    } else {
    }
    %c0 = arith.constant 0 : index
    %c0_1 = arith.constant 0 : index
    %3 = vector.load %arg8[%c0, %c0_1] : memref<32x128xf32, #tpu.memory_space<vmem>>, vector<32x128xf32>
    %c0_2 = arith.constant 0 : index
    %c0_3 = arith.constant 0 : index
    %4 = vector.load %arg3[%c0_2, %c0_3] : memref<32x640xbf16, #tpu.memory_space<vmem>>, vector<32x640xbf16>
    %c0_4 = arith.constant 0 : index
    %c0_5 = arith.constant 0 : index
    %5 = vector.load %arg4[%c0_4, %c0_5] : memref<640x128xbf16, #tpu.memory_space<vmem>>, vector<640x128xbf16>
    %cst = arith.constant dense<0.000000e+00> : vector<32x128xf32>
    %6 = tpu.matmul %4, %5, %cst {dimension_numbers = #tpu.dot_dimension_numbers<[1], [0], [0], [1], [0, 0, 1, 1], [], []>} : vector<32x640xbf16>, vector<640x128xbf16>, vector<32x128xf32> -> vector<32x128xf32>
    %7 = arith.addf %3, %6 : vector<32x128xf32>
    %c0_6 = arith.constant 0 : index
    %c0_7 = arith.constant 0 : index
    %8 = vector.load %arg8[%c0_6, %c0_7] : memref<32x128xf32, #tpu.memory_space<vmem>>, vector<32x128xf32>
    tpu.vector_store %arg8[%c0_6, %c0_7], %7 {strides = array<i32>} : memref<32x128xf32, #tpu.memory_space<vmem>>, vector<32x128xf32>,
    %c0_i32_8 = arith.constant 0 : i32
    %9 = arith.cmpi eq, %arg2, %c0_i32_8 : i32
    %10 = arith.extui %9 : i1 to i32
    %c0_i32_9 = arith.constant 0 : i32
    %11 = arith.cmpi ne, %10, %c0_i32_9 : i32
    scf.if %11 {
      %c0_10 = arith.constant 0 : index
      %c0_11 = arith.constant 0 : index
      %12 = vector.load %arg8[%c0_10, %c0_11] : memref<32x128xf32, #tpu.memory_space<vmem>>, vector<32x128xf32>
      %c0_12 = arith.constant 0 : index
      %c0_13 = arith.constant 0 : index
      %13 = vector.load %arg5[%c0_12, %c0_13] : memref<1x128xf32, #tpu.memory_space<vmem>>, vector<1x128xf32>
      %14 = vector.broadcast %13 : vector<1x128xf32> to vector<32x128xf32>
      %15 = arith.mulf %12, %14 : vector<32x128xf32>
      %c0_14 = arith.constant 0 : index
      %c0_15 = arith.constant 0 : index
      %16 = vector.load %arg6[%c0_14, %c0_15] : memref<1x128xf32, #tpu.memory_space<vmem>>, vector<1x128xf32>
      %17 = vector.broadcast %16 : vector<1x128xf32> to vector<32x128xf32>
      %18 = arith.addf %15, %17 : vector<32x128xf32>
      %cst_16 = arith.constant 0.000000e+00 : f32
      %19 = vector.broadcast %cst_16 : f32 to vector<32x128xf32>
      %20 = arith.maximumf %18, %19 : vector<32x128xf32>
      %c0_17 = arith.constant 0 : index
      %c0_18 = arith.constant 0 : index
      %21 = vector.load %arg7[%c0_17, %c0_18] : memref<32x128xf32, #tpu.memory_space<vmem>>, vector<32x128xf32>
      tpu.vector_store %arg7[%c0_17, %c0_18], %20 {strides = array<i32>} : memref<32x128xf32, #tpu.memory_space<vmem>>, vector<32x128xf32>,
    } else {
    }
    return
  }
  func.func @transform_0(%arg0: i32, %arg1: i32, %arg2: i32) -> (i32, i32) {
    %c0_i32 = arith.constant 0 : i32
    return %arg0, %arg2 : i32, i32
  }
  func.func @transform_1(%arg0: i32, %arg1: i32, %arg2: i32) -> (i32, i32) {
    %c0_i32 = arith.constant 0 : i32
    return %arg2, %arg1 : i32, i32
  }
  func.func @transform_2(%arg0: i32, %arg1: i32, %arg2: i32) -> (i32, i32) {
    %c0_i32 = arith.constant 0 : i32
    %c0_i32_0 = arith.constant 0 : i32
    return %c0_i32, %arg1 : i32, i32
  }
  func.func @transform_3(%arg0: i32, %arg1: i32, %arg2: i32) -> (i32, i32) {
    %c0_i32 = arith.constant 0 : i32
    %c0_i32_0 = arith.constant 0 : i32
    return %c0_i32, %arg1 : i32, i32
  }
  func.func @transform_4(%arg0: i32, %arg1: i32, %arg2: i32) -> (i32, i32) {
    %c0_i32 = arith.constant 0 : i32
    return %arg0, %arg1 : i32, i32
  }
}

module attributes {stable_mosaic.version = 11 : i64} {
  func.func @_fused_matmul_kernel(%arg0: i32, %arg1: i32, %arg2: i32, %arg3: memref<32x128xbf16, #tpu.memory_space<vmem>>, %arg4: memref<128x128xbf16, #tpu.memory_space<vmem>>, %arg5: memref<1x128xf32, #tpu.memory_space<vmem>>, %arg6: memref<1x128xf32, #tpu.memory_space<vmem>>, %arg7: memref<32x128xf32, #tpu.memory_space<vmem>>, %arg8: memref<32x128xf32, #tpu.memory_space<vmem>>) attributes {dimension_semantics = [#tpu.dimension_semantics<parallel>, #tpu.dimension_semantics<parallel>, #tpu.dimension_semantics<arbitrary>], iteration_bounds = array<i64: 1, 1, 1>, scalar_prefetch = 0 : i64, scratch_operands = 1 : i64, tpu.core_type = #tpu.core_type<tc>, window_params = [{transform_indices = @transform_0, window_bounds = array<i64: 32, 128>}, {transform_indices = @transform_1, window_bounds = array<i64: 128, 128>}, {transform_indices = @transform_2, window_bounds = array<i64: 1, 128>}, {transform_indices = @transform_3, window_bounds = array<i64: 1, 128>}, {transform_indices = @transform_4, window_bounds = array<i64: 32, 128>}]} {
    %c0_i32 = arith.constant 0 : i32
    %0 = arith.cmpi eq, %arg2, %c0_i32 : i32
    %1 = arith.extui %0 : i1 to i32
    %c0_i32_0 = arith.constant 0 : i32
    %2 = arith.cmpi ne, %1, %c0_i32_0 : i32
    scf.if %2 {
      %cst_10 = arith.constant 0.000000e+00 : f32
      %12 = vector.broadcast %cst_10 : f32 to vector<32x128xf32>
      %c0_11 = arith.constant 0 : index
      %c0_12 = arith.constant 0 : index
      %13 = vector.load %arg8[%c0_11, %c0_12] : memref<32x128xf32, #tpu.memory_space<vmem>>, vector<32x128xf32>
      tpu.vector_store %arg8[%c0_11, %c0_12], %12 {strides = array<i32>} : memref<32x128xf32, #tpu.memory_space<vmem>>, vector<32x128xf32>,
    } else {
    }
    %c0 = arith.constant 0 : index
    %c0_1 = arith.constant 0 : index
    %3 = vector.load %arg8[%c0, %c0_1] : memref<32x128xf32, #tpu.memory_space<vmem>>, vector<32x128xf32>
    %c0_2 = arith.constant 0 : index
    %c0_3 = arith.constant 0 : index
    %4 = vector.load %arg3[%c0_2, %c0_3] : memref<32x128xbf16, #tpu.memory_space<vmem>>, vector<32x128xbf16>
    %c0_4 = arith.constant 0 : index
    %c0_5 = arith.constant 0 : index
    %5 = vector.load %arg4[%c0_4, %c0_5] : memref<128x128xbf16, #tpu.memory_space<vmem>>, vector<128x128xbf16>
    %cst = arith.constant dense<0.000000e+00> : vector<32x128xf32>
    %6 = tpu.matmul %4, %5, %cst {dimension_numbers = #tpu.dot_dimension_numbers<[1], [0], [0], [1], [0, 0, 1, 1], [], []>} : vector<32x128xbf16>, vector<128x128xbf16>, vector<32x128xf32> -> vector<32x128xf32>
    %7 = arith.addf %3, %6 : vector<32x128xf32>
    %c0_6 = arith.constant 0 : index
    %c0_7 = arith.constant 0 : index
    %8 = vector.load %arg8[%c0_6, %c0_7] : memref<32x128xf32, #tpu.memory_space<vmem>>, vector<32x128xf32>
    tpu.vector_store %arg8[%c0_6, %c0_7], %7 {strides = array<i32>} : memref<32x128xf32, #tpu.memory_space<vmem>>, vector<32x128xf32>,
    %c0_i32_8 = arith.constant 0 : i32
    %9 = arith.cmpi eq, %arg2, %c0_i32_8 : i32
    %10 = arith.extui %9 : i1 to i32
    %c0_i32_9 = arith.constant 0 : i32
    %11 = arith.cmpi ne, %10, %c0_i32_9 : i32
    scf.if %11 {
      %c0_10 = arith.constant 0 : index
      %c0_11 = arith.constant 0 : index
      %12 = vector.load %arg8[%c0_10, %c0_11] : memref<32x128xf32, #tpu.memory_space<vmem>>, vector<32x128xf32>
      %c0_12 = arith.constant 0 : index
      %c0_13 = arith.constant 0 : index
      %13 = vector.load %arg5[%c0_12, %c0_13] : memref<1x128xf32, #tpu.memory_space<vmem>>, vector<1x128xf32>
      %14 = vector.broadcast %13 : vector<1x128xf32> to vector<32x128xf32>
      %15 = arith.mulf %12, %14 : vector<32x128xf32>
      %c0_14 = arith.constant 0 : index
      %c0_15 = arith.constant 0 : index
      %16 = vector.load %arg6[%c0_14, %c0_15] : memref<1x128xf32, #tpu.memory_space<vmem>>, vector<1x128xf32>
      %17 = vector.broadcast %16 : vector<1x128xf32> to vector<32x128xf32>
      %18 = arith.addf %15, %17 : vector<32x128xf32>
      %c0_16 = arith.constant 0 : index
      %c0_17 = arith.constant 0 : index
      %19 = vector.load %arg7[%c0_16, %c0_17] : memref<32x128xf32, #tpu.memory_space<vmem>>, vector<32x128xf32>
      tpu.vector_store %arg7[%c0_16, %c0_17], %18 {strides = array<i32>} : memref<32x128xf32, #tpu.memory_space<vmem>>, vector<32x128xf32>,
    } else {
    }
    return
  }
  func.func @transform_0(%arg0: i32, %arg1: i32, %arg2: i32) -> (i32, i32) {
    %c0_i32 = arith.constant 0 : i32
    return %arg0, %arg2 : i32, i32
  }
  func.func @transform_1(%arg0: i32, %arg1: i32, %arg2: i32) -> (i32, i32) {
    %c0_i32 = arith.constant 0 : i32
    return %arg2, %arg1 : i32, i32
  }
  func.func @transform_2(%arg0: i32, %arg1: i32, %arg2: i32) -> (i32, i32) {
    %c0_i32 = arith.constant 0 : i32
    %c0_i32_0 = arith.constant 0 : i32
    return %c0_i32, %arg1 : i32, i32
  }
  func.func @transform_3(%arg0: i32, %arg1: i32, %arg2: i32) -> (i32, i32) {
    %c0_i32 = arith.constant 0 : i32
    %c0_i32_0 = arith.constant 0 : i32
    return %c0_i32, %arg1 : i32, i32
  }
  func.func @transform_4(%arg0: i32, %arg1: i32, %arg2: i32) -> (i32, i32) {
    %c0_i32 = arith.constant 0 : i32
    return %arg0, %arg1 : i32, i32
  }
}

module attributes {stable_mosaic.version = 11 : i64} {
  func.func @_fused_matmul_kernel(%arg0: i32, %arg1: i32, %arg2: i32, %arg3: memref<32x384xbf16, #tpu.memory_space<vmem>>, %arg4: memref<384x128xbf16, #tpu.memory_space<vmem>>, %arg5: memref<1x128xf32, #tpu.memory_space<vmem>>, %arg6: memref<1x128xf32, #tpu.memory_space<vmem>>, %arg7: memref<32x128xf32, #tpu.memory_space<vmem>>, %arg8: memref<32x128xf32, #tpu.memory_space<vmem>>, %arg9: memref<32x128xf32, #tpu.memory_space<vmem>>) attributes {dimension_semantics = [#tpu.dimension_semantics<parallel>, #tpu.dimension_semantics<parallel>, #tpu.dimension_semantics<arbitrary>], iteration_bounds = array<i64: 1, 1, 3>, scalar_prefetch = 0 : i64, scratch_operands = 1 : i64, tpu.core_type = #tpu.core_type<tc>, window_params = [{transform_indices = @transform_0, window_bounds = array<i64: 32, 384>}, {transform_indices = @transform_1, window_bounds = array<i64: 384, 128>}, {transform_indices = @transform_2, window_bounds = array<i64: 1, 128>}, {transform_indices = @transform_3, window_bounds = array<i64: 1, 128>}, {transform_indices = @transform_4, window_bounds = array<i64: 32, 128>}, {transform_indices = @transform_5, window_bounds = array<i64: 32, 128>}]} {
    %c0_i32 = arith.constant 0 : i32
    %0 = arith.cmpi eq, %arg2, %c0_i32 : i32
    %1 = arith.extui %0 : i1 to i32
    %c0_i32_0 = arith.constant 0 : i32
    %2 = arith.cmpi ne, %1, %c0_i32_0 : i32
    scf.if %2 {
      %cst_9 = arith.constant 0.000000e+00 : f32
      %12 = vector.broadcast %cst_9 : f32 to vector<32x128xf32>
      %c0_10 = arith.constant 0 : index
      %c0_11 = arith.constant 0 : index
      %13 = vector.load %arg9[%c0_10, %c0_11] : memref<32x128xf32, #tpu.memory_space<vmem>>, vector<32x128xf32>
      tpu.vector_store %arg9[%c0_10, %c0_11], %12 {strides = array<i32>} : memref<32x128xf32, #tpu.memory_space<vmem>>, vector<32x128xf32>,
    } else {
    }
    %c0 = arith.constant 0 : index
    %c0_1 = arith.constant 0 : index
    %3 = vector.load %arg9[%c0, %c0_1] : memref<32x128xf32, #tpu.memory_space<vmem>>, vector<32x128xf32>
    %c0_2 = arith.constant 0 : index
    %c0_3 = arith.constant 0 : index
    %4 = vector.load %arg3[%c0_2, %c0_3] : memref<32x384xbf16, #tpu.memory_space<vmem>>, vector<32x384xbf16>
    %c0_4 = arith.constant 0 : index
    %c0_5 = arith.constant 0 : index
    %5 = vector.load %arg4[%c0_4, %c0_5] : memref<384x128xbf16, #tpu.memory_space<vmem>>, vector<384x128xbf16>
    %cst = arith.constant dense<0.000000e+00> : vector<32x128xf32>
    %6 = tpu.matmul %4, %5, %cst {dimension_numbers = #tpu.dot_dimension_numbers<[1], [0], [0], [1], [0, 0, 1, 1], [], []>} : vector<32x384xbf16>, vector<384x128xbf16>, vector<32x128xf32> -> vector<32x128xf32>
    %7 = arith.addf %3, %6 : vector<32x128xf32>
    %c0_6 = arith.constant 0 : index
    %c0_7 = arith.constant 0 : index
    %8 = vector.load %arg9[%c0_6, %c0_7] : memref<32x128xf32, #tpu.memory_space<vmem>>, vector<32x128xf32>
    tpu.vector_store %arg9[%c0_6, %c0_7], %7 {strides = array<i32>} : memref<32x128xf32, #tpu.memory_space<vmem>>, vector<32x128xf32>,
    %c2_i32 = arith.constant 2 : i32
    %9 = arith.cmpi eq, %arg2, %c2_i32 : i32
    %10 = arith.extui %9 : i1 to i32
    %c0_i32_8 = arith.constant 0 : i32
    %11 = arith.cmpi ne, %10, %c0_i32_8 : i32
    scf.if %11 {
      %c0_9 = arith.constant 0 : index
      %c0_10 = arith.constant 0 : index
      %12 = vector.load %arg9[%c0_9, %c0_10] : memref<32x128xf32, #tpu.memory_space<vmem>>, vector<32x128xf32>
      %c0_11 = arith.constant 0 : index
      %c0_12 = arith.constant 0 : index
      %13 = vector.load %arg5[%c0_11, %c0_12] : memref<1x128xf32, #tpu.memory_space<vmem>>, vector<1x128xf32>
      %14 = vector.broadcast %13 : vector<1x128xf32> to vector<32x128xf32>
      %15 = arith.mulf %12, %14 : vector<32x128xf32>
      %c0_13 = arith.constant 0 : index
      %c0_14 = arith.constant 0 : index
      %16 = vector.load %arg6[%c0_13, %c0_14] : memref<1x128xf32, #tpu.memory_space<vmem>>, vector<1x128xf32>
      %17 = vector.broadcast %16 : vector<1x128xf32> to vector<32x128xf32>
      %18 = arith.addf %15, %17 : vector<32x128xf32>
      %cst_15 = arith.constant 0.000000e+00 : f32
      %19 = vector.broadcast %cst_15 : f32 to vector<32x128xf32>
      %20 = arith.maximumf %18, %19 : vector<32x128xf32>
      %c0_16 = arith.constant 0 : index
      %c0_17 = arith.constant 0 : index
      %21 = vector.load %arg7[%c0_16, %c0_17] : memref<32x128xf32, #tpu.memory_space<vmem>>, vector<32x128xf32>
      %22 = arith.addf %20, %21 : vector<32x128xf32>
      %cst_18 = arith.constant 0.000000e+00 : f32
      %23 = vector.broadcast %cst_18 : f32 to vector<32x128xf32>
      %24 = arith.maximumf %22, %23 : vector<32x128xf32>
      %c0_19 = arith.constant 0 : index
      %c0_20 = arith.constant 0 : index
      %25 = vector.load %arg8[%c0_19, %c0_20] : memref<32x128xf32, #tpu.memory_space<vmem>>, vector<32x128xf32>
      tpu.vector_store %arg8[%c0_19, %c0_20], %24 {strides = array<i32>} : memref<32x128xf32, #tpu.memory_space<vmem>>, vector<32x128xf32>,
    } else {
    }
    return
  }
  func.func @transform_0(%arg0: i32, %arg1: i32, %arg2: i32) -> (i32, i32) {
    %c0_i32 = arith.constant 0 : i32
    return %arg0, %arg2 : i32, i32
  }
  func.func @transform_1(%arg0: i32, %arg1: i32, %arg2: i32) -> (i32, i32) {
    %c0_i32 = arith.constant 0 : i32
    return %arg2, %arg1 : i32, i32
  }
  func.func @transform_2(%arg0: i32, %arg1: i32, %arg2: i32) -> (i32, i32) {
    %c0_i32 = arith.constant 0 : i32
    %c0_i32_0 = arith.constant 0 : i32
    return %c0_i32, %arg1 : i32, i32
  }
  func.func @transform_3(%arg0: i32, %arg1: i32, %arg2: i32) -> (i32, i32) {
    %c0_i32 = arith.constant 0 : i32
    %c0_i32_0 = arith.constant 0 : i32
    return %c0_i32, %arg1 : i32, i32
  }
  func.func @transform_4(%arg0: i32, %arg1: i32, %arg2: i32) -> (i32, i32) {
    %c0_i32 = arith.constant 0 : i32
    return %arg0, %arg1 : i32, i32
  }
  func.func @transform_5(%arg0: i32, %arg1: i32, %arg2: i32) -> (i32, i32) {
    %c0_i32 = arith.constant 0 : i32
    return %arg0, %arg1 : i32, i32
  }
}

module attributes {stable_mosaic.version = 11 : i64} {
  func.func @_fused_matmul_kernel(%arg0: i32, %arg1: i32, %arg2: i32, %arg3: memref<8x384xbf16, #tpu.memory_space<vmem>>, %arg4: memref<384x256xbf16, #tpu.memory_space<vmem>>, %arg5: memref<1x256xf32, #tpu.memory_space<vmem>>, %arg6: memref<1x256xf32, #tpu.memory_space<vmem>>, %arg7: memref<8x256xf32, #tpu.memory_space<vmem>>, %arg8: memref<8x256xf32, #tpu.memory_space<vmem>>) attributes {dimension_semantics = [#tpu.dimension_semantics<parallel>, #tpu.dimension_semantics<parallel>, #tpu.dimension_semantics<arbitrary>], iteration_bounds = array<i64: 1, 1, 3>, scalar_prefetch = 0 : i64, scratch_operands = 1 : i64, tpu.core_type = #tpu.core_type<tc>, window_params = [{transform_indices = @transform_0, window_bounds = array<i64: 8, 384>}, {transform_indices = @transform_1, window_bounds = array<i64: 384, 256>}, {transform_indices = @transform_2, window_bounds = array<i64: 1, 256>}, {transform_indices = @transform_3, window_bounds = array<i64: 1, 256>}, {transform_indices = @transform_4, window_bounds = array<i64: 8, 256>}]} {
    %c0_i32 = arith.constant 0 : i32
    %0 = arith.cmpi eq, %arg2, %c0_i32 : i32
    %1 = arith.extui %0 : i1 to i32
    %c0_i32_0 = arith.constant 0 : i32
    %2 = arith.cmpi ne, %1, %c0_i32_0 : i32
    scf.if %2 {
      %cst_9 = arith.constant 0.000000e+00 : f32
      %12 = vector.broadcast %cst_9 : f32 to vector<8x256xf32>
      %c0_10 = arith.constant 0 : index
      %c0_11 = arith.constant 0 : index
      %13 = vector.load %arg8[%c0_10, %c0_11] : memref<8x256xf32, #tpu.memory_space<vmem>>, vector<8x256xf32>
      tpu.vector_store %arg8[%c0_10, %c0_11], %12 {strides = array<i32>} : memref<8x256xf32, #tpu.memory_space<vmem>>, vector<8x256xf32>,
    } else {
    }
    %c0 = arith.constant 0 : index
    %c0_1 = arith.constant 0 : index
    %3 = vector.load %arg8[%c0, %c0_1] : memref<8x256xf32, #tpu.memory_space<vmem>>, vector<8x256xf32>
    %c0_2 = arith.constant 0 : index
    %c0_3 = arith.constant 0 : index
    %4 = vector.load %arg3[%c0_2, %c0_3] : memref<8x384xbf16, #tpu.memory_space<vmem>>, vector<8x384xbf16>
    %c0_4 = arith.constant 0 : index
    %c0_5 = arith.constant 0 : index
    %5 = vector.load %arg4[%c0_4, %c0_5] : memref<384x256xbf16, #tpu.memory_space<vmem>>, vector<384x256xbf16>
    %cst = arith.constant dense<0.000000e+00> : vector<8x256xf32>
    %6 = tpu.matmul %4, %5, %cst {dimension_numbers = #tpu.dot_dimension_numbers<[1], [0], [0], [1], [0, 0, 1, 1], [], []>} : vector<8x384xbf16>, vector<384x256xbf16>, vector<8x256xf32> -> vector<8x256xf32>
    %7 = arith.addf %3, %6 : vector<8x256xf32>
    %c0_6 = arith.constant 0 : index
    %c0_7 = arith.constant 0 : index
    %8 = vector.load %arg8[%c0_6, %c0_7] : memref<8x256xf32, #tpu.memory_space<vmem>>, vector<8x256xf32>
    tpu.vector_store %arg8[%c0_6, %c0_7], %7 {strides = array<i32>} : memref<8x256xf32, #tpu.memory_space<vmem>>, vector<8x256xf32>,
    %c2_i32 = arith.constant 2 : i32
    %9 = arith.cmpi eq, %arg2, %c2_i32 : i32
    %10 = arith.extui %9 : i1 to i32
    %c0_i32_8 = arith.constant 0 : i32
    %11 = arith.cmpi ne, %10, %c0_i32_8 : i32
    scf.if %11 {
      %c0_9 = arith.constant 0 : index
      %c0_10 = arith.constant 0 : index
      %12 = vector.load %arg8[%c0_9, %c0_10] : memref<8x256xf32, #tpu.memory_space<vmem>>, vector<8x256xf32>
      %c0_11 = arith.constant 0 : index
      %c0_12 = arith.constant 0 : index
      %13 = vector.load %arg5[%c0_11, %c0_12] : memref<1x256xf32, #tpu.memory_space<vmem>>, vector<1x256xf32>
      %14 = vector.broadcast %13 : vector<1x256xf32> to vector<8x256xf32>
      %15 = arith.mulf %12, %14 : vector<8x256xf32>
      %c0_13 = arith.constant 0 : index
      %c0_14 = arith.constant 0 : index
      %16 = vector.load %arg6[%c0_13, %c0_14] : memref<1x256xf32, #tpu.memory_space<vmem>>, vector<1x256xf32>
      %17 = vector.broadcast %16 : vector<1x256xf32> to vector<8x256xf32>
      %18 = arith.addf %15, %17 : vector<8x256xf32>
      %cst_15 = arith.constant 0.000000e+00 : f32
      %19 = vector.broadcast %cst_15 : f32 to vector<8x256xf32>
      %20 = arith.maximumf %18, %19 : vector<8x256xf32>
      %c0_16 = arith.constant 0 : index
      %c0_17 = arith.constant 0 : index
      %21 = vector.load %arg7[%c0_16, %c0_17] : memref<8x256xf32, #tpu.memory_space<vmem>>, vector<8x256xf32>
      tpu.vector_store %arg7[%c0_16, %c0_17], %20 {strides = array<i32>} : memref<8x256xf32, #tpu.memory_space<vmem>>, vector<8x256xf32>,
    } else {
    }
    return
  }
  func.func @transform_0(%arg0: i32, %arg1: i32, %arg2: i32) -> (i32, i32) {
    %c0_i32 = arith.constant 0 : i32
    return %arg0, %arg2 : i32, i32
  }
  func.func @transform_1(%arg0: i32, %arg1: i32, %arg2: i32) -> (i32, i32) {
    %c0_i32 = arith.constant 0 : i32
    return %arg2, %arg1 : i32, i32
  }
  func.func @transform_2(%arg0: i32, %arg1: i32, %arg2: i32) -> (i32, i32) {
    %c0_i32 = arith.constant 0 : i32
    %c0_i32_0 = arith.constant 0 : i32
    return %c0_i32, %arg1 : i32, i32
  }
  func.func @transform_3(%arg0: i32, %arg1: i32, %arg2: i32) -> (i32, i32) {
    %c0_i32 = arith.constant 0 : i32
    %c0_i32_0 = arith.constant 0 : i32
    return %c0_i32, %arg1 : i32, i32
  }
  func.func @transform_4(%arg0: i32, %arg1: i32, %arg2: i32) -> (i32, i32) {
    %c0_i32 = arith.constant 0 : i32
    return %arg0, %arg1 : i32, i32
  }
}

module attributes {stable_mosaic.version = 11 : i64} {
  func.func @_fused_matmul_kernel(%arg0: i32, %arg1: i32, %arg2: i32, %arg3: memref<8x128xbf16, #tpu.memory_space<vmem>>, %arg4: memref<128x256xbf16, #tpu.memory_space<vmem>>, %arg5: memref<1x256xf32, #tpu.memory_space<vmem>>, %arg6: memref<1x256xf32, #tpu.memory_space<vmem>>, %arg7: memref<8x256xf32, #tpu.memory_space<vmem>>, %arg8: memref<8x256xf32, #tpu.memory_space<vmem>>) attributes {dimension_semantics = [#tpu.dimension_semantics<parallel>, #tpu.dimension_semantics<parallel>, #tpu.dimension_semantics<arbitrary>], iteration_bounds = array<i64: 1, 1, 1>, scalar_prefetch = 0 : i64, scratch_operands = 1 : i64, tpu.core_type = #tpu.core_type<tc>, window_params = [{transform_indices = @transform_0, window_bounds = array<i64: 8, 128>}, {transform_indices = @transform_1, window_bounds = array<i64: 128, 256>}, {transform_indices = @transform_2, window_bounds = array<i64: 1, 256>}, {transform_indices = @transform_3, window_bounds = array<i64: 1, 256>}, {transform_indices = @transform_4, window_bounds = array<i64: 8, 256>}]} {
    %c0_i32 = arith.constant 0 : i32
    %0 = arith.cmpi eq, %arg2, %c0_i32 : i32
    %1 = arith.extui %0 : i1 to i32
    %c0_i32_0 = arith.constant 0 : i32
    %2 = arith.cmpi ne, %1, %c0_i32_0 : i32
    scf.if %2 {
      %cst_10 = arith.constant 0.000000e+00 : f32
      %12 = vector.broadcast %cst_10 : f32 to vector<8x256xf32>
      %c0_11 = arith.constant 0 : index
      %c0_12 = arith.constant 0 : index
      %13 = vector.load %arg8[%c0_11, %c0_12] : memref<8x256xf32, #tpu.memory_space<vmem>>, vector<8x256xf32>
      tpu.vector_store %arg8[%c0_11, %c0_12], %12 {strides = array<i32>} : memref<8x256xf32, #tpu.memory_space<vmem>>, vector<8x256xf32>,
    } else {
    }
    %c0 = arith.constant 0 : index
    %c0_1 = arith.constant 0 : index
    %3 = vector.load %arg8[%c0, %c0_1] : memref<8x256xf32, #tpu.memory_space<vmem>>, vector<8x256xf32>
    %c0_2 = arith.constant 0 : index
    %c0_3 = arith.constant 0 : index
    %4 = vector.load %arg3[%c0_2, %c0_3] : memref<8x128xbf16, #tpu.memory_space<vmem>>, vector<8x128xbf16>
    %c0_4 = arith.constant 0 : index
    %c0_5 = arith.constant 0 : index
    %5 = vector.load %arg4[%c0_4, %c0_5] : memref<128x256xbf16, #tpu.memory_space<vmem>>, vector<128x256xbf16>
    %cst = arith.constant dense<0.000000e+00> : vector<8x256xf32>
    %6 = tpu.matmul %4, %5, %cst {dimension_numbers = #tpu.dot_dimension_numbers<[1], [0], [0], [1], [0, 0, 1, 1], [], []>} : vector<8x128xbf16>, vector<128x256xbf16>, vector<8x256xf32> -> vector<8x256xf32>
    %7 = arith.addf %3, %6 : vector<8x256xf32>
    %c0_6 = arith.constant 0 : index
    %c0_7 = arith.constant 0 : index
    %8 = vector.load %arg8[%c0_6, %c0_7] : memref<8x256xf32, #tpu.memory_space<vmem>>, vector<8x256xf32>
    tpu.vector_store %arg8[%c0_6, %c0_7], %7 {strides = array<i32>} : memref<8x256xf32, #tpu.memory_space<vmem>>, vector<8x256xf32>,
    %c0_i32_8 = arith.constant 0 : i32
    %9 = arith.cmpi eq, %arg2, %c0_i32_8 : i32
    %10 = arith.extui %9 : i1 to i32
    %c0_i32_9 = arith.constant 0 : i32
    %11 = arith.cmpi ne, %10, %c0_i32_9 : i32
    scf.if %11 {
      %c0_10 = arith.constant 0 : index
      %c0_11 = arith.constant 0 : index
      %12 = vector.load %arg8[%c0_10, %c0_11] : memref<8x256xf32, #tpu.memory_space<vmem>>, vector<8x256xf32>
      %c0_12 = arith.constant 0 : index
      %c0_13 = arith.constant 0 : index
      %13 = vector.load %arg5[%c0_12, %c0_13] : memref<1x256xf32, #tpu.memory_space<vmem>>, vector<1x256xf32>
      %14 = vector.broadcast %13 : vector<1x256xf32> to vector<8x256xf32>
      %15 = arith.mulf %12, %14 : vector<8x256xf32>
      %c0_14 = arith.constant 0 : index
      %c0_15 = arith.constant 0 : index
      %16 = vector.load %arg6[%c0_14, %c0_15] : memref<1x256xf32, #tpu.memory_space<vmem>>, vector<1x256xf32>
      %17 = vector.broadcast %16 : vector<1x256xf32> to vector<8x256xf32>
      %18 = arith.addf %15, %17 : vector<8x256xf32>
      %c0_16 = arith.constant 0 : index
      %c0_17 = arith.constant 0 : index
      %19 = vector.load %arg7[%c0_16, %c0_17] : memref<8x256xf32, #tpu.memory_space<vmem>>, vector<8x256xf32>
      tpu.vector_store %arg7[%c0_16, %c0_17], %18 {strides = array<i32>} : memref<8x256xf32, #tpu.memory_space<vmem>>, vector<8x256xf32>,
    } else {
    }
    return
  }
  func.func @transform_0(%arg0: i32, %arg1: i32, %arg2: i32) -> (i32, i32) {
    %c0_i32 = arith.constant 0 : i32
    return %arg0, %arg2 : i32, i32
  }
  func.func @transform_1(%arg0: i32, %arg1: i32, %arg2: i32) -> (i32, i32) {
    %c0_i32 = arith.constant 0 : i32
    return %arg2, %arg1 : i32, i32
  }
  func.func @transform_2(%arg0: i32, %arg1: i32, %arg2: i32) -> (i32, i32) {
    %c0_i32 = arith.constant 0 : i32
    %c0_i32_0 = arith.constant 0 : i32
    return %c0_i32, %arg1 : i32, i32
  }
  func.func @transform_3(%arg0: i32, %arg1: i32, %arg2: i32) -> (i32, i32) {
    %c0_i32 = arith.constant 0 : i32
    %c0_i32_0 = arith.constant 0 : i32
    return %c0_i32, %arg1 : i32, i32
  }
  func.func @transform_4(%arg0: i32, %arg1: i32, %arg2: i32) -> (i32, i32) {
    %c0_i32 = arith.constant 0 : i32
    return %arg0, %arg1 : i32, i32
  }
}

module attributes {stable_mosaic.version = 11 : i64} {
  func.func @_fused_matmul_kernel(%arg0: i32, %arg1: i32, %arg2: i32, %arg3: memref<8x768xbf16, #tpu.memory_space<vmem>>, %arg4: memref<768x256xbf16, #tpu.memory_space<vmem>>, %arg5: memref<1x256xf32, #tpu.memory_space<vmem>>, %arg6: memref<1x256xf32, #tpu.memory_space<vmem>>, %arg7: memref<8x256xf32, #tpu.memory_space<vmem>>, %arg8: memref<8x256xf32, #tpu.memory_space<vmem>>, %arg9: memref<8x256xf32, #tpu.memory_space<vmem>>) attributes {dimension_semantics = [#tpu.dimension_semantics<parallel>, #tpu.dimension_semantics<parallel>, #tpu.dimension_semantics<arbitrary>], iteration_bounds = array<i64: 1, 1, 3>, scalar_prefetch = 0 : i64, scratch_operands = 1 : i64, tpu.core_type = #tpu.core_type<tc>, window_params = [{transform_indices = @transform_0, window_bounds = array<i64: 8, 768>}, {transform_indices = @transform_1, window_bounds = array<i64: 768, 256>}, {transform_indices = @transform_2, window_bounds = array<i64: 1, 256>}, {transform_indices = @transform_3, window_bounds = array<i64: 1, 256>}, {transform_indices = @transform_4, window_bounds = array<i64: 8, 256>}, {transform_indices = @transform_5, window_bounds = array<i64: 8, 256>}]} {
    %c0_i32 = arith.constant 0 : i32
    %0 = arith.cmpi eq, %arg2, %c0_i32 : i32
    %1 = arith.extui %0 : i1 to i32
    %c0_i32_0 = arith.constant 0 : i32
    %2 = arith.cmpi ne, %1, %c0_i32_0 : i32
    scf.if %2 {
      %cst_9 = arith.constant 0.000000e+00 : f32
      %12 = vector.broadcast %cst_9 : f32 to vector<8x256xf32>
      %c0_10 = arith.constant 0 : index
      %c0_11 = arith.constant 0 : index
      %13 = vector.load %arg9[%c0_10, %c0_11] : memref<8x256xf32, #tpu.memory_space<vmem>>, vector<8x256xf32>
      tpu.vector_store %arg9[%c0_10, %c0_11], %12 {strides = array<i32>} : memref<8x256xf32, #tpu.memory_space<vmem>>, vector<8x256xf32>,
    } else {
    }
    %c0 = arith.constant 0 : index
    %c0_1 = arith.constant 0 : index
    %3 = vector.load %arg9[%c0, %c0_1] : memref<8x256xf32, #tpu.memory_space<vmem>>, vector<8x256xf32>
    %c0_2 = arith.constant 0 : index
    %c0_3 = arith.constant 0 : index
    %4 = vector.load %arg3[%c0_2, %c0_3] : memref<8x768xbf16, #tpu.memory_space<vmem>>, vector<8x768xbf16>
    %c0_4 = arith.constant 0 : index
    %c0_5 = arith.constant 0 : index
    %5 = vector.load %arg4[%c0_4, %c0_5] : memref<768x256xbf16, #tpu.memory_space<vmem>>, vector<768x256xbf16>
    %cst = arith.constant dense<0.000000e+00> : vector<8x256xf32>
    %6 = tpu.matmul %4, %5, %cst {dimension_numbers = #tpu.dot_dimension_numbers<[1], [0], [0], [1], [0, 0, 1, 1], [], []>} : vector<8x768xbf16>, vector<768x256xbf16>, vector<8x256xf32> -> vector<8x256xf32>
    %7 = arith.addf %3, %6 : vector<8x256xf32>
    %c0_6 = arith.constant 0 : index
    %c0_7 = arith.constant 0 : index
    %8 = vector.load %arg9[%c0_6, %c0_7] : memref<8x256xf32, #tpu.memory_space<vmem>>, vector<8x256xf32>
    tpu.vector_store %arg9[%c0_6, %c0_7], %7 {strides = array<i32>} : memref<8x256xf32, #tpu.memory_space<vmem>>, vector<8x256xf32>,
    %c2_i32 = arith.constant 2 : i32
    %9 = arith.cmpi eq, %arg2, %c2_i32 : i32
    %10 = arith.extui %9 : i1 to i32
    %c0_i32_8 = arith.constant 0 : i32
    %11 = arith.cmpi ne, %10, %c0_i32_8 : i32
    scf.if %11 {
      %c0_9 = arith.constant 0 : index
      %c0_10 = arith.constant 0 : index
      %12 = vector.load %arg9[%c0_9, %c0_10] : memref<8x256xf32, #tpu.memory_space<vmem>>, vector<8x256xf32>
      %c0_11 = arith.constant 0 : index
      %c0_12 = arith.constant 0 : index
      %13 = vector.load %arg5[%c0_11, %c0_12] : memref<1x256xf32, #tpu.memory_space<vmem>>, vector<1x256xf32>
      %14 = vector.broadcast %13 : vector<1x256xf32> to vector<8x256xf32>
      %15 = arith.mulf %12, %14 : vector<8x256xf32>
      %c0_13 = arith.constant 0 : index
      %c0_14 = arith.constant 0 : index
      %16 = vector.load %arg6[%c0_13, %c0_14] : memref<1x256xf32, #tpu.memory_space<vmem>>, vector<1x256xf32>
      %17 = vector.broadcast %16 : vector<1x256xf32> to vector<8x256xf32>
      %18 = arith.addf %15, %17 : vector<8x256xf32>
      %cst_15 = arith.constant 0.000000e+00 : f32
      %19 = vector.broadcast %cst_15 : f32 to vector<8x256xf32>
      %20 = arith.maximumf %18, %19 : vector<8x256xf32>
      %c0_16 = arith.constant 0 : index
      %c0_17 = arith.constant 0 : index
      %21 = vector.load %arg7[%c0_16, %c0_17] : memref<8x256xf32, #tpu.memory_space<vmem>>, vector<8x256xf32>
      %22 = arith.addf %20, %21 : vector<8x256xf32>
      %cst_18 = arith.constant 0.000000e+00 : f32
      %23 = vector.broadcast %cst_18 : f32 to vector<8x256xf32>
      %24 = arith.maximumf %22, %23 : vector<8x256xf32>
      %c0_19 = arith.constant 0 : index
      %c0_20 = arith.constant 0 : index
      %25 = vector.load %arg8[%c0_19, %c0_20] : memref<8x256xf32, #tpu.memory_space<vmem>>, vector<8x256xf32>
      tpu.vector_store %arg8[%c0_19, %c0_20], %24 {strides = array<i32>} : memref<8x256xf32, #tpu.memory_space<vmem>>, vector<8x256xf32>,
    } else {
    }
    return
  }
  func.func @transform_0(%arg0: i32, %arg1: i32, %arg2: i32) -> (i32, i32) {
    %c0_i32 = arith.constant 0 : i32
    return %arg0, %arg2 : i32, i32
  }
  func.func @transform_1(%arg0: i32, %arg1: i32, %arg2: i32) -> (i32, i32) {
    %c0_i32 = arith.constant 0 : i32
    return %arg2, %arg1 : i32, i32
  }
  func.func @transform_2(%arg0: i32, %arg1: i32, %arg2: i32) -> (i32, i32) {
    %c0_i32 = arith.constant 0 : i32
    %c0_i32_0 = arith.constant 0 : i32
    return %c0_i32, %arg1 : i32, i32
  }
  func.func @transform_3(%arg0: i32, %arg1: i32, %arg2: i32) -> (i32, i32) {
    %c0_i32 = arith.constant 0 : i32
    %c0_i32_0 = arith.constant 0 : i32
    return %c0_i32, %arg1 : i32, i32
  }
  func.func @transform_4(%arg0: i32, %arg1: i32, %arg2: i32) -> (i32, i32) {
    %c0_i32 = arith.constant 0 : i32
    return %arg0, %arg1 : i32, i32
  }
  func.func @transform_5(%arg0: i32, %arg1: i32, %arg2: i32) -> (i32, i32) {
    %c0_i32 = arith.constant 0 : i32
    return %arg0, %arg1 : i32, i32
  }
}

module attributes {stable_mosaic.version = 11 : i64} {
  func.func @_fused_matmul_kernel(%arg0: i32, %arg1: i32, %arg2: i32, %arg3: memref<8x768xbf16, #tpu.memory_space<vmem>>, %arg4: memref<768x256xbf16, #tpu.memory_space<vmem>>, %arg5: memref<1x256xf32, #tpu.memory_space<vmem>>, %arg6: memref<1x256xf32, #tpu.memory_space<vmem>>, %arg7: memref<8x256xf32, #tpu.memory_space<vmem>>, %arg8: memref<8x256xf32, #tpu.memory_space<vmem>>) attributes {dimension_semantics = [#tpu.dimension_semantics<parallel>, #tpu.dimension_semantics<parallel>, #tpu.dimension_semantics<arbitrary>], iteration_bounds = array<i64: 1, 2, 3>, scalar_prefetch = 0 : i64, scratch_operands = 1 : i64, tpu.core_type = #tpu.core_type<tc>, window_params = [{transform_indices = @transform_0, window_bounds = array<i64: 8, 768>}, {transform_indices = @transform_1, window_bounds = array<i64: 768, 256>}, {transform_indices = @transform_2, window_bounds = array<i64: 1, 256>}, {transform_indices = @transform_3, window_bounds = array<i64: 1, 256>}, {transform_indices = @transform_4, window_bounds = array<i64: 8, 256>}]} {
    %c0_i32 = arith.constant 0 : i32
    %0 = arith.cmpi eq, %arg2, %c0_i32 : i32
    %1 = arith.extui %0 : i1 to i32
    %c0_i32_0 = arith.constant 0 : i32
    %2 = arith.cmpi ne, %1, %c0_i32_0 : i32
    scf.if %2 {
      %cst_9 = arith.constant 0.000000e+00 : f32
      %12 = vector.broadcast %cst_9 : f32 to vector<8x256xf32>
      %c0_10 = arith.constant 0 : index
      %c0_11 = arith.constant 0 : index
      %13 = vector.load %arg8[%c0_10, %c0_11] : memref<8x256xf32, #tpu.memory_space<vmem>>, vector<8x256xf32>
      tpu.vector_store %arg8[%c0_10, %c0_11], %12 {strides = array<i32>} : memref<8x256xf32, #tpu.memory_space<vmem>>, vector<8x256xf32>,
    } else {
    }
    %c0 = arith.constant 0 : index
    %c0_1 = arith.constant 0 : index
    %3 = vector.load %arg8[%c0, %c0_1] : memref<8x256xf32, #tpu.memory_space<vmem>>, vector<8x256xf32>
    %c0_2 = arith.constant 0 : index
    %c0_3 = arith.constant 0 : index
    %4 = vector.load %arg3[%c0_2, %c0_3] : memref<8x768xbf16, #tpu.memory_space<vmem>>, vector<8x768xbf16>
    %c0_4 = arith.constant 0 : index
    %c0_5 = arith.constant 0 : index
    %5 = vector.load %arg4[%c0_4, %c0_5] : memref<768x256xbf16, #tpu.memory_space<vmem>>, vector<768x256xbf16>
    %cst = arith.constant dense<0.000000e+00> : vector<8x256xf32>
    %6 = tpu.matmul %4, %5, %cst {dimension_numbers = #tpu.dot_dimension_numbers<[1], [0], [0], [1], [0, 0, 1, 1], [], []>} : vector<8x768xbf16>, vector<768x256xbf16>, vector<8x256xf32> -> vector<8x256xf32>
    %7 = arith.addf %3, %6 : vector<8x256xf32>
    %c0_6 = arith.constant 0 : index
    %c0_7 = arith.constant 0 : index
    %8 = vector.load %arg8[%c0_6, %c0_7] : memref<8x256xf32, #tpu.memory_space<vmem>>, vector<8x256xf32>
    tpu.vector_store %arg8[%c0_6, %c0_7], %7 {strides = array<i32>} : memref<8x256xf32, #tpu.memory_space<vmem>>, vector<8x256xf32>,
    %c2_i32 = arith.constant 2 : i32
    %9 = arith.cmpi eq, %arg2, %c2_i32 : i32
    %10 = arith.extui %9 : i1 to i32
    %c0_i32_8 = arith.constant 0 : i32
    %11 = arith.cmpi ne, %10, %c0_i32_8 : i32
    scf.if %11 {
      %c0_9 = arith.constant 0 : index
      %c0_10 = arith.constant 0 : index
      %12 = vector.load %arg8[%c0_9, %c0_10] : memref<8x256xf32, #tpu.memory_space<vmem>>, vector<8x256xf32>
      %c0_11 = arith.constant 0 : index
      %c0_12 = arith.constant 0 : index
      %13 = vector.load %arg5[%c0_11, %c0_12] : memref<1x256xf32, #tpu.memory_space<vmem>>, vector<1x256xf32>
      %14 = vector.broadcast %13 : vector<1x256xf32> to vector<8x256xf32>
      %15 = arith.mulf %12, %14 : vector<8x256xf32>
      %c0_13 = arith.constant 0 : index
      %c0_14 = arith.constant 0 : index
      %16 = vector.load %arg6[%c0_13, %c0_14] : memref<1x256xf32, #tpu.memory_space<vmem>>, vector<1x256xf32>
      %17 = vector.broadcast %16 : vector<1x256xf32> to vector<8x256xf32>
      %18 = arith.addf %15, %17 : vector<8x256xf32>
      %cst_15 = arith.constant 0.000000e+00 : f32
      %19 = vector.broadcast %cst_15 : f32 to vector<8x256xf32>
      %20 = arith.maximumf %18, %19 : vector<8x256xf32>
      %c0_16 = arith.constant 0 : index
      %c0_17 = arith.constant 0 : index
      %21 = vector.load %arg7[%c0_16, %c0_17] : memref<8x256xf32, #tpu.memory_space<vmem>>, vector<8x256xf32>
      tpu.vector_store %arg7[%c0_16, %c0_17], %20 {strides = array<i32>} : memref<8x256xf32, #tpu.memory_space<vmem>>, vector<8x256xf32>,
    } else {
    }
    return
  }
  func.func @transform_0(%arg0: i32, %arg1: i32, %arg2: i32) -> (i32, i32) {
    %c0_i32 = arith.constant 0 : i32
    return %arg0, %arg2 : i32, i32
  }
  func.func @transform_1(%arg0: i32, %arg1: i32, %arg2: i32) -> (i32, i32) {
    %c0_i32 = arith.constant 0 : i32
    return %arg2, %arg1 : i32, i32
  }
  func.func @transform_2(%arg0: i32, %arg1: i32, %arg2: i32) -> (i32, i32) {
    %c0_i32 = arith.constant 0 : i32
    %c0_i32_0 = arith.constant 0 : i32
    return %c0_i32, %arg1 : i32, i32
  }
  func.func @transform_3(%arg0: i32, %arg1: i32, %arg2: i32) -> (i32, i32) {
    %c0_i32 = arith.constant 0 : i32
    %c0_i32_0 = arith.constant 0 : i32
    return %c0_i32, %arg1 : i32, i32
  }
  func.func @transform_4(%arg0: i32, %arg1: i32, %arg2: i32) -> (i32, i32) {
    %c0_i32 = arith.constant 0 : i32
    return %arg0, %arg1 : i32, i32
  }
}

module attributes {stable_mosaic.version = 11 : i64} {
  func.func @_fused_matmul_kernel(%arg0: i32, %arg1: i32, %arg2: i32, %arg3: memref<8x256xbf16, #tpu.memory_space<vmem>>, %arg4: memref<256x256xbf16, #tpu.memory_space<vmem>>, %arg5: memref<1x256xf32, #tpu.memory_space<vmem>>, %arg6: memref<1x256xf32, #tpu.memory_space<vmem>>, %arg7: memref<8x256xf32, #tpu.memory_space<vmem>>, %arg8: memref<8x256xf32, #tpu.memory_space<vmem>>) attributes {dimension_semantics = [#tpu.dimension_semantics<parallel>, #tpu.dimension_semantics<parallel>, #tpu.dimension_semantics<arbitrary>], iteration_bounds = array<i64: 1, 2, 1>, scalar_prefetch = 0 : i64, scratch_operands = 1 : i64, tpu.core_type = #tpu.core_type<tc>, window_params = [{transform_indices = @transform_0, window_bounds = array<i64: 8, 256>}, {transform_indices = @transform_1, window_bounds = array<i64: 256, 256>}, {transform_indices = @transform_2, window_bounds = array<i64: 1, 256>}, {transform_indices = @transform_3, window_bounds = array<i64: 1, 256>}, {transform_indices = @transform_4, window_bounds = array<i64: 8, 256>}]} {
    %c0_i32 = arith.constant 0 : i32
    %0 = arith.cmpi eq, %arg2, %c0_i32 : i32
    %1 = arith.extui %0 : i1 to i32
    %c0_i32_0 = arith.constant 0 : i32
    %2 = arith.cmpi ne, %1, %c0_i32_0 : i32
    scf.if %2 {
      %cst_10 = arith.constant 0.000000e+00 : f32
      %12 = vector.broadcast %cst_10 : f32 to vector<8x256xf32>
      %c0_11 = arith.constant 0 : index
      %c0_12 = arith.constant 0 : index
      %13 = vector.load %arg8[%c0_11, %c0_12] : memref<8x256xf32, #tpu.memory_space<vmem>>, vector<8x256xf32>
      tpu.vector_store %arg8[%c0_11, %c0_12], %12 {strides = array<i32>} : memref<8x256xf32, #tpu.memory_space<vmem>>, vector<8x256xf32>,
    } else {
    }
    %c0 = arith.constant 0 : index
    %c0_1 = arith.constant 0 : index
    %3 = vector.load %arg8[%c0, %c0_1] : memref<8x256xf32, #tpu.memory_space<vmem>>, vector<8x256xf32>
    %c0_2 = arith.constant 0 : index
    %c0_3 = arith.constant 0 : index
    %4 = vector.load %arg3[%c0_2, %c0_3] : memref<8x256xbf16, #tpu.memory_space<vmem>>, vector<8x256xbf16>
    %c0_4 = arith.constant 0 : index
    %c0_5 = arith.constant 0 : index
    %5 = vector.load %arg4[%c0_4, %c0_5] : memref<256x256xbf16, #tpu.memory_space<vmem>>, vector<256x256xbf16>
    %cst = arith.constant dense<0.000000e+00> : vector<8x256xf32>
    %6 = tpu.matmul %4, %5, %cst {dimension_numbers = #tpu.dot_dimension_numbers<[1], [0], [0], [1], [0, 0, 1, 1], [], []>} : vector<8x256xbf16>, vector<256x256xbf16>, vector<8x256xf32> -> vector<8x256xf32>
    %7 = arith.addf %3, %6 : vector<8x256xf32>
    %c0_6 = arith.constant 0 : index
    %c0_7 = arith.constant 0 : index
    %8 = vector.load %arg8[%c0_6, %c0_7] : memref<8x256xf32, #tpu.memory_space<vmem>>, vector<8x256xf32>
    tpu.vector_store %arg8[%c0_6, %c0_7], %7 {strides = array<i32>} : memref<8x256xf32, #tpu.memory_space<vmem>>, vector<8x256xf32>,
    %c0_i32_8 = arith.constant 0 : i32
    %9 = arith.cmpi eq, %arg2, %c0_i32_8 : i32
    %10 = arith.extui %9 : i1 to i32
    %c0_i32_9 = arith.constant 0 : i32
    %11 = arith.cmpi ne, %10, %c0_i32_9 : i32
    scf.if %11 {
      %c0_10 = arith.constant 0 : index
      %c0_11 = arith.constant 0 : index
      %12 = vector.load %arg8[%c0_10, %c0_11] : memref<8x256xf32, #tpu.memory_space<vmem>>, vector<8x256xf32>
      %c0_12 = arith.constant 0 : index
      %c0_13 = arith.constant 0 : index
      %13 = vector.load %arg5[%c0_12, %c0_13] : memref<1x256xf32, #tpu.memory_space<vmem>>, vector<1x256xf32>
      %14 = vector.broadcast %13 : vector<1x256xf32> to vector<8x256xf32>
      %15 = arith.mulf %12, %14 : vector<8x256xf32>
      %c0_14 = arith.constant 0 : index
      %c0_15 = arith.constant 0 : index
      %16 = vector.load %arg6[%c0_14, %c0_15] : memref<1x256xf32, #tpu.memory_space<vmem>>, vector<1x256xf32>
      %17 = vector.broadcast %16 : vector<1x256xf32> to vector<8x256xf32>
      %18 = arith.addf %15, %17 : vector<8x256xf32>
      %c0_16 = arith.constant 0 : index
      %c0_17 = arith.constant 0 : index
      %19 = vector.load %arg7[%c0_16, %c0_17] : memref<8x256xf32, #tpu.memory_space<vmem>>, vector<8x256xf32>
      tpu.vector_store %arg7[%c0_16, %c0_17], %18 {strides = array<i32>} : memref<8x256xf32, #tpu.memory_space<vmem>>, vector<8x256xf32>,
    } else {
    }
    return
  }
  func.func @transform_0(%arg0: i32, %arg1: i32, %arg2: i32) -> (i32, i32) {
    %c0_i32 = arith.constant 0 : i32
    return %arg0, %arg2 : i32, i32
  }
  func.func @transform_1(%arg0: i32, %arg1: i32, %arg2: i32) -> (i32, i32) {
    %c0_i32 = arith.constant 0 : i32
    return %arg2, %arg1 : i32, i32
  }
  func.func @transform_2(%arg0: i32, %arg1: i32, %arg2: i32) -> (i32, i32) {
    %c0_i32 = arith.constant 0 : i32
    %c0_i32_0 = arith.constant 0 : i32
    return %c0_i32, %arg1 : i32, i32
  }
  func.func @transform_3(%arg0: i32, %arg1: i32, %arg2: i32) -> (i32, i32) {
    %c0_i32 = arith.constant 0 : i32
    %c0_i32_0 = arith.constant 0 : i32
    return %c0_i32, %arg1 : i32, i32
  }
  func.func @transform_4(%arg0: i32, %arg1: i32, %arg2: i32) -> (i32, i32) {
    %c0_i32 = arith.constant 0 : i32
    return %arg0, %arg1 : i32, i32
  }
}

module attributes {stable_mosaic.version = 11 : i64} {
  func.func @_fused_matmul_kernel(%arg0: i32, %arg1: i32, %arg2: i32, %arg3: memref<8x768xbf16, #tpu.memory_space<vmem>>, %arg4: memref<768x256xbf16, #tpu.memory_space<vmem>>, %arg5: memref<1x256xf32, #tpu.memory_space<vmem>>, %arg6: memref<1x256xf32, #tpu.memory_space<vmem>>, %arg7: memref<8x256xf32, #tpu.memory_space<vmem>>, %arg8: memref<8x256xf32, #tpu.memory_space<vmem>>, %arg9: memref<8x256xf32, #tpu.memory_space<vmem>>) attributes {dimension_semantics = [#tpu.dimension_semantics<parallel>, #tpu.dimension_semantics<parallel>, #tpu.dimension_semantics<arbitrary>], iteration_bounds = array<i64: 1, 2, 6>, scalar_prefetch = 0 : i64, scratch_operands = 1 : i64, tpu.core_type = #tpu.core_type<tc>, window_params = [{transform_indices = @transform_0, window_bounds = array<i64: 8, 768>}, {transform_indices = @transform_1, window_bounds = array<i64: 768, 256>}, {transform_indices = @transform_2, window_bounds = array<i64: 1, 256>}, {transform_indices = @transform_3, window_bounds = array<i64: 1, 256>}, {transform_indices = @transform_4, window_bounds = array<i64: 8, 256>}, {transform_indices = @transform_5, window_bounds = array<i64: 8, 256>}]} {
    %c0_i32 = arith.constant 0 : i32
    %0 = arith.cmpi eq, %arg2, %c0_i32 : i32
    %1 = arith.extui %0 : i1 to i32
    %c0_i32_0 = arith.constant 0 : i32
    %2 = arith.cmpi ne, %1, %c0_i32_0 : i32
    scf.if %2 {
      %cst_9 = arith.constant 0.000000e+00 : f32
      %12 = vector.broadcast %cst_9 : f32 to vector<8x256xf32>
      %c0_10 = arith.constant 0 : index
      %c0_11 = arith.constant 0 : index
      %13 = vector.load %arg9[%c0_10, %c0_11] : memref<8x256xf32, #tpu.memory_space<vmem>>, vector<8x256xf32>
      tpu.vector_store %arg9[%c0_10, %c0_11], %12 {strides = array<i32>} : memref<8x256xf32, #tpu.memory_space<vmem>>, vector<8x256xf32>,
    } else {
    }
    %c0 = arith.constant 0 : index
    %c0_1 = arith.constant 0 : index
    %3 = vector.load %arg9[%c0, %c0_1] : memref<8x256xf32, #tpu.memory_space<vmem>>, vector<8x256xf32>
    %c0_2 = arith.constant 0 : index
    %c0_3 = arith.constant 0 : index
    %4 = vector.load %arg3[%c0_2, %c0_3] : memref<8x768xbf16, #tpu.memory_space<vmem>>, vector<8x768xbf16>
    %c0_4 = arith.constant 0 : index
    %c0_5 = arith.constant 0 : index
    %5 = vector.load %arg4[%c0_4, %c0_5] : memref<768x256xbf16, #tpu.memory_space<vmem>>, vector<768x256xbf16>
    %cst = arith.constant dense<0.000000e+00> : vector<8x256xf32>
    %6 = tpu.matmul %4, %5, %cst {dimension_numbers = #tpu.dot_dimension_numbers<[1], [0], [0], [1], [0, 0, 1, 1], [], []>} : vector<8x768xbf16>, vector<768x256xbf16>, vector<8x256xf32> -> vector<8x256xf32>
    %7 = arith.addf %3, %6 : vector<8x256xf32>
    %c0_6 = arith.constant 0 : index
    %c0_7 = arith.constant 0 : index
    %8 = vector.load %arg9[%c0_6, %c0_7] : memref<8x256xf32, #tpu.memory_space<vmem>>, vector<8x256xf32>
    tpu.vector_store %arg9[%c0_6, %c0_7], %7 {strides = array<i32>} : memref<8x256xf32, #tpu.memory_space<vmem>>, vector<8x256xf32>,
    %c5_i32 = arith.constant 5 : i32
    %9 = arith.cmpi eq, %arg2, %c5_i32 : i32
    %10 = arith.extui %9 : i1 to i32
    %c0_i32_8 = arith.constant 0 : i32
    %11 = arith.cmpi ne, %10, %c0_i32_8 : i32
    scf.if %11 {
      %c0_9 = arith.constant 0 : index
      %c0_10 = arith.constant 0 : index
      %12 = vector.load %arg9[%c0_9, %c0_10] : memref<8x256xf32, #tpu.memory_space<vmem>>, vector<8x256xf32>
      %c0_11 = arith.constant 0 : index
      %c0_12 = arith.constant 0 : index
      %13 = vector.load %arg5[%c0_11, %c0_12] : memref<1x256xf32, #tpu.memory_space<vmem>>, vector<1x256xf32>
      %14 = vector.broadcast %13 : vector<1x256xf32> to vector<8x256xf32>
      %15 = arith.mulf %12, %14 : vector<8x256xf32>
      %c0_13 = arith.constant 0 : index
      %c0_14 = arith.constant 0 : index
      %16 = vector.load %arg6[%c0_13, %c0_14] : memref<1x256xf32, #tpu.memory_space<vmem>>, vector<1x256xf32>
      %17 = vector.broadcast %16 : vector<1x256xf32> to vector<8x256xf32>
      %18 = arith.addf %15, %17 : vector<8x256xf32>
      %cst_15 = arith.constant 0.000000e+00 : f32
      %19 = vector.broadcast %cst_15 : f32 to vector<8x256xf32>
      %20 = arith.maximumf %18, %19 : vector<8x256xf32>
      %c0_16 = arith.constant 0 : index
      %c0_17 = arith.constant 0 : index
      %21 = vector.load %arg7[%c0_16, %c0_17] : memref<8x256xf32, #tpu.memory_space<vmem>>, vector<8x256xf32>
      %22 = arith.addf %20, %21 : vector<8x256xf32>
      %cst_18 = arith.constant 0.000000e+00 : f32
      %23 = vector.broadcast %cst_18 : f32 to vector<8x256xf32>
      %24 = arith.maximumf %22, %23 : vector<8x256xf32>
      %c0_19 = arith.constant 0 : index
      %c0_20 = arith.constant 0 : index
      %25 = vector.load %arg8[%c0_19, %c0_20] : memref<8x256xf32, #tpu.memory_space<vmem>>, vector<8x256xf32>
      tpu.vector_store %arg8[%c0_19, %c0_20], %24 {strides = array<i32>} : memref<8x256xf32, #tpu.memory_space<vmem>>, vector<8x256xf32>,
    } else {
    }
    return
  }
  func.func @transform_0(%arg0: i32, %arg1: i32, %arg2: i32) -> (i32, i32) {
    %c0_i32 = arith.constant 0 : i32
    return %arg0, %arg2 : i32, i32
  }
  func.func @transform_1(%arg0: i32, %arg1: i32, %arg2: i32) -> (i32, i32) {
    %c0_i32 = arith.constant 0 : i32
    return %arg2, %arg1 : i32, i32
  }
  func.func @transform_2(%arg0: i32, %arg1: i32, %arg2: i32) -> (i32, i32) {
    %c0_i32 = arith.constant 0 : i32
    %c0_i32_0 = arith.constant 0 : i32
    return %c0_i32, %arg1 : i32, i32
  }
  func.func @transform_3(%arg0: i32, %arg1: i32, %arg2: i32) -> (i32, i32) {
    %c0_i32 = arith.constant 0 : i32
    %c0_i32_0 = arith.constant 0 : i32
    return %c0_i32, %arg1 : i32, i32
  }
  func.func @transform_4(%arg0: i32, %arg1: i32, %arg2: i32) -> (i32, i32) {
    %c0_i32 = arith.constant 0 : i32
    return %arg0, %arg1 : i32, i32
  }
  func.func @transform_5(%arg0: i32, %arg1: i32, %arg2: i32) -> (i32, i32) {
    %c0_i32 = arith.constant 0 : i32
    return %arg0, %arg1 : i32, i32
  }
}

module attributes {stable_mosaic.version = 11 : i64} {
  func.func @_gap_kernel(%arg0: memref<2x1x512xf32, #tpu.memory_space<vmem>>, %arg1: memref<2x512xf32, #tpu.memory_space<vmem>>) attributes {dimension_semantics = [], scalar_prefetch = 0 : i64, scratch_operands = 0 : i64, tpu.core_type = #tpu.core_type<tc>} {
    %c0 = arith.constant 0 : index
    %c0_0 = arith.constant 0 : index
    %c0_1 = arith.constant 0 : index
    %0 = vector.load %arg0[%c0, %c0_0, %c0_1] : memref<2x1x512xf32, #tpu.memory_space<vmem>>, vector<2x1x512xf32>
    %cst = arith.constant dense<0.000000e+00> : vector<2x512xf32>
    %1 = vector.multi_reduction <add>, %0, %cst [1] : vector<2x1x512xf32> to vector<2x512xf32>
    %cst_2 = arith.constant 1.000000e+00 : f32
    %2 = vector.broadcast %cst_2 : f32 to vector<2x512xf32>
    %3 = arith.divf %1, %2 : vector<2x512xf32>
    %c0_3 = arith.constant 0 : index
    %c0_4 = arith.constant 0 : index
    %4 = vector.load %arg1[%c0_3, %c0_4] : memref<2x512xf32, #tpu.memory_space<vmem>>, vector<2x512xf32>
    tpu.vector_store %arg1[%c0_3, %c0_4], %3 {strides = array<i32>} : memref<2x512xf32, #tpu.memory_space<vmem>>, vector<2x512xf32>,
    return
  }
}

</mosaic_0001>

<bundles_post_ra>
// kernel: _lambda_.15
= control target key start
LH: loop header
LB: loop body
LE: loop exit
PB: predicated region body
PF: predicated region fallthrough
CT: control target
= control target key end

     0   :  { %vm372_vm0 = vcmask 523264   ;;  %s993_s0 = inlined_call_operand.vmem [shape: f32[128,64], index: 0, kind: input, shape index: {}]   ;;  %s994_s1 = inlined_call_operand.vmem [shape: f32[128,64], index: 1, kind: input, shape index: {}]   ;;  %s995_s2 = inlined_call_operand.vmem [shape: f32[128,64], index: 2, kind: input, shape index: {}]   ;;  %s996_s3 = inlined_call_operand.vmem [shape: f32[128,64], index: 3, kind: input, shape index: {}]   ;;  %s997_s4 = inlined_call_operand.vmem [shape: f32[128,64], index: 4, kind: input, shape index: {}]   ;;  %s998_s5 = inlined_call_operand.vmem [shape: f32[128,64], index: 5, kind: input, shape index: {}]   ;;  %s999_s6 = inlined_call_operand.vmem [shape: f32[128,64], index: 6, kind: input, shape index: {}]   ;;  %s1000_s7 = inlined_call_operand.vmem [shape: f32[128,64], index: 7, kind: input, shape index: {}]   ;;  %s1001_s8 = inlined_call_operand.vmem [shape: f32[128,64], index: 8, kind: input, shape index: {}]   ;;  %s1002_s9 = inlined_call_operand.vmem [shape: f32[1,64], index: 9, kind: input, shape index: {}]   ;;  %s1003_s10 = inlined_call_operand.vmem [shape: f32[1,64], index: 10, kind: input, shape index: {}]   ;;  %s1004_s11 = inlined_call_operand.vmem [shape: f32[128,64], index: 11, kind: output, shape index: {}]  }
   0x1   :  { %v38_v0 = vld [vmem:[%s993_s0] sm:$0xff]  ;;  %v39_v6 = vld [vmem:[%s993_s0 + $0x8] sm:$0xff]  ;;  %v40_v14 = vld [vmem:[%s993_s0 + $0x10] sm:$0xff] }
   0x2   :  { %v54_v1 = vld [vmem:[%s994_s1] sm:$0xff]  ;;  %v55_v8 = vld [vmem:[%s994_s1 + $0x8] sm:$0xff]  ;;  %v56_v17 = vld [vmem:[%s994_s1 + $0x10] sm:$0xff] }
   0x3   :  { %v86_v2 = vld [vmem:[%s995_s2] sm:$0xff]  ;;  %v70_v3 = vmax.f32 %v38_v0, %v54_v1  ;;  %v87_v9 = vld [vmem:[%s995_s2 + $0x8] sm:$0xff]  ;;  %v71_v11 = vmax.f32 %v39_v6, %v55_v8  ;;  %v88_v18 = vld [vmem:[%s995_s2 + $0x10] sm:$0xff]  ;;  %v72_v21 = vmax.f32 %v40_v14, %v56_v17 }
   0x4   :  { %v118_v4 = vld [vmem:[%s996_s3] sm:$0xff]  ;;  %v119_v13 = vld [vmem:[%s996_s3 + $0x8] sm:$0xff]  ;;  %v120_v25 = vld [vmem:[%s996_s3 + $0x10] sm:$0xff] }
   0x5   :  { %v102_v5 = vmax.f32 %v70_v3, %v86_v2  ;;  %v150_v7 = vld [vmem:[%s997_s4] sm:$0xff]  ;;  %v103_v16 = vmax.f32 %v71_v11, %v87_v9  ;;  %v151_v20 = vld [vmem:[%s997_s4 + $0x8] sm:$0xff]  ;;  %v41_v26 = vld [vmem:[%s993_s0 + $0x18] sm:$0xff]  ;;  %v104_v28 = vmax.f32 %v72_v21, %v88_v18 }
   0x6   :  { %v182_v12 = vld [vmem:[%s998_s5] sm:$0xff]  ;;  %v183_v27 = vld [vmem:[%s998_s5 + $0x8] sm:$0xff]  ;;  %v57_v29 = vld [vmem:[%s994_s1 + $0x18] sm:$0xff] }
   0x7   :  { %v134_v10 = vmax.f32 %v102_v5, %v118_v4  ;;  %v214_v19 = vld [vmem:[%s999_s6] sm:$0xff]  ;;  %v135_v24 = vmax.f32 %v103_v16, %v119_v13  ;;  %v89_v30 = vld [vmem:[%s995_s2 + $0x18] sm:$0xff]  ;;  %v152_v34 = vld [vmem:[%s997_s4 + $0x10] sm:$0xff]  ;;  %v73_v35 = vmax.f32 %v41_v26, %v57_v29  ;;  %v136_v38 = vmax.f32 %v104_v28, %v120_v25 }
   0x8   :  { %v246_v23 = vld [vmem:[%s1000_s7] sm:$0xff]  ;;  %v215_v37 = vld [vmem:[%s999_s6 + $0x8] sm:$0xff]  ;;  %v121_v39 = vld [vmem:[%s996_s3 + $0x18] sm:$0xff] }
   0x9   :  { %v166_v15 = vmax.f32 %v134_v10, %v150_v7  ;;  %v278_v32 = vld [vmem:[%s1001_s8] sm:$0xff]  ;;  %v167_v33 = vmax.f32 %v135_v24, %v151_v20  ;;  %v184_v43 = vld [vmem:[%s998_s5 + $0x10] sm:$0xff]  ;;  %v105_v44 = vmax.f32 %v73_v35, %v89_v30  ;;  %v247_v48 = vld [vmem:[%s1000_s7 + $0x8] sm:$0xff]  ;;  %v168_v50 = vmax.f32 %v136_v38, %v152_v34 }
   0xa   :  { %v527_v36 = vld [vmem:[%s1002_s9] ss:$0 sm:$0xff]  ;;  %v279_v49 = vld [vmem:[%s1001_s8 + $0x8] sm:$0xff]  ;;  %v153_v51 = vld [vmem:[%s997_s4 + $0x18] sm:$0xff] }
   0xb   :  { %v198_v22 = vmax.f32 %v166_v15, %v182_v12  ;;  %v42_v40 = vld [vmem:[%s993_s0 + $0x20] sm:$0xff]  ;;  %v199_v42 = vmax.f32 %v167_v33, %v183_v27  ;;  %v216_v55 = vld [vmem:[%s999_s6 + $0x10] sm:$0xff]  ;;  %v137_v56 = vmax.f32 %v105_v44, %v121_v39  ;;  %v43_v58 = vld [vmem:[%s993_s0 + $0x28] sm:$0xff]  ;;  %v200_v59 = vmax.f32 %v168_v50, %v184_v43 }
   0xc   :  { %v58_v45 = vld [vmem:[%s994_s1 + $0x20] sm:$0xff]  ;;  %v185_v60 = vld [vmem:[%s998_s5 + $0x18] sm:$0xff]  ;;  %v59_v62 = vld [vmem:[%s994_s1 + $0x28] sm:$0xff] }
   0xd   :  { %v230_v31 = vmax.f32 %v198_v22, %v214_v19  ;;  %v90_v46 = vld [vmem:[%s995_s2 + $0x20] sm:$0xff]  ;;  %v74_v52 = vmax.f32 %v42_v40, %v58_v45  ;;  %v231_v54 = vmax.f32 %v199_v42, %v215_v37  ;;  %v91_v63 = vld [vmem:[%s995_s2 + $0x28] sm:$0xff]  ;;  %v248_v2 = vld [vmem:[%s1000_s7 + $0x10] sm:$0xff]  ;;  %v169_v4 = vmax.f32 %v137_v56, %v153_v51 }
   0xe   :  { %v550_v47 = vld [vmem:[%s1003_s10] ss:$0 sm:$0xff]  ;;  %v280_v3 = vld [vmem:[%s1001_s8 + $0x10] sm:$0xff]  ;;  %v75_v6 = vmax.f32 %v43_v58, %v59_v62  ;;  %v232_v7 = vmax.f32 %v200_v59, %v216_v55  ;;  %v217_v8 = vld [vmem:[%s999_s6 + $0x18] sm:$0xff] }
   0xf   :  { %v262_v41 = vmax.f32 %v230_v31, %v246_v23  ;;  %v122_v57 = vld [vmem:[%s996_s3 + $0x20] sm:$0xff]  ;;  %v106_v61 = vmax.f32 %v74_v52, %v90_v46  ;;  %v263_v1 = vmax.f32 %v231_v54, %v247_v48  ;;  %v123_v10 = vld [vmem:[%s996_s3 + $0x28] sm:$0xff]  ;;  %v44_v11 = vld [vmem:[%s993_s0 + $0x30] sm:$0xff]  ;;  %v201_v14 = vmax.f32 %v169_v4, %v185_v60 }
  0x10   :  { %v154_v5 = vld [vmem:[%s997_s4 + $0x20] sm:$0xff]  ;;  %v107_v16 = vmax.f32 %v75_v6, %v91_v63  ;;  %v60_v17 = vld [vmem:[%s994_s1 + $0x30] sm:$0xff]  ;;  %v264_v19 = vmax.f32 %v232_v7, %v248_v2  ;;  %v249_v20 = vld [vmem:[%s1000_s7 + $0x18] sm:$0xff] }
  0x11   :  { %v294_v53 = vmax.f32 %v262_v41, %v278_v32  ;;  %v138_v9 = vmax.f32 %v106_v61, %v122_v57  ;;  %v295_v13 = vmax.f32 %v263_v1, %v279_v49  ;;  %v186_v15 = vld [vmem:[%s998_s5 + $0x20] sm:$0xff]  ;;  %v92_v18 = vld [vmem:[%s995_s2 + $0x30] sm:$0xff]  ;;  %v281_v21 = vld [vmem:[%s1001_s8 + $0x18] sm:$0xff]  ;;  %v76_v24 = vmax.f32 %v44_v11, %v60_v17 }
  0x12   :  { %v155_v23 = vld [vmem:[%s997_s4 + $0x28] sm:$0xff]  ;;  %v233_v27 = vmax.f32 %v201_v14, %v217_v8  ;;  %v218_v28 = vld [vmem:[%s999_s6 + $0x20] sm:$0xff]  ;;  %v139_v29 = vmax.f32 %v107_v16, %v123_v10  ;;  %v124_v30 = vld [vmem:[%s996_s3 + $0x30] sm:$0xff]  ;;  %v296_v32 = vmax.f32 %v264_v19, %v280_v3 }
  0x13   :  { %v317_v0 = vmul.f32 %v527_v36, %v294_v53  ;;  %v170_v22 = vmax.f32 %v138_v9, %v154_v5  ;;  %v318_v26 = vmul.f32 %v527_v36, %v295_v13  ;;  %v45_v31 = vld [vmem:[%s993_s0 + $0x38] sm:$0xff]  ;;  %v187_v34 = vld [vmem:[%s998_s5 + $0x28] sm:$0xff]  ;;  %v108_v35 = vmax.f32 %v76_v24, %v92_v18  ;;  %v250_v41 = vld [vmem:[%s1000_s7 + $0x20] sm:$0xff] }
  0x14   :  { %v61_v37 = vld [vmem:[%s994_s1 + $0x38] sm:$0xff]  ;;  %v265_v40 = vmax.f32 %v233_v27, %v249_v20  ;;  %v282_v42 = vld [vmem:[%s1001_s8 + $0x20] sm:$0xff]  ;;  %v171_v43 = vmax.f32 %v139_v29, %v155_v23  ;;  %v156_v44 = vld [vmem:[%s997_s4 + $0x30] sm:$0xff]  ;;  %v319_v46 = vmul.f32 %v527_v36, %v296_v32 }
  0x15   :  { %v340_v12 = vadd.f32 %v550_v47, %v317_v0  ;;  %v202_v33 = vmax.f32 %v170_v22, %v186_v15  ;;  %v93_v38 = vld [vmem:[%s995_s2 + $0x38] sm:$0xff]  ;;  %v341_v39 = vadd.f32 %v550_v47, %v318_v26  ;;  %v77_v45 = vmax.f32 %v45_v31, %v61_v37  ;;  %v219_v49 = vld [vmem:[%s999_s6 + $0x28] sm:$0xff]  ;;  %v46_v52 = vld [vmem:[%s993_s0 + $0x40] sm:$0xff] }
  0x16   :  { %v140_v50 = vmax.f32 %v108_v35, %v124_v30  ;;  %v125_v51 = vld [vmem:[%s996_s3 + $0x38] sm:$0xff]  ;;  %v297_v54 = vmax.f32 %v265_v40, %v281_v21  ;;  %v203_v55 = vmax.f32 %v171_v43, %v187_v34  ;;  %v188_v56 = vld [vmem:[%s998_s5 + $0x30] sm:$0xff]  ;;  %v62_v58 = vld [vmem:[%s994_s1 + $0x40] sm:$0xff]  ;;  %v342_v60 = vadd.f32 %v550_v47, %v319_v46 }
  0x17   :  { %v356_v25 = vmax.f32 %v340_v12, 0.0  ;;  %v234_v48 = vmax.f32 %v202_v33, %v218_v28  ;;  %v357_v53 = vmax.f32 %v341_v39, 0.0  ;;  %v109_v57 = vmax.f32 %v77_v45, %v93_v38  ;;  %v94_v59 = vld [vmem:[%s995_s2 + $0x40] sm:$0xff]  ;;  %v251_v62 = vld [vmem:[%s1000_s7 + $0x28] sm:$0xff]  ;;  %v157_v1 = vld [vmem:[%s997_s4 + $0x38] sm:$0xff] }
  0x18   :  { %v283_v63 = vld [vmem:[%s1001_s8 + $0x28] sm:$0xff]  ;;  %v172_v0 = vmax.f32 %v140_v50, %v156_v44  ;;  %v78_v2 = vmax.f32 %v46_v52, %v62_v58  ;;  %v320_v3 = vmul.f32 %v527_v36, %v297_v54  ;;  %v235_v4 = vmax.f32 %v203_v55, %v219_v49  ;;  %v220_v5 = vld [vmem:[%s999_s6 + $0x30] sm:$0xff]  ;;  %v126_v7 = vld [vmem:[%s996_s3 + $0x40] sm:$0xff] }
  0x19   :  { %373 = vst.msk [vmem:[%s1004_s11] sm:$0xff] %vm372_vm0, %v356_v25  ;;  %v266_v61 = vmax.f32 %v234_v48, %v250_v41  ;;  %374 = vst.msk [vmem:[%s1004_s11 + $0x8] sm:$0xff] %vm372_vm0, %v357_v53  ;;  %v141_v6 = vmax.f32 %v109_v57, %v125_v51  ;;  %v47_v8 = vld [vmem:[%s993_s0 + $0x48] sm:$0xff]  ;;  %v358_v9 = vmax.f32 %v342_v60, 0.0  ;;  %v189_v12 = vld [vmem:[%s998_s5 + $0x38] sm:$0xff] }
  0x1a   :  { %v204_v11 = vmax.f32 %v172_v0, %v188_v56  ;;  %v110_v13 = vmax.f32 %v78_v2, %v94_v59  ;;  %v63_v14 = vld [vmem:[%s994_s1 + $0x48] sm:$0xff]  ;;  %v343_v16 = vadd.f32 %v550_v47, %v320_v3  ;;  %v267_v17 = vmax.f32 %v235_v4, %v251_v62  ;;  %v252_v18 = vld [vmem:[%s1000_s7 + $0x30] sm:$0xff]  ;;  %v158_v21 = vld [vmem:[%s997_s4 + $0x40] sm:$0xff] }
  0x1b   :  { %v298_v10 = vmax.f32 %v266_v61, %v282_v42  ;;  %v95_v15 = vld [vmem:[%s995_s2 + $0x48] sm:$0xff]  ;;  %v284_v19 = vld [vmem:[%s1001_s8 + $0x30] sm:$0xff]  ;;  %v173_v20 = vmax.f32 %v141_v6, %v157_v1  ;;  %v79_v22 = vmax.f32 %v47_v8, %v63_v14  ;;  %375 = vst.msk [vmem:[%s1004_s11 + $0x10] sm:$0xff] %vm372_vm0, %v358_v9  ;;  %v221_v25 = vld [vmem:[%s999_s6 + $0x38] sm:$0xff] }
  0x1c   :  { %v236_v24 = vmax.f32 %v204_v11, %v220_v5  ;;  %v142_v26 = vmax.f32 %v110_v13, %v126_v7  ;;  %v127_v27 = vld [vmem:[%s996_s3 + $0x48] sm:$0xff]  ;;  %v48_v28 = vld [vmem:[%s993_s0 + $0x50] sm:$0xff]  ;;  %v359_v29 = vmax.f32 %v343_v16, 0.0  ;;  %v299_v30 = vmax.f32 %v267_v17, %v283_v63  ;;  %v190_v32 = vld [vmem:[%s998_s5 + $0x40] sm:$0xff] }
  0x1d   :  { %v321_v23 = vmul.f32 %v527_v36, %v298_v10  ;;  %v205_v31 = vmax.f32 %v173_v20, %v189_v12  ;;  %v111_v33 = vmax.f32 %v79_v22, %v95_v15  ;;  %v64_v34 = vld [vmem:[%s994_s1 + $0x50] sm:$0xff]  ;;  %v253_v39 = vld [vmem:[%s1000_s7 + $0x38] sm:$0xff]  ;;  %v159_v42 = vld [vmem:[%s997_s4 + $0x48] sm:$0xff] }
  0x1e   :  { %v96_v35 = vld [vmem:[%s995_s2 + $0x50] sm:$0xff]  ;;  %v268_v38 = vmax.f32 %v236_v24, %v252_v18  ;;  %v285_v40 = vld [vmem:[%s1001_s8 + $0x38] sm:$0xff]  ;;  %v174_v41 = vmax.f32 %v142_v26, %v158_v21  ;;  %v80_v43 = vmax.f32 %v48_v28, %v64_v34  ;;  %376 = vst.msk [vmem:[%s1004_s11 + $0x18] sm:$0xff] %vm372_vm0, %v359_v29  ;;  %v322_v44 = vmul.f32 %v527_v36, %v299_v30  ;;  %v222_v46 = vld [vmem:[%s999_s6 + $0x40] sm:$0xff] }
  0x1f   :  { %v344_v37 = vadd.f32 %v550_v47, %v321_v23  ;;  %v237_v45 = vmax.f32 %v205_v31, %v221_v25  ;;  %v143_v48 = vmax.f32 %v111_v33, %v127_v27  ;;  %v128_v49 = vld [vmem:[%s996_s3 + $0x50] sm:$0xff]  ;;  %v49_v50 = vld [vmem:[%s993_s0 + $0x58] sm:$0xff]  ;;  %v191_v54 = vld [vmem:[%s998_s5 + $0x48] sm:$0xff] }
  0x20   :  { %v300_v52 = vmax.f32 %v268_v38, %v284_v19  ;;  %v206_v53 = vmax.f32 %v174_v41, %v190_v32  ;;  %v112_v55 = vmax.f32 %v80_v43, %v96_v35  ;;  %v65_v56 = vld [vmem:[%s994_s1 + $0x58] sm:$0xff]  ;;  %v345_v58 = vadd.f32 %v550_v47, %v322_v44  ;;  %v254_v60 = vld [vmem:[%s1000_s7 + $0x40] sm:$0xff]  ;;  %v160_v63 = vld [vmem:[%s997_s4 + $0x50] sm:$0xff] }
  0x21   :  { %v360_v51 = vmax.f32 %v344_v37, 0.0  ;;  %v97_v57 = vld [vmem:[%s995_s2 + $0x58] sm:$0xff]  ;;  %v269_v59 = vmax.f32 %v237_v45, %v253_v39  ;;  %v286_v61 = vld [vmem:[%s1001_s8 + $0x40] sm:$0xff]  ;;  %v175_v62 = vmax.f32 %v143_v48, %v159_v42  ;;  %v81_v0 = vmax.f32 %v49_v50, %v65_v56  ;;  %v223_v3 = vld [vmem:[%s999_s6 + $0x48] sm:$0xff] }
  0x22   :  { %v323_v1 = vmul.f32 %v527_v36, %v300_v52  ;;  %v238_v2 = vmax.f32 %v206_v53, %v222_v46  ;;  %v144_v4 = vmax.f32 %v112_v55, %v128_v49  ;;  %v129_v5 = vld [vmem:[%s996_s3 + $0x58] sm:$0xff]  ;;  %v50_v6 = vld [vmem:[%s993_s0 + $0x60] sm:$0xff]  ;;  %v361_v7 = vmax.f32 %v345_v58, 0.0  ;;  %v192_v10 = vld [vmem:[%s998_s5 + $0x50] sm:$0xff] }
  0x23   :  { %377 = vst.msk [vmem:[%s1004_s11 + $0x20] sm:$0xff] %vm372_vm0, %v360_v51  ;;  %v301_v8 = vmax.f32 %v269_v59, %v285_v40  ;;  %v207_v9 = vmax.f32 %v175_v62, %v191_v54  ;;  %v113_v11 = vmax.f32 %v81_v0, %v97_v57  ;;  %v66_v12 = vld [vmem:[%s994_s1 + $0x60] sm:$0xff]  ;;  %v255_v16 = vld [vmem:[%s1000_s7 + $0x48] sm:$0xff]  ;;  %v161_v19 = vld [vmem:[%s997_s4 + $0x58] sm:$0xff] }
  0x24   :  { %v98_v13 = vld [vmem:[%s995_s2 + $0x60] sm:$0xff]  ;;  %v346_v14 = vadd.f32 %v550_v47, %v323_v1  ;;  %v270_v15 = vmax.f32 %v238_v2, %v254_v60  ;;  %v287_v17 = vld [vmem:[%s1001_s8 + $0x48] sm:$0xff]  ;;  %v176_v18 = vmax.f32 %v144_v4, %v160_v63  ;;  %v82_v20 = vmax.f32 %v50_v6, %v66_v12  ;;  %378 = vst.msk [vmem:[%s1004_s11 + $0x28] sm:$0xff] %vm372_vm0, %v361_v7  ;;  %v224_v23 = vld [vmem:[%s999_s6 + $0x50] sm:$0xff] }
  0x25   :  { %v324_v21 = vmul.f32 %v527_v36, %v301_v8  ;;  %v239_v22 = vmax.f32 %v207_v9, %v223_v3  ;;  %v145_v24 = vmax.f32 %v113_v11, %v129_v5  ;;  %v130_v25 = vld [vmem:[%s996_s3 + $0x60] sm:$0xff]  ;;  %v51_v26 = vld [vmem:[%s993_s0 + $0x68] sm:$0xff]  ;;  %v193_v30 = vld [vmem:[%s998_s5 + $0x58] sm:$0xff] }
  0x26   :  { %v362_v27 = vmax.f32 %v346_v14, 0.0  ;;  %v302_v28 = vmax.f32 %v270_v15, %v286_v61  ;;  %v208_v29 = vmax.f32 %v176_v18, %v192_v10  ;;  %v114_v31 = vmax.f32 %v82_v20, %v98_v13  ;;  %v67_v32 = vld [vmem:[%s994_s1 + $0x68] sm:$0xff]  ;;  %v256_v37 = vld [vmem:[%s1000_s7 + $0x50] sm:$0xff]  ;;  %v162_v40 = vld [vmem:[%s997_s4 + $0x60] sm:$0xff] }
  0x27   :  { %v99_v33 = vld [vmem:[%s995_s2 + $0x68] sm:$0xff]  ;;  %v347_v34 = vadd.f32 %v550_v47, %v324_v21  ;;  %v271_v35 = vmax.f32 %v239_v22, %v255_v16  ;;  %v288_v38 = vld [vmem:[%s1001_s8 + $0x50] sm:$0xff]  ;;  %v177_v39 = vmax.f32 %v145_v24, %v161_v19  ;;  %v83_v41 = vmax.f32 %v51_v26, %v67_v32  ;;  %v225_v44 = vld [vmem:[%s999_s6 + $0x58] sm:$0xff] }
  0x28   :  { %379 = vst.msk [vmem:[%s1004_s11 + $0x30] sm:$0xff] %vm372_vm0, %v362_v27  ;;  %v325_v42 = vmul.f32 %v527_v36, %v302_v28  ;;  %v240_v43 = vmax.f32 %v208_v29, %v224_v23  ;;  %v146_v45 = vmax.f32 %v114_v31, %v130_v25  ;;  %v131_v46 = vld [vmem:[%s996_s3 + $0x68] sm:$0xff]  ;;  %v52_v48 = vld [vmem:[%s993_s0 + $0x70] sm:$0xff]  ;;  %v194_v52 = vld [vmem:[%s998_s5 + $0x60] sm:$0xff] }
  0x29   :  { %v363_v49 = vmax.f32 %v347_v34, 0.0  ;;  %v303_v50 = vmax.f32 %v271_v35, %v287_v17  ;;  %v209_v51 = vmax.f32 %v177_v39, %v193_v30  ;;  %v115_v53 = vmax.f32 %v83_v41, %v99_v33  ;;  %v68_v54 = vld [vmem:[%s994_s1 + $0x70] sm:$0xff]  ;;  %v257_v58 = vld [vmem:[%s1000_s7 + $0x58] sm:$0xff]  ;;  %v163_v61 = vld [vmem:[%s997_s4 + $0x68] sm:$0xff] }
  0x2a   :  { %v100_v55 = vld [vmem:[%s995_s2 + $0x70] sm:$0xff]  ;;  %v348_v56 = vadd.f32 %v550_v47, %v325_v42  ;;  %v272_v57 = vmax.f32 %v240_v43, %v256_v37  ;;  %v289_v59 = vld [vmem:[%s1001_s8 + $0x58] sm:$0xff]  ;;  %v178_v60 = vmax.f32 %v146_v45, %v162_v40  ;;  %v84_v62 = vmax.f32 %v52_v48, %v68_v54  ;;  %v226_v1 = vld [vmem:[%s999_s6 + $0x60] sm:$0xff] }
  0x2b   :  { %380 = vst.msk [vmem:[%s1004_s11 + $0x38] sm:$0xff] %vm372_vm0, %v363_v49  ;;  %v326_v63 = vmul.f32 %v527_v36, %v303_v50  ;;  %v241_v0 = vmax.f32 %v209_v51, %v225_v44  ;;  %v147_v2 = vmax.f32 %v115_v53, %v131_v46  ;;  %v132_v3 = vld [vmem:[%s996_s3 + $0x70] sm:$0xff]  ;;  %v53_v4 = vld [vmem:[%s993_s0 + $0x78] sm:$0xff]  ;;  %v195_v8 = vld [vmem:[%s998_s5 + $0x68] sm:$0xff] }
  0x2c   :  { %v364_v5 = vmax.f32 %v348_v56, 0.0  ;;  %v304_v6 = vmax.f32 %v272_v57, %v288_v38  ;;  %v210_v7 = vmax.f32 %v178_v60, %v194_v52  ;;  %v116_v9 = vmax.f32 %v84_v62, %v100_v55  ;;  %v69_v10 = vld [vmem:[%s994_s1 + $0x78] sm:$0xff]  ;;  %v258_v14 = vld [vmem:[%s1000_s7 + $0x60] sm:$0xff]  ;;  %v164_v16 = vld [vmem:[%s997_s4 + $0x70] sm:$0xff] }
  0x2d   :  { %v101_v11 = vld [vmem:[%s995_s2 + $0x78] sm:$0xff]  ;;  %v349_v12 = vadd.f32 %v550_v47, %v326_v63  ;;  %v273_v13 = vmax.f32 %v241_v0, %v257_v58  ;;  %v179_v15 = vmax.f32 %v147_v2, %v163_v61  ;;  %v85_v17 = vmax.f32 %v53_v4, %v69_v10  ;;  %v227_v20 = vld [vmem:[%s999_s6 + $0x68] sm:$0xff]  ;;  %v290_v25 = vld [vmem:[%s1001_s8 + $0x60] sm:$0xff] }
  0x2e   :  { %381 = vst.msk [vmem:[%s1004_s11 + $0x40] sm:$0xff] %vm372_vm0, %v364_v5  ;;  %v327_v18 = vmul.f32 %v527_v36, %v304_v6  ;;  %v242_v19 = vmax.f32 %v210_v7, %v226_v1  ;;  %v148_v21 = vmax.f32 %v116_v9, %v132_v3  ;;  %v133_v22 = vld [vmem:[%s996_s3 + $0x78] sm:$0xff]  ;;  %v196_v27 = vld [vmem:[%s998_s5 + $0x70] sm:$0xff]  ;;  %v259_v31 = vld [vmem:[%s1000_s7 + $0x68] sm:$0xff] }
  0x2f   :  { %v365_v23 = vmax.f32 %v349_v12, 0.0  ;;  %v305_v24 = vmax.f32 %v273_v13, %v289_v59  ;;  %v211_v26 = vmax.f32 %v179_v15, %v195_v8  ;;  %v117_v28 = vmax.f32 %v85_v17, %v101_v11  ;;  %v165_v33 = vld [vmem:[%s997_s4 + $0x78] sm:$0xff]  ;;  %v228_v37 = vld [vmem:[%s999_s6 + $0x70] sm:$0xff]  ;;  %v291_v41 = vld [vmem:[%s1001_s8 + $0x68] sm:$0xff] }
  0x30   :  { %v350_v29 = vadd.f32 %v550_v47, %v327_v18  ;;  %v274_v30 = vmax.f32 %v242_v19, %v258_v14  ;;  %v180_v32 = vmax.f32 %v148_v21, %v164_v16  ;;  %v197_v43 = vld [vmem:[%s998_s5 + $0x78] sm:$0xff]  ;;  %v260_v46 = vld [vmem:[%s1000_s7 + $0x70] sm:$0xff] }
  0x31   :  { %382 = vst.msk [vmem:[%s1004_s11 + $0x48] sm:$0xff] %vm372_vm0, %v365_v23  ;;  %v328_v34 = vmul.f32 %v527_v36, %v305_v24  ;;  %v243_v35 = vmax.f32 %v211_v26, %v227_v20  ;;  %v149_v38 = vmax.f32 %v117_v28, %v133_v22  ;;  %v229_v51 = vld [vmem:[%s999_s6 + $0x78] sm:$0xff]  ;;  %v292_v54 = vld [vmem:[%s1001_s8 + $0x70] sm:$0xff] }
  0x32   :  { %v366_v39 = vmax.f32 %v350_v29, 0.0  ;;  %v306_v40 = vmax.f32 %v274_v30, %v290_v25  ;;  %v212_v42 = vmax.f32 %v180_v32, %v196_v27  ;;  %v261_v58 = vld [vmem:[%s1000_s7 + $0x78] sm:$0xff] }
  0x33   :  { %v351_v44 = vadd.f32 %v550_v47, %v328_v34  ;;  %v275_v45 = vmax.f32 %v243_v35, %v259_v31  ;;  %v181_v48 = vmax.f32 %v149_v38, %v165_v33  ;;  %v293_v63 = vld [vmem:[%s1001_s8 + $0x78] sm:$0xff] }
  0x34   :  { %383 = vst.msk [vmem:[%s1004_s11 + $0x50] sm:$0xff] %vm372_vm0, %v366_v39  ;;  %v329_v49 = vmul.f32 %v527_v36, %v306_v40  ;;  %v244_v50 = vmax.f32 %v212_v42, %v228_v37 }
  0x35   :  { %v367_v52 = vmax.f32 %v351_v44, 0.0  ;;  %v307_v53 = vmax.f32 %v275_v45, %v291_v41  ;;  %v213_v55 = vmax.f32 %v181_v48, %v197_v43 }
  0x36   :  { %v352_v56 = vadd.f32 %v550_v47, %v329_v49  ;;  %v276_v57 = vmax.f32 %v244_v50, %v260_v46 }
  0x37   :  { %384 = vst.msk [vmem:[%s1004_s11 + $0x58] sm:$0xff] %vm372_vm0, %v367_v52  ;;  %v330_v59 = vmul.f32 %v527_v36, %v307_v53  ;;  %v245_v60 = vmax.f32 %v213_v55, %v229_v51 }
  0x38   :  { %v368_v61 = vmax.f32 %v352_v56, 0.0  ;;  %v308_v62 = vmax.f32 %v276_v57, %v292_v54 }
  0x39   :  { %v353_v0 = vadd.f32 %v550_v47, %v330_v59  ;;  %v277_v1 = vmax.f32 %v245_v60, %v261_v58 }
  0x3a   :  { %385 = vst.msk [vmem:[%s1004_s11 + $0x60] sm:$0xff] %vm372_vm0, %v368_v61  ;;  %v331_v2 = vmul.f32 %v527_v36, %v308_v62 }
  0x3b   :  { %v369_v3 = vmax.f32 %v353_v0, 0.0  ;;  %v309_v4 = vmax.f32 %v277_v1, %v293_v63 }
  0x3c   :  { %v354_v5 = vadd.f32 %v550_v47, %v331_v2 }
  0x3d   :  { %386 = vst.msk [vmem:[%s1004_s11 + $0x68] sm:$0xff] %vm372_vm0, %v369_v3  ;;  %v332_v6 = vmul.f32 %v527_v36, %v309_v4 }
  0x3e   :  { %v370_v7 = vmax.f32 %v354_v5, 0.0 }
  0x3f   :  { %v355_v8 = vadd.f32 %v550_v47, %v332_v6 }
  0x40   :  { %387 = vst.msk [vmem:[%s1004_s11 + $0x70] sm:$0xff] %vm372_vm0, %v370_v7 }
  0x41   :  { %v371_v9 = vmax.f32 %v355_v8, 0.0 }
  0x43   :  { %388 = vst.msk [vmem:[%s1004_s11 + $0x78] sm:$0xff] %vm372_vm0, %v371_v9 }

// kernel: _lambda_.14
= control target key start
LH: loop header
LB: loop body
LE: loop exit
PB: predicated region body
PF: predicated region fallthrough
CT: control target
= control target key end

     0   :  { %v2549_v0 = vmov 0   ;;  %vm22_vm0 = vcmask 523264   ;;  %s3696_s1 = inlined_call_operand.vmem [shape: bf16[512,64], index: 1, kind: input, shape index: {}]   ;;  %s3697_s0 = inlined_call_operand.vmem [shape: bf16[512,512], index: 0, kind: input, shape index: {}]   ;;  %s3698_s2 = inlined_call_operand.vmem [shape: f32[1,64], index: 2, kind: input, shape index: {}]   ;;  %s3699_s3 = inlined_call_operand.vmem [shape: f32[1,64], index: 3, kind: input, shape index: {}]   ;;  %s3700_s4 = inlined_call_operand.vmem [shape: f32[512,64], index: 4, kind: output, shape index: {}]  }
   0x1   :  { %1175 = vmatprep.subr.bf16.mxu0 %v2549_v0  ;;  %1464 = vmatprep.subr.bf16.mxu1 %v2549_v0  ;;  %v2323_v1 = vld [vmem:[%s3696_s1] sm:$0xff]   ;;  %v2325_v3 = vld [vmem:[%s3696_s1 + $0x8] sm:$0xff]   ;;  %v2327_v5 = vld [vmem:[%s3696_s1 + $0x10] sm:$0xff]  }
   0x2   :  { %v2324_v2 = vld [vmem:[%s3696_s1 + $0x80] sm:$0xff]   ;;  %1176 = vmatpush1.bf16.msra.mxu0 %v2323_v1  ;;  %v2326_v4 = vld [vmem:[%s3696_s1 + $0x88] sm:$0xff]   ;;  %v2328_v6 = vld [vmem:[%s3696_s1 + $0x90] sm:$0xff]  }
   0x3   :  { %1465 = vmatpush1.bf16.msra.mxu1 %v2324_v2  ;;  %1177 = vmatprep.subr.bf16.mxu0 %v2549_v0  ;;  %v2329_v7 = vld [vmem:[%s3696_s1 + $0x18] sm:$0xff]   ;;  %v2331_v9 = vld [vmem:[%s3696_s1 + $0x20] sm:$0xff]   ;;  %v2333_v11 = vld [vmem:[%s3696_s1 + $0x28] sm:$0xff]  }
   0x4   :  { %1466 = vmatprep.subr.bf16.mxu1 %v2549_v0  ;;  %v2330_v8 = vld [vmem:[%s3696_s1 + $0x98] sm:$0xff]   ;;  %v2332_v10 = vld [vmem:[%s3696_s1 + $0xa0] sm:$0xff]   ;;  %v2334_v12 = vld [vmem:[%s3696_s1 + $0xa8] sm:$0xff]  }
   0x5   :  { %v2335_v13 = vld [vmem:[%s3696_s1 + $0x30] sm:$0xff]   ;;  %v2337_v15 = vld [vmem:[%s3696_s1 + $0x38] sm:$0xff]   ;;  %v2339_v17 = vld [vmem:[%s3696_s1 + $0x40] sm:$0xff]  }
   0x6   :  { %1178 = vmatpush1.bf16.msra.mxu0 %v2325_v3  ;;  %v2336_v14 = vld [vmem:[%s3696_s1 + $0xb0] sm:$0xff]   ;;  %v2338_v16 = vld [vmem:[%s3696_s1 + $0xb8] sm:$0xff]   ;;  %v2340_v18 = vld [vmem:[%s3696_s1 + $0xc0] sm:$0xff]  }
   0x7   :  { %1467 = vmatpush1.bf16.msra.mxu1 %v2326_v4  ;;  %1179 = vmatprep.subr.bf16.mxu0 %v2549_v0  ;;  %v2357_v19 = vld [vmem:[%s3697_s0 + $0x4] ss:$16 sps:$4 sm:$0xff]   ;;  %v2341_v20 = vld [vmem:[%s3696_s1 + $0x48] sm:$0xff]   ;;  %v2345_v25 = vld [vmem:[%s3696_s1 + $0x58] sm:$0xff]  }
   0x8   :  { %1468 = vmatprep.subr.bf16.mxu1 %v2549_v0  ;;  %v2360_v21 = vld [vmem:[%s3697_s0 + $0xc] ss:$16 sps:$4 sm:$0xff]   ;;  %1207 = vmatprep.mubr.bf16.mxu0 %v2357_v19  ;;  %v2343_v23 = vld [vmem:[%s3696_s1 + $0x50] sm:$0xff]   ;;  %v2347_v27 = vld [vmem:[%s3696_s1 + $0x60] sm:$0xff]  }
   0x9   :  { %v2342_v22 = vld [vmem:[%s3696_s1 + $0xc8] sm:$0xff]   ;;  %1496 = vmatprep.mubr.bf16.mxu1 %v2360_v21  ;;  %v2344_v24 = vld [vmem:[%s3696_s1 + $0xd0] sm:$0xff]   ;;  %v2346_v26 = vld [vmem:[%s3696_s1 + $0xd8] sm:$0xff]  }
   0xa   :  { %1180 = vmatpush1.bf16.msra.mxu0 %v2327_v5  ;;  %v2348_v28 = vld [vmem:[%s3696_s1 + $0xe0] sm:$0xff]   ;;  %v2349_v29 = vld [vmem:[%s3696_s1 + $0x68] sm:$0xff]   ;;  %v2351_v31 = vld [vmem:[%s3696_s1 + $0x70] sm:$0xff]  }
   0xb   :  { %1469 = vmatpush1.bf16.msra.mxu1 %v2328_v6  ;;  %1181 = vmatprep.subr.bf16.mxu0 %v2549_v0  ;;  %v2350_v30 = vld [vmem:[%s3696_s1 + $0xe8] sm:$0xff]   ;;  %v2352_v32 = vld [vmem:[%s3696_s1 + $0xf0] sm:$0xff]   ;;  %v2353_v33 = vld [vmem:[%s3696_s1 + $0x78] sm:$0xff]  }
   0xc   :  { %1470 = vmatprep.subr.bf16.mxu1 %v2549_v0  ;;  %v2354_v34 = vld [vmem:[%s3696_s1 + $0xf8] sm:$0xff]   ;;  %v2355_v35 = vld [vmem:[%s3697_s0] ss:$16 sps:$4 sm:$0xff]   ;;  %v2361_v37 = vld [vmem:[%s3697_s0 + $0x24] ss:$16 sps:$4 sm:$0xff]  }
   0xd   :  { %v2358_v36 = vld [vmem:[%s3697_s0 + $0x8] ss:$16 sps:$4 sm:$0xff]   ;;  %v2363_v38 = vld [vmem:[%s3697_s0 + $0x2c] ss:$16 sps:$4 sm:$0xff]   ;;  %v2365_v39 = vld [vmem:[%s3697_s0 + $0x20] ss:$16 sps:$4 sm:$0xff]  }
   0xe   :  { %1182 = vmatpush1.bf16.msra.mxu0 %v2329_v7  ;;  %v2366_v40 = vld [vmem:[%s3697_s0 + $0x28] ss:$16 sps:$4 sm:$0xff]   ;;  %v2367_v41 = vld [vmem:[%s3697_s0 + $0x44] ss:$16 sps:$4 sm:$0xff]   ;;  %v2369_v42 = vld [vmem:[%s3697_s0 + $0x4c] ss:$16 sps:$4 sm:$0xff]  }
   0xf   :  { %1471 = vmatpush1.bf16.msra.mxu1 %v2330_v8  ;;  %1183 = vmatprep.subr.bf16.mxu0 %v2549_v0  ;;  %v2371_v43 = vld [vmem:[%s3697_s0 + $0x40] ss:$16 sps:$4 sm:$0xff]   ;;  %v2372_v44 = vld [vmem:[%s3697_s0 + $0x48] ss:$16 sps:$4 sm:$0xff]   ;;  %v2373_v45 = vld [vmem:[%s3697_s0 + $0x64] ss:$16 sps:$4 sm:$0xff]  }
  0x10   :  { %1472 = vmatprep.subr.bf16.mxu1 %v2549_v0  ;;  %v2375_v46 = vld [vmem:[%s3697_s0 + $0x6c] ss:$16 sps:$4 sm:$0xff]   ;;  %v2377_v47 = vld [vmem:[%s3697_s0 + $0x60] ss:$16 sps:$4 sm:$0xff]   ;;  %v2378_v48 = vld [vmem:[%s3697_s0 + $0x68] ss:$16 sps:$4 sm:$0xff]  }
  0x11   :  { %v2379_v49 = vld [vmem:[%s3697_s0 + $0x84] ss:$16 sps:$4 sm:$0xff]   ;;  %v2381_v50 = vld [vmem:[%s3697_s0 + $0x8c] ss:$16 sps:$4 sm:$0xff]   ;;  %v2383_v51 = vld [vmem:[%s3697_s0 + $0x80] ss:$16 sps:$4 sm:$0xff]  }
  0x12   :  { %1184 = vmatpush1.bf16.msra.mxu0 %v2331_v9  ;;  %v2384_v52 = vld [vmem:[%s3697_s0 + $0x88] ss:$16 sps:$4 sm:$0xff]   ;;  %v2385_v53 = vld [vmem:[%s3697_s0 + $0xa4] ss:$16 sps:$4 sm:$0xff]   ;;  %v2387_v54 = vld [vmem:[%s3697_s0 + $0xac] ss:$16 sps:$4 sm:$0xff]  }
  0x13   :  { %1473 = vmatpush1.bf16.msra.mxu1 %v2332_v10  ;;  %1185 = vmatprep.subr.bf16.mxu0 %v2549_v0  ;;  %v2389_v55 = vld [vmem:[%s3697_s0 + $0xa0] ss:$16 sps:$4 sm:$0xff]   ;;  %v2390_v56 = vld [vmem:[%s3697_s0 + $0xa8] ss:$16 sps:$4 sm:$0xff]   ;;  %v2391_v57 = vld [vmem:[%s3697_s0 + $0xc4] ss:$16 sps:$4 sm:$0xff]  }
  0x14   :  { %1474 = vmatprep.subr.bf16.mxu1 %v2549_v0  ;;  %v2393_v58 = vld [vmem:[%s3697_s0 + $0xcc] ss:$16 sps:$4 sm:$0xff]   ;;  %v2395_v59 = vld [vmem:[%s3697_s0 + $0xc0] ss:$16 sps:$4 sm:$0xff]   ;;  %v2396_v60 = vld [vmem:[%s3697_s0 + $0xc8] ss:$16 sps:$4 sm:$0xff]  }
  0x15   :  { %v2397_v61 = vld [vmem:[%s3697_s0 + $0xe4] ss:$16 sps:$4 sm:$0xff]   ;;  %v2399_v62 = vld [vmem:[%s3697_s0 + $0xec] ss:$16 sps:$4 sm:$0xff]   ;;  %v2401_v63 = vld [vmem:[%s3697_s0 + $0xe0] ss:$16 sps:$4 sm:$0xff]  }
  0x16   :  { %1186 = vmatpush1.bf16.msra.mxu0 %v2333_v11  ;;  %v2403_v1 = vld [vmem:[%s3697_s0 + $0x104] ss:$16 sps:$4 sm:$0xff]   ;;  %v2405_v2 = vld [vmem:[%s3697_s0 + $0x10c] ss:$16 sps:$4 sm:$0xff]   ;;  %v2407_v3 = vld [vmem:[%s3697_s0 + $0x100] ss:$16 sps:$4 sm:$0xff]  }
  0x17   :  { %1475 = vmatpush1.bf16.msra.mxu1 %v2334_v12  ;;  %1187 = vmatprep.subr.bf16.mxu0 %v2549_v0  ;;  %v2408_v4 = vld [vmem:[%s3697_s0 + $0x108] ss:$16 sps:$4 sm:$0xff]   ;;  %v2409_v5 = vld [vmem:[%s3697_s0 + $0x124] ss:$16 sps:$4 sm:$0xff]   ;;  %v2411_v6 = vld [vmem:[%s3697_s0 + $0x12c] ss:$16 sps:$4 sm:$0xff]  }
  0x18   :  { %1476 = vmatprep.subr.bf16.mxu1 %v2549_v0  ;;  %v2413_v7 = vld [vmem:[%s3697_s0 + $0x120] ss:$16 sps:$4 sm:$0xff]   ;;  %v2414_v8 = vld [vmem:[%s3697_s0 + $0x128] ss:$16 sps:$4 sm:$0xff]   ;;  %v2415_v9 = vld [vmem:[%s3697_s0 + $0x144] ss:$16 sps:$4 sm:$0xff]  }
  0x19   :  { %v2417_v10 = vld [vmem:[%s3697_s0 + $0x14c] ss:$16 sps:$4 sm:$0xff]   ;;  %v2833_v11 = vld [vmem:[%s3697_s0 + $0x140] ss:$16 sps:$4 sm:$0xff]   ;;  %v2838_v12 = vld [vmem:[%s3697_s0 + $0x148] ss:$16 sps:$4 sm:$0xff]  }
  0x1a   :  { %1188 = vmatpush1.bf16.msra.mxu0 %v2335_v13  ;;  %v2843_v13 = vld [vmem:[%s3697_s0 + $0x164] ss:$16 sps:$4 sm:$0xff]   ;;  %v2429_v19 = vld [vmem:[%s3697_s0 + $0x18c] ss:$16 sps:$4 sm:$0xff]   ;;  %v2432_v21 = vld [vmem:[%s3697_s0 + $0x188] ss:$16 sps:$4 sm:$0xff]  }
  0x1b   :  { %1477 = vmatpush1.bf16.msra.mxu1 %v2336_v14  ;;  %1189 = vmatprep.subr.bf16.mxu0 %v2549_v0  ;;  %v2848_v14 = vld [vmem:[%s3697_s0 + $0x16c] ss:$16 sps:$4 sm:$0xff]  }
  0x1c   :  { %1478 = vmatprep.subr.bf16.mxu1 %v2549_v0 }
  0x1e   :  { %1190 = vmatpush1.bf16.msra.mxu0 %v2337_v15  ;;  %v2550_v15 = vmov 0.0  }
  0x1f   :  { %1479 = vmatpush1.bf16.msra.mxu1 %v2338_v16  ;;  %1191 = vmatprep.subr.bf16.mxu0 %v2549_v0  ;;  %23 = vst.msk [vmem:[#allocation2] sm:$0xff] %vm22_vm0, %v2550_v15  ;;  %24 = vst.msk [vmem:[#allocation2 + $0x8] sm:$0xff] %vm22_vm0, %v2550_v15  ;;  %v2425_v16 = vld [vmem:[%s3697_s0 + $0x160] ss:$16 sps:$4 sm:$0xff]  }
  0x20   :  { %1480 = vmatprep.subr.bf16.mxu1 %v2549_v0  ;;  %25 = vst.msk [vmem:[#allocation2 + $0x10] sm:$0xff] %vm22_vm0, %v2550_v15  ;;  %26 = vst.msk [vmem:[#allocation2 + $0x18] sm:$0xff] %vm22_vm0, %v2550_v15 }
  0x21   :  { %27 = vst.msk [vmem:[#allocation2 + $0x20] sm:$0xff] %vm22_vm0, %v2550_v15  ;;  %28 = vst.msk [vmem:[#allocation2 + $0x28] sm:$0xff] %vm22_vm0, %v2550_v15 }
  0x22   :  { %1192 = vmatpush1.bf16.msra.mxu0 %v2339_v17  ;;  %29 = vst.msk [vmem:[#allocation2 + $0x30] sm:$0xff] %vm22_vm0, %v2550_v15  ;;  %30 = vst.msk [vmem:[#allocation2 + $0x38] sm:$0xff] %vm22_vm0, %v2550_v15  ;;  %v2426_v17 = vld [vmem:[%s3697_s0 + $0x168] ss:$16 sps:$4 sm:$0xff]  }
  0x23   :  { %1481 = vmatpush1.bf16.msra.mxu1 %v2340_v18  ;;  %1193 = vmatprep.subr.bf16.mxu0 %v2549_v0  ;;  %31 = vst.msk [vmem:[#allocation2 + $0x40] sm:$0xff] %vm22_vm0, %v2550_v15  ;;  %32 = vst.msk [vmem:[#allocation2 + $0x48] sm:$0xff] %vm22_vm0, %v2550_v15  ;;  %v2427_v18 = vld [vmem:[%s3697_s0 + $0x184] ss:$16 sps:$4 sm:$0xff]  }
  0x24   :  { %1482 = vmatprep.subr.bf16.mxu1 %v2549_v0  ;;  %33 = vst.msk [vmem:[#allocation2 + $0x50] sm:$0xff] %vm22_vm0, %v2550_v15  ;;  %34 = vst.msk [vmem:[#allocation2 + $0x58] sm:$0xff] %vm22_vm0, %v2550_v15 }
  0x25   :  { %35 = vst.msk [vmem:[#allocation2 + $0x60] sm:$0xff] %vm22_vm0, %v2550_v15  ;;  %36 = vst.msk [vmem:[#allocation2 + $0x68] sm:$0xff] %vm22_vm0, %v2550_v15 }
  0x26   :  { %1194 = vmatpush1.bf16.msra.mxu0 %v2341_v20  ;;  %37 = vst.msk [vmem:[#allocation2 + $0x70] sm:$0xff] %vm22_vm0, %v2550_v15  ;;  %38 = vst.msk [vmem:[#allocation2 + $0x78] sm:$0xff] %vm22_vm0, %v2550_v15  ;;  %v2431_v20 = vld [vmem:[%s3697_s0 + $0x180] ss:$16 sps:$4 sm:$0xff]  }
  0x27   :  { %1483 = vmatpush1.bf16.msra.mxu1 %v2342_v22  ;;  %1195 = vmatprep.subr.bf16.mxu0 %v2549_v0  ;;  %39 = vst.msk [vmem:[#allocation2 + $0x80] sm:$0xff] %vm22_vm0, %v2550_v15  ;;  %40 = vst.msk [vmem:[#allocation2 + $0x88] sm:$0xff] %vm22_vm0, %v2550_v15  ;;  %v2433_v22 = vld [vmem:[%s3697_s0 + $0x1a4] ss:$16 sps:$4 sm:$0xff]  }
  0x28   :  { %1484 = vmatprep.subr.bf16.mxu1 %v2549_v0  ;;  %41 = vst.msk [vmem:[#allocation2 + $0x90] sm:$0xff] %vm22_vm0, %v2550_v15  ;;  %42 = vst.msk [vmem:[#allocation2 + $0x98] sm:$0xff] %vm22_vm0, %v2550_v15 }
  0x29   :  { %43 = vst.msk [vmem:[#allocation2 + $0xa0] sm:$0xff] %vm22_vm0, %v2550_v15  ;;  %44 = vst.msk [vmem:[#allocation2 + $0xa8] sm:$0xff] %vm22_vm0, %v2550_v15 }
  0x2a   :  { %1196 = vmatpush1.bf16.msra.mxu0 %v2343_v23  ;;  %45 = vst.msk [vmem:[#allocation2 + $0xb0] sm:$0xff] %vm22_vm0, %v2550_v15  ;;  %46 = vst.msk [vmem:[#allocation2 + $0xb8] sm:$0xff] %vm22_vm0, %v2550_v15  ;;  %v2435_v23 = vld [vmem:[%s3697_s0 + $0x1ac] ss:$16 sps:$4 sm:$0xff]  }
  0x2b   :  { %1485 = vmatpush1.bf16.msra.mxu1 %v2344_v24  ;;  %1197 = vmatprep.subr.bf16.mxu0 %v2549_v0  ;;  %47 = vst.msk [vmem:[#allocation2 + $0xc0] sm:$0xff] %vm22_vm0, %v2550_v15  ;;  %48 = vst.msk [vmem:[#allocation2 + $0xc8] sm:$0xff] %vm22_vm0, %v2550_v15  ;;  %v2437_v24 = vld [vmem:[%s3697_s0 + $0x1a0] ss:$16 sps:$4 sm:$0xff]  }
  0x2c   :  { %1486 = vmatprep.subr.bf16.mxu1 %v2549_v0  ;;  %49 = vst.msk [vmem:[#allocation2 + $0xd0] sm:$0xff] %vm22_vm0, %v2550_v15  ;;  %50 = vst.msk [vmem:[#allocation2 + $0xd8] sm:$0xff] %vm22_vm0, %v2550_v15 }
  0x2d   :  { %51 = vst.msk [vmem:[#allocation2 + $0xe0] sm:$0xff] %vm22_vm0, %v2550_v15  ;;  %52 = vst.msk [vmem:[#allocation2 + $0xe8] sm:$0xff] %vm22_vm0, %v2550_v15 }
  0x2e   :  { %1198 = vmatpush1.bf16.msra.mxu0 %v2345_v25  ;;  %53 = vst.msk [vmem:[#allocation2 + $0xf0] sm:$0xff] %vm22_vm0, %v2550_v15  ;;  %54 = vst.msk [vmem:[#allocation2 + $0xf8] sm:$0xff] %vm22_vm0, %v2550_v15  ;;  %v2438_v25 = vld [vmem:[%s3697_s0 + $0x1a8] ss:$16 sps:$4 sm:$0xff]  }
  0x2f   :  { %1487 = vmatpush1.bf16.msra.mxu1 %v2346_v26  ;;  %1199 = vmatprep.subr.bf16.mxu0 %v2549_v0  ;;  %55 = vst.msk [vmem:[#allocation2 + $0x100] sm:$0xff] %vm22_vm0, %v2550_v15  ;;  %56 = vst.msk [vmem:[#allocation2 + $0x108] sm:$0xff] %vm22_vm0, %v2550_v15  ;;  %v2439_v26 = vld [vmem:[%s3697_s0 + $0x1c4] ss:$16 sps:$4 sm:$0xff]  }
  0x30   :  { %1488 = vmatprep.subr.bf16.mxu1 %v2549_v0  ;;  %57 = vst.msk [vmem:[#allocation2 + $0x110] sm:$0xff] %vm22_vm0, %v2550_v15  ;;  %58 = vst.msk [vmem:[#allocation2 + $0x118] sm:$0xff] %vm22_vm0, %v2550_v15 }
  0x31   :  { %59 = vst.msk [vmem:[#allocation2 + $0x120] sm:$0xff] %vm22_vm0, %v2550_v15  ;;  %60 = vst.msk [vmem:[#allocation2 + $0x128] sm:$0xff] %vm22_vm0, %v2550_v15 }
  0x32   :  { %1200 = vmatpush1.bf16.msra.mxu0 %v2347_v27  ;;  %61 = vst.msk [vmem:[#allocation2 + $0x130] sm:$0xff] %vm22_vm0, %v2550_v15  ;;  %62 = vst.msk [vmem:[#allocation2 + $0x138] sm:$0xff] %vm22_vm0, %v2550_v15  ;;  %v2441_v27 = vld [vmem:[%s3697_s0 + $0x1cc] ss:$16 sps:$4 sm:$0xff]  }
  0x33   :  { %1489 = vmatpush1.bf16.msra.mxu1 %v2348_v28  ;;  %1201 = vmatprep.subr.bf16.mxu0 %v2549_v0  ;;  %63 = vst.msk [vmem:[#allocation2 + $0x140] sm:$0xff] %vm22_vm0, %v2550_v15  ;;  %64 = vst.msk [vmem:[#allocation2 + $0x148] sm:$0xff] %vm22_vm0, %v2550_v15  ;;  %v2443_v28 = vld [vmem:[%s3697_s0 + $0x1c0] ss:$16 sps:$4 sm:$0xff]  }
  0x34   :  { %1490 = vmatprep.subr.bf16.mxu1 %v2549_v0  ;;  %65 = vst.msk [vmem:[#allocation2 + $0x150] sm:$0xff] %vm22_vm0, %v2550_v15  ;;  %66 = vst.msk [vmem:[#allocation2 + $0x158] sm:$0xff] %vm22_vm0, %v2550_v15 }
  0x35   :  { %67 = vst.msk [vmem:[#allocation2 + $0x160] sm:$0xff] %vm22_vm0, %v2550_v15  ;;  %68 = vst.msk [vmem:[#allocation2 + $0x168] sm:$0xff] %vm22_vm0, %v2550_v15 }
  0x36   :  { %1202 = vmatpush1.bf16.msra.mxu0 %v2349_v29  ;;  %69 = vst.msk [vmem:[#allocation2 + $0x170] sm:$0xff] %vm22_vm0, %v2550_v15  ;;  %70 = vst.msk [vmem:[#allocation2 + $0x178] sm:$0xff] %vm22_vm0, %v2550_v15  ;;  %v2444_v29 = vld [vmem:[%s3697_s0 + $0x1c8] ss:$16 sps:$4 sm:$0xff]  }
  0x37   :  { %1491 = vmatpush1.bf16.msra.mxu1 %v2350_v30  ;;  %1203 = vmatprep.subr.bf16.mxu0 %v2549_v0  ;;  %71 = vst.msk [vmem:[#allocation2 + $0x180] sm:$0xff] %vm22_vm0, %v2550_v15  ;;  %72 = vst.msk [vmem:[#allocation2 + $0x188] sm:$0xff] %vm22_vm0, %v2550_v15  ;;  %v2445_v30 = vld [vmem:[%s3697_s0 + $0x1e4] ss:$16 sps:$4 sm:$0xff]  }
  0x38   :  { %1492 = vmatprep.subr.bf16.mxu1 %v2549_v0  ;;  %73 = vst.msk [vmem:[#allocation2 + $0x190] sm:$0xff] %vm22_vm0, %v2550_v15  ;;  %74 = vst.msk [vmem:[#allocation2 + $0x198] sm:$0xff] %vm22_vm0, %v2550_v15 }
  0x39   :  { %75 = vst.msk [vmem:[#allocation2 + $0x1a0] sm:$0xff] %vm22_vm0, %v2550_v15  ;;  %76 = vst.msk [vmem:[#allocation2 + $0x1a8] sm:$0xff] %vm22_vm0, %v2550_v15 }
  0x3a   :  { %1204 = vmatpush1.bf16.msra.mxu0 %v2351_v31  ;;  %77 = vst.msk [vmem:[#allocation2 + $0x1b0] sm:$0xff] %vm22_vm0, %v2550_v15  ;;  %78 = vst.msk [vmem:[#allocation2 + $0x1b8] sm:$0xff] %vm22_vm0, %v2550_v15  ;;  %v2447_v31 = vld [vmem:[%s3697_s0 + $0x1ec] ss:$16 sps:$4 sm:$0xff]  }
  0x3b   :  { %1493 = vmatpush1.bf16.msra.mxu1 %v2352_v32  ;;  %1205 = vmatprep.subr.bf16.mxu0 %v2549_v0  ;;  %79 = vst.msk [vmem:[#allocation2 + $0x1c0] sm:$0xff] %vm22_vm0, %v2550_v15  ;;  %80 = vst.msk [vmem:[#allocation2 + $0x1c8] sm:$0xff] %vm22_vm0, %v2550_v15  ;;  %v2449_v32 = vld [vmem:[%s3697_s0 + $0x1e0] ss:$16 sps:$4 sm:$0xff]  }
  0x3c   :  { %1494 = vmatprep.subr.bf16.mxu1 %v2549_v0  ;;  %v2402_v0 = vld [vmem:[%s3697_s0 + $0xe8] ss:$16 sps:$4 sm:$0xff]   ;;  %81 = vst.msk [vmem:[#allocation2 + $0x1d0] sm:$0xff] %vm22_vm0, %v2550_v15  ;;  %82 = vst.msk [vmem:[#allocation2 + $0x1d8] sm:$0xff] %vm22_vm0, %v2550_v15 }
  0x3d   :  { %83 = vst.msk [vmem:[#allocation2 + $0x1e0] sm:$0xff] %vm22_vm0, %v2550_v15  ;;  %84 = vst.msk [vmem:[#allocation2 + $0x1e8] sm:$0xff] %vm22_vm0, %v2550_v15 }
  0x3e   :  { %1206 = vmatpush1.bf16.msra.mxu0 %v2353_v33  ;;  %85 = vst.msk [vmem:[#allocation2 + $0x1f0] sm:$0xff] %vm22_vm0, %v2550_v15  ;;  %86 = vst.msk [vmem:[#allocation2 + $0x1f8] sm:$0xff] %vm22_vm0, %v2550_v15  ;;  %v2450_v33 = vld [vmem:[%s3697_s0 + $0x1e8] ss:$16 sps:$4 sm:$0xff]   ;;  %v2519_v15 = vld [vmem:[%s3697_s0 + $0x36c] ss:$16 sps:$4 sm:$0xff]  }
  0x3f   :  { %1495 = vmatpush1.bf16.msra.mxu1 %v2354_v34  ;;  %v2451_v34 = vld [vmem:[%s3697_s0 + $0x204] ss:$16 sps:$4 sm:$0xff]  }
  0x41   :  { %1208 = vmatmul.mubr.bf16.vlgmr.msra.gmra.mrb[0].mxu0 %v2355_v35  ;;  %v2453_v35 = vld [vmem:[%s3697_s0 + $0x20c] ss:$16 sps:$4 sm:$0xff]  }
  0x42   :  { %1497 = vmatmul.mubr.bf16.vlgmr.msra.gmra.mrb[0].mxu1 %v2358_v36  ;;  %1215 = vmatprep.mubr.bf16.mxu0 %v2361_v37  ;;  %v2455_v36 = vld [vmem:[%s3697_s0 + $0x200] ss:$16 sps:$4 sm:$0xff]   ;;  %v2456_v37 = vld [vmem:[%s3697_s0 + $0x208] ss:$16 sps:$4 sm:$0xff]  }
  0x43   :  { %1504 = vmatprep.mubr.bf16.mxu1 %v2363_v38  ;;  %v2457_v38 = vld [vmem:[%s3697_s0 + $0x224] ss:$16 sps:$4 sm:$0xff]  }
  0x49   :  { %1216 = vmatmul.mubr.bf16.gmra.mrb[4].mxu0 %v2365_v39  ;;  %v2459_v39 = vld [vmem:[%s3697_s0 + $0x22c] ss:$16 sps:$4 sm:$0xff]  }
  0x4a   :  { %1505 = vmatmul.mubr.bf16.gmra.mrb[4].mxu1 %v2366_v40  ;;  %1223 = vmatprep.mubr.bf16.mxu0 %v2367_v41  ;;  %v2461_v40 = vld [vmem:[%s3697_s0 + $0x220] ss:$16 sps:$4 sm:$0xff]   ;;  %v2462_v41 = vld [vmem:[%s3697_s0 + $0x228] ss:$16 sps:$4 sm:$0xff]  }
  0x4b   :  { %1512 = vmatprep.mubr.bf16.mxu1 %v2369_v42  ;;  %v2463_v42 = vld [vmem:[%s3697_s0 + $0x244] ss:$16 sps:$4 sm:$0xff]  }
  0x51   :  { %1224 = vmatmul.mubr.bf16.gmra.mrb[8].mxu0 %v2371_v43  ;;  %v2465_v43 = vld [vmem:[%s3697_s0 + $0x24c] ss:$16 sps:$4 sm:$0xff]  }
  0x52   :  { %1513 = vmatmul.mubr.bf16.gmra.mrb[8].mxu1 %v2372_v44  ;;  %1231 = vmatprep.mubr.bf16.mxu0 %v2373_v45  ;;  %v2467_v44 = vld [vmem:[%s3697_s0 + $0x240] ss:$16 sps:$4 sm:$0xff]   ;;  %v2468_v45 = vld [vmem:[%s3697_s0 + $0x248] ss:$16 sps:$4 sm:$0xff]  }
  0x53   :  { %1520 = vmatprep.mubr.bf16.mxu1 %v2375_v46  ;;  %v2469_v46 = vld [vmem:[%s3697_s0 + $0x264] ss:$16 sps:$4 sm:$0xff]  }
  0x59   :  { %1232 = vmatmul.mubr.bf16.gmra.mrb[12].mxu0 %v2377_v47  ;;  %v2471_v47 = vld [vmem:[%s3697_s0 + $0x26c] ss:$16 sps:$4 sm:$0xff]  }
  0x5a   :  { %1521 = vmatmul.mubr.bf16.gmra.mrb[12].mxu1 %v2378_v48  ;;  %1239 = vmatprep.mubr.bf16.mxu0 %v2379_v49  ;;  %v2473_v48 = vld [vmem:[%s3697_s0 + $0x260] ss:$16 sps:$4 sm:$0xff]   ;;  %v2474_v49 = vld [vmem:[%s3697_s0 + $0x268] ss:$16 sps:$4 sm:$0xff]  }
  0x5b   :  { %1528 = vmatprep.mubr.bf16.mxu1 %v2381_v50  ;;  %v2475_v50 = vld [vmem:[%s3697_s0 + $0x284] ss:$16 sps:$4 sm:$0xff]  }
  0x61   :  { %1240 = vmatmul.mubr.bf16.gmra.mrb[16].mxu0 %v2383_v51  ;;  %v2477_v51 = vld [vmem:[%s3697_s0 + $0x28c] ss:$16 sps:$4 sm:$0xff]  }
  0x62   :  { %1529 = vmatmul.mubr.bf16.gmra.mrb[16].mxu1 %v2384_v52  ;;  %1247 = vmatprep.mubr.bf16.mxu0 %v2385_v53  ;;  %v2479_v52 = vld [vmem:[%s3697_s0 + $0x280] ss:$16 sps:$4 sm:$0xff]   ;;  %v2480_v53 = vld [vmem:[%s3697_s0 + $0x288] ss:$16 sps:$4 sm:$0xff]  }
  0x63   :  { %1536 = vmatprep.mubr.bf16.mxu1 %v2387_v54  ;;  %v2481_v54 = vld [vmem:[%s3697_s0 + $0x2a4] ss:$16 sps:$4 sm:$0xff]  }
  0x69   :  { %1248 = vmatmul.mubr.bf16.gmra.mrb[20].mxu0 %v2389_v55  ;;  %v2483_v55 = vld [vmem:[%s3697_s0 + $0x2ac] ss:$16 sps:$4 sm:$0xff]  }
  0x6a   :  { %1537 = vmatmul.mubr.bf16.gmra.mrb[20].mxu1 %v2390_v56  ;;  %1255 = vmatprep.mubr.bf16.mxu0 %v2391_v57  ;;  %v2485_v56 = vld [vmem:[%s3697_s0 + $0x2a0] ss:$16 sps:$4 sm:$0xff]   ;;  %v2486_v57 = vld [vmem:[%s3697_s0 + $0x2a8] ss:$16 sps:$4 sm:$0xff]  }
  0x6b   :  { %1544 = vmatprep.mubr.bf16.mxu1 %v2393_v58  ;;  %v2487_v58 = vld [vmem:[%s3697_s0 + $0x2c4] ss:$16 sps:$4 sm:$0xff]  }
  0x71   :  { %1256 = vmatmul.mubr.bf16.gmra.mrb[24].mxu0 %v2395_v59  ;;  %v2489_v59 = vld [vmem:[%s3697_s0 + $0x2cc] ss:$16 sps:$4 sm:$0xff]  }
  0x72   :  { %1545 = vmatmul.mubr.bf16.gmra.mrb[24].mxu1 %v2396_v60  ;;  %1263 = vmatprep.mubr.bf16.mxu0 %v2397_v61  ;;  %v2491_v60 = vld [vmem:[%s3697_s0 + $0x2c0] ss:$16 sps:$4 sm:$0xff]   ;;  %v2492_v61 = vld [vmem:[%s3697_s0 + $0x2c8] ss:$16 sps:$4 sm:$0xff]  }
  0x73   :  { %1552 = vmatprep.mubr.bf16.mxu1 %v2399_v62  ;;  %v2493_v62 = vld [vmem:[%s3697_s0 + $0x2e4] ss:$16 sps:$4 sm:$0xff]  }
  0x79   :  { %1264 = vmatmul.mubr.bf16.gmra.mrb[28].mxu0 %v2401_v63  ;;  %v2495_v63 = vld [vmem:[%s3697_s0 + $0x2ec] ss:$16 sps:$4 sm:$0xff]  }
  0x7a   :  { %1553 = vmatmul.mubr.bf16.gmra.mrb[28].mxu1 %v2402_v0  ;;  %1271 = vmatprep.mubr.bf16.mxu0 %v2403_v1  ;;  %v2497_v0 = vld [vmem:[%s3697_s0 + $0x2e0] ss:$16 sps:$4 sm:$0xff]   ;;  %v2498_v1 = vld [vmem:[%s3697_s0 + $0x2e8] ss:$16 sps:$4 sm:$0xff]  }
  0x7b   :  { %1560 = vmatprep.mubr.bf16.mxu1 %v2405_v2  ;;  %v2499_v2 = vld [vmem:[%s3697_s0 + $0x304] ss:$16 sps:$4 sm:$0xff]  }
  0x81   :  { %1272 = vmatmul.mubr.bf16.gmra.mrb[32].mxu0 %v2407_v3  ;;  %v2501_v3 = vld [vmem:[%s3697_s0 + $0x30c] ss:$16 sps:$4 sm:$0xff]  }
  0x82   :  { %1561 = vmatmul.mubr.bf16.gmra.mrb[32].mxu1 %v2408_v4  ;;  %1279 = vmatprep.mubr.bf16.mxu0 %v2409_v5  ;;  %v2503_v4 = vld [vmem:[%s3697_s0 + $0x300] ss:$16 sps:$4 sm:$0xff]   ;;  %v2504_v5 = vld [vmem:[%s3697_s0 + $0x308] ss:$16 sps:$4 sm:$0xff]  }
  0x83   :  { %1568 = vmatprep.mubr.bf16.mxu1 %v2411_v6  ;;  %v2505_v6 = vld [vmem:[%s3697_s0 + $0x324] ss:$16 sps:$4 sm:$0xff]  }
  0x89   :  { %1280 = vmatmul.mubr.bf16.gmra.mrb[36].mxu0 %v2413_v7  ;;  %v2507_v7 = vld [vmem:[%s3697_s0 + $0x32c] ss:$16 sps:$4 sm:$0xff]  }
  0x8a   :  { %1569 = vmatmul.mubr.bf16.gmra.mrb[36].mxu1 %v2414_v8  ;;  %1287 = vmatprep.mubr.bf16.mxu0 %v2415_v9  ;;  %v2509_v8 = vld [vmem:[%s3697_s0 + $0x320] ss:$16 sps:$4 sm:$0xff]   ;;  %v2510_v9 = vld [vmem:[%s3697_s0 + $0x328] ss:$16 sps:$4 sm:$0xff]  }
  0x8b   :  { %1576 = vmatprep.mubr.bf16.mxu1 %v2417_v10  ;;  %v2511_v10 = vld [vmem:[%s3697_s0 + $0x344] ss:$16 sps:$4 sm:$0xff]  }
  0x91   :  { %1288 = vmatmul.mubr.bf16.gmra.mrb[40].mxu0 %v2833_v11  ;;  %v2513_v11 = vld [vmem:[%s3697_s0 + $0x34c] ss:$16 sps:$4 sm:$0xff]  }
  0x92   :  { %1577 = vmatmul.mubr.bf16.gmra.mrb[40].mxu1 %v2838_v12  ;;  %1295 = vmatprep.mubr.bf16.mxu0 %v2843_v13  ;;  %v2515_v12 = vld [vmem:[%s3697_s0 + $0x340] ss:$16 sps:$4 sm:$0xff]   ;;  %v2516_v13 = vld [vmem:[%s3697_s0 + $0x348] ss:$16 sps:$4 sm:$0xff]  }
  0x93   :  { %1584 = vmatprep.mubr.bf16.mxu1 %v2848_v14  ;;  %v2517_v14 = vld [vmem:[%s3697_s0 + $0x364] ss:$16 sps:$4 sm:$0xff]  }
  0x99   :  { %1296 = vmatmul.mubr.bf16.gmra.mrb[44].mxu0 %v2425_v16 }
  0x9a   :  { %1585 = vmatmul.mubr.bf16.gmra.mrb[44].mxu1 %v2426_v17  ;;  %1303 = vmatprep.mubr.bf16.mxu0 %v2427_v18  ;;  %v87_v17 = vld [vmem:[#allocation2] sm:$0xff] }
  0x9b   :  { %1592 = vmatprep.mubr.bf16.mxu1 %v2429_v19 }
  0xa1   :  { %1304 = vmatmul.mubr.bf16.gmra.mrb[48].mxu0 %v2431_v20  ;;  %v2521_v20 = vld [vmem:[%s3697_s0 + $0x360] ss:$16 sps:$4 sm:$0xff]  }
  0xa2   :  { %1593 = vmatmul.mubr.bf16.gmra.mrb[48].mxu1 %v2432_v21  ;;  %1311 = vmatprep.mubr.bf16.mxu0 %v2433_v22 }
  0xa3   :  { %1600 = vmatprep.mubr.bf16.mxu1 %v2435_v23 }
  0xa9   :  { %1312 = vmatmul.mubr.bf16.gmra.mrb[52].mxu0 %v2437_v24  ;;  %v2522_v24 = vld [vmem:[%s3697_s0 + $0x368] ss:$16 sps:$4 sm:$0xff]  }
  0xaa   :  { %1601 = vmatmul.mubr.bf16.gmra.mrb[52].mxu1 %v2438_v25  ;;  %1319 = vmatprep.mubr.bf16.mxu0 %v2439_v26  ;;  %v2523_v25 = vld [vmem:[%s3697_s0 + $0x384] ss:$16 sps:$4 sm:$0xff]   ;;  %v88_v26 = vld [vmem:[#allocation2 + $0x8] sm:$0xff] }
  0xab   :  { %1608 = vmatprep.mubr.bf16.mxu1 %v2441_v27 }
  0xb1   :  { %1320 = vmatmul.mubr.bf16.gmra.mrb[56].mxu0 %v2443_v28 }
  0xb2   :  { %1609 = vmatmul.mubr.bf16.gmra.mrb[56].mxu1 %v2444_v29  ;;  %1327 = vmatprep.mubr.bf16.mxu0 %v2445_v30  ;;  %v2525_v29 = vld [vmem:[%s3697_s0 + $0x38c] ss:$16 sps:$4 sm:$0xff]  }
  0xb3   :  { %1616 = vmatprep.mubr.bf16.mxu1 %v2447_v31 }
  0xb9   :  { %1328 = vmatmul.mubr.bf16.gmra.mrb[60].mxu0 %v2449_v32 }
  0xba   :  { %1617 = vmatmul.mubr.bf16.gmra.mrb[60].mxu1 %v2450_v33  ;;  %1335 = vmatprep.mubr.bf16.mxu0 %v2451_v34 }
  0xbb   :  { %1624 = vmatprep.mubr.bf16.mxu1 %v2453_v35  ;;  %v89_v35 = vld [vmem:[#allocation2 + $0x10] sm:$0xff] }
  0xc1   :  { %1336 = vmatmul.mubr.bf16.gmra.mrb[64].mxu0 %v2455_v36 }
  0xc2   :  { %1625 = vmatmul.mubr.bf16.gmra.mrb[64].mxu1 %v2456_v37  ;;  %1343 = vmatprep.mubr.bf16.mxu0 %v2457_v38  ;;  %v2527_v38 = vld [vmem:[%s3697_s0 + $0x380] ss:$16 sps:$4 sm:$0xff]  }
  0xc3   :  { %1632 = vmatprep.mubr.bf16.mxu1 %v2459_v39  ;;  %v2528_v39 = vld [vmem:[%s3697_s0 + $0x388] ss:$16 sps:$4 sm:$0xff]  }
  0xc9   :  { %1344 = vmatmul.mubr.bf16.gmra.mrb[68].mxu0 %v2461_v40  ;;  %v3197_v40 = vld [vmem:[%s3698_s2] ss:$0 sm:$0xff] }
  0xca   :  { %1633 = vmatmul.mubr.bf16.gmra.mrb[68].mxu1 %v2462_v41  ;;  %1351 = vmatprep.mubr.bf16.mxu0 %v2463_v42 }
  0xcb   :  { %1640 = vmatprep.mubr.bf16.mxu1 %v2465_v43 }
  0xd1   :  { %1352 = vmatmul.mubr.bf16.gmra.mrb[72].mxu0 %v2467_v44  ;;  %v2529_v44 = vld [vmem:[%s3697_s0 + $0x3a4] ss:$16 sps:$4 sm:$0xff]  }
  0xd2   :  { %1641 = vmatmul.mubr.bf16.gmra.mrb[72].mxu1 %v2468_v45  ;;  %1359 = vmatprep.mubr.bf16.mxu0 %v2469_v46  ;;  %v90_v45 = vld [vmem:[#allocation2 + $0x18] sm:$0xff] }
  0xd3   :  { %1648 = vmatprep.mubr.bf16.mxu1 %v2471_v47 }
  0xd9   :  { %1360 = vmatmul.mubr.bf16.gmra.mrb[76].mxu0 %v2473_v48  ;;  %v2531_v48 = vld [vmem:[%s3697_s0 + $0x3ac] ss:$16 sps:$4 sm:$0xff]  }
  0xda   :  { %1649 = vmatmul.mubr.bf16.gmra.mrb[76].mxu1 %v2474_v49  ;;  %1367 = vmatprep.mubr.bf16.mxu0 %v2475_v50 }
  0xdb   :  { %1656 = vmatprep.mubr.bf16.mxu1 %v2477_v51 }
  0xe1   :  { %1368 = vmatmul.mubr.bf16.gmra.mrb[80].mxu0 %v2479_v52 }
  0xe2   :  { %1657 = vmatmul.mubr.bf16.gmra.mrb[80].mxu1 %v2480_v53  ;;  %1375 = vmatprep.mubr.bf16.mxu0 %v2481_v54  ;;  %v3208_v53 = vld [vmem:[%s3699_s3] ss:$0 sm:$0xff] }
  0xe3   :  { %1664 = vmatprep.mubr.bf16.mxu1 %v2483_v55 }
  0xe9   :  { %1376 = vmatmul.mubr.bf16.gmra.mrb[84].mxu0 %v2485_v56 }
  0xea   :  { %1665 = vmatmul.mubr.bf16.gmra.mrb[84].mxu1 %v2486_v57  ;;  %1383 = vmatprep.mubr.bf16.mxu0 %v2487_v58 }
  0xeb   :  { %1672 = vmatprep.mubr.bf16.mxu1 %v2489_v59 }
  0xf1   :  { %1384 = vmatmul.mubr.bf16.gmra.mrb[88].mxu0 %v2491_v60  ;;  %v91_v60 = vld [vmem:[#allocation2 + $0x20] sm:$0xff] }
  0xf2   :  { %1673 = vmatmul.mubr.bf16.gmra.mrb[88].mxu1 %v2492_v61  ;;  %1391 = vmatprep.mubr.bf16.mxu0 %v2493_v62 }
  0xf3   :  { %1680 = vmatprep.mubr.bf16.mxu1 %v2495_v63  ;;  %v2533_v63 = vld [vmem:[%s3697_s0 + $0x3a0] ss:$16 sps:$4 sm:$0xff]  }
  0xf9   :  { %1392 = vmatmul.mubr.bf16.gmra.mrb[92].mxu0 %v2497_v0 }
  0xfa   :  { %1681 = vmatmul.mubr.bf16.gmra.mrb[92].mxu1 %v2498_v1  ;;  %1399 = vmatprep.mubr.bf16.mxu0 %v2499_v2 }
  0xfb   :  { %1688 = vmatprep.mubr.bf16.mxu1 %v2501_v3 }
 0x101   :  { %1400 = vmatmul.mubr.bf16.gmra.mrb[96].mxu0 %v2503_v4  ;;  %v2534_v4 = vld [vmem:[%s3697_s0 + $0x3a8] ss:$16 sps:$4 sm:$0xff]  }
 0x102   :  { %1689 = vmatmul.mubr.bf16.gmra.mrb[96].mxu1 %v2504_v5  ;;  %1407 = vmatprep.mubr.bf16.mxu0 %v2505_v6  ;;  %v2535_v5 = vld [vmem:[%s3697_s0 + $0x3c4] ss:$16 sps:$4 sm:$0xff]   ;;  %v92_v6 = vld [vmem:[#allocation2 + $0x28] sm:$0xff] }
 0x103   :  { %1696 = vmatprep.mubr.bf16.mxu1 %v2507_v7 }
 0x109   :  { %1408 = vmatmul.mubr.bf16.gmra.mrb[100].mxu0 %v2509_v8 }
 0x10a   :  { %1697 = vmatmul.mubr.bf16.gmra.mrb[100].mxu1 %v2510_v9  ;;  %1415 = vmatprep.mubr.bf16.mxu0 %v2511_v10  ;;  %v2537_v9 = vld [vmem:[%s3697_s0 + $0x3cc] ss:$16 sps:$4 sm:$0xff]  }
 0x10b   :  { %1704 = vmatprep.mubr.bf16.mxu1 %v2513_v11 }
 0x111   :  { %1416 = vmatmul.mubr.bf16.gmra.mrb[104].mxu0 %v2515_v12 }
 0x112   :  { %1705 = vmatmul.mubr.bf16.gmra.mrb[104].mxu1 %v2516_v13  ;;  %1423 = vmatprep.mubr.bf16.mxu0 %v2517_v14 }
 0x113   :  { %1712 = vmatprep.mubr.bf16.mxu1 %v2519_v15 }
 0x114   :  { %v1209_v16 = vpop.f32.mrb[0].mxu0 }
 0x115   :  { %v1498_v18 = vpop.f32.mrb[0].mxu1  ;;  %v1211_v19 = vpop.f32.mrb[1].mxu0 }
 0x116   :  { %v1499_v21 = vadd.f32 %v1498_v18, %v1209_v16  ;;  %v1500_v22 = vpop.f32.mrb[1].mxu1  ;;  %v1212_v23 = vpop.f32.mrb[2].mxu0 }
 0x117   :  { %v1501_v27 = vpop.f32.mrb[2].mxu1  ;;  %v1214_v28 = vpop.f32.mrb[3].mxu0 }
 0x118   :  { %v1753_v30 = vadd.f32 %v1499_v21, %v87_v17  ;;  %v1502_v31 = vadd.f32 %v1501_v27, %v1212_v23  ;;  %v1503_v32 = vpop.f32.mrb[3].mxu1  ;;  %v2539_v23 = vld [vmem:[%s3697_s0 + $0x3c0] ss:$16 sps:$4 sm:$0xff]   ;;  %v2540_v28 = vld [vmem:[%s3697_s0 + $0x3c8] ss:$16 sps:$4 sm:$0xff]  }
 0x119   :  { %1424 = vmatmul.mubr.bf16.gmra.mrb[108].mxu0 %v2521_v20  ;;  %v93_v20 = vld [vmem:[#allocation2 + $0x30] sm:$0xff] }
 0x11a   :  { %1818 = vst.msk [vmem:[#allocation2] sm:$0xff] %vm22_vm0, %v1753_v30  ;;  %v1754_v33 = vadd.f32 %v1502_v31, %v88_v26  ;;  %1713 = vmatmul.mubr.bf16.gmra.mrb[108].mxu1 %v2522_v24  ;;  %1431 = vmatprep.mubr.bf16.mxu0 %v2523_v25  ;;  %v94_v30 = vld [vmem:[#allocation2 + $0x38] sm:$0xff] }
 0x11b   :  { %1720 = vmatprep.mubr.bf16.mxu1 %v2525_v29  ;;  %v2541_v29 = vld [vmem:[%s3697_s0 + $0x3e4] ss:$16 sps:$4 sm:$0xff]  }
 0x11c   :  { %1819 = vst.msk [vmem:[#allocation2 + $0x8] sm:$0xff] %vm22_vm0, %v1754_v33  ;;  %v1217_v34 = vpop.f32.mrb[4].mxu0  ;;  %v2543_v33 = vld [vmem:[%s3697_s0 + $0x3ec] ss:$16 sps:$4 sm:$0xff]  }
 0x11d   :  { %v1506_v36 = vpop.f32.mrb[4].mxu1  ;;  %v1219_v37 = vpop.f32.mrb[5].mxu0 }
 0x11e   :  { %v1507_v41 = vadd.f32 %v1506_v36, %v1217_v34  ;;  %v1508_v42 = vpop.f32.mrb[5].mxu1  ;;  %v1220_v43 = vpop.f32.mrb[6].mxu0 }
 0x11f   :  { %v1509_v46 = vpop.f32.mrb[6].mxu1  ;;  %v1222_v47 = vpop.f32.mrb[7].mxu0 }
 0x120   :  { %v1755_v49 = vadd.f32 %v1507_v41, %v89_v35  ;;  %v1510_v50 = vadd.f32 %v1509_v46, %v1220_v43  ;;  %v1511_v51 = vpop.f32.mrb[7].mxu1 }
 0x121   :  { %v1885_v52 = vld [vmem:[#allocation2] sm:$0xff]  ;;  %1432 = vmatmul.mubr.bf16.gmra.mrb[112].mxu0 %v2527_v38 }
 0x122   :  { %v1956_v54 = vmul.f32 %v3197_v40, %v1885_v52  ;;  %1820 = vst.msk [vmem:[#allocation2 + $0x10] sm:$0xff] %vm22_vm0, %v1755_v49  ;;  %v1756_v55 = vadd.f32 %v1510_v50, %v90_v45  ;;  %1721 = vmatmul.mubr.bf16.gmra.mrb[112].mxu1 %v2528_v39  ;;  %1439 = vmatprep.mubr.bf16.mxu0 %v2529_v44  ;;  %v95_v45 = vld [vmem:[#allocation2 + $0x40] sm:$0xff] }
 0x123   :  { %v1886_v56 = vld [vmem:[#allocation2 + $0x8] sm:$0xff]  ;;  %1728 = vmatprep.mubr.bf16.mxu1 %v2531_v48  ;;  %v2545_v48 = vld [vmem:[%s3697_s0 + $0x3e0] ss:$16 sps:$4 sm:$0xff]  }
 0x124   :  { %v2027_v57 = vadd.f32 %v3208_v53, %v1956_v54  ;;  %v1957_v58 = vmul.f32 %v3197_v40, %v1886_v56  ;;  %1821 = vst.msk [vmem:[#allocation2 + $0x18] sm:$0xff] %vm22_vm0, %v1756_v55  ;;  %v1225_v59 = vpop.f32.mrb[8].mxu0  ;;  %v2546_v54 = vld [vmem:[%s3697_s0 + $0x3e8] ss:$16 sps:$4 sm:$0xff]  }
 0x125   :  { %v1514_v61 = vpop.f32.mrb[8].mxu1  ;;  %v1227_v62 = vpop.f32.mrb[9].mxu0  ;;  %v96_v55 = vld [vmem:[#allocation2 + $0x48] sm:$0xff] }
 0x126   :  { %2091 = vst.msk [vmem:[%s3700_s4] sm:$0xff] %vm22_vm0, %v2027_v57  ;;  %v2028_v0 = vadd.f32 %v3208_v53, %v1957_v58  ;;  %v1515_v1 = vadd.f32 %v1514_v61, %v1225_v59  ;;  %v1516_v2 = vpop.f32.mrb[9].mxu1  ;;  %v1228_v3 = vpop.f32.mrb[10].mxu0 }
 0x127   :  { %v1517_v7 = vpop.f32.mrb[10].mxu1  ;;  %v1230_v8 = vpop.f32.mrb[11].mxu0 }
 0x128   :  { %2092 = vst.msk [vmem:[%s3700_s4 + $0x8] sm:$0xff] %vm22_vm0, %v2028_v0  ;;  %v1757_v10 = vadd.f32 %v1515_v1, %v91_v60  ;;  %v1518_v11 = vadd.f32 %v1517_v7, %v1228_v3  ;;  %v1519_v12 = vpop.f32.mrb[11].mxu1 }
 0x129   :  { %v1887_v13 = vld [vmem:[#allocation2 + $0x10] sm:$0xff]  ;;  %1440 = vmatmul.mubr.bf16.gmra.mrb[116].mxu0 %v2533_v63 }
 0x12a   :  { %v1958_v14 = vmul.f32 %v3197_v40, %v1887_v13  ;;  %1822 = vst.msk [vmem:[#allocation2 + $0x20] sm:$0xff] %vm22_vm0, %v1757_v10  ;;  %v1758_v15 = vadd.f32 %v1518_v11, %v92_v6  ;;  %1729 = vmatmul.mubr.bf16.gmra.mrb[116].mxu1 %v2534_v4  ;;  %1447 = vmatprep.mubr.bf16.mxu0 %v2535_v5  ;;  %v97_v4 = vld [vmem:[#allocation2 + $0x50] sm:$0xff]  ;;  %v98_v11 = vld [vmem:[#allocation2 + $0x58] sm:$0xff] }
 0x12b   :  { %v1888_v16 = vld [vmem:[#allocation2 + $0x18] sm:$0xff]  ;;  %1736 = vmatprep.mubr.bf16.mxu1 %v2537_v9 }
 0x12c   :  { %v2029_v17 = vadd.f32 %v3208_v53, %v1958_v14  ;;  %v1959_v18 = vmul.f32 %v3197_v40, %v1888_v16  ;;  %1823 = vst.msk [vmem:[#allocation2 + $0x28] sm:$0xff] %vm22_vm0, %v1758_v15  ;;  %v1233_v19 = vpop.f32.mrb[12].mxu0 }
 0x12d   :  { %v1522_v21 = vpop.f32.mrb[12].mxu1  ;;  %v1235_v22 = vpop.f32.mrb[13].mxu0 }
 0x12e   :  { %2093 = vst.msk [vmem:[%s3700_s4 + $0x10] sm:$0xff] %vm22_vm0, %v2029_v17  ;;  %v2030_v24 = vadd.f32 %v3208_v53, %v1959_v18  ;;  %v1523_v25 = vadd.f32 %v1522_v21, %v1233_v19  ;;  %v1524_v26 = vpop.f32.mrb[13].mxu1  ;;  %v1236_v27 = vpop.f32.mrb[14].mxu0 }
 0x12f   :  { %v1525_v31 = vpop.f32.mrb[14].mxu1  ;;  %v1238_v32 = vpop.f32.mrb[15].mxu0 }
 0x130   :  { %2094 = vst.msk [vmem:[%s3700_s4 + $0x18] sm:$0xff] %vm22_vm0, %v2030_v24  ;;  %v1759_v34 = vadd.f32 %v1523_v25, %v93_v20  ;;  %v1526_v35 = vadd.f32 %v1525_v31, %v1236_v27  ;;  %v1527_v36 = vpop.f32.mrb[15].mxu1  ;;  %v99_v24 = vld [vmem:[#allocation2 + $0x60] sm:$0xff]  ;;  %v100_v31 = vld [vmem:[#allocation2 + $0x68] sm:$0xff] }
 0x131   :  { %v1889_v37 = vld [vmem:[#allocation2 + $0x20] sm:$0xff]  ;;  %1448 = vmatmul.mubr.bf16.gmra.mrb[120].mxu0 %v2539_v23 }
 0x132   :  { %v1960_v38 = vmul.f32 %v3197_v40, %v1889_v37  ;;  %1824 = vst.msk [vmem:[#allocation2 + $0x30] sm:$0xff] %vm22_vm0, %v1759_v34  ;;  %v1760_v39 = vadd.f32 %v1526_v35, %v94_v30  ;;  %1737 = vmatmul.mubr.bf16.gmra.mrb[120].mxu1 %v2540_v28  ;;  %1455 = vmatprep.mubr.bf16.mxu0 %v2541_v29 }
 0x133   :  { %v1890_v41 = vld [vmem:[#allocation2 + $0x28] sm:$0xff]  ;;  %1744 = vmatprep.mubr.bf16.mxu1 %v2543_v33 }
 0x134   :  { %v2031_v42 = vadd.f32 %v3208_v53, %v1960_v38  ;;  %v1961_v43 = vmul.f32 %v3197_v40, %v1890_v41  ;;  %1825 = vst.msk [vmem:[#allocation2 + $0x38] sm:$0xff] %vm22_vm0, %v1760_v39  ;;  %v1241_v44 = vpop.f32.mrb[16].mxu0 }
 0x135   :  { %v1530_v46 = vpop.f32.mrb[16].mxu1  ;;  %v1243_v47 = vpop.f32.mrb[17].mxu0 }
 0x136   :  { %2095 = vst.msk [vmem:[%s3700_s4 + $0x20] sm:$0xff] %vm22_vm0, %v2031_v42  ;;  %v2032_v49 = vadd.f32 %v3208_v53, %v1961_v43  ;;  %v1531_v50 = vadd.f32 %v1530_v46, %v1241_v44  ;;  %v1532_v51 = vpop.f32.mrb[17].mxu1  ;;  %v1244_v52 = vpop.f32.mrb[18].mxu0 }
 0x137   :  { %v1533_v56 = vpop.f32.mrb[18].mxu1  ;;  %v1246_v57 = vpop.f32.mrb[19].mxu0 }
 0x138   :  { %2096 = vst.msk [vmem:[%s3700_s4 + $0x28] sm:$0xff] %vm22_vm0, %v2032_v49  ;;  %v1761_v58 = vadd.f32 %v1531_v50, %v95_v45  ;;  %v1534_v59 = vadd.f32 %v1533_v56, %v1244_v52  ;;  %v1535_v60 = vpop.f32.mrb[19].mxu1  ;;  %v101_v45 = vld [vmem:[#allocation2 + $0x70] sm:$0xff]  ;;  %v102_v52 = vld [vmem:[#allocation2 + $0x78] sm:$0xff] }
 0x139   :  { %v1891_v61 = vld [vmem:[#allocation2 + $0x30] sm:$0xff]  ;;  %1456 = vmatmul.mubr.bf16.gmra.mrb[124].mxu0 %v2545_v48 }
 0x13a   :  { %v1962_v62 = vmul.f32 %v3197_v40, %v1891_v61  ;;  %1826 = vst.msk [vmem:[#allocation2 + $0x40] sm:$0xff] %vm22_vm0, %v1761_v58  ;;  %v1762_v63 = vadd.f32 %v1534_v59, %v96_v55  ;;  %1745 = vmatmul.mubr.bf16.gmra.mrb[124].mxu1 %v2546_v54 }
 0x13b   :  { %v1892_v0 = vld [vmem:[#allocation2 + $0x38] sm:$0xff] }
 0x13c   :  { %v2033_v1 = vadd.f32 %v3208_v53, %v1962_v62  ;;  %v1963_v2 = vmul.f32 %v3197_v40, %v1892_v0  ;;  %1827 = vst.msk [vmem:[#allocation2 + $0x48] sm:$0xff] %vm22_vm0, %v1762_v63  ;;  %v1249_v3 = vpop.f32.mrb[20].mxu0 }
 0x13d   :  { %v1538_v5 = vpop.f32.mrb[20].mxu1  ;;  %v1251_v6 = vpop.f32.mrb[21].mxu0 }
 0x13e   :  { %2097 = vst.msk [vmem:[%s3700_s4 + $0x30] sm:$0xff] %vm22_vm0, %v2033_v1  ;;  %v2034_v7 = vadd.f32 %v3208_v53, %v1963_v2  ;;  %v1539_v8 = vadd.f32 %v1538_v5, %v1249_v3  ;;  %v1540_v9 = vpop.f32.mrb[21].mxu1  ;;  %v1252_v10 = vpop.f32.mrb[22].mxu0  ;;  %v103_v2 = vld [vmem:[#allocation2 + $0x80] sm:$0xff] }
 0x13f   :  { %v1541_v12 = vpop.f32.mrb[22].mxu1  ;;  %v1254_v13 = vpop.f32.mrb[23].mxu0  ;;  %v104_v9 = vld [vmem:[#allocation2 + $0x88] sm:$0xff] }
 0x140   :  { %2098 = vst.msk [vmem:[%s3700_s4 + $0x38] sm:$0xff] %vm22_vm0, %v2034_v7  ;;  %v1763_v14 = vadd.f32 %v1539_v8, %v97_v4  ;;  %v1542_v15 = vadd.f32 %v1541_v12, %v1252_v10  ;;  %v1543_v16 = vpop.f32.mrb[23].mxu1 }
 0x141   :  { %v1893_v17 = vld [vmem:[#allocation2 + $0x40] sm:$0xff] }
 0x142   :  { %v1964_v18 = vmul.f32 %v3197_v40, %v1893_v17  ;;  %1828 = vst.msk [vmem:[#allocation2 + $0x50] sm:$0xff] %vm22_vm0, %v1763_v14  ;;  %v1764_v19 = vadd.f32 %v1542_v15, %v98_v11 }
 0x143   :  { %v1894_v20 = vld [vmem:[#allocation2 + $0x48] sm:$0xff] }
 0x144   :  { %v2035_v21 = vadd.f32 %v3208_v53, %v1964_v18  ;;  %v1965_v22 = vmul.f32 %v3197_v40, %v1894_v20  ;;  %1829 = vst.msk [vmem:[#allocation2 + $0x58] sm:$0xff] %vm22_vm0, %v1764_v19  ;;  %v1257_v23 = vpop.f32.mrb[24].mxu0 }
 0x145   :  { %v1546_v25 = vpop.f32.mrb[24].mxu1  ;;  %v1259_v26 = vpop.f32.mrb[25].mxu0 }
 0x146   :  { %2099 = vst.msk [vmem:[%s3700_s4 + $0x40] sm:$0xff] %vm22_vm0, %v2035_v21  ;;  %v2036_v27 = vadd.f32 %v3208_v53, %v1965_v22  ;;  %v1547_v28 = vadd.f32 %v1546_v25, %v1257_v23  ;;  %v1548_v29 = vpop.f32.mrb[25].mxu1  ;;  %v1260_v30 = vpop.f32.mrb[26].mxu0  ;;  %v105_v22 = vld [vmem:[#allocation2 + $0x90] sm:$0xff] }
 0x147   :  { %v1549_v32 = vpop.f32.mrb[26].mxu1  ;;  %v1262_v33 = vpop.f32.mrb[27].mxu0  ;;  %v106_v29 = vld [vmem:[#allocation2 + $0x98] sm:$0xff] }
 0x148   :  { %2100 = vst.msk [vmem:[%s3700_s4 + $0x48] sm:$0xff] %vm22_vm0, %v2036_v27  ;;  %v1765_v34 = vadd.f32 %v1547_v28, %v99_v24  ;;  %v1550_v35 = vadd.f32 %v1549_v32, %v1260_v30  ;;  %v1551_v36 = vpop.f32.mrb[27].mxu1 }
 0x149   :  { %v1895_v37 = vld [vmem:[#allocation2 + $0x50] sm:$0xff] }
 0x14a   :  { %v1966_v38 = vmul.f32 %v3197_v40, %v1895_v37  ;;  %1830 = vst.msk [vmem:[#allocation2 + $0x60] sm:$0xff] %vm22_vm0, %v1765_v34  ;;  %v1766_v39 = vadd.f32 %v1550_v35, %v100_v31 }
 0x14b   :  { %v1896_v41 = vld [vmem:[#allocation2 + $0x58] sm:$0xff] }
 0x14c   :  { %v2037_v42 = vadd.f32 %v3208_v53, %v1966_v38  ;;  %v1967_v43 = vmul.f32 %v3197_v40, %v1896_v41  ;;  %1831 = vst.msk [vmem:[#allocation2 + $0x68] sm:$0xff] %vm22_vm0, %v1766_v39  ;;  %v1265_v44 = vpop.f32.mrb[28].mxu0 }
 0x14d   :  { %v1554_v46 = vpop.f32.mrb[28].mxu1  ;;  %v1267_v47 = vpop.f32.mrb[29].mxu0 }
 0x14e   :  { %2101 = vst.msk [vmem:[%s3700_s4 + $0x50] sm:$0xff] %vm22_vm0, %v2037_v42  ;;  %v2038_v48 = vadd.f32 %v3208_v53, %v1967_v43  ;;  %v1555_v49 = vadd.f32 %v1554_v46, %v1265_v44  ;;  %v1556_v50 = vpop.f32.mrb[29].mxu1  ;;  %v1268_v51 = vpop.f32.mrb[30].mxu0  ;;  %v107_v43 = vld [vmem:[#allocation2 + $0xa0] sm:$0xff] }
 0x14f   :  { %v1557_v54 = vpop.f32.mrb[30].mxu1  ;;  %v1270_v55 = vpop.f32.mrb[31].mxu0  ;;  %v108_v50 = vld [vmem:[#allocation2 + $0xa8] sm:$0xff] }
 0x150   :  { %2102 = vst.msk [vmem:[%s3700_s4 + $0x58] sm:$0xff] %vm22_vm0, %v2038_v48  ;;  %v1767_v56 = vadd.f32 %v1555_v49, %v101_v45  ;;  %v1558_v57 = vadd.f32 %v1557_v54, %v1268_v51  ;;  %v1559_v58 = vpop.f32.mrb[31].mxu1 }
 0x151   :  { %v1897_v59 = vld [vmem:[#allocation2 + $0x60] sm:$0xff] }
 0x152   :  { %v1968_v60 = vmul.f32 %v3197_v40, %v1897_v59  ;;  %1832 = vst.msk [vmem:[#allocation2 + $0x70] sm:$0xff] %vm22_vm0, %v1767_v56  ;;  %v1768_v61 = vadd.f32 %v1558_v57, %v102_v52 }
 0x153   :  { %v1898_v62 = vld [vmem:[#allocation2 + $0x68] sm:$0xff] }
 0x154   :  { %v2039_v63 = vadd.f32 %v3208_v53, %v1968_v60  ;;  %v1969_v0 = vmul.f32 %v3197_v40, %v1898_v62  ;;  %1833 = vst.msk [vmem:[#allocation2 + $0x78] sm:$0xff] %vm22_vm0, %v1768_v61  ;;  %v1273_v1 = vpop.f32.mrb[32].mxu0 }
 0x155   :  { %v1562_v3 = vpop.f32.mrb[32].mxu1  ;;  %v1275_v4 = vpop.f32.mrb[33].mxu0 }
 0x156   :  { %2103 = vst.msk [vmem:[%s3700_s4 + $0x60] sm:$0xff] %vm22_vm0, %v2039_v63  ;;  %v2040_v5 = vadd.f32 %v3208_v53, %v1969_v0  ;;  %v1563_v6 = vadd.f32 %v1562_v3, %v1273_v1  ;;  %v1564_v7 = vpop.f32.mrb[33].mxu1  ;;  %v1276_v8 = vpop.f32.mrb[34].mxu0  ;;  %v109_v0 = vld [vmem:[#allocation2 + $0xb0] sm:$0xff] }
 0x157   :  { %v1565_v10 = vpop.f32.mrb[34].mxu1  ;;  %v1278_v11 = vpop.f32.mrb[35].mxu0  ;;  %v110_v7 = vld [vmem:[#allocation2 + $0xb8] sm:$0xff] }
 0x158   :  { %2104 = vst.msk [vmem:[%s3700_s4 + $0x68] sm:$0xff] %vm22_vm0, %v2040_v5  ;;  %v1769_v12 = vadd.f32 %v1563_v6, %v103_v2  ;;  %v1566_v13 = vadd.f32 %v1565_v10, %v1276_v8  ;;  %v1567_v14 = vpop.f32.mrb[35].mxu1 }
 0x159   :  { %v1899_v15 = vld [vmem:[#allocation2 + $0x70] sm:$0xff] }
 0x15a   :  { %v1970_v16 = vmul.f32 %v3197_v40, %v1899_v15  ;;  %1834 = vst.msk [vmem:[#allocation2 + $0x80] sm:$0xff] %vm22_vm0, %v1769_v12  ;;  %v1770_v17 = vadd.f32 %v1566_v13, %v104_v9 }
 0x15b   :  { %v1900_v18 = vld [vmem:[#allocation2 + $0x78] sm:$0xff] }
 0x15c   :  { %v2041_v19 = vadd.f32 %v3208_v53, %v1970_v16  ;;  %v1971_v20 = vmul.f32 %v3197_v40, %v1900_v18  ;;  %1835 = vst.msk [vmem:[#allocation2 + $0x88] sm:$0xff] %vm22_vm0, %v1770_v17  ;;  %v1281_v21 = vpop.f32.mrb[36].mxu0 }
 0x15d   :  { %v1570_v23 = vpop.f32.mrb[36].mxu1  ;;  %v1283_v24 = vpop.f32.mrb[37].mxu0 }
 0x15e   :  { %2105 = vst.msk [vmem:[%s3700_s4 + $0x70] sm:$0xff] %vm22_vm0, %v2041_v19  ;;  %v2042_v25 = vadd.f32 %v3208_v53, %v1971_v20  ;;  %v1571_v26 = vadd.f32 %v1570_v23, %v1281_v21  ;;  %v1572_v27 = vpop.f32.mrb[37].mxu1  ;;  %v1284_v28 = vpop.f32.mrb[38].mxu0  ;;  %v111_v20 = vld [vmem:[#allocation2 + $0xc0] sm:$0xff] }
 0x15f   :  { %v1573_v30 = vpop.f32.mrb[38].mxu1  ;;  %v1286_v31 = vpop.f32.mrb[39].mxu0  ;;  %v112_v27 = vld [vmem:[#allocation2 + $0xc8] sm:$0xff] }
 0x160   :  { %2106 = vst.msk [vmem:[%s3700_s4 + $0x78] sm:$0xff] %vm22_vm0, %v2042_v25  ;;  %v1771_v32 = vadd.f32 %v1571_v26, %v105_v22  ;;  %v1574_v33 = vadd.f32 %v1573_v30, %v1284_v28  ;;  %v1575_v34 = vpop.f32.mrb[39].mxu1 }
 0x161   :  { %v1901_v35 = vld [vmem:[#allocation2 + $0x80] sm:$0xff] }
 0x162   :  { %v1972_v36 = vmul.f32 %v3197_v40, %v1901_v35  ;;  %1836 = vst.msk [vmem:[#allocation2 + $0x90] sm:$0xff] %vm22_vm0, %v1771_v32  ;;  %v1772_v37 = vadd.f32 %v1574_v33, %v106_v29 }
 0x163   :  { %v1902_v38 = vld [vmem:[#allocation2 + $0x88] sm:$0xff] }
 0x164   :  { %v2043_v39 = vadd.f32 %v3208_v53, %v1972_v36  ;;  %v1973_v41 = vmul.f32 %v3197_v40, %v1902_v38  ;;  %1837 = vst.msk [vmem:[#allocation2 + $0x98] sm:$0xff] %vm22_vm0, %v1772_v37  ;;  %v1289_v42 = vpop.f32.mrb[40].mxu0 }
 0x165   :  { %v1578_v44 = vpop.f32.mrb[40].mxu1  ;;  %v1291_v45 = vpop.f32.mrb[41].mxu0 }
 0x166   :  { %2107 = vst.msk [vmem:[%s3700_s4 + $0x80] sm:$0xff] %vm22_vm0, %v2043_v39  ;;  %v2044_v46 = vadd.f32 %v3208_v53, %v1973_v41  ;;  %v1579_v47 = vadd.f32 %v1578_v44, %v1289_v42  ;;  %v1580_v48 = vpop.f32.mrb[41].mxu1  ;;  %v1292_v49 = vpop.f32.mrb[42].mxu0  ;;  %v113_v41 = vld [vmem:[#allocation2 + $0xd0] sm:$0xff] }
 0x167   :  { %v1581_v51 = vpop.f32.mrb[42].mxu1  ;;  %v1294_v52 = vpop.f32.mrb[43].mxu0  ;;  %v114_v48 = vld [vmem:[#allocation2 + $0xd8] sm:$0xff] }
 0x168   :  { %2108 = vst.msk [vmem:[%s3700_s4 + $0x88] sm:$0xff] %vm22_vm0, %v2044_v46  ;;  %v1773_v54 = vadd.f32 %v1579_v47, %v107_v43  ;;  %v1582_v55 = vadd.f32 %v1581_v51, %v1292_v49  ;;  %v1583_v56 = vpop.f32.mrb[43].mxu1 }
 0x169   :  { %v1903_v57 = vld [vmem:[#allocation2 + $0x90] sm:$0xff] }
 0x16a   :  { %v1974_v58 = vmul.f32 %v3197_v40, %v1903_v57  ;;  %1838 = vst.msk [vmem:[#allocation2 + $0xa0] sm:$0xff] %vm22_vm0, %v1773_v54  ;;  %v1774_v59 = vadd.f32 %v1582_v55, %v108_v50 }
 0x16b   :  { %v1904_v60 = vld [vmem:[#allocation2 + $0x98] sm:$0xff] }
 0x16c   :  { %v2045_v61 = vadd.f32 %v3208_v53, %v1974_v58  ;;  %v1975_v62 = vmul.f32 %v3197_v40, %v1904_v60  ;;  %1839 = vst.msk [vmem:[#allocation2 + $0xa8] sm:$0xff] %vm22_vm0, %v1774_v59  ;;  %v1297_v63 = vpop.f32.mrb[44].mxu0 }
 0x16d   :  { %v1586_v1 = vpop.f32.mrb[44].mxu1  ;;  %v1299_v2 = vpop.f32.mrb[45].mxu0 }
 0x16e   :  { %2109 = vst.msk [vmem:[%s3700_s4 + $0x90] sm:$0xff] %vm22_vm0, %v2045_v61  ;;  %v2046_v3 = vadd.f32 %v3208_v53, %v1975_v62  ;;  %v1587_v4 = vadd.f32 %v1586_v1, %v1297_v63  ;;  %v1588_v5 = vpop.f32.mrb[45].mxu1  ;;  %v1300_v6 = vpop.f32.mrb[46].mxu0  ;;  %v115_v62 = vld [vmem:[#allocation2 + $0xe0] sm:$0xff] }
 0x16f   :  { %v1589_v8 = vpop.f32.mrb[46].mxu1  ;;  %v1302_v9 = vpop.f32.mrb[47].mxu0  ;;  %v116_v5 = vld [vmem:[#allocation2 + $0xe8] sm:$0xff] }
 0x170   :  { %2110 = vst.msk [vmem:[%s3700_s4 + $0x98] sm:$0xff] %vm22_vm0, %v2046_v3  ;;  %v1775_v10 = vadd.f32 %v1587_v4, %v109_v0  ;;  %v1590_v11 = vadd.f32 %v1589_v8, %v1300_v6  ;;  %v1591_v12 = vpop.f32.mrb[47].mxu1 }
 0x171   :  { %v1905_v13 = vld [vmem:[#allocation2 + $0xa0] sm:$0xff] }
 0x172   :  { %v1976_v14 = vmul.f32 %v3197_v40, %v1905_v13  ;;  %1840 = vst.msk [vmem:[#allocation2 + $0xb0] sm:$0xff] %vm22_vm0, %v1775_v10  ;;  %v1776_v15 = vadd.f32 %v1590_v11, %v110_v7 }
 0x173   :  { %v1906_v16 = vld [vmem:[#allocation2 + $0xa8] sm:$0xff] }
 0x174   :  { %v2047_v17 = vadd.f32 %v3208_v53, %v1976_v14  ;;  %v1977_v18 = vmul.f32 %v3197_v40, %v1906_v16  ;;  %1841 = vst.msk [vmem:[#allocation2 + $0xb8] sm:$0xff] %vm22_vm0, %v1776_v15  ;;  %v1305_v19 = vpop.f32.mrb[48].mxu0 }
 0x175   :  { %v1594_v21 = vpop.f32.mrb[48].mxu1  ;;  %v1307_v22 = vpop.f32.mrb[49].mxu0 }
 0x176   :  { %2111 = vst.msk [vmem:[%s3700_s4 + $0xa0] sm:$0xff] %vm22_vm0, %v2047_v17  ;;  %v2048_v23 = vadd.f32 %v3208_v53, %v1977_v18  ;;  %v1595_v24 = vadd.f32 %v1594_v21, %v1305_v19  ;;  %v1596_v25 = vpop.f32.mrb[49].mxu1  ;;  %v1308_v26 = vpop.f32.mrb[50].mxu0  ;;  %v117_v18 = vld [vmem:[#allocation2 + $0xf0] sm:$0xff] }
 0x177   :  { %v1597_v28 = vpop.f32.mrb[50].mxu1  ;;  %v1310_v29 = vpop.f32.mrb[51].mxu0  ;;  %v118_v25 = vld [vmem:[#allocation2 + $0xf8] sm:$0xff] }
 0x178   :  { %2112 = vst.msk [vmem:[%s3700_s4 + $0xa8] sm:$0xff] %vm22_vm0, %v2048_v23  ;;  %v1777_v30 = vadd.f32 %v1595_v24, %v111_v20  ;;  %v1598_v31 = vadd.f32 %v1597_v28, %v1308_v26  ;;  %v1599_v32 = vpop.f32.mrb[51].mxu1 }
 0x179   :  { %v1907_v33 = vld [vmem:[#allocation2 + $0xb0] sm:$0xff] }
 0x17a   :  { %v1978_v34 = vmul.f32 %v3197_v40, %v1907_v33  ;;  %1842 = vst.msk [vmem:[#allocation2 + $0xc0] sm:$0xff] %vm22_vm0, %v1777_v30  ;;  %v1778_v35 = vadd.f32 %v1598_v31, %v112_v27 }
 0x17b   :  { %v1908_v36 = vld [vmem:[#allocation2 + $0xb8] sm:$0xff] }
 0x17c   :  { %v2049_v37 = vadd.f32 %v3208_v53, %v1978_v34  ;;  %v1979_v38 = vmul.f32 %v3197_v40, %v1908_v36  ;;  %1843 = vst.msk [vmem:[#allocation2 + $0xc8] sm:$0xff] %vm22_vm0, %v1778_v35  ;;  %v1313_v39 = vpop.f32.mrb[52].mxu0 }
 0x17d   :  { %v1602_v42 = vpop.f32.mrb[52].mxu1  ;;  %v1315_v43 = vpop.f32.mrb[53].mxu0 }
 0x17e   :  { %2113 = vst.msk [vmem:[%s3700_s4 + $0xb0] sm:$0xff] %vm22_vm0, %v2049_v37  ;;  %v2050_v44 = vadd.f32 %v3208_v53, %v1979_v38  ;;  %v1603_v45 = vadd.f32 %v1602_v42, %v1313_v39  ;;  %v1604_v46 = vpop.f32.mrb[53].mxu1  ;;  %v1316_v47 = vpop.f32.mrb[54].mxu0  ;;  %v119_v38 = vld [vmem:[#allocation2 + $0x100] sm:$0xff] }
 0x17f   :  { %v1605_v49 = vpop.f32.mrb[54].mxu1  ;;  %v1318_v50 = vpop.f32.mrb[55].mxu0  ;;  %v120_v46 = vld [vmem:[#allocation2 + $0x108] sm:$0xff] }
 0x180   :  { %2114 = vst.msk [vmem:[%s3700_s4 + $0xb8] sm:$0xff] %vm22_vm0, %v2050_v44  ;;  %v1779_v51 = vadd.f32 %v1603_v45, %v113_v41  ;;  %v1606_v52 = vadd.f32 %v1605_v49, %v1316_v47  ;;  %v1607_v54 = vpop.f32.mrb[55].mxu1 }
 0x181   :  { %v1909_v55 = vld [vmem:[#allocation2 + $0xc0] sm:$0xff] }
 0x182   :  { %v1980_v56 = vmul.f32 %v3197_v40, %v1909_v55  ;;  %1844 = vst.msk [vmem:[#allocation2 + $0xd0] sm:$0xff] %vm22_vm0, %v1779_v51  ;;  %v1780_v57 = vadd.f32 %v1606_v52, %v114_v48 }
 0x183   :  { %v1910_v58 = vld [vmem:[#allocation2 + $0xc8] sm:$0xff] }
 0x184   :  { %v2051_v59 = vadd.f32 %v3208_v53, %v1980_v56  ;;  %v1981_v60 = vmul.f32 %v3197_v40, %v1910_v58  ;;  %1845 = vst.msk [vmem:[#allocation2 + $0xd8] sm:$0xff] %vm22_vm0, %v1780_v57  ;;  %v1321_v61 = vpop.f32.mrb[56].mxu0 }
 0x185   :  { %v1610_v63 = vpop.f32.mrb[56].mxu1  ;;  %v1323_v0 = vpop.f32.mrb[57].mxu0 }
 0x186   :  { %2115 = vst.msk [vmem:[%s3700_s4 + $0xc0] sm:$0xff] %vm22_vm0, %v2051_v59  ;;  %v2052_v1 = vadd.f32 %v3208_v53, %v1981_v60  ;;  %v1611_v2 = vadd.f32 %v1610_v63, %v1321_v61  ;;  %v1612_v3 = vpop.f32.mrb[57].mxu1  ;;  %v1324_v4 = vpop.f32.mrb[58].mxu0  ;;  %v121_v60 = vld [vmem:[#allocation2 + $0x110] sm:$0xff] }
 0x187   :  { %v1613_v6 = vpop.f32.mrb[58].mxu1  ;;  %v1326_v7 = vpop.f32.mrb[59].mxu0  ;;  %v122_v3 = vld [vmem:[#allocation2 + $0x118] sm:$0xff] }
 0x188   :  { %2116 = vst.msk [vmem:[%s3700_s4 + $0xc8] sm:$0xff] %vm22_vm0, %v2052_v1  ;;  %v1781_v8 = vadd.f32 %v1611_v2, %v115_v62  ;;  %v1614_v9 = vadd.f32 %v1613_v6, %v1324_v4  ;;  %v1615_v10 = vpop.f32.mrb[59].mxu1 }
 0x189   :  { %v1911_v11 = vld [vmem:[#allocation2 + $0xd0] sm:$0xff] }
 0x18a   :  { %v1982_v12 = vmul.f32 %v3197_v40, %v1911_v11  ;;  %1846 = vst.msk [vmem:[#allocation2 + $0xe0] sm:$0xff] %vm22_vm0, %v1781_v8  ;;  %v1782_v13 = vadd.f32 %v1614_v9, %v116_v5 }
 0x18b   :  { %v1912_v14 = vld [vmem:[#allocation2 + $0xd8] sm:$0xff] }
 0x18c   :  { %v2053_v15 = vadd.f32 %v3208_v53, %v1982_v12  ;;  %v1983_v16 = vmul.f32 %v3197_v40, %v1912_v14  ;;  %1847 = vst.msk [vmem:[#allocation2 + $0xe8] sm:$0xff] %vm22_vm0, %v1782_v13  ;;  %v1329_v17 = vpop.f32.mrb[60].mxu0 }
 0x18d   :  { %v1618_v19 = vpop.f32.mrb[60].mxu1  ;;  %v1331_v20 = vpop.f32.mrb[61].mxu0 }
 0x18e   :  { %2117 = vst.msk [vmem:[%s3700_s4 + $0xd0] sm:$0xff] %vm22_vm0, %v2053_v15  ;;  %v2054_v21 = vadd.f32 %v3208_v53, %v1983_v16  ;;  %v1619_v22 = vadd.f32 %v1618_v19, %v1329_v17  ;;  %v1620_v23 = vpop.f32.mrb[61].mxu1  ;;  %v1332_v24 = vpop.f32.mrb[62].mxu0  ;;  %v123_v16 = vld [vmem:[#allocation2 + $0x120] sm:$0xff] }
 0x18f   :  { %v1621_v26 = vpop.f32.mrb[62].mxu1  ;;  %v1334_v27 = vpop.f32.mrb[63].mxu0  ;;  %v124_v23 = vld [vmem:[#allocation2 + $0x128] sm:$0xff] }
 0x190   :  { %2118 = vst.msk [vmem:[%s3700_s4 + $0xd8] sm:$0xff] %vm22_vm0, %v2054_v21  ;;  %v1783_v28 = vadd.f32 %v1619_v22, %v117_v18  ;;  %v1622_v29 = vadd.f32 %v1621_v26, %v1332_v24  ;;  %v1623_v30 = vpop.f32.mrb[63].mxu1 }
 0x191   :  { %v1913_v31 = vld [vmem:[#allocation2 + $0xe0] sm:$0xff] }
 0x192   :  { %v1984_v32 = vmul.f32 %v3197_v40, %v1913_v31  ;;  %1848 = vst.msk [vmem:[#allocation2 + $0xf0] sm:$0xff] %vm22_vm0, %v1783_v28  ;;  %v1784_v33 = vadd.f32 %v1622_v29, %v118_v25 }
 0x193   :  { %v1914_v34 = vld [vmem:[#allocation2 + $0xe8] sm:$0xff] }
 0x194   :  { %v2055_v35 = vadd.f32 %v3208_v53, %v1984_v32  ;;  %v1985_v36 = vmul.f32 %v3197_v40, %v1914_v34  ;;  %1849 = vst.msk [vmem:[#allocation2 + $0xf8] sm:$0xff] %vm22_vm0, %v1784_v33  ;;  %v1337_v37 = vpop.f32.mrb[64].mxu0 }
 0x195   :  { %v1626_v39 = vpop.f32.mrb[64].mxu1  ;;  %v1339_v41 = vpop.f32.mrb[65].mxu0 }
 0x196   :  { %2119 = vst.msk [vmem:[%s3700_s4 + $0xe0] sm:$0xff] %vm22_vm0, %v2055_v35  ;;  %v2056_v42 = vadd.f32 %v3208_v53, %v1985_v36  ;;  %v1627_v43 = vadd.f32 %v1626_v39, %v1337_v37  ;;  %v1628_v44 = vpop.f32.mrb[65].mxu1  ;;  %v1340_v45 = vpop.f32.mrb[66].mxu0  ;;  %v125_v36 = vld [vmem:[#allocation2 + $0x130] sm:$0xff] }
 0x197   :  { %v1629_v47 = vpop.f32.mrb[66].mxu1  ;;  %v1342_v48 = vpop.f32.mrb[67].mxu0  ;;  %v126_v44 = vld [vmem:[#allocation2 + $0x138] sm:$0xff] }
 0x198   :  { %2120 = vst.msk [vmem:[%s3700_s4 + $0xe8] sm:$0xff] %vm22_vm0, %v2056_v42  ;;  %v1785_v49 = vadd.f32 %v1627_v43, %v119_v38  ;;  %v1630_v50 = vadd.f32 %v1629_v47, %v1340_v45  ;;  %v1631_v51 = vpop.f32.mrb[67].mxu1 }
 0x199   :  { %v1915_v52 = vld [vmem:[#allocation2 + $0xf0] sm:$0xff] }
 0x19a   :  { %v1986_v54 = vmul.f32 %v3197_v40, %v1915_v52  ;;  %1850 = vst.msk [vmem:[#allocation2 + $0x100] sm:$0xff] %vm22_vm0, %v1785_v49  ;;  %v1786_v55 = vadd.f32 %v1630_v50, %v120_v46 }
 0x19b   :  { %v1916_v56 = vld [vmem:[#allocation2 + $0xf8] sm:$0xff] }
 0x19c   :  { %v2057_v57 = vadd.f32 %v3208_v53, %v1986_v54  ;;  %v1987_v58 = vmul.f32 %v3197_v40, %v1916_v56  ;;  %1851 = vst.msk [vmem:[#allocation2 + $0x108] sm:$0xff] %vm22_vm0, %v1786_v55  ;;  %v1345_v59 = vpop.f32.mrb[68].mxu0 }
 0x19d   :  { %v1634_v61 = vpop.f32.mrb[68].mxu1  ;;  %v1347_v62 = vpop.f32.mrb[69].mxu0 }
 0x19e   :  { %2121 = vst.msk [vmem:[%s3700_s4 + $0xf0] sm:$0xff] %vm22_vm0, %v2057_v57  ;;  %v2058_v63 = vadd.f32 %v3208_v53, %v1987_v58  ;;  %v1635_v0 = vadd.f32 %v1634_v61, %v1345_v59  ;;  %v1636_v1 = vpop.f32.mrb[69].mxu1  ;;  %v1348_v2 = vpop.f32.mrb[70].mxu0  ;;  %v127_v58 = vld [vmem:[#allocation2 + $0x140] sm:$0xff] }
 0x19f   :  { %v1637_v4 = vpop.f32.mrb[70].mxu1  ;;  %v1350_v5 = vpop.f32.mrb[71].mxu0  ;;  %v128_v1 = vld [vmem:[#allocation2 + $0x148] sm:$0xff] }
 0x1a0   :  { %2122 = vst.msk [vmem:[%s3700_s4 + $0xf8] sm:$0xff] %vm22_vm0, %v2058_v63  ;;  %v1787_v6 = vadd.f32 %v1635_v0, %v121_v60  ;;  %v1638_v7 = vadd.f32 %v1637_v4, %v1348_v2  ;;  %v1639_v8 = vpop.f32.mrb[71].mxu1 }
 0x1a1   :  { %v1917_v9 = vld [vmem:[#allocation2 + $0x100] sm:$0xff] }
 0x1a2   :  { %v1988_v10 = vmul.f32 %v3197_v40, %v1917_v9  ;;  %1852 = vst.msk [vmem:[#allocation2 + $0x110] sm:$0xff] %vm22_vm0, %v1787_v6  ;;  %v1788_v11 = vadd.f32 %v1638_v7, %v122_v3 }
 0x1a3   :  { %v1918_v12 = vld [vmem:[#allocation2 + $0x108] sm:$0xff] }
 0x1a4   :  { %v2059_v13 = vadd.f32 %v3208_v53, %v1988_v10  ;;  %v1989_v14 = vmul.f32 %v3197_v40, %v1918_v12  ;;  %1853 = vst.msk [vmem:[#allocation2 + $0x118] sm:$0xff] %vm22_vm0, %v1788_v11  ;;  %v1353_v15 = vpop.f32.mrb[72].mxu0 }
 0x1a5   :  { %v1642_v17 = vpop.f32.mrb[72].mxu1  ;;  %v1355_v18 = vpop.f32.mrb[73].mxu0 }
 0x1a6   :  { %2123 = vst.msk [vmem:[%s3700_s4 + $0x100] sm:$0xff] %vm22_vm0, %v2059_v13  ;;  %v2060_v19 = vadd.f32 %v3208_v53, %v1989_v14  ;;  %v1643_v20 = vadd.f32 %v1642_v17, %v1353_v15  ;;  %v1644_v21 = vpop.f32.mrb[73].mxu1  ;;  %v1356_v22 = vpop.f32.mrb[74].mxu0  ;;  %v129_v14 = vld [vmem:[#allocation2 + $0x150] sm:$0xff] }
 0x1a7   :  { %v1645_v24 = vpop.f32.mrb[74].mxu1  ;;  %v1358_v25 = vpop.f32.mrb[75].mxu0  ;;  %v130_v21 = vld [vmem:[#allocation2 + $0x158] sm:$0xff] }
 0x1a8   :  { %2124 = vst.msk [vmem:[%s3700_s4 + $0x108] sm:$0xff] %vm22_vm0, %v2060_v19  ;;  %v1789_v26 = vadd.f32 %v1643_v20, %v123_v16  ;;  %v1646_v27 = vadd.f32 %v1645_v24, %v1356_v22  ;;  %v1647_v28 = vpop.f32.mrb[75].mxu1 }
 0x1a9   :  { %v1919_v29 = vld [vmem:[#allocation2 + $0x110] sm:$0xff] }
 0x1aa   :  { %v1990_v30 = vmul.f32 %v3197_v40, %v1919_v29  ;;  %1854 = vst.msk [vmem:[#allocation2 + $0x120] sm:$0xff] %vm22_vm0, %v1789_v26  ;;  %v1790_v31 = vadd.f32 %v1646_v27, %v124_v23  ;;  %v3523_v27 = vld [vmem:[%s3698_s2] ss:$0 sm:$0xff] }
 0x1ab   :  { %v1920_v32 = vld [vmem:[#allocation2 + $0x118] sm:$0xff] }
 0x1ac   :  { %v2061_v33 = vadd.f32 %v3208_v53, %v1990_v30  ;;  %v1991_v34 = vmul.f32 %v3197_v40, %v1920_v32  ;;  %1855 = vst.msk [vmem:[#allocation2 + $0x128] sm:$0xff] %vm22_vm0, %v1790_v31  ;;  %v1361_v35 = vpop.f32.mrb[76].mxu0 }
 0x1ad   :  { %v1650_v37 = vpop.f32.mrb[76].mxu1  ;;  %v1363_v38 = vpop.f32.mrb[77].mxu0 }
 0x1ae   :  { %2125 = vst.msk [vmem:[%s3700_s4 + $0x110] sm:$0xff] %vm22_vm0, %v2061_v33  ;;  %v2062_v39 = vadd.f32 %v3208_v53, %v1991_v34  ;;  %v1651_v41 = vadd.f32 %v1650_v37, %v1361_v35  ;;  %v1652_v42 = vpop.f32.mrb[77].mxu1  ;;  %v1364_v43 = vpop.f32.mrb[78].mxu0  ;;  %v131_v34 = vld [vmem:[#allocation2 + $0x160] sm:$0xff] }
 0x1af   :  { %v1653_v45 = vpop.f32.mrb[78].mxu1  ;;  %v1366_v46 = vpop.f32.mrb[79].mxu0  ;;  %v3537_v37 = vld [vmem:[%s3699_s3] ss:$0 sm:$0xff]  ;;  %v132_v42 = vld [vmem:[#allocation2 + $0x168] sm:$0xff] }
 0x1b0   :  { %2126 = vst.msk [vmem:[%s3700_s4 + $0x118] sm:$0xff] %vm22_vm0, %v2062_v39  ;;  %v1791_v47 = vadd.f32 %v1651_v41, %v125_v36  ;;  %v1654_v48 = vadd.f32 %v1653_v45, %v1364_v43  ;;  %v1655_v49 = vpop.f32.mrb[79].mxu1 }
 0x1b1   :  { %v1921_v50 = vld [vmem:[#allocation2 + $0x120] sm:$0xff] }
 0x1b2   :  { %v1992_v51 = vmul.f32 %v3197_v40, %v1921_v50  ;;  %1856 = vst.msk [vmem:[#allocation2 + $0x130] sm:$0xff] %vm22_vm0, %v1791_v47  ;;  %v1792_v52 = vadd.f32 %v1654_v48, %v126_v44 }
 0x1b3   :  { %v1922_v54 = vld [vmem:[#allocation2 + $0x128] sm:$0xff] }
 0x1b4   :  { %v2063_v55 = vadd.f32 %v3208_v53, %v1992_v51  ;;  %v1993_v56 = vmul.f32 %v3197_v40, %v1922_v54  ;;  %1857 = vst.msk [vmem:[#allocation2 + $0x138] sm:$0xff] %vm22_vm0, %v1792_v52  ;;  %v1369_v57 = vpop.f32.mrb[80].mxu0 }
 0x1b5   :  { %v1658_v59 = vpop.f32.mrb[80].mxu1  ;;  %v1371_v60 = vpop.f32.mrb[81].mxu0 }
 0x1b6   :  { %2127 = vst.msk [vmem:[%s3700_s4 + $0x120] sm:$0xff] %vm22_vm0, %v2063_v55  ;;  %v2064_v61 = vadd.f32 %v3208_v53, %v1993_v56  ;;  %v1659_v62 = vadd.f32 %v1658_v59, %v1369_v57  ;;  %v1660_v63 = vpop.f32.mrb[81].mxu1  ;;  %v1372_v0 = vpop.f32.mrb[82].mxu0  ;;  %v133_v56 = vld [vmem:[#allocation2 + $0x170] sm:$0xff] }
 0x1b7   :  { %v1661_v2 = vpop.f32.mrb[82].mxu1  ;;  %v1374_v3 = vpop.f32.mrb[83].mxu0  ;;  %v134_v63 = vld [vmem:[#allocation2 + $0x178] sm:$0xff] }
 0x1b8   :  { %2128 = vst.msk [vmem:[%s3700_s4 + $0x128] sm:$0xff] %vm22_vm0, %v2064_v61  ;;  %v1793_v4 = vadd.f32 %v1659_v62, %v127_v58  ;;  %v1662_v5 = vadd.f32 %v1661_v2, %v1372_v0  ;;  %v1663_v6 = vpop.f32.mrb[83].mxu1 }
 0x1b9   :  { %v1923_v7 = vld [vmem:[#allocation2 + $0x130] sm:$0xff] }
 0x1ba   :  { %v1994_v8 = vmul.f32 %v3197_v40, %v1923_v7  ;;  %1858 = vst.msk [vmem:[#allocation2 + $0x140] sm:$0xff] %vm22_vm0, %v1793_v4  ;;  %v1794_v9 = vadd.f32 %v1662_v5, %v128_v1 }
 0x1bb   :  { %v1924_v10 = vld [vmem:[#allocation2 + $0x138] sm:$0xff] }
 0x1bc   :  { %v2065_v11 = vadd.f32 %v3208_v53, %v1994_v8  ;;  %v1995_v12 = vmul.f32 %v3197_v40, %v1924_v10  ;;  %1859 = vst.msk [vmem:[#allocation2 + $0x148] sm:$0xff] %vm22_vm0, %v1794_v9  ;;  %v1377_v13 = vpop.f32.mrb[84].mxu0 }
 0x1bd   :  { %v1666_v15 = vpop.f32.mrb[84].mxu1  ;;  %v1379_v16 = vpop.f32.mrb[85].mxu0 }
 0x1be   :  { %2129 = vst.msk [vmem:[%s3700_s4 + $0x130] sm:$0xff] %vm22_vm0, %v2065_v11  ;;  %v2066_v17 = vadd.f32 %v3208_v53, %v1995_v12  ;;  %v1667_v18 = vadd.f32 %v1666_v15, %v1377_v13  ;;  %v1668_v19 = vpop.f32.mrb[85].mxu1  ;;  %v1380_v20 = vpop.f32.mrb[86].mxu0  ;;  %v135_v12 = vld [vmem:[#allocation2 + $0x180] sm:$0xff] }
 0x1bf   :  { %v1669_v22 = vpop.f32.mrb[86].mxu1  ;;  %v1382_v23 = vpop.f32.mrb[87].mxu0  ;;  %v136_v19 = vld [vmem:[#allocation2 + $0x188] sm:$0xff] }
 0x1c0   :  { %2130 = vst.msk [vmem:[%s3700_s4 + $0x138] sm:$0xff] %vm22_vm0, %v2066_v17  ;;  %v1795_v40 = vadd.f32 %v1667_v18, %v129_v14  ;;  %v1670_v24 = vadd.f32 %v1669_v22, %v1380_v20  ;;  %v1671_v25 = vpop.f32.mrb[87].mxu1 }
 0x1c1   :  { %v1925_v26 = vld [vmem:[#allocation2 + $0x140] sm:$0xff] }
 0x1c2   :  { %v1996_v28 = vmul.f32 %v3523_v27, %v1925_v26  ;;  %1860 = vst.msk [vmem:[#allocation2 + $0x150] sm:$0xff] %vm22_vm0, %v1795_v40  ;;  %v1796_v29 = vadd.f32 %v1670_v24, %v130_v21 }
 0x1c3   :  { %v1926_v30 = vld [vmem:[#allocation2 + $0x148] sm:$0xff] }
 0x1c4   :  { %v2067_v31 = vadd.f32 %v3208_v53, %v1996_v28  ;;  %v1997_v32 = vmul.f32 %v3523_v27, %v1926_v30  ;;  %1861 = vst.msk [vmem:[#allocation2 + $0x158] sm:$0xff] %vm22_vm0, %v1796_v29  ;;  %v1385_v33 = vpop.f32.mrb[88].mxu0 }
 0x1c5   :  { %v1674_v35 = vpop.f32.mrb[88].mxu1  ;;  %v1387_v36 = vpop.f32.mrb[89].mxu0 }
 0x1c6   :  { %2131 = vst.msk [vmem:[%s3700_s4 + $0x140] sm:$0xff] %vm22_vm0, %v2067_v31  ;;  %v2068_v53 = vadd.f32 %v3537_v37, %v1997_v32  ;;  %v1675_v38 = vadd.f32 %v1674_v35, %v1385_v33  ;;  %v1676_v39 = vpop.f32.mrb[89].mxu1  ;;  %v1388_v41 = vpop.f32.mrb[90].mxu0  ;;  %v137_v32 = vld [vmem:[#allocation2 + $0x190] sm:$0xff] }
 0x1c7   :  { %v1677_v43 = vpop.f32.mrb[90].mxu1  ;;  %v1390_v44 = vpop.f32.mrb[91].mxu0  ;;  %v138_v39 = vld [vmem:[#allocation2 + $0x198] sm:$0xff] }
 0x1c8   :  { %2132 = vst.msk [vmem:[%s3700_s4 + $0x148] sm:$0xff] %vm22_vm0, %v2068_v53  ;;  %v1797_v45 = vadd.f32 %v1675_v38, %v131_v34  ;;  %v1678_v46 = vadd.f32 %v1677_v43, %v1388_v41  ;;  %v1679_v47 = vpop.f32.mrb[91].mxu1 }
 0x1c9   :  { %v1927_v48 = vld [vmem:[#allocation2 + $0x150] sm:$0xff] }
 0x1ca   :  { %v1998_v49 = vmul.f32 %v3523_v27, %v1927_v48  ;;  %1862 = vst.msk [vmem:[#allocation2 + $0x160] sm:$0xff] %vm22_vm0, %v1797_v45  ;;  %v1798_v50 = vadd.f32 %v1678_v46, %v132_v42 }
 0x1cb   :  { %v1928_v51 = vld [vmem:[#allocation2 + $0x158] sm:$0xff] }
 0x1cc   :  { %v2069_v52 = vadd.f32 %v3537_v37, %v1998_v49  ;;  %v1999_v54 = vmul.f32 %v3523_v27, %v1928_v51  ;;  %1863 = vst.msk [vmem:[#allocation2 + $0x168] sm:$0xff] %vm22_vm0, %v1798_v50  ;;  %v1393_v55 = vpop.f32.mrb[92].mxu0 }
 0x1cd   :  { %v1682_v57 = vpop.f32.mrb[92].mxu1  ;;  %v1395_v58 = vpop.f32.mrb[93].mxu0 }
 0x1ce   :  { %2133 = vst.msk [vmem:[%s3700_s4 + $0x150] sm:$0xff] %vm22_vm0, %v2069_v52  ;;  %v2070_v59 = vadd.f32 %v3537_v37, %v1999_v54  ;;  %v1683_v60 = vadd.f32 %v1682_v57, %v1393_v55  ;;  %v1684_v61 = vpop.f32.mrb[93].mxu1  ;;  %v1396_v62 = vpop.f32.mrb[94].mxu0  ;;  %v139_v54 = vld [vmem:[#allocation2 + $0x1a0] sm:$0xff] }
 0x1cf   :  { %v1685_v0 = vpop.f32.mrb[94].mxu1  ;;  %v1398_v1 = vpop.f32.mrb[95].mxu0  ;;  %v140_v61 = vld [vmem:[#allocation2 + $0x1a8] sm:$0xff] }
 0x1d0   :  { %2134 = vst.msk [vmem:[%s3700_s4 + $0x158] sm:$0xff] %vm22_vm0, %v2070_v59  ;;  %v1799_v2 = vadd.f32 %v1683_v60, %v133_v56  ;;  %v1686_v3 = vadd.f32 %v1685_v0, %v1396_v62  ;;  %v1687_v4 = vpop.f32.mrb[95].mxu1 }
 0x1d1   :  { %v1929_v5 = vld [vmem:[#allocation2 + $0x160] sm:$0xff] }
 0x1d2   :  { %v2000_v6 = vmul.f32 %v3523_v27, %v1929_v5  ;;  %1864 = vst.msk [vmem:[#allocation2 + $0x170] sm:$0xff] %vm22_vm0, %v1799_v2  ;;  %v1800_v7 = vadd.f32 %v1686_v3, %v134_v63 }
 0x1d3   :  { %v1930_v8 = vld [vmem:[#allocation2 + $0x168] sm:$0xff] }
 0x1d4   :  { %v2071_v9 = vadd.f32 %v3537_v37, %v2000_v6  ;;  %v2001_v10 = vmul.f32 %v3523_v27, %v1930_v8  ;;  %1865 = vst.msk [vmem:[#allocation2 + $0x178] sm:$0xff] %vm22_vm0, %v1800_v7  ;;  %v1401_v11 = vpop.f32.mrb[96].mxu0 }
 0x1d5   :  { %v1690_v13 = vpop.f32.mrb[96].mxu1  ;;  %v1403_v14 = vpop.f32.mrb[97].mxu0 }
 0x1d6   :  { %2135 = vst.msk [vmem:[%s3700_s4 + $0x160] sm:$0xff] %vm22_vm0, %v2071_v9  ;;  %v2072_v15 = vadd.f32 %v3537_v37, %v2001_v10  ;;  %v1691_v16 = vadd.f32 %v1690_v13, %v1401_v11  ;;  %v1692_v17 = vpop.f32.mrb[97].mxu1  ;;  %v1404_v18 = vpop.f32.mrb[98].mxu0  ;;  %v141_v10 = vld [vmem:[#allocation2 + $0x1b0] sm:$0xff] }
 0x1d7   :  { %v1693_v20 = vpop.f32.mrb[98].mxu1  ;;  %v1406_v21 = vpop.f32.mrb[99].mxu0  ;;  %v142_v17 = vld [vmem:[#allocation2 + $0x1b8] sm:$0xff] }
 0x1d8   :  { %2136 = vst.msk [vmem:[%s3700_s4 + $0x168] sm:$0xff] %vm22_vm0, %v2072_v15  ;;  %v1801_v22 = vadd.f32 %v1691_v16, %v135_v12  ;;  %v1694_v23 = vadd.f32 %v1693_v20, %v1404_v18  ;;  %v1695_v40 = vpop.f32.mrb[99].mxu1 }
 0x1d9   :  { %v1931_v24 = vld [vmem:[#allocation2 + $0x170] sm:$0xff] }
 0x1da   :  { %v2002_v25 = vmul.f32 %v3523_v27, %v1931_v24  ;;  %1866 = vst.msk [vmem:[#allocation2 + $0x180] sm:$0xff] %vm22_vm0, %v1801_v22  ;;  %v1802_v26 = vadd.f32 %v1694_v23, %v136_v19 }
 0x1db   :  { %v1932_v28 = vld [vmem:[#allocation2 + $0x178] sm:$0xff] }
 0x1dc   :  { %v2073_v29 = vadd.f32 %v3537_v37, %v2002_v25  ;;  %v2003_v30 = vmul.f32 %v3523_v27, %v1932_v28  ;;  %1867 = vst.msk [vmem:[#allocation2 + $0x188] sm:$0xff] %vm22_vm0, %v1802_v26  ;;  %v1409_v31 = vpop.f32.mrb[100].mxu0 }
 0x1dd   :  { %v1698_v33 = vpop.f32.mrb[100].mxu1  ;;  %v1411_v34 = vpop.f32.mrb[101].mxu0 }
 0x1de   :  { %2137 = vst.msk [vmem:[%s3700_s4 + $0x170] sm:$0xff] %vm22_vm0, %v2073_v29  ;;  %v2074_v35 = vadd.f32 %v3537_v37, %v2003_v30  ;;  %v1699_v36 = vadd.f32 %v1698_v33, %v1409_v31  ;;  %v1700_v53 = vpop.f32.mrb[101].mxu1  ;;  %v1412_v38 = vpop.f32.mrb[102].mxu0  ;;  %v143_v30 = vld [vmem:[#allocation2 + $0x1c0] sm:$0xff] }
 0x1df   :  { %v1701_v41 = vpop.f32.mrb[102].mxu1  ;;  %v1414_v42 = vpop.f32.mrb[103].mxu0  ;;  %v144_v53 = vld [vmem:[#allocation2 + $0x1c8] sm:$0xff] }
 0x1e0   :  { %2138 = vst.msk [vmem:[%s3700_s4 + $0x178] sm:$0xff] %vm22_vm0, %v2074_v35  ;;  %v1803_v43 = vadd.f32 %v1699_v36, %v137_v32  ;;  %v1702_v44 = vadd.f32 %v1701_v41, %v1412_v38  ;;  %v1703_v45 = vpop.f32.mrb[103].mxu1 }
 0x1e1   :  { %v1933_v46 = vld [vmem:[#allocation2 + $0x180] sm:$0xff] }
 0x1e2   :  { %v2004_v47 = vmul.f32 %v3523_v27, %v1933_v46  ;;  %1868 = vst.msk [vmem:[#allocation2 + $0x190] sm:$0xff] %vm22_vm0, %v1803_v43  ;;  %v1804_v48 = vadd.f32 %v1702_v44, %v138_v39 }
 0x1e3   :  { %v1934_v49 = vld [vmem:[#allocation2 + $0x188] sm:$0xff] }
 0x1e4   :  { %v2075_v50 = vadd.f32 %v3537_v37, %v2004_v47  ;;  %v2005_v51 = vmul.f32 %v3523_v27, %v1934_v49  ;;  %1869 = vst.msk [vmem:[#allocation2 + $0x198] sm:$0xff] %vm22_vm0, %v1804_v48  ;;  %v1417_v52 = vpop.f32.mrb[104].mxu0 }
 0x1e5   :  { %v1706_v55 = vpop.f32.mrb[104].mxu1  ;;  %v1419_v56 = vpop.f32.mrb[105].mxu0 }
 0x1e6   :  { %2139 = vst.msk [vmem:[%s3700_s4 + $0x180] sm:$0xff] %vm22_vm0, %v2075_v50  ;;  %v2076_v57 = vadd.f32 %v3537_v37, %v2005_v51  ;;  %v1707_v58 = vadd.f32 %v1706_v55, %v1417_v52  ;;  %v1708_v59 = vpop.f32.mrb[105].mxu1  ;;  %v1420_v60 = vpop.f32.mrb[106].mxu0  ;;  %v145_v51 = vld [vmem:[#allocation2 + $0x1d0] sm:$0xff] }
 0x1e7   :  { %v1709_v62 = vpop.f32.mrb[106].mxu1  ;;  %v1422_v63 = vpop.f32.mrb[107].mxu0  ;;  %v146_v59 = vld [vmem:[#allocation2 + $0x1d8] sm:$0xff] }
 0x1e8   :  { %2140 = vst.msk [vmem:[%s3700_s4 + $0x188] sm:$0xff] %vm22_vm0, %v2076_v57  ;;  %v1805_v0 = vadd.f32 %v1707_v58, %v139_v54  ;;  %v1710_v1 = vadd.f32 %v1709_v62, %v1420_v60  ;;  %v1711_v2 = vpop.f32.mrb[107].mxu1 }
 0x1e9   :  { %v1935_v3 = vld [vmem:[#allocation2 + $0x190] sm:$0xff] }
 0x1ea   :  { %v2006_v4 = vmul.f32 %v3523_v27, %v1935_v3  ;;  %1870 = vst.msk [vmem:[#allocation2 + $0x1a0] sm:$0xff] %vm22_vm0, %v1805_v0  ;;  %v1806_v5 = vadd.f32 %v1710_v1, %v140_v61 }
 0x1eb   :  { %v1936_v6 = vld [vmem:[#allocation2 + $0x198] sm:$0xff] }
 0x1ec   :  { %v2077_v7 = vadd.f32 %v3537_v37, %v2006_v4  ;;  %v2007_v8 = vmul.f32 %v3523_v27, %v1936_v6  ;;  %1871 = vst.msk [vmem:[#allocation2 + $0x1a8] sm:$0xff] %vm22_vm0, %v1806_v5  ;;  %v1425_v9 = vpop.f32.mrb[108].mxu0 }
 0x1ed   :  { %v1714_v11 = vpop.f32.mrb[108].mxu1  ;;  %v1427_v12 = vpop.f32.mrb[109].mxu0 }
 0x1ee   :  { %2141 = vst.msk [vmem:[%s3700_s4 + $0x190] sm:$0xff] %vm22_vm0, %v2077_v7  ;;  %v2078_v13 = vadd.f32 %v3537_v37, %v2007_v8  ;;  %v1715_v14 = vadd.f32 %v1714_v11, %v1425_v9  ;;  %v1716_v15 = vpop.f32.mrb[109].mxu1  ;;  %v1428_v16 = vpop.f32.mrb[110].mxu0  ;;  %v147_v8 = vld [vmem:[#allocation2 + $0x1e0] sm:$0xff] }
 0x1ef   :  { %v1717_v18 = vpop.f32.mrb[110].mxu1  ;;  %v1430_v19 = vpop.f32.mrb[111].mxu0  ;;  %v148_v15 = vld [vmem:[#allocation2 + $0x1e8] sm:$0xff] }
 0x1f0   :  { %2142 = vst.msk [vmem:[%s3700_s4 + $0x198] sm:$0xff] %vm22_vm0, %v2078_v13  ;;  %v1807_v20 = vadd.f32 %v1715_v14, %v141_v10  ;;  %v1718_v21 = vadd.f32 %v1717_v18, %v1428_v16  ;;  %v1719_v22 = vpop.f32.mrb[111].mxu1 }
 0x1f1   :  { %v1937_v23 = vld [vmem:[#allocation2 + $0x1a0] sm:$0xff] }
 0x1f2   :  { %v2008_v40 = vmul.f32 %v3523_v27, %v1937_v23  ;;  %1872 = vst.msk [vmem:[#allocation2 + $0x1b0] sm:$0xff] %vm22_vm0, %v1807_v20  ;;  %v1808_v24 = vadd.f32 %v1718_v21, %v142_v17 }
 0x1f3   :  { %v1938_v25 = vld [vmem:[#allocation2 + $0x1a8] sm:$0xff] }
 0x1f4   :  { %v2079_v26 = vadd.f32 %v3537_v37, %v2008_v40  ;;  %v2009_v28 = vmul.f32 %v3523_v27, %v1938_v25  ;;  %1873 = vst.msk [vmem:[#allocation2 + $0x1b8] sm:$0xff] %vm22_vm0, %v1808_v24  ;;  %v1433_v29 = vpop.f32.mrb[112].mxu0 }
 0x1f5   :  { %v1722_v31 = vpop.f32.mrb[112].mxu1  ;;  %v1435_v32 = vpop.f32.mrb[113].mxu0 }
 0x1f6   :  { %2143 = vst.msk [vmem:[%s3700_s4 + $0x1a0] sm:$0xff] %vm22_vm0, %v2079_v26  ;;  %v2080_v33 = vadd.f32 %v3537_v37, %v2009_v28  ;;  %v1723_v34 = vadd.f32 %v1722_v31, %v1433_v29  ;;  %v1724_v35 = vpop.f32.mrb[113].mxu1  ;;  %v1436_v36 = vpop.f32.mrb[114].mxu0  ;;  %v149_v28 = vld [vmem:[#allocation2 + $0x1f0] sm:$0xff] }
 0x1f7   :  { %v1725_v38 = vpop.f32.mrb[114].mxu1  ;;  %v1438_v39 = vpop.f32.mrb[115].mxu0  ;;  %v150_v35 = vld [vmem:[#allocation2 + $0x1f8] sm:$0xff] }
 0x1f8   :  { %2144 = vst.msk [vmem:[%s3700_s4 + $0x1a8] sm:$0xff] %vm22_vm0, %v2080_v33  ;;  %v1809_v41 = vadd.f32 %v1723_v34, %v143_v30  ;;  %v1726_v42 = vadd.f32 %v1725_v38, %v1436_v36  ;;  %v1727_v43 = vpop.f32.mrb[115].mxu1 }
 0x1f9   :  { %v1939_v44 = vld [vmem:[#allocation2 + $0x1b0] sm:$0xff] }
 0x1fa   :  { %v2010_v45 = vmul.f32 %v3523_v27, %v1939_v44  ;;  %1874 = vst.msk [vmem:[#allocation2 + $0x1c0] sm:$0xff] %vm22_vm0, %v1809_v41  ;;  %v1810_v46 = vadd.f32 %v1726_v42, %v144_v53 }
 0x1fb   :  { %v1940_v47 = vld [vmem:[#allocation2 + $0x1b8] sm:$0xff] }
 0x1fc   :  { %v2081_v48 = vadd.f32 %v3537_v37, %v2010_v45  ;;  %v2011_v49 = vmul.f32 %v3523_v27, %v1940_v47  ;;  %1875 = vst.msk [vmem:[#allocation2 + $0x1c8] sm:$0xff] %vm22_vm0, %v1810_v46  ;;  %v1441_v50 = vpop.f32.mrb[116].mxu0 }
 0x1fd   :  { %v1730_v52 = vpop.f32.mrb[116].mxu1  ;;  %v1443_v54 = vpop.f32.mrb[117].mxu0 }
 0x1fe   :  { %2145 = vst.msk [vmem:[%s3700_s4 + $0x1b0] sm:$0xff] %vm22_vm0, %v2081_v48  ;;  %v2082_v55 = vadd.f32 %v3537_v37, %v2011_v49  ;;  %v1731_v56 = vadd.f32 %v1730_v52, %v1441_v50  ;;  %v1732_v57 = vpop.f32.mrb[117].mxu1  ;;  %v1444_v58 = vpop.f32.mrb[118].mxu0 }
 0x1ff   :  { %v1733_v60 = vpop.f32.mrb[118].mxu1  ;;  %v1446_v61 = vpop.f32.mrb[119].mxu0 }
 0x200   :  { %2146 = vst.msk [vmem:[%s3700_s4 + $0x1b8] sm:$0xff] %vm22_vm0, %v2082_v55  ;;  %v1811_v62 = vadd.f32 %v1731_v56, %v145_v51  ;;  %v1734_v63 = vadd.f32 %v1733_v60, %v1444_v58  ;;  %v1735_v0 = vpop.f32.mrb[119].mxu1 }
 0x201   :  { %v1941_v1 = vld [vmem:[#allocation2 + $0x1c0] sm:$0xff] }
 0x202   :  { %v2012_v2 = vmul.f32 %v3523_v27, %v1941_v1  ;;  %1876 = vst.msk [vmem:[#allocation2 + $0x1d0] sm:$0xff] %vm22_vm0, %v1811_v62  ;;  %v1812_v3 = vadd.f32 %v1734_v63, %v146_v59 }
 0x203   :  { %v1942_v4 = vld [vmem:[#allocation2 + $0x1c8] sm:$0xff] }
 0x204   :  { %v2083_v5 = vadd.f32 %v3537_v37, %v2012_v2  ;;  %v2013_v6 = vmul.f32 %v3523_v27, %v1942_v4  ;;  %1877 = vst.msk [vmem:[#allocation2 + $0x1d8] sm:$0xff] %vm22_vm0, %v1812_v3  ;;  %v1449_v7 = vpop.f32.mrb[120].mxu0 }
 0x205   :  { %v1738_v9 = vpop.f32.mrb[120].mxu1  ;;  %v1451_v10 = vpop.f32.mrb[121].mxu0 }
 0x206   :  { %2147 = vst.msk [vmem:[%s3700_s4 + $0x1c0] sm:$0xff] %vm22_vm0, %v2083_v5  ;;  %v2084_v11 = vadd.f32 %v3537_v37, %v2013_v6  ;;  %v1739_v12 = vadd.f32 %v1738_v9, %v1449_v7  ;;  %v1740_v13 = vpop.f32.mrb[121].mxu1  ;;  %v1452_v14 = vpop.f32.mrb[122].mxu0 }
 0x207   :  { %v1741_v16 = vpop.f32.mrb[122].mxu1  ;;  %v1454_v17 = vpop.f32.mrb[123].mxu0 }
 0x208   :  { %2148 = vst.msk [vmem:[%s3700_s4 + $0x1c8] sm:$0xff] %vm22_vm0, %v2084_v11  ;;  %v1813_v18 = vadd.f32 %v1739_v12, %v147_v8  ;;  %v1742_v19 = vadd.f32 %v1741_v16, %v1452_v14  ;;  %v1743_v20 = vpop.f32.mrb[123].mxu1 }
 0x209   :  { %v1943_v21 = vld [vmem:[#allocation2 + $0x1d0] sm:$0xff] }
 0x20a   :  { %v2014_v22 = vmul.f32 %v3523_v27, %v1943_v21  ;;  %1878 = vst.msk [vmem:[#allocation2 + $0x1e0] sm:$0xff] %vm22_vm0, %v1813_v18  ;;  %v1814_v23 = vadd.f32 %v1742_v19, %v148_v15 }
 0x20b   :  { %v1944_v40 = vld [vmem:[#allocation2 + $0x1d8] sm:$0xff] }
 0x20c   :  { %v2085_v24 = vadd.f32 %v3537_v37, %v2014_v22  ;;  %v2015_v25 = vmul.f32 %v3523_v27, %v1944_v40  ;;  %1879 = vst.msk [vmem:[#allocation2 + $0x1e8] sm:$0xff] %vm22_vm0, %v1814_v23  ;;  %v1457_v26 = vpop.f32.mrb[124].mxu0 }
 0x20d   :  { %v1746_v29 = vpop.f32.mrb[124].mxu1  ;;  %v1459_v30 = vpop.f32.mrb[125].mxu0 }
 0x20e   :  { %2149 = vst.msk [vmem:[%s3700_s4 + $0x1d0] sm:$0xff] %vm22_vm0, %v2085_v24  ;;  %v2086_v31 = vadd.f32 %v3537_v37, %v2015_v25  ;;  %v1747_v32 = vadd.f32 %v1746_v29, %v1457_v26  ;;  %v1748_v33 = vpop.f32.mrb[125].mxu1  ;;  %v1460_v34 = vpop.f32.mrb[126].mxu0 }
 0x20f   :  { %v1749_v36 = vpop.f32.mrb[126].mxu1  ;;  %v1462_v53 = vpop.f32.mrb[127].mxu0 }
 0x210   :  { %2150 = vst.msk [vmem:[%s3700_s4 + $0x1d8] sm:$0xff] %vm22_vm0, %v2086_v31  ;;  %v1815_v38 = vadd.f32 %v1747_v32, %v149_v28  ;;  %v1750_v39 = vadd.f32 %v1749_v36, %v1460_v34  ;;  %v1751_v41 = vpop.f32.mrb[127].mxu1 }
 0x211   :  { %v1945_v42 = vld [vmem:[#allocation2 + $0x1e0] sm:$0xff] }
 0x212   :  { %v2016_v43 = vmul.f32 %v3523_v27, %v1945_v42  ;;  %1880 = vst.msk [vmem:[#allocation2 + $0x1f0] sm:$0xff] %vm22_vm0, %v1815_v38  ;;  %v1816_v44 = vadd.f32 %v1750_v39, %v150_v35 }
 0x213   :  { %v1946_v45 = vld [vmem:[#allocation2 + $0x1e8] sm:$0xff] }
 0x214   :  { %v2087_v46 = vadd.f32 %v3537_v37, %v2016_v43  ;;  %v2017_v47 = vmul.f32 %v3523_v27, %v1946_v45  ;;  %1881 = vst.msk [vmem:[#allocation2 + $0x1f8] sm:$0xff] %vm22_vm0, %v1816_v44 }
 0x216   :  { %2151 = vst.msk [vmem:[%s3700_s4 + $0x1e0] sm:$0xff] %vm22_vm0, %v2087_v46  ;;  %v2088_v48 = vadd.f32 %v3537_v37, %v2017_v47 }
 0x218   :  { %2152 = vst.msk [vmem:[%s3700_s4 + $0x1e8] sm:$0xff] %vm22_vm0, %v2088_v48 }
 0x219   :  { %v1947_v49 = vld [vmem:[#allocation2 + $0x1f0] sm:$0xff] }
 0x21a   :  { %v2018_v50 = vmul.f32 %v3523_v27, %v1947_v49 }
 0x21b   :  { %v1948_v51 = vld [vmem:[#allocation2 + $0x1f8] sm:$0xff] }
 0x21c   :  { %v2089_v52 = vadd.f32 %v3537_v37, %v2018_v50  ;;  %v2019_v54 = vmul.f32 %v3523_v27, %v1948_v51 }
 0x21e   :  { %2153 = vst.msk [vmem:[%s3700_s4 + $0x1f0] sm:$0xff] %vm22_vm0, %v2089_v52  ;;  %v2090_v55 = vadd.f32 %v3537_v37, %v2019_v54 }
 0x220   :  { %2154 = vst.msk [vmem:[%s3700_s4 + $0x1f8] sm:$0xff] %vm22_vm0, %v2090_v55 }

// kernel: _lambda_.16
= control target key start
LH: loop header
LB: loop body
LE: loop exit
PB: predicated region body
PF: predicated region fallthrough
CT: control target
= control target key end

     0   :  { %vm22_vm0 = vcmask 523264   ;;  %s1867_s1 = inlined_call_operand.vmem [shape: bf16[640,64], index: 1, kind: input, shape index: {}]   ;;  %s1868_s0 = inlined_call_operand.vmem [shape: bf16[128,640], index: 0, kind: input, shape index: {}]   ;;  %s1869_s2 = inlined_call_operand.vmem [shape: f32[1,64], index: 2, kind: input, shape index: {}]   ;;  %s1870_s3 = inlined_call_operand.vmem [shape: f32[1,64], index: 3, kind: input, shape index: {}]   ;;  %s1871_s4 = inlined_call_operand.vmem [shape: f32[128,64], index: 4, kind: output, shape index: {}]  }
   0x1   :  { %v1331_v0 = vld [vmem:[%s1867_s1 + $0x40] sm:$0xff]   ;;  %v1335_v4 = vld [vmem:[%s1867_s1 + $0x48] sm:$0xff]   ;;  %v1339_v8 = vld [vmem:[%s1867_s1 + $0x50] sm:$0xff]  }
   0x2   :  { %v1332_v1 = vld [vmem:[%s1867_s1 + $0xc0] sm:$0xff]   ;;  %1138 = vmatprep.subr.bf16.mxu0 %v1331_v0  ;;  %v1336_v5 = vld [vmem:[%s1867_s1 + $0xc8] sm:$0xff]   ;;  %v1340_v9 = vld [vmem:[%s1867_s1 + $0xd0] sm:$0xff]  }
   0x3   :  { %v1333_v2 = vld [vmem:[%s1867_s1] sm:$0xff]   ;;  %1202 = vmatprep.subr.bf16.mxu1 %v1332_v1  ;;  %v1337_v6 = vld [vmem:[%s1867_s1 + $0x8] sm:$0xff]   ;;  %v1341_v10 = vld [vmem:[%s1867_s1 + $0x10] sm:$0xff]  }
   0x4   :  { %v1334_v3 = vld [vmem:[%s1867_s1 + $0x80] sm:$0xff]   ;;  %1139 = vmatpush3.bf16.msra.mxu0 %v1333_v2  ;;  %v1338_v7 = vld [vmem:[%s1867_s1 + $0x88] sm:$0xff]   ;;  %v1342_v11 = vld [vmem:[%s1867_s1 + $0x90] sm:$0xff]  }
   0x5   :  { %1203 = vmatpush3.bf16.msra.mxu1 %v1334_v3  ;;  %1140 = vmatprep.subr.bf16.mxu0 %v1335_v4  ;;  %v1343_v12 = vld [vmem:[%s1867_s1 + $0x58] sm:$0xff]   ;;  %v1347_v16 = vld [vmem:[%s1867_s1 + $0x60] sm:$0xff]   ;;  %v1351_v20 = vld [vmem:[%s1867_s1 + $0x68] sm:$0xff]  }
   0x6   :  { %1204 = vmatprep.subr.bf16.mxu1 %v1336_v5  ;;  %v1344_v13 = vld [vmem:[%s1867_s1 + $0xd8] sm:$0xff]   ;;  %v1348_v17 = vld [vmem:[%s1867_s1 + $0xe0] sm:$0xff]   ;;  %v1352_v21 = vld [vmem:[%s1867_s1 + $0xe8] sm:$0xff]  }
   0x7   :  { %v1345_v14 = vld [vmem:[%s1867_s1 + $0x18] sm:$0xff]   ;;  %v1349_v18 = vld [vmem:[%s1867_s1 + $0x20] sm:$0xff]   ;;  %v1353_v22 = vld [vmem:[%s1867_s1 + $0x28] sm:$0xff]  }
   0x8   :  { %1141 = vmatpush3.bf16.msra.mxu0 %v1337_v6  ;;  %v1346_v15 = vld [vmem:[%s1867_s1 + $0x98] sm:$0xff]   ;;  %v1350_v19 = vld [vmem:[%s1867_s1 + $0xa0] sm:$0xff]   ;;  %v1354_v23 = vld [vmem:[%s1867_s1 + $0xa8] sm:$0xff]  }
   0x9   :  { %1205 = vmatpush3.bf16.msra.mxu1 %v1338_v7  ;;  %1142 = vmatprep.subr.bf16.mxu0 %v1339_v8  ;;  %v1355_v24 = vld [vmem:[%s1867_s1 + $0x70] sm:$0xff]   ;;  %v1359_v28 = vld [vmem:[%s1867_s1 + $0x78] sm:$0xff]   ;;  %v1368_v35 = vld [vmem:[%s1868_s0 + $0xc] ss:$20 sps:$4 sm:$0xff]  }
   0xa   :  { %1206 = vmatprep.subr.bf16.mxu1 %v1340_v9  ;;  %v1356_v25 = vld [vmem:[%s1867_s1 + $0xf0] sm:$0xff]   ;;  %v1360_v29 = vld [vmem:[%s1867_s1 + $0xf8] sm:$0xff]   ;;  %v1369_v36 = vld [vmem:[%s1867_s1 + $0x100] sm:$0xff]   ;;  %760 = vmatprep.mubr.bf16.mxu1 %v1368_v35 }
   0xb   :  { %v1357_v26 = vld [vmem:[%s1867_s1 + $0x30] sm:$0xff]   ;;  %v1361_v30 = vld [vmem:[%s1867_s1 + $0x38] sm:$0xff]   ;;  %v1370_v37 = vld [vmem:[%s1868_s0 + $0x2c] ss:$20 sps:$4 sm:$0xff]  }
   0xc   :  { %1143 = vmatpush3.bf16.msra.mxu0 %v1341_v10  ;;  %v1358_v27 = vld [vmem:[%s1867_s1 + $0xb0] sm:$0xff]   ;;  %v1362_v31 = vld [vmem:[%s1867_s1 + $0xb8] sm:$0xff]   ;;  %v1376_v39 = vld [vmem:[%s1867_s1 + $0x108] sm:$0xff]  }
   0xd   :  { %1207 = vmatpush3.bf16.msra.mxu1 %v1342_v11  ;;  %1144 = vmatprep.subr.bf16.mxu0 %v1343_v12  ;;  %v1363_v32 = vld [vmem:[%s1868_s0] ss:$20 sps:$4 sm:$0xff]   ;;  %v1365_v33 = vld [vmem:[%s1868_s0 + $0x4] ss:$20 sps:$4 sm:$0xff]   ;;  %v1366_v34 = vld [vmem:[%s1868_s0 + $0x8] ss:$20 sps:$4 sm:$0xff]  }
   0xe   :  { %1208 = vmatprep.subr.bf16.mxu1 %v1344_v13  ;;  %663 = vmatprep.mubr.bf16.mxu0 %v1365_v33  ;;  %v1372_v38 = vld [vmem:[%s1868_s0 + $0x34] ss:$20 sps:$4 sm:$0xff]   ;;  %v1375_v41 = vld [vmem:[%s1868_s0 + $0x30] ss:$20 sps:$4 sm:$0xff]   ;;  %v1390_v45 = vld [vmem:[%s1867_s1 + $0x118] sm:$0xff]  }
   0xf   :  { %v1374_v40 = vld [vmem:[%s1868_s0 + $0x28] ss:$20 sps:$4 sm:$0xff]   ;;  %v1383_v44 = vld [vmem:[%s1867_s1 + $0x110] sm:$0xff]   ;;  %v1382_v47 = vld [vmem:[%s1868_s0 + $0x58] ss:$20 sps:$4 sm:$0xff]  }
  0x10   :  { %1145 = vmatpush3.bf16.msra.mxu0 %v1345_v14  ;;  %v1377_v42 = vld [vmem:[%s1868_s0 + $0x54] ss:$20 sps:$4 sm:$0xff]   ;;  %v1379_v43 = vld [vmem:[%s1868_s0 + $0x5c] ss:$20 sps:$4 sm:$0xff]   ;;  %v1386_v49 = vld [vmem:[%s1868_s0 + $0x84] ss:$20 sps:$4 sm:$0xff]  }
  0x11   :  { %1209 = vmatpush3.bf16.msra.mxu1 %v1346_v15  ;;  %1146 = vmatprep.subr.bf16.mxu0 %v1347_v16  ;;  %v1381_v46 = vld [vmem:[%s1868_s0 + $0x50] ss:$20 sps:$4 sm:$0xff]   ;;  %v1404_v51 = vld [vmem:[%s1867_s1 + $0x128] sm:$0xff]   ;;  %v1389_v53 = vld [vmem:[%s1868_s0 + $0x80] ss:$20 sps:$4 sm:$0xff]   ;;  %v1427_v16 = vmov 0.0  }
  0x12   :  { %1210 = vmatprep.subr.bf16.mxu1 %v1348_v17  ;;  %v1384_v48 = vld [vmem:[%s1868_s0 + $0x7c] ss:$20 sps:$4 sm:$0xff]   ;;  %v1397_v50 = vld [vmem:[%s1867_s1 + $0x120] sm:$0xff]   ;;  %v1388_v52 = vld [vmem:[%s1868_s0 + $0x78] ss:$20 sps:$4 sm:$0xff]   ;;  %25 = vst.msk [vmem:[#allocation2 + $0x10] sm:$0xff] %vm22_vm0, %v1427_v16 }
  0x13   :  { %v1391_v54 = vld [vmem:[%s1868_s0 + $0xa4] ss:$20 sps:$4 sm:$0xff]   ;;  %v1411_v55 = vld [vmem:[%s1867_s1 + $0x130] sm:$0xff]   ;;  %v1393_v56 = vld [vmem:[%s1868_s0 + $0xac] ss:$20 sps:$4 sm:$0xff]   ;;  %23 = vst.msk [vmem:[#allocation2] sm:$0xff] %vm22_vm0, %v1427_v16 }
  0x14   :  { %1147 = vmatpush3.bf16.msra.mxu0 %v1349_v18  ;;  %v1418_v57 = vld [vmem:[%s1867_s1 + $0x138] sm:$0xff]   ;;  %v1395_v58 = vld [vmem:[%s1868_s0 + $0xa0] ss:$20 sps:$4 sm:$0xff]   ;;  %v1403_v63 = vld [vmem:[%s1868_s0 + $0xd0] ss:$20 sps:$4 sm:$0xff]   ;;  %24 = vst.msk [vmem:[#allocation2 + $0x8] sm:$0xff] %vm22_vm0, %v1427_v16 }
  0x15   :  { %1211 = vmatpush3.bf16.msra.mxu1 %v1350_v19  ;;  %1148 = vmatprep.subr.bf16.mxu0 %v1351_v20  ;;  %v1396_v59 = vld [vmem:[%s1868_s0 + $0xa8] ss:$20 sps:$4 sm:$0xff]   ;;  %v1398_v60 = vld [vmem:[%s1868_s0 + $0xcc] ss:$20 sps:$4 sm:$0xff]   ;;  %v1409_v2 = vld [vmem:[%s1868_s0 + $0xf0] ss:$20 sps:$4 sm:$0xff]  }
  0x16   :  { %1212 = vmatprep.subr.bf16.mxu1 %v1352_v21  ;;  %v1400_v61 = vld [vmem:[%s1868_s0 + $0xd4] ss:$20 sps:$4 sm:$0xff]   ;;  %v1407_v1 = vld [vmem:[%s1868_s0 + $0xfc] ss:$20 sps:$4 sm:$0xff]   ;;  %v1410_v3 = vld [vmem:[%s1868_s0 + $0xf8] ss:$20 sps:$4 sm:$0xff]  }
  0x17   :  { %v1402_v62 = vld [vmem:[%s1868_s0 + $0xc8] ss:$20 sps:$4 sm:$0xff]   ;;  %v1414_v5 = vld [vmem:[%s1868_s0 + $0x124] ss:$20 sps:$4 sm:$0xff]   ;;  %v1417_v7 = vld [vmem:[%s1868_s0 + $0x120] ss:$20 sps:$4 sm:$0xff]  }
  0x18   :  { %1149 = vmatpush3.bf16.msra.mxu0 %v1353_v22  ;;  %v1405_v0 = vld [vmem:[%s1868_s0 + $0xf4] ss:$20 sps:$4 sm:$0xff]   ;;  %v1412_v4 = vld [vmem:[%s1868_s0 + $0x11c] ss:$20 sps:$4 sm:$0xff]   ;;  %v1416_v6 = vld [vmem:[%s1868_s0 + $0x118] ss:$20 sps:$4 sm:$0xff]  }
  0x19   :  { %1213 = vmatpush3.bf16.msra.mxu1 %v1354_v23  ;;  %1150 = vmatprep.subr.bf16.mxu0 %v1355_v24  ;;  %v1419_v8 = vld [vmem:[%s1868_s0 + $0x10] ss:$20 sps:$4 sm:$0xff]   ;;  %v1421_v10 = vld [vmem:[%s1868_s0 + $0x38] ss:$20 sps:$4 sm:$0xff]   ;;  %v1423_v12 = vld [vmem:[%s1868_s0 + $0x60] ss:$20 sps:$4 sm:$0xff]  }
  0x1a   :  { %1214 = vmatprep.subr.bf16.mxu1 %v1356_v25  ;;  %v1420_v9 = vld [vmem:[%s1868_s0 + $0xb0] ss:$20 sps:$4 sm:$0xff]   ;;  %v1422_v11 = vld [vmem:[%s1868_s0 + $0xd8] ss:$20 sps:$4 sm:$0xff]   ;;  %v1424_v13 = vld [vmem:[%s1868_s0 + $0x100] ss:$20 sps:$4 sm:$0xff]  }
  0x1b   :  { %v1425_v14 = vld [vmem:[%s1868_s0 + $0x88] ss:$20 sps:$4 sm:$0xff]   ;;  %26 = vst.msk [vmem:[#allocation2 + $0x18] sm:$0xff] %vm22_vm0, %v1427_v16  ;;  %27 = vst.msk [vmem:[#allocation2 + $0x20] sm:$0xff] %vm22_vm0, %v1427_v16 }
  0x1c   :  { %1151 = vmatpush3.bf16.msra.mxu0 %v1357_v26  ;;  %v1426_v15 = vld [vmem:[%s1868_s0 + $0x128] ss:$20 sps:$4 sm:$0xff]   ;;  %28 = vst.msk [vmem:[#allocation2 + $0x28] sm:$0xff] %vm22_vm0, %v1427_v16  ;;  %29 = vst.msk [vmem:[#allocation2 + $0x30] sm:$0xff] %vm22_vm0, %v1427_v16 }
  0x1d   :  { %1215 = vmatpush3.bf16.msra.mxu1 %v1358_v27  ;;  %1152 = vmatprep.subr.bf16.mxu0 %v1359_v28  ;;  %30 = vst.msk [vmem:[#allocation2 + $0x38] sm:$0xff] %vm22_vm0, %v1427_v16  ;;  %31 = vst.msk [vmem:[#allocation2 + $0x40] sm:$0xff] %vm22_vm0, %v1427_v16 }
  0x1e   :  { %1216 = vmatprep.subr.bf16.mxu1 %v1360_v29  ;;  %32 = vst.msk [vmem:[#allocation2 + $0x48] sm:$0xff] %vm22_vm0, %v1427_v16  ;;  %33 = vst.msk [vmem:[#allocation2 + $0x50] sm:$0xff] %vm22_vm0, %v1427_v16 }
  0x1f   :  { %34 = vst.msk [vmem:[#allocation2 + $0x58] sm:$0xff] %vm22_vm0, %v1427_v16  ;;  %35 = vst.msk [vmem:[#allocation2 + $0x60] sm:$0xff] %vm22_vm0, %v1427_v16 }
  0x20   :  { %1153 = vmatpush3.bf16.msra.mxu0 %v1361_v30  ;;  %36 = vst.msk [vmem:[#allocation2 + $0x68] sm:$0xff] %vm22_vm0, %v1427_v16  ;;  %37 = vst.msk [vmem:[#allocation2 + $0x70] sm:$0xff] %vm22_vm0, %v1427_v16 }
  0x21   :  { %1217 = vmatpush3.bf16.msra.mxu1 %v1362_v31  ;;  %1282 = vmatprep.subr.bf16.mxu0 %v1369_v36  ;;  %38 = vst.msk [vmem:[#allocation2 + $0x78] sm:$0xff] %vm22_vm0, %v1427_v16 }
  0x22   :  { %1314 = vmatprep.subr.bf16.mxu1 %v1369_v36 }
  0x23   :  { %664 = vmatmul.mubr.bf16.vlgmr.msra.gmra.mrb[0].mxu0 %v1363_v32 }
  0x24   :  { %761 = vmatmul.mubr.bf16.vlgmr.msra.gmra.mrb[0].mxu1 %v1366_v34  ;;  %1283 = vmatpush3.bf16.msra.mxu0 %v1369_v36 }
  0x25   :  { %1322 = vmatpush3.bf16.msra.mxu1 %v1369_v36  ;;  %671 = vmatprep.mubr.bf16.mxu0 %v1370_v37 }
  0x26   :  { %768 = vmatprep.mubr.bf16.mxu1 %v1372_v38  ;;  %1284 = vmatprep.subr.bf16.mxu0 %v1376_v39 }
  0x27   :  { %1315 = vmatprep.subr.bf16.mxu1 %v1376_v39 }
  0x28   :  { %1285 = vmatpush3.bf16.msra.mxu0 %v1376_v39 }
  0x29   :  { %1323 = vmatpush3.bf16.msra.mxu1 %v1376_v39  ;;  %1286 = vmatprep.subr.bf16.mxu0 %v1383_v44 }
  0x2a   :  { %1316 = vmatprep.subr.bf16.mxu1 %v1383_v44 }
  0x2b   :  { %672 = vmatmul.mubr.bf16.gmra.mrb[4].mxu0 %v1374_v40 }
  0x2c   :  { %769 = vmatmul.mubr.bf16.gmra.mrb[4].mxu1 %v1375_v41  ;;  %679 = vmatprep.mubr.bf16.mxu0 %v1377_v42 }
  0x2d   :  { %776 = vmatprep.mubr.bf16.mxu1 %v1379_v43  ;;  %1287 = vmatpush3.bf16.msra.mxu0 %v1383_v44 }
  0x2e   :  { %1324 = vmatpush3.bf16.msra.mxu1 %v1383_v44  ;;  %1288 = vmatprep.subr.bf16.mxu0 %v1390_v45 }
  0x2f   :  { %1317 = vmatprep.subr.bf16.mxu1 %v1390_v45 }
  0x31   :  { %1289 = vmatpush3.bf16.msra.mxu0 %v1390_v45 }
  0x32   :  { %1325 = vmatpush3.bf16.msra.mxu1 %v1390_v45  ;;  %1290 = vmatprep.subr.bf16.mxu0 %v1397_v50 }
  0x33   :  { %680 = vmatmul.mubr.bf16.gmra.mrb[8].mxu0 %v1381_v46  ;;  %1318 = vmatprep.subr.bf16.mxu1 %v1397_v50 }
  0x34   :  { %777 = vmatmul.mubr.bf16.gmra.mrb[8].mxu1 %v1382_v47  ;;  %687 = vmatprep.mubr.bf16.mxu0 %v1384_v48 }
  0x35   :  { %784 = vmatprep.mubr.bf16.mxu1 %v1386_v49  ;;  %1291 = vmatpush3.bf16.msra.mxu0 %v1397_v50 }
  0x36   :  { %1326 = vmatpush3.bf16.msra.mxu1 %v1397_v50  ;;  %1292 = vmatprep.subr.bf16.mxu0 %v1404_v51 }
  0x37   :  { %1319 = vmatprep.subr.bf16.mxu1 %v1404_v51 }
  0x39   :  { %1293 = vmatpush3.bf16.msra.mxu0 %v1404_v51 }
  0x3a   :  { %1327 = vmatpush3.bf16.msra.mxu1 %v1404_v51  ;;  %1294 = vmatprep.subr.bf16.mxu0 %v1411_v55 }
  0x3b   :  { %688 = vmatmul.mubr.bf16.gmra.mrb[12].mxu0 %v1388_v52  ;;  %1320 = vmatprep.subr.bf16.mxu1 %v1411_v55 }
  0x3c   :  { %785 = vmatmul.mubr.bf16.gmra.mrb[12].mxu1 %v1389_v53  ;;  %695 = vmatprep.mubr.bf16.mxu0 %v1391_v54 }
  0x3d   :  { %792 = vmatprep.mubr.bf16.mxu1 %v1393_v56  ;;  %1295 = vmatpush3.bf16.msra.mxu0 %v1411_v55 }
  0x3e   :  { %1328 = vmatpush3.bf16.msra.mxu1 %v1411_v55  ;;  %1296 = vmatprep.subr.bf16.mxu0 %v1418_v57 }
  0x3f   :  { %1321 = vmatprep.subr.bf16.mxu1 %v1418_v57 }
  0x41   :  { %1297 = vmatpush3.bf16.msra.mxu0 %v1418_v57 }
  0x42   :  { %1329 = vmatpush3.bf16.msra.mxu1 %v1418_v57 }
  0x43   :  { %696 = vmatmul.mubr.bf16.gmra.mrb[16].mxu0 %v1395_v58 }
  0x44   :  { %793 = vmatmul.mubr.bf16.gmra.mrb[16].mxu1 %v1396_v59  ;;  %703 = vmatprep.mubr.bf16.mxu0 %v1398_v60 }
  0x45   :  { %800 = vmatprep.mubr.bf16.mxu1 %v1400_v61 }
  0x4b   :  { %704 = vmatmul.mubr.bf16.gmra.mrb[20].mxu0 %v1402_v62 }
  0x4c   :  { %801 = vmatmul.mubr.bf16.gmra.mrb[20].mxu1 %v1403_v63  ;;  %711 = vmatprep.mubr.bf16.mxu0 %v1405_v0 }
  0x4d   :  { %808 = vmatprep.mubr.bf16.mxu1 %v1407_v1 }
  0x53   :  { %712 = vmatmul.mubr.bf16.gmra.mrb[24].mxu0 %v1409_v2 }
  0x54   :  { %809 = vmatmul.mubr.bf16.gmra.mrb[24].mxu1 %v1410_v3  ;;  %719 = vmatprep.mubr.bf16.mxu0 %v1412_v4 }
  0x55   :  { %816 = vmatprep.mubr.bf16.mxu1 %v1414_v5 }
  0x5b   :  { %720 = vmatmul.mubr.bf16.gmra.mrb[28].mxu0 %v1416_v6 }
  0x5c   :  { %817 = vmatmul.mubr.bf16.gmra.mrb[28].mxu1 %v1417_v7  ;;  %1298 = vmatprep.mubr.bf16.mxu0 %v1419_v8 }
  0x5d   :  { %1306 = vmatprep.mubr.bf16.mxu1 %v1420_v9 }
  0x63   :  { %1299 = vmatmul.mubr.bf16.vlgmr.msra.gmra.mrb[32].mxu0 %v1421_v10 }
  0x64   :  { %1307 = vmatmul.mubr.bf16.vlgmr.msra.gmra.mrb[32].mxu1 %v1422_v11  ;;  %1302 = vmatprep.mubr.bf16.mxu0 %v1423_v12 }
  0x65   :  { %1310 = vmatprep.mubr.bf16.mxu1 %v1424_v13 }
  0x6b   :  { %1303 = vmatmul.mubr.bf16.gmra.mrb[36].mxu0 %v1425_v14 }
  0x6c   :  { %1311 = vmatmul.mubr.bf16.gmra.mrb[36].mxu1 %v1426_v15 }
  0xf6   :  { %v1154_v17 = vpop.f32.mrb[0].mxu0 }
  0xf7   :  { %v1218_v18 = vpop.f32.mrb[0].mxu1  ;;  %v1155_v19 = vpop.f32.mrb[1].mxu0 }
  0xf8   :  { %v1156_v20 = vadd.f32 %v1155_v19, %v1154_v17  ;;  %v1219_v21 = vpop.f32.mrb[1].mxu1  ;;  %v1157_v22 = vpop.f32.mrb[2].mxu0 }
  0xf9   :  { %v1220_v23 = vadd.f32 %v1219_v21, %v1218_v18  ;;  %v1221_v24 = vpop.f32.mrb[2].mxu1  ;;  %v1158_v25 = vpop.f32.mrb[3].mxu0 }
  0xfa   :  { %v1159_v26 = vadd.f32 %v1158_v25, %v1157_v22  ;;  %v1222_v27 = vpop.f32.mrb[3].mxu1 }
  0xfb   :  { %v1223_v28 = vadd.f32 %v1222_v27, %v1221_v24  ;;  %v1709_v29 = vadd.f32 %v1220_v23, %v1156_v20 }
  0xfd   :  { %v1711_v30 = vadd.f32 %v1223_v28, %v1159_v26 }
  0xfe   :  { %v1160_v31 = vpop.f32.mrb[4].mxu0 }
  0xff   :  { %v1224_v32 = vpop.f32.mrb[4].mxu1  ;;  %v1161_v33 = vpop.f32.mrb[5].mxu0 }
 0x100   :  { %v1162_v34 = vadd.f32 %v1161_v33, %v1160_v31  ;;  %v1225_v35 = vpop.f32.mrb[5].mxu1  ;;  %v1163_v36 = vpop.f32.mrb[6].mxu0 }
 0x101   :  { %v1226_v37 = vadd.f32 %v1225_v35, %v1224_v32  ;;  %v1227_v38 = vpop.f32.mrb[6].mxu1  ;;  %v1164_v39 = vpop.f32.mrb[7].mxu0 }
 0x102   :  { %v1165_v40 = vadd.f32 %v1164_v39, %v1163_v36  ;;  %v1228_v41 = vpop.f32.mrb[7].mxu1 }
 0x103   :  { %v1229_v42 = vadd.f32 %v1228_v41, %v1227_v38  ;;  %v1713_v43 = vadd.f32 %v1226_v37, %v1162_v34 }
 0x105   :  { %v1715_v44 = vadd.f32 %v1229_v42, %v1165_v40 }
 0x106   :  { %v1166_v45 = vpop.f32.mrb[8].mxu0 }
 0x107   :  { %v1230_v46 = vpop.f32.mrb[8].mxu1  ;;  %v1167_v47 = vpop.f32.mrb[9].mxu0 }
 0x108   :  { %v1168_v48 = vadd.f32 %v1167_v47, %v1166_v45  ;;  %v1231_v49 = vpop.f32.mrb[9].mxu1  ;;  %v1169_v50 = vpop.f32.mrb[10].mxu0 }
 0x109   :  { %v1232_v51 = vadd.f32 %v1231_v49, %v1230_v46  ;;  %v1233_v52 = vpop.f32.mrb[10].mxu1  ;;  %v1170_v53 = vpop.f32.mrb[11].mxu0 }
 0x10a   :  { %v1171_v54 = vadd.f32 %v1170_v53, %v1169_v50  ;;  %v1234_v55 = vpop.f32.mrb[11].mxu1 }
 0x10b   :  { %v1235_v56 = vadd.f32 %v1234_v55, %v1233_v52  ;;  %v1717_v57 = vadd.f32 %v1232_v51, %v1168_v48 }
 0x10d   :  { %v1719_v58 = vadd.f32 %v1235_v56, %v1171_v54 }
 0x10e   :  { %v1172_v59 = vpop.f32.mrb[12].mxu0 }
 0x10f   :  { %v1236_v60 = vpop.f32.mrb[12].mxu1  ;;  %v1173_v61 = vpop.f32.mrb[13].mxu0 }
 0x110   :  { %v1174_v62 = vadd.f32 %v1173_v61, %v1172_v59  ;;  %v1237_v63 = vpop.f32.mrb[13].mxu1  ;;  %v1175_v0 = vpop.f32.mrb[14].mxu0 }
 0x111   :  { %v1238_v1 = vadd.f32 %v1237_v63, %v1236_v60  ;;  %v1239_v2 = vpop.f32.mrb[14].mxu1  ;;  %v1176_v3 = vpop.f32.mrb[15].mxu0 }
 0x112   :  { %v1177_v4 = vadd.f32 %v1176_v3, %v1175_v0  ;;  %v1240_v5 = vpop.f32.mrb[15].mxu1 }
 0x113   :  { %v1241_v6 = vadd.f32 %v1240_v5, %v1239_v2  ;;  %v1721_v7 = vadd.f32 %v1238_v1, %v1174_v62 }
 0x115   :  { %v1723_v8 = vadd.f32 %v1241_v6, %v1177_v4 }
 0x116   :  { %v1178_v9 = vpop.f32.mrb[16].mxu0 }
 0x117   :  { %v1242_v10 = vpop.f32.mrb[16].mxu1  ;;  %v1179_v11 = vpop.f32.mrb[17].mxu0 }
 0x118   :  { %v1180_v12 = vadd.f32 %v1179_v11, %v1178_v9  ;;  %v1243_v13 = vpop.f32.mrb[17].mxu1  ;;  %v1181_v14 = vpop.f32.mrb[18].mxu0  ;;  %v41_v9 = vld [vmem:[#allocation2 + $0x10] sm:$0xff] }
 0x119   :  { %v1244_v15 = vadd.f32 %v1243_v13, %v1242_v10  ;;  %v1245_v16 = vpop.f32.mrb[18].mxu1  ;;  %v1182_v17 = vpop.f32.mrb[19].mxu0 }
 0x11a   :  { %v1183_v18 = vadd.f32 %v1182_v17, %v1181_v14  ;;  %v1246_v19 = vpop.f32.mrb[19].mxu1  ;;  %v39_v14 = vld [vmem:[#allocation2] sm:$0xff] }
 0x11b   :  { %v1247_v20 = vadd.f32 %v1246_v19, %v1245_v16  ;;  %v795_v21 = vadd.f32 %v1244_v15, %v1180_v12  ;;  %v49_v12 = vld [vmem:[#allocation2 + $0x50] sm:$0xff] }
 0x11d   :  { %v1725_v22 = vadd.f32 %v1247_v20, %v1183_v18  ;;  %v47_v18 = vld [vmem:[#allocation2 + $0x40] sm:$0xff]  ;;  %v42_v20 = vld [vmem:[#allocation2 + $0x18] sm:$0xff] }
 0x11e   :  { %v1184_v23 = vpop.f32.mrb[20].mxu0 }
 0x11f   :  { %v1248_v24 = vpop.f32.mrb[20].mxu1  ;;  %v1185_v25 = vpop.f32.mrb[21].mxu0 }
 0x120   :  { %v1186_v26 = vadd.f32 %v1185_v25, %v1184_v23  ;;  %v1249_v27 = vpop.f32.mrb[21].mxu1  ;;  %v1187_v28 = vpop.f32.mrb[22].mxu0 }
 0x121   :  { %v1250_v31 = vadd.f32 %v1249_v27, %v1248_v24  ;;  %v1251_v32 = vpop.f32.mrb[22].mxu1  ;;  %v1188_v33 = vpop.f32.mrb[23].mxu0  ;;  %v50_v27 = vld [vmem:[#allocation2 + $0x58] sm:$0xff] }
 0x122   :  { %v1189_v34 = vadd.f32 %v1188_v33, %v1187_v28  ;;  %v1252_v35 = vpop.f32.mrb[23].mxu1 }
 0x123   :  { %v1253_v36 = vadd.f32 %v1252_v35, %v1251_v32  ;;  %v803_v37 = vadd.f32 %v1250_v31, %v1186_v26  ;;  %v40_v31 = vld [vmem:[#allocation2 + $0x8] sm:$0xff] }
 0x125   :  { %v806_v38 = vadd.f32 %v1253_v36, %v1189_v34  ;;  %v48_v36 = vld [vmem:[#allocation2 + $0x48] sm:$0xff] }
 0x126   :  { %v1190_v39 = vpop.f32.mrb[24].mxu0 }
 0x127   :  { %v1254_v40 = vpop.f32.mrb[24].mxu1  ;;  %v1191_v41 = vpop.f32.mrb[25].mxu0 }
 0x128   :  { %v1192_v42 = vadd.f32 %v1191_v41, %v1190_v39  ;;  %v1255_v45 = vpop.f32.mrb[25].mxu1  ;;  %v1193_v46 = vpop.f32.mrb[26].mxu0 }
 0x129   :  { %v1256_v47 = vadd.f32 %v1255_v45, %v1254_v40  ;;  %v1257_v48 = vpop.f32.mrb[26].mxu1  ;;  %v1194_v49 = vpop.f32.mrb[27].mxu0 }
 0x12a   :  { %v1195_v50 = vadd.f32 %v1194_v49, %v1193_v46  ;;  %v1258_v51 = vpop.f32.mrb[27].mxu1  ;;  %v43_v46 = vld [vmem:[#allocation2 + $0x20] sm:$0xff] }
 0x12b   :  { %v1259_v52 = vadd.f32 %v1258_v51, %v1257_v48  ;;  %v1727_v53 = vadd.f32 %v1256_v47, %v1192_v42  ;;  %v53_v42 = vld [vmem:[#allocation2 + $0x70] sm:$0xff]  ;;  %v1750_v48 = vld [vmem:[%s1869_s2] ss:$0 sm:$0xff] }
 0x12c   :  { %v51_v51 = vld [vmem:[#allocation2 + $0x60] sm:$0xff] }
 0x12d   :  { %v1729_v54 = vadd.f32 %v1259_v52, %v1195_v50 }
 0x12e   :  { %v1196_v55 = vpop.f32.mrb[28].mxu0 }
 0x12f   :  { %v1260_v56 = vpop.f32.mrb[28].mxu1  ;;  %v1197_v59 = vpop.f32.mrb[29].mxu0 }
 0x130   :  { %v1198_v60 = vadd.f32 %v1197_v59, %v1196_v55  ;;  %v1261_v61 = vpop.f32.mrb[29].mxu1  ;;  %v1199_v62 = vpop.f32.mrb[30].mxu0  ;;  %v46_v55 = vld [vmem:[#allocation2 + $0x38] sm:$0xff] }
 0x131   :  { %v1262_v63 = vadd.f32 %v1261_v61, %v1260_v56  ;;  %v1263_v0 = vpop.f32.mrb[30].mxu1  ;;  %v1200_v1 = vpop.f32.mrb[31].mxu0  ;;  %v54_v61 = vld [vmem:[#allocation2 + $0x78] sm:$0xff] }
 0x132   :  { %v1201_v2 = vadd.f32 %v1200_v1, %v1199_v62  ;;  %v1264_v3 = vpop.f32.mrb[31].mxu1 }
 0x133   :  { %v1265_v4 = vadd.f32 %v1264_v3, %v1263_v0  ;;  %v819_v5 = vadd.f32 %v1262_v63, %v1198_v60  ;;  %v44_v63 = vld [vmem:[#allocation2 + $0x28] sm:$0xff] }
 0x135   :  { %v1731_v6 = vadd.f32 %v1265_v4, %v1201_v2  ;;  %v1758_v2 = vld [vmem:[%s1870_s3] ss:$0 sm:$0xff] }
 0x136   :  { %v1300_v10 = vpop.f32.mrb[32].mxu0 }
 0x137   :  { %v868_v11 = vadd.f32 %v1300_v10, %v1713_v43  ;;  %v1308_v13 = vpop.f32.mrb[32].mxu1  ;;  %v859_v15 = vpop.f32.mrb[33].mxu0 }
 0x138   :  { %v900_v16 = vadd.f32 %v1308_v13, %v803_v37  ;;  %v860_v17 = vadd.f32 %v859_v15, %v1709_v29  ;;  %v891_v19 = vpop.f32.mrb[33].mxu1  ;;  %v1301_v23 = vpop.f32.mrb[34].mxu0 }
 0x139   :  { %v924_v24 = vadd.f32 %v868_v11, %v41_v9  ;;  %v892_v25 = vadd.f32 %v891_v19, %v795_v21  ;;  %v871_v26 = vadd.f32 %v1301_v23, %v1715_v44  ;;  %v1309_v28 = vpop.f32.mrb[34].mxu1  ;;  %v862_v32 = vpop.f32.mrb[35].mxu0  ;;  %v52_v9 = vld [vmem:[#allocation2 + $0x68] sm:$0xff] }
 0x13a   :  { %v932_v43 = vadd.f32 %v900_v16, %v49_v12  ;;  %v922_v33 = vadd.f32 %v860_v17, %v39_v14  ;;  %v903_v34 = vadd.f32 %v1309_v28, %v806_v38  ;;  %v863_v35 = vadd.f32 %v862_v32, %v1711_v30  ;;  %v894_v37 = vpop.f32.mrb[35].mxu1  ;;  %v45_v30 = vld [vmem:[#allocation2 + $0x30] sm:$0xff] }
 0x13b   :  { %941 = vst.msk [vmem:[#allocation2 + $0x10] sm:$0xff] %vm22_vm0, %v924_v24  ;;  %v930_v29 = vadd.f32 %v892_v25, %v47_v18  ;;  %v925_v39 = vadd.f32 %v871_v26, %v42_v20  ;;  %v895_v40 = vadd.f32 %v894_v37, %v1725_v22 }
 0x13c   :  { %949 = vst.msk [vmem:[#allocation2 + $0x50] sm:$0xff] %vm22_vm0, %v932_v43  ;;  %939 = vst.msk [vmem:[#allocation2] sm:$0xff] %vm22_vm0, %v922_v33  ;;  %v933_v44 = vadd.f32 %v903_v34, %v50_v27  ;;  %v923_v21 = vadd.f32 %v863_v35, %v40_v31 }
 0x13d   :  { %947 = vst.msk [vmem:[#allocation2 + $0x40] sm:$0xff] %vm22_vm0, %v930_v29  ;;  %942 = vst.msk [vmem:[#allocation2 + $0x18] sm:$0xff] %vm22_vm0, %v925_v39  ;;  %v931_v38 = vadd.f32 %v895_v40, %v48_v36 }
 0x13e   :  { %950 = vst.msk [vmem:[#allocation2 + $0x58] sm:$0xff] %vm22_vm0, %v933_v44  ;;  %940 = vst.msk [vmem:[#allocation2 + $0x8] sm:$0xff] %vm22_vm0, %v923_v21  ;;  %v1304_v41 = vpop.f32.mrb[36].mxu0 }
 0x13f   :  { %948 = vst.msk [vmem:[#allocation2 + $0x48] sm:$0xff] %vm22_vm0, %v931_v38  ;;  %v884_v22 = vadd.f32 %v1304_v41, %v1721_v7  ;;  %v1312_v45 = vpop.f32.mrb[36].mxu1  ;;  %v875_v47 = vpop.f32.mrb[37].mxu0 }
 0x140   :  { %v916_v49 = vadd.f32 %v1312_v45, %v819_v5  ;;  %v876_v50 = vadd.f32 %v875_v47, %v1717_v57  ;;  %v907_v52 = vpop.f32.mrb[37].mxu1  ;;  %v1305_v56 = vpop.f32.mrb[38].mxu0 }
 0x141   :  { %v928_v59 = vadd.f32 %v884_v22, %v45_v30  ;;  %v908_v60 = vadd.f32 %v907_v52, %v1727_v53  ;;  %v887_v7 = vadd.f32 %v1305_v56, %v1723_v8  ;;  %v1313_v62 = vpop.f32.mrb[38].mxu1  ;;  %v878_v0 = vpop.f32.mrb[39].mxu0 }
 0x142   :  { %v960_v1 = vld [vmem:[#allocation2 + $0x10] sm:$0xff]  ;;  %v936_v57 = vadd.f32 %v916_v49, %v53_v42  ;;  %v926_v3 = vadd.f32 %v876_v50, %v43_v46  ;;  %v919_v4 = vadd.f32 %v1313_v62, %v1731_v6  ;;  %v879_v5 = vadd.f32 %v878_v0, %v1719_v58  ;;  %v910_v53 = vpop.f32.mrb[39].mxu1 }
 0x143   :  { %v983_v8 = vmul.f32 %v1750_v48, %v960_v1  ;;  %v968_v10 = vld [vmem:[#allocation2 + $0x50] sm:$0xff]  ;;  %v958_v11 = vld [vmem:[#allocation2] sm:$0xff]  ;;  %945 = vst.msk [vmem:[#allocation2 + $0x30] sm:$0xff] %vm22_vm0, %v928_v59  ;;  %v934_v12 = vadd.f32 %v908_v60, %v51_v51  ;;  %v929_v13 = vadd.f32 %v887_v7, %v46_v55  ;;  %v911_v14 = vadd.f32 %v910_v53, %v1729_v54 }
 0x144   :  { %v991_v15 = vmul.f32 %v1750_v48, %v968_v10  ;;  %v981_v16 = vmul.f32 %v1750_v48, %v958_v11  ;;  %v966_v17 = vld [vmem:[#allocation2 + $0x40] sm:$0xff]  ;;  %v961_v6 = vld [vmem:[#allocation2 + $0x18] sm:$0xff]  ;;  %953 = vst.msk [vmem:[#allocation2 + $0x70] sm:$0xff] %vm22_vm0, %v936_v57  ;;  %943 = vst.msk [vmem:[#allocation2 + $0x20] sm:$0xff] %vm22_vm0, %v926_v3  ;;  %v937_v58 = vadd.f32 %v919_v4, %v54_v61 }
 0x145   :  { %v927_v18 = vadd.f32 %v879_v5, %v44_v63  ;;  %v1006_v19 = vadd.f32 %v1758_v2, %v983_v8  ;;  %v989_v20 = vmul.f32 %v1750_v48, %v966_v17  ;;  %v984_v23 = vmul.f32 %v1750_v48, %v961_v6  ;;  %v969_v24 = vld [vmem:[#allocation2 + $0x58] sm:$0xff]  ;;  %v959_v54 = vld [vmem:[#allocation2 + $0x8] sm:$0xff]  ;;  %951 = vst.msk [vmem:[#allocation2 + $0x60] sm:$0xff] %vm22_vm0, %v934_v12 }
 0x146   :  { %946 = vst.msk [vmem:[#allocation2 + $0x38] sm:$0xff] %vm22_vm0, %v929_v13  ;;  %v935_v25 = vadd.f32 %v911_v14, %v52_v9  ;;  %v1014_v26 = vadd.f32 %v1758_v2, %v991_v15  ;;  %v1004_v27 = vadd.f32 %v1758_v2, %v981_v16  ;;  %v992_v28 = vmul.f32 %v1750_v48, %v969_v24  ;;  %v967_v32 = vld [vmem:[#allocation2 + $0x48] sm:$0xff] }
 0x147   :  { %v982_v31 = vmul.f32 %v1750_v48, %v959_v54  ;;  %954 = vst.msk [vmem:[#allocation2 + $0x78] sm:$0xff] %vm22_vm0, %v937_v58  ;;  %944 = vst.msk [vmem:[#allocation2 + $0x28] sm:$0xff] %vm22_vm0, %v927_v18  ;;  %v1022_v43 = vmax.f32 %v1006_v19, 0.0  ;;  %v1012_v33 = vadd.f32 %v1758_v2, %v989_v20  ;;  %v1007_v34 = vadd.f32 %v1758_v2, %v984_v23 }
 0x148   :  { %v990_v35 = vmul.f32 %v1750_v48, %v967_v32  ;;  %952 = vst.msk [vmem:[#allocation2 + $0x68] sm:$0xff] %vm22_vm0, %v935_v25  ;;  %v1030_v36 = vmax.f32 %v1014_v26, 0.0  ;;  %v1020_v37 = vmax.f32 %v1004_v27, 0.0  ;;  %v1015_v29 = vadd.f32 %v1758_v2, %v992_v28 }
 0x149   :  { %v1005_v39 = vadd.f32 %v1758_v2, %v982_v31  ;;  %1038 = vst.msk [vmem:[%s1871_s4 + $0x10] sm:$0xff] %vm22_vm0, %v1022_v43  ;;  %v1028_v40 = vmax.f32 %v1012_v33, 0.0  ;;  %v1023_v44 = vmax.f32 %v1007_v34, 0.0 }
 0x14a   :  { %v1013_v21 = vadd.f32 %v1758_v2, %v990_v35  ;;  %1046 = vst.msk [vmem:[%s1871_s4 + $0x50] sm:$0xff] %vm22_vm0, %v1030_v36  ;;  %1036 = vst.msk [vmem:[%s1871_s4] sm:$0xff] %vm22_vm0, %v1020_v37  ;;  %v1031_v38 = vmax.f32 %v1015_v29, 0.0  ;;  %v964_v41 = vld [vmem:[#allocation2 + $0x30] sm:$0xff] }
 0x14b   :  { %v1021_v30 = vmax.f32 %v1005_v39, 0.0  ;;  %1044 = vst.msk [vmem:[%s1871_s4 + $0x40] sm:$0xff] %vm22_vm0, %v1028_v40  ;;  %1039 = vst.msk [vmem:[%s1871_s4 + $0x18] sm:$0xff] %vm22_vm0, %v1023_v44  ;;  %v987_v42 = vmul.f32 %v1750_v48, %v964_v41  ;;  %v972_v45 = vld [vmem:[#allocation2 + $0x70] sm:$0xff]  ;;  %v962_v46 = vld [vmem:[#allocation2 + $0x20] sm:$0xff] }
 0x14c   :  { %v1029_v22 = vmax.f32 %v1013_v21, 0.0  ;;  %1047 = vst.msk [vmem:[%s1871_s4 + $0x58] sm:$0xff] %vm22_vm0, %v1031_v38  ;;  %v995_v47 = vmul.f32 %v1750_v48, %v972_v45  ;;  %v985_v49 = vmul.f32 %v1750_v48, %v962_v46  ;;  %v970_v50 = vld [vmem:[#allocation2 + $0x60] sm:$0xff] }
 0x14d   :  { %1037 = vst.msk [vmem:[%s1871_s4 + $0x8] sm:$0xff] %vm22_vm0, %v1021_v30  ;;  %v965_v51 = vld [vmem:[#allocation2 + $0x38] sm:$0xff]  ;;  %v1010_v52 = vadd.f32 %v1758_v2, %v987_v42  ;;  %v993_v55 = vmul.f32 %v1750_v48, %v970_v50 }
 0x14e   :  { %1045 = vst.msk [vmem:[%s1871_s4 + $0x48] sm:$0xff] %vm22_vm0, %v1029_v22  ;;  %v988_v56 = vmul.f32 %v1750_v48, %v965_v51  ;;  %v973_v59 = vld [vmem:[#allocation2 + $0x78] sm:$0xff]  ;;  %v963_v60 = vld [vmem:[#allocation2 + $0x28] sm:$0xff]  ;;  %v1018_v7 = vadd.f32 %v1758_v2, %v995_v47  ;;  %v1008_v61 = vadd.f32 %v1758_v2, %v985_v49 }
 0x14f   :  { %v996_v62 = vmul.f32 %v1750_v48, %v973_v59  ;;  %v986_v63 = vmul.f32 %v1750_v48, %v963_v60  ;;  %v971_v0 = vld [vmem:[#allocation2 + $0x68] sm:$0xff]  ;;  %v1026_v1 = vmax.f32 %v1010_v52, 0.0  ;;  %v1016_v57 = vadd.f32 %v1758_v2, %v993_v55 }
 0x150   :  { %v1011_v3 = vadd.f32 %v1758_v2, %v988_v56  ;;  %v994_v4 = vmul.f32 %v1750_v48, %v971_v0  ;;  %v1034_v5 = vmax.f32 %v1018_v7, 0.0  ;;  %v1024_v9 = vmax.f32 %v1008_v61, 0.0 }
 0x151   :  { %v1019_v53 = vadd.f32 %v1758_v2, %v996_v62  ;;  %v1009_v8 = vadd.f32 %v1758_v2, %v986_v63  ;;  %1042 = vst.msk [vmem:[%s1871_s4 + $0x30] sm:$0xff] %vm22_vm0, %v1026_v1  ;;  %v1032_v10 = vmax.f32 %v1016_v57, 0.0 }
 0x152   :  { %v1027_v11 = vmax.f32 %v1011_v3, 0.0  ;;  %v1017_v12 = vadd.f32 %v1758_v2, %v994_v4  ;;  %1050 = vst.msk [vmem:[%s1871_s4 + $0x70] sm:$0xff] %vm22_vm0, %v1034_v5  ;;  %1040 = vst.msk [vmem:[%s1871_s4 + $0x20] sm:$0xff] %vm22_vm0, %v1024_v9 }
 0x153   :  { %v1035_v48 = vmax.f32 %v1019_v53, 0.0  ;;  %v1025_v13 = vmax.f32 %v1009_v8, 0.0  ;;  %1048 = vst.msk [vmem:[%s1871_s4 + $0x60] sm:$0xff] %vm22_vm0, %v1032_v10 }
 0x154   :  { %1043 = vst.msk [vmem:[%s1871_s4 + $0x38] sm:$0xff] %vm22_vm0, %v1027_v11  ;;  %v1033_v2 = vmax.f32 %v1017_v12, 0.0 }
 0x155   :  { %1051 = vst.msk [vmem:[%s1871_s4 + $0x78] sm:$0xff] %vm22_vm0, %v1035_v48  ;;  %1041 = vst.msk [vmem:[%s1871_s4 + $0x28] sm:$0xff] %vm22_vm0, %v1025_v13 }
 0x156   :  { %1049 = vst.msk [vmem:[%s1871_s4 + $0x68] sm:$0xff] %vm22_vm0, %v1033_v2 }

// kernel: _lambda_.17
= control target key start
LH: loop header
LB: loop body
LE: loop exit
PB: predicated region body
PF: predicated region fallthrough
CT: control target
= control target key end

     0   :  { %vm25_vm0 = vcmask 523264   ;;  %s1971_s1 = inlined_call_operand.vmem [shape: bf16[640,64], index: 1, kind: input, shape index: {}]   ;;  %s1972_s0 = inlined_call_operand.vmem [shape: bf16[128,640], index: 0, kind: input, shape index: {}]   ;;  %s1973_s2 = inlined_call_operand.vmem [shape: f32[1,64], index: 2, kind: input, shape index: {}]   ;;  %s1974_s3 = inlined_call_operand.vmem [shape: f32[1,64], index: 3, kind: input, shape index: {}]   ;;  %s1975_s4 = inlined_call_operand.vmem [shape: f32[128,64], index: 4, kind: input, shape index: {}]   ;;  %s1976_s5 = inlined_call_operand.vmem [shape: f32[128,64], index: 5, kind: output, shape index: {}]  }
   0x1   :  { %v1382_v0 = vld [vmem:[%s1971_s1 + $0x40] sm:$0xff]   ;;  %v1386_v4 = vld [vmem:[%s1971_s1 + $0x48] sm:$0xff]   ;;  %v1390_v8 = vld [vmem:[%s1971_s1 + $0x50] sm:$0xff]  }
   0x2   :  { %v1383_v1 = vld [vmem:[%s1971_s1 + $0xc0] sm:$0xff]   ;;  %1189 = vmatprep.subr.bf16.mxu0 %v1382_v0  ;;  %v1387_v5 = vld [vmem:[%s1971_s1 + $0xc8] sm:$0xff]   ;;  %v1391_v9 = vld [vmem:[%s1971_s1 + $0xd0] sm:$0xff]  }
   0x3   :  { %v1384_v2 = vld [vmem:[%s1971_s1] sm:$0xff]   ;;  %1253 = vmatprep.subr.bf16.mxu1 %v1383_v1  ;;  %v1388_v6 = vld [vmem:[%s1971_s1 + $0x8] sm:$0xff]   ;;  %v1392_v10 = vld [vmem:[%s1971_s1 + $0x10] sm:$0xff]  }
   0x4   :  { %v1385_v3 = vld [vmem:[%s1971_s1 + $0x80] sm:$0xff]   ;;  %1190 = vmatpush3.bf16.msra.mxu0 %v1384_v2  ;;  %v1389_v7 = vld [vmem:[%s1971_s1 + $0x88] sm:$0xff]   ;;  %v1393_v11 = vld [vmem:[%s1971_s1 + $0x90] sm:$0xff]  }
   0x5   :  { %1254 = vmatpush3.bf16.msra.mxu1 %v1385_v3  ;;  %1191 = vmatprep.subr.bf16.mxu0 %v1386_v4  ;;  %v1394_v12 = vld [vmem:[%s1971_s1 + $0x58] sm:$0xff]   ;;  %v1398_v16 = vld [vmem:[%s1971_s1 + $0x60] sm:$0xff]   ;;  %v1402_v20 = vld [vmem:[%s1971_s1 + $0x68] sm:$0xff]  }
   0x6   :  { %1255 = vmatprep.subr.bf16.mxu1 %v1387_v5  ;;  %v1395_v13 = vld [vmem:[%s1971_s1 + $0xd8] sm:$0xff]   ;;  %v1399_v17 = vld [vmem:[%s1971_s1 + $0xe0] sm:$0xff]   ;;  %v1403_v21 = vld [vmem:[%s1971_s1 + $0xe8] sm:$0xff]  }
   0x7   :  { %v1396_v14 = vld [vmem:[%s1971_s1 + $0x18] sm:$0xff]   ;;  %v1400_v18 = vld [vmem:[%s1971_s1 + $0x20] sm:$0xff]   ;;  %v1404_v22 = vld [vmem:[%s1971_s1 + $0x28] sm:$0xff]  }
   0x8   :  { %1192 = vmatpush3.bf16.msra.mxu0 %v1388_v6  ;;  %v1397_v15 = vld [vmem:[%s1971_s1 + $0x98] sm:$0xff]   ;;  %v1401_v19 = vld [vmem:[%s1971_s1 + $0xa0] sm:$0xff]   ;;  %v1405_v23 = vld [vmem:[%s1971_s1 + $0xa8] sm:$0xff]  }
   0x9   :  { %1256 = vmatpush3.bf16.msra.mxu1 %v1389_v7  ;;  %1193 = vmatprep.subr.bf16.mxu0 %v1390_v8  ;;  %v1406_v24 = vld [vmem:[%s1971_s1 + $0x70] sm:$0xff]   ;;  %v1410_v28 = vld [vmem:[%s1971_s1 + $0x78] sm:$0xff]   ;;  %v1419_v35 = vld [vmem:[%s1972_s0 + $0xc] ss:$20 sps:$4 sm:$0xff]  }
   0xa   :  { %1257 = vmatprep.subr.bf16.mxu1 %v1391_v9  ;;  %v1407_v25 = vld [vmem:[%s1971_s1 + $0xf0] sm:$0xff]   ;;  %v1411_v29 = vld [vmem:[%s1971_s1 + $0xf8] sm:$0xff]   ;;  %v1420_v36 = vld [vmem:[%s1971_s1 + $0x100] sm:$0xff]   ;;  %763 = vmatprep.mubr.bf16.mxu1 %v1419_v35 }
   0xb   :  { %v1408_v26 = vld [vmem:[%s1971_s1 + $0x30] sm:$0xff]   ;;  %v1412_v30 = vld [vmem:[%s1971_s1 + $0x38] sm:$0xff]   ;;  %v1421_v37 = vld [vmem:[%s1972_s0 + $0x2c] ss:$20 sps:$4 sm:$0xff]  }
   0xc   :  { %1194 = vmatpush3.bf16.msra.mxu0 %v1392_v10  ;;  %v1409_v27 = vld [vmem:[%s1971_s1 + $0xb0] sm:$0xff]   ;;  %v1413_v31 = vld [vmem:[%s1971_s1 + $0xb8] sm:$0xff]   ;;  %v1427_v39 = vld [vmem:[%s1971_s1 + $0x108] sm:$0xff]  }
   0xd   :  { %1258 = vmatpush3.bf16.msra.mxu1 %v1393_v11  ;;  %1195 = vmatprep.subr.bf16.mxu0 %v1394_v12  ;;  %v1414_v32 = vld [vmem:[%s1972_s0] ss:$20 sps:$4 sm:$0xff]   ;;  %v1416_v33 = vld [vmem:[%s1972_s0 + $0x4] ss:$20 sps:$4 sm:$0xff]   ;;  %v1417_v34 = vld [vmem:[%s1972_s0 + $0x8] ss:$20 sps:$4 sm:$0xff]  }
   0xe   :  { %1259 = vmatprep.subr.bf16.mxu1 %v1395_v13  ;;  %666 = vmatprep.mubr.bf16.mxu0 %v1416_v33  ;;  %v1423_v38 = vld [vmem:[%s1972_s0 + $0x34] ss:$20 sps:$4 sm:$0xff]   ;;  %v1426_v41 = vld [vmem:[%s1972_s0 + $0x30] ss:$20 sps:$4 sm:$0xff]   ;;  %v1441_v45 = vld [vmem:[%s1971_s1 + $0x118] sm:$0xff]  }
   0xf   :  { %v1425_v40 = vld [vmem:[%s1972_s0 + $0x28] ss:$20 sps:$4 sm:$0xff]   ;;  %v1434_v44 = vld [vmem:[%s1971_s1 + $0x110] sm:$0xff]   ;;  %v1433_v47 = vld [vmem:[%s1972_s0 + $0x58] ss:$20 sps:$4 sm:$0xff]  }
  0x10   :  { %1196 = vmatpush3.bf16.msra.mxu0 %v1396_v14  ;;  %v1428_v42 = vld [vmem:[%s1972_s0 + $0x54] ss:$20 sps:$4 sm:$0xff]   ;;  %v1430_v43 = vld [vmem:[%s1972_s0 + $0x5c] ss:$20 sps:$4 sm:$0xff]   ;;  %v1437_v49 = vld [vmem:[%s1972_s0 + $0x84] ss:$20 sps:$4 sm:$0xff]  }
  0x11   :  { %1260 = vmatpush3.bf16.msra.mxu1 %v1397_v15  ;;  %1197 = vmatprep.subr.bf16.mxu0 %v1398_v16  ;;  %v1432_v46 = vld [vmem:[%s1972_s0 + $0x50] ss:$20 sps:$4 sm:$0xff]   ;;  %v1455_v51 = vld [vmem:[%s1971_s1 + $0x128] sm:$0xff]   ;;  %v1440_v53 = vld [vmem:[%s1972_s0 + $0x80] ss:$20 sps:$4 sm:$0xff]   ;;  %v1478_v16 = vmov 0.0  }
  0x12   :  { %1261 = vmatprep.subr.bf16.mxu1 %v1399_v17  ;;  %v1435_v48 = vld [vmem:[%s1972_s0 + $0x7c] ss:$20 sps:$4 sm:$0xff]   ;;  %v1448_v50 = vld [vmem:[%s1971_s1 + $0x120] sm:$0xff]   ;;  %v1439_v52 = vld [vmem:[%s1972_s0 + $0x78] ss:$20 sps:$4 sm:$0xff]   ;;  %28 = vst.msk [vmem:[#allocation2 + $0x10] sm:$0xff] %vm25_vm0, %v1478_v16 }
  0x13   :  { %v1442_v54 = vld [vmem:[%s1972_s0 + $0xa4] ss:$20 sps:$4 sm:$0xff]   ;;  %v1462_v55 = vld [vmem:[%s1971_s1 + $0x130] sm:$0xff]   ;;  %v1444_v56 = vld [vmem:[%s1972_s0 + $0xac] ss:$20 sps:$4 sm:$0xff]   ;;  %26 = vst.msk [vmem:[#allocation2] sm:$0xff] %vm25_vm0, %v1478_v16 }
  0x14   :  { %1198 = vmatpush3.bf16.msra.mxu0 %v1400_v18  ;;  %v1469_v57 = vld [vmem:[%s1971_s1 + $0x138] sm:$0xff]   ;;  %v1446_v58 = vld [vmem:[%s1972_s0 + $0xa0] ss:$20 sps:$4 sm:$0xff]   ;;  %v1454_v63 = vld [vmem:[%s1972_s0 + $0xd0] ss:$20 sps:$4 sm:$0xff]   ;;  %27 = vst.msk [vmem:[#allocation2 + $0x8] sm:$0xff] %vm25_vm0, %v1478_v16 }
  0x15   :  { %1262 = vmatpush3.bf16.msra.mxu1 %v1401_v19  ;;  %1199 = vmatprep.subr.bf16.mxu0 %v1402_v20  ;;  %v1447_v59 = vld [vmem:[%s1972_s0 + $0xa8] ss:$20 sps:$4 sm:$0xff]   ;;  %v1449_v60 = vld [vmem:[%s1972_s0 + $0xcc] ss:$20 sps:$4 sm:$0xff]   ;;  %v1460_v2 = vld [vmem:[%s1972_s0 + $0xf0] ss:$20 sps:$4 sm:$0xff]  }
  0x16   :  { %1263 = vmatprep.subr.bf16.mxu1 %v1403_v21  ;;  %v1451_v61 = vld [vmem:[%s1972_s0 + $0xd4] ss:$20 sps:$4 sm:$0xff]   ;;  %v1458_v1 = vld [vmem:[%s1972_s0 + $0xfc] ss:$20 sps:$4 sm:$0xff]   ;;  %v1461_v3 = vld [vmem:[%s1972_s0 + $0xf8] ss:$20 sps:$4 sm:$0xff]  }
  0x17   :  { %v1453_v62 = vld [vmem:[%s1972_s0 + $0xc8] ss:$20 sps:$4 sm:$0xff]   ;;  %v1465_v5 = vld [vmem:[%s1972_s0 + $0x124] ss:$20 sps:$4 sm:$0xff]   ;;  %v1468_v7 = vld [vmem:[%s1972_s0 + $0x120] ss:$20 sps:$4 sm:$0xff]  }
  0x18   :  { %1200 = vmatpush3.bf16.msra.mxu0 %v1404_v22  ;;  %v1456_v0 = vld [vmem:[%s1972_s0 + $0xf4] ss:$20 sps:$4 sm:$0xff]   ;;  %v1463_v4 = vld [vmem:[%s1972_s0 + $0x11c] ss:$20 sps:$4 sm:$0xff]   ;;  %v1467_v6 = vld [vmem:[%s1972_s0 + $0x118] ss:$20 sps:$4 sm:$0xff]  }
  0x19   :  { %1264 = vmatpush3.bf16.msra.mxu1 %v1405_v23  ;;  %1201 = vmatprep.subr.bf16.mxu0 %v1406_v24  ;;  %v1470_v8 = vld [vmem:[%s1972_s0 + $0x10] ss:$20 sps:$4 sm:$0xff]   ;;  %v1472_v10 = vld [vmem:[%s1972_s0 + $0x38] ss:$20 sps:$4 sm:$0xff]   ;;  %v1474_v12 = vld [vmem:[%s1972_s0 + $0x60] ss:$20 sps:$4 sm:$0xff]  }
  0x1a   :  { %1265 = vmatprep.subr.bf16.mxu1 %v1407_v25  ;;  %v1471_v9 = vld [vmem:[%s1972_s0 + $0xb0] ss:$20 sps:$4 sm:$0xff]   ;;  %v1473_v11 = vld [vmem:[%s1972_s0 + $0xd8] ss:$20 sps:$4 sm:$0xff]   ;;  %v1475_v13 = vld [vmem:[%s1972_s0 + $0x100] ss:$20 sps:$4 sm:$0xff]  }
  0x1b   :  { %v1476_v14 = vld [vmem:[%s1972_s0 + $0x88] ss:$20 sps:$4 sm:$0xff]   ;;  %29 = vst.msk [vmem:[#allocation2 + $0x18] sm:$0xff] %vm25_vm0, %v1478_v16  ;;  %30 = vst.msk [vmem:[#allocation2 + $0x20] sm:$0xff] %vm25_vm0, %v1478_v16 }
  0x1c   :  { %1202 = vmatpush3.bf16.msra.mxu0 %v1408_v26  ;;  %v1477_v15 = vld [vmem:[%s1972_s0 + $0x128] ss:$20 sps:$4 sm:$0xff]   ;;  %31 = vst.msk [vmem:[#allocation2 + $0x28] sm:$0xff] %vm25_vm0, %v1478_v16  ;;  %32 = vst.msk [vmem:[#allocation2 + $0x30] sm:$0xff] %vm25_vm0, %v1478_v16 }
  0x1d   :  { %1266 = vmatpush3.bf16.msra.mxu1 %v1409_v27  ;;  %1203 = vmatprep.subr.bf16.mxu0 %v1410_v28  ;;  %33 = vst.msk [vmem:[#allocation2 + $0x38] sm:$0xff] %vm25_vm0, %v1478_v16  ;;  %34 = vst.msk [vmem:[#allocation2 + $0x40] sm:$0xff] %vm25_vm0, %v1478_v16 }
  0x1e   :  { %1267 = vmatprep.subr.bf16.mxu1 %v1411_v29  ;;  %35 = vst.msk [vmem:[#allocation2 + $0x48] sm:$0xff] %vm25_vm0, %v1478_v16  ;;  %36 = vst.msk [vmem:[#allocation2 + $0x50] sm:$0xff] %vm25_vm0, %v1478_v16 }
  0x1f   :  { %37 = vst.msk [vmem:[#allocation2 + $0x58] sm:$0xff] %vm25_vm0, %v1478_v16  ;;  %38 = vst.msk [vmem:[#allocation2 + $0x60] sm:$0xff] %vm25_vm0, %v1478_v16 }
  0x20   :  { %1204 = vmatpush3.bf16.msra.mxu0 %v1412_v30  ;;  %39 = vst.msk [vmem:[#allocation2 + $0x68] sm:$0xff] %vm25_vm0, %v1478_v16  ;;  %40 = vst.msk [vmem:[#allocation2 + $0x70] sm:$0xff] %vm25_vm0, %v1478_v16 }
  0x21   :  { %1268 = vmatpush3.bf16.msra.mxu1 %v1413_v31  ;;  %1333 = vmatprep.subr.bf16.mxu0 %v1420_v36  ;;  %41 = vst.msk [vmem:[#allocation2 + $0x78] sm:$0xff] %vm25_vm0, %v1478_v16 }
  0x22   :  { %1365 = vmatprep.subr.bf16.mxu1 %v1420_v36 }
  0x23   :  { %667 = vmatmul.mubr.bf16.vlgmr.msra.gmra.mrb[0].mxu0 %v1414_v32 }
  0x24   :  { %764 = vmatmul.mubr.bf16.vlgmr.msra.gmra.mrb[0].mxu1 %v1417_v34  ;;  %1334 = vmatpush3.bf16.msra.mxu0 %v1420_v36 }
  0x25   :  { %1373 = vmatpush3.bf16.msra.mxu1 %v1420_v36  ;;  %674 = vmatprep.mubr.bf16.mxu0 %v1421_v37 }
  0x26   :  { %771 = vmatprep.mubr.bf16.mxu1 %v1423_v38  ;;  %1335 = vmatprep.subr.bf16.mxu0 %v1427_v39 }
  0x27   :  { %1366 = vmatprep.subr.bf16.mxu1 %v1427_v39 }
  0x28   :  { %1336 = vmatpush3.bf16.msra.mxu0 %v1427_v39 }
  0x29   :  { %1374 = vmatpush3.bf16.msra.mxu1 %v1427_v39  ;;  %1337 = vmatprep.subr.bf16.mxu0 %v1434_v44 }
  0x2a   :  { %1367 = vmatprep.subr.bf16.mxu1 %v1434_v44 }
  0x2b   :  { %675 = vmatmul.mubr.bf16.gmra.mrb[4].mxu0 %v1425_v40 }
  0x2c   :  { %772 = vmatmul.mubr.bf16.gmra.mrb[4].mxu1 %v1426_v41  ;;  %682 = vmatprep.mubr.bf16.mxu0 %v1428_v42 }
  0x2d   :  { %779 = vmatprep.mubr.bf16.mxu1 %v1430_v43  ;;  %1338 = vmatpush3.bf16.msra.mxu0 %v1434_v44 }
  0x2e   :  { %1375 = vmatpush3.bf16.msra.mxu1 %v1434_v44  ;;  %1339 = vmatprep.subr.bf16.mxu0 %v1441_v45 }
  0x2f   :  { %1368 = vmatprep.subr.bf16.mxu1 %v1441_v45 }
  0x31   :  { %1340 = vmatpush3.bf16.msra.mxu0 %v1441_v45 }
  0x32   :  { %1376 = vmatpush3.bf16.msra.mxu1 %v1441_v45  ;;  %1341 = vmatprep.subr.bf16.mxu0 %v1448_v50 }
  0x33   :  { %683 = vmatmul.mubr.bf16.gmra.mrb[8].mxu0 %v1432_v46  ;;  %1369 = vmatprep.subr.bf16.mxu1 %v1448_v50 }
  0x34   :  { %780 = vmatmul.mubr.bf16.gmra.mrb[8].mxu1 %v1433_v47  ;;  %690 = vmatprep.mubr.bf16.mxu0 %v1435_v48 }
  0x35   :  { %787 = vmatprep.mubr.bf16.mxu1 %v1437_v49  ;;  %1342 = vmatpush3.bf16.msra.mxu0 %v1448_v50 }
  0x36   :  { %1377 = vmatpush3.bf16.msra.mxu1 %v1448_v50  ;;  %1343 = vmatprep.subr.bf16.mxu0 %v1455_v51 }
  0x37   :  { %1370 = vmatprep.subr.bf16.mxu1 %v1455_v51 }
  0x39   :  { %1344 = vmatpush3.bf16.msra.mxu0 %v1455_v51 }
  0x3a   :  { %1378 = vmatpush3.bf16.msra.mxu1 %v1455_v51  ;;  %1345 = vmatprep.subr.bf16.mxu0 %v1462_v55 }
  0x3b   :  { %691 = vmatmul.mubr.bf16.gmra.mrb[12].mxu0 %v1439_v52  ;;  %1371 = vmatprep.subr.bf16.mxu1 %v1462_v55 }
  0x3c   :  { %788 = vmatmul.mubr.bf16.gmra.mrb[12].mxu1 %v1440_v53  ;;  %698 = vmatprep.mubr.bf16.mxu0 %v1442_v54 }
  0x3d   :  { %795 = vmatprep.mubr.bf16.mxu1 %v1444_v56  ;;  %1346 = vmatpush3.bf16.msra.mxu0 %v1462_v55 }
  0x3e   :  { %1379 = vmatpush3.bf16.msra.mxu1 %v1462_v55  ;;  %1347 = vmatprep.subr.bf16.mxu0 %v1469_v57 }
  0x3f   :  { %1372 = vmatprep.subr.bf16.mxu1 %v1469_v57 }
  0x41   :  { %1348 = vmatpush3.bf16.msra.mxu0 %v1469_v57 }
  0x42   :  { %1380 = vmatpush3.bf16.msra.mxu1 %v1469_v57 }
  0x43   :  { %699 = vmatmul.mubr.bf16.gmra.mrb[16].mxu0 %v1446_v58 }
  0x44   :  { %796 = vmatmul.mubr.bf16.gmra.mrb[16].mxu1 %v1447_v59  ;;  %706 = vmatprep.mubr.bf16.mxu0 %v1449_v60 }
  0x45   :  { %803 = vmatprep.mubr.bf16.mxu1 %v1451_v61 }
  0x4b   :  { %707 = vmatmul.mubr.bf16.gmra.mrb[20].mxu0 %v1453_v62 }
  0x4c   :  { %804 = vmatmul.mubr.bf16.gmra.mrb[20].mxu1 %v1454_v63  ;;  %714 = vmatprep.mubr.bf16.mxu0 %v1456_v0 }
  0x4d   :  { %811 = vmatprep.mubr.bf16.mxu1 %v1458_v1 }
  0x53   :  { %715 = vmatmul.mubr.bf16.gmra.mrb[24].mxu0 %v1460_v2 }
  0x54   :  { %812 = vmatmul.mubr.bf16.gmra.mrb[24].mxu1 %v1461_v3  ;;  %722 = vmatprep.mubr.bf16.mxu0 %v1463_v4 }
  0x55   :  { %819 = vmatprep.mubr.bf16.mxu1 %v1465_v5 }
  0x5b   :  { %723 = vmatmul.mubr.bf16.gmra.mrb[28].mxu0 %v1467_v6 }
  0x5c   :  { %820 = vmatmul.mubr.bf16.gmra.mrb[28].mxu1 %v1468_v7  ;;  %1349 = vmatprep.mubr.bf16.mxu0 %v1470_v8 }
  0x5d   :  { %1357 = vmatprep.mubr.bf16.mxu1 %v1471_v9 }
  0x63   :  { %1350 = vmatmul.mubr.bf16.vlgmr.msra.gmra.mrb[32].mxu0 %v1472_v10 }
  0x64   :  { %1358 = vmatmul.mubr.bf16.vlgmr.msra.gmra.mrb[32].mxu1 %v1473_v11  ;;  %1353 = vmatprep.mubr.bf16.mxu0 %v1474_v12 }
  0x65   :  { %1361 = vmatprep.mubr.bf16.mxu1 %v1475_v13 }
  0x6b   :  { %1354 = vmatmul.mubr.bf16.gmra.mrb[36].mxu0 %v1476_v14 }
  0x6c   :  { %1362 = vmatmul.mubr.bf16.gmra.mrb[36].mxu1 %v1477_v15 }
  0xf6   :  { %v1205_v17 = vpop.f32.mrb[0].mxu0 }
  0xf7   :  { %v1269_v18 = vpop.f32.mrb[0].mxu1  ;;  %v1206_v19 = vpop.f32.mrb[1].mxu0 }
  0xf8   :  { %v1207_v20 = vadd.f32 %v1206_v19, %v1205_v17  ;;  %v1270_v21 = vpop.f32.mrb[1].mxu1  ;;  %v1208_v22 = vpop.f32.mrb[2].mxu0 }
  0xf9   :  { %v1271_v23 = vadd.f32 %v1270_v21, %v1269_v18  ;;  %v1272_v24 = vpop.f32.mrb[2].mxu1  ;;  %v1209_v25 = vpop.f32.mrb[3].mxu0 }
  0xfa   :  { %v1210_v26 = vadd.f32 %v1209_v25, %v1208_v22  ;;  %v1273_v27 = vpop.f32.mrb[3].mxu1 }
  0xfb   :  { %v1274_v28 = vadd.f32 %v1273_v27, %v1272_v24  ;;  %v1765_v29 = vadd.f32 %v1271_v23, %v1207_v20 }
  0xfd   :  { %v1767_v30 = vadd.f32 %v1274_v28, %v1210_v26 }
  0xfe   :  { %v1211_v31 = vpop.f32.mrb[4].mxu0 }
  0xff   :  { %v1275_v32 = vpop.f32.mrb[4].mxu1  ;;  %v1212_v33 = vpop.f32.mrb[5].mxu0 }
 0x100   :  { %v1213_v34 = vadd.f32 %v1212_v33, %v1211_v31  ;;  %v1276_v35 = vpop.f32.mrb[5].mxu1  ;;  %v1214_v36 = vpop.f32.mrb[6].mxu0 }
 0x101   :  { %v1277_v37 = vadd.f32 %v1276_v35, %v1275_v32  ;;  %v1278_v38 = vpop.f32.mrb[6].mxu1  ;;  %v1215_v39 = vpop.f32.mrb[7].mxu0 }
 0x102   :  { %v1216_v40 = vadd.f32 %v1215_v39, %v1214_v36  ;;  %v1279_v41 = vpop.f32.mrb[7].mxu1 }
 0x103   :  { %v1280_v42 = vadd.f32 %v1279_v41, %v1278_v38  ;;  %v1769_v43 = vadd.f32 %v1277_v37, %v1213_v34 }
 0x105   :  { %v1771_v44 = vadd.f32 %v1280_v42, %v1216_v40 }
 0x106   :  { %v1217_v45 = vpop.f32.mrb[8].mxu0 }
 0x107   :  { %v1281_v46 = vpop.f32.mrb[8].mxu1  ;;  %v1218_v47 = vpop.f32.mrb[9].mxu0 }
 0x108   :  { %v1219_v48 = vadd.f32 %v1218_v47, %v1217_v45  ;;  %v1282_v49 = vpop.f32.mrb[9].mxu1  ;;  %v1220_v50 = vpop.f32.mrb[10].mxu0 }
 0x109   :  { %v1283_v51 = vadd.f32 %v1282_v49, %v1281_v46  ;;  %v1284_v52 = vpop.f32.mrb[10].mxu1  ;;  %v1221_v53 = vpop.f32.mrb[11].mxu0 }
 0x10a   :  { %v1222_v54 = vadd.f32 %v1221_v53, %v1220_v50  ;;  %v1285_v55 = vpop.f32.mrb[11].mxu1 }
 0x10b   :  { %v1286_v56 = vadd.f32 %v1285_v55, %v1284_v52  ;;  %v1773_v57 = vadd.f32 %v1283_v51, %v1219_v48 }
 0x10d   :  { %v1775_v58 = vadd.f32 %v1286_v56, %v1222_v54 }
 0x10e   :  { %v1223_v59 = vpop.f32.mrb[12].mxu0 }
 0x10f   :  { %v1287_v60 = vpop.f32.mrb[12].mxu1  ;;  %v1224_v61 = vpop.f32.mrb[13].mxu0 }
 0x110   :  { %v1225_v62 = vadd.f32 %v1224_v61, %v1223_v59  ;;  %v1288_v63 = vpop.f32.mrb[13].mxu1  ;;  %v1226_v0 = vpop.f32.mrb[14].mxu0 }
 0x111   :  { %v1289_v1 = vadd.f32 %v1288_v63, %v1287_v60  ;;  %v1290_v2 = vpop.f32.mrb[14].mxu1  ;;  %v1227_v3 = vpop.f32.mrb[15].mxu0 }
 0x112   :  { %v1228_v4 = vadd.f32 %v1227_v3, %v1226_v0  ;;  %v1291_v5 = vpop.f32.mrb[15].mxu1 }
 0x113   :  { %v1292_v6 = vadd.f32 %v1291_v5, %v1290_v2  ;;  %v1777_v7 = vadd.f32 %v1289_v1, %v1225_v62 }
 0x115   :  { %v1779_v8 = vadd.f32 %v1292_v6, %v1228_v4 }
 0x116   :  { %v1229_v9 = vpop.f32.mrb[16].mxu0 }
 0x117   :  { %v1293_v10 = vpop.f32.mrb[16].mxu1  ;;  %v1230_v11 = vpop.f32.mrb[17].mxu0 }
 0x118   :  { %v1231_v12 = vadd.f32 %v1230_v11, %v1229_v9  ;;  %v1294_v13 = vpop.f32.mrb[17].mxu1  ;;  %v1232_v14 = vpop.f32.mrb[18].mxu0  ;;  %v44_v9 = vld [vmem:[#allocation2 + $0x10] sm:$0xff] }
 0x119   :  { %v1295_v15 = vadd.f32 %v1294_v13, %v1293_v10  ;;  %v1296_v16 = vpop.f32.mrb[18].mxu1  ;;  %v1233_v17 = vpop.f32.mrb[19].mxu0 }
 0x11a   :  { %v1234_v18 = vadd.f32 %v1233_v17, %v1232_v14  ;;  %v1297_v19 = vpop.f32.mrb[19].mxu1  ;;  %v42_v14 = vld [vmem:[#allocation2] sm:$0xff] }
 0x11b   :  { %v1298_v20 = vadd.f32 %v1297_v19, %v1296_v16  ;;  %v798_v21 = vadd.f32 %v1295_v15, %v1231_v12  ;;  %v52_v12 = vld [vmem:[#allocation2 + $0x50] sm:$0xff] }
 0x11d   :  { %v1781_v22 = vadd.f32 %v1298_v20, %v1234_v18  ;;  %v50_v18 = vld [vmem:[#allocation2 + $0x40] sm:$0xff]  ;;  %v45_v20 = vld [vmem:[#allocation2 + $0x18] sm:$0xff] }
 0x11e   :  { %v1235_v23 = vpop.f32.mrb[20].mxu0 }
 0x11f   :  { %v1299_v24 = vpop.f32.mrb[20].mxu1  ;;  %v1236_v25 = vpop.f32.mrb[21].mxu0 }
 0x120   :  { %v1237_v26 = vadd.f32 %v1236_v25, %v1235_v23  ;;  %v1300_v27 = vpop.f32.mrb[21].mxu1  ;;  %v1238_v28 = vpop.f32.mrb[22].mxu0 }
 0x121   :  { %v1301_v31 = vadd.f32 %v1300_v27, %v1299_v24  ;;  %v1302_v32 = vpop.f32.mrb[22].mxu1  ;;  %v1239_v33 = vpop.f32.mrb[23].mxu0  ;;  %v53_v27 = vld [vmem:[#allocation2 + $0x58] sm:$0xff] }
 0x122   :  { %v1240_v34 = vadd.f32 %v1239_v33, %v1238_v28  ;;  %v1303_v35 = vpop.f32.mrb[23].mxu1 }
 0x123   :  { %v1304_v36 = vadd.f32 %v1303_v35, %v1302_v32  ;;  %v806_v37 = vadd.f32 %v1301_v31, %v1237_v26  ;;  %v43_v31 = vld [vmem:[#allocation2 + $0x8] sm:$0xff] }
 0x125   :  { %v809_v38 = vadd.f32 %v1304_v36, %v1240_v34  ;;  %v51_v36 = vld [vmem:[#allocation2 + $0x48] sm:$0xff] }
 0x126   :  { %v1241_v39 = vpop.f32.mrb[24].mxu0 }
 0x127   :  { %v1305_v40 = vpop.f32.mrb[24].mxu1  ;;  %v1242_v41 = vpop.f32.mrb[25].mxu0 }
 0x128   :  { %v1243_v42 = vadd.f32 %v1242_v41, %v1241_v39  ;;  %v1306_v45 = vpop.f32.mrb[25].mxu1  ;;  %v1244_v46 = vpop.f32.mrb[26].mxu0 }
 0x129   :  { %v1307_v47 = vadd.f32 %v1306_v45, %v1305_v40  ;;  %v1308_v48 = vpop.f32.mrb[26].mxu1  ;;  %v1245_v49 = vpop.f32.mrb[27].mxu0 }
 0x12a   :  { %v1246_v50 = vadd.f32 %v1245_v49, %v1244_v46  ;;  %v1309_v51 = vpop.f32.mrb[27].mxu1  ;;  %v46_v46 = vld [vmem:[#allocation2 + $0x20] sm:$0xff] }
 0x12b   :  { %v1310_v52 = vadd.f32 %v1309_v51, %v1308_v48  ;;  %v1783_v53 = vadd.f32 %v1307_v47, %v1243_v42  ;;  %v56_v42 = vld [vmem:[#allocation2 + $0x70] sm:$0xff]  ;;  %v1806_v48 = vld [vmem:[%s1973_s2] ss:$0 sm:$0xff] }
 0x12c   :  { %v54_v51 = vld [vmem:[#allocation2 + $0x60] sm:$0xff] }
 0x12d   :  { %v1785_v54 = vadd.f32 %v1310_v52, %v1246_v50 }
 0x12e   :  { %v1247_v55 = vpop.f32.mrb[28].mxu0 }
 0x12f   :  { %v1311_v56 = vpop.f32.mrb[28].mxu1  ;;  %v1248_v59 = vpop.f32.mrb[29].mxu0 }
 0x130   :  { %v1249_v60 = vadd.f32 %v1248_v59, %v1247_v55  ;;  %v1312_v61 = vpop.f32.mrb[29].mxu1  ;;  %v1250_v62 = vpop.f32.mrb[30].mxu0  ;;  %v49_v55 = vld [vmem:[#allocation2 + $0x38] sm:$0xff] }
 0x131   :  { %v1313_v63 = vadd.f32 %v1312_v61, %v1311_v56  ;;  %v1314_v0 = vpop.f32.mrb[30].mxu1  ;;  %v1251_v1 = vpop.f32.mrb[31].mxu0  ;;  %v57_v61 = vld [vmem:[#allocation2 + $0x78] sm:$0xff] }
 0x132   :  { %v1252_v2 = vadd.f32 %v1251_v1, %v1250_v62  ;;  %v1315_v3 = vpop.f32.mrb[31].mxu1 }
 0x133   :  { %v1316_v4 = vadd.f32 %v1315_v3, %v1314_v0  ;;  %v822_v5 = vadd.f32 %v1313_v63, %v1249_v60  ;;  %v47_v63 = vld [vmem:[#allocation2 + $0x28] sm:$0xff] }
 0x135   :  { %v1787_v6 = vadd.f32 %v1316_v4, %v1252_v2  ;;  %v1814_v2 = vld [vmem:[%s1974_s3] ss:$0 sm:$0xff] }
 0x136   :  { %v1351_v10 = vpop.f32.mrb[32].mxu0 }
 0x137   :  { %v871_v11 = vadd.f32 %v1351_v10, %v1769_v43  ;;  %v1359_v13 = vpop.f32.mrb[32].mxu1  ;;  %v862_v15 = vpop.f32.mrb[33].mxu0 }
 0x138   :  { %v903_v16 = vadd.f32 %v1359_v13, %v806_v37  ;;  %v863_v17 = vadd.f32 %v862_v15, %v1765_v29  ;;  %v894_v19 = vpop.f32.mrb[33].mxu1  ;;  %v1352_v23 = vpop.f32.mrb[34].mxu0 }
 0x139   :  { %v927_v24 = vadd.f32 %v871_v11, %v44_v9  ;;  %v895_v25 = vadd.f32 %v894_v19, %v798_v21  ;;  %v874_v26 = vadd.f32 %v1352_v23, %v1771_v44  ;;  %v1360_v28 = vpop.f32.mrb[34].mxu1  ;;  %v865_v32 = vpop.f32.mrb[35].mxu0  ;;  %v55_v9 = vld [vmem:[#allocation2 + $0x68] sm:$0xff] }
 0x13a   :  { %v935_v43 = vadd.f32 %v903_v16, %v52_v12  ;;  %v925_v33 = vadd.f32 %v863_v17, %v42_v14  ;;  %v906_v34 = vadd.f32 %v1360_v28, %v809_v38  ;;  %v866_v35 = vadd.f32 %v865_v32, %v1767_v30  ;;  %v897_v37 = vpop.f32.mrb[35].mxu1  ;;  %v48_v30 = vld [vmem:[#allocation2 + $0x30] sm:$0xff] }
 0x13b   :  { %944 = vst.msk [vmem:[#allocation2 + $0x10] sm:$0xff] %vm25_vm0, %v927_v24  ;;  %v933_v29 = vadd.f32 %v895_v25, %v50_v18  ;;  %v928_v39 = vadd.f32 %v874_v26, %v45_v20  ;;  %v898_v40 = vadd.f32 %v897_v37, %v1781_v22  ;;  %v1041_v26 = vld [vmem:[%s1975_s4 + $0x10] sm:$0xff] }
 0x13c   :  { %952 = vst.msk [vmem:[#allocation2 + $0x50] sm:$0xff] %vm25_vm0, %v935_v43  ;;  %942 = vst.msk [vmem:[#allocation2] sm:$0xff] %vm25_vm0, %v925_v33  ;;  %v936_v44 = vadd.f32 %v906_v34, %v53_v27  ;;  %v926_v21 = vadd.f32 %v866_v35, %v43_v31  ;;  %v1049_v34 = vld [vmem:[%s1975_s4 + $0x50] sm:$0xff]  ;;  %v1039_v35 = vld [vmem:[%s1975_s4] sm:$0xff] }
 0x13d   :  { %950 = vst.msk [vmem:[#allocation2 + $0x40] sm:$0xff] %vm25_vm0, %v933_v29  ;;  %945 = vst.msk [vmem:[#allocation2 + $0x18] sm:$0xff] %vm25_vm0, %v928_v39  ;;  %v934_v38 = vadd.f32 %v898_v40, %v51_v36 }
 0x13e   :  { %953 = vst.msk [vmem:[#allocation2 + $0x58] sm:$0xff] %vm25_vm0, %v936_v44  ;;  %943 = vst.msk [vmem:[#allocation2 + $0x8] sm:$0xff] %vm25_vm0, %v926_v21  ;;  %v1355_v41 = vpop.f32.mrb[36].mxu0  ;;  %v1047_v44 = vld [vmem:[%s1975_s4 + $0x40] sm:$0xff]  ;;  %v1042_v21 = vld [vmem:[%s1975_s4 + $0x18] sm:$0xff] }
 0x13f   :  { %951 = vst.msk [vmem:[#allocation2 + $0x48] sm:$0xff] %vm25_vm0, %v934_v38  ;;  %v887_v22 = vadd.f32 %v1355_v41, %v1777_v7  ;;  %v1363_v45 = vpop.f32.mrb[36].mxu1  ;;  %v878_v47 = vpop.f32.mrb[37].mxu0 }
 0x140   :  { %v919_v49 = vadd.f32 %v1363_v45, %v822_v5  ;;  %v879_v50 = vadd.f32 %v878_v47, %v1773_v57  ;;  %v910_v52 = vpop.f32.mrb[37].mxu1  ;;  %v1356_v56 = vpop.f32.mrb[38].mxu0  ;;  %v1050_v45 = vld [vmem:[%s1975_s4 + $0x58] sm:$0xff] }
 0x141   :  { %v931_v59 = vadd.f32 %v887_v22, %v48_v30  ;;  %v911_v60 = vadd.f32 %v910_v52, %v1783_v53  ;;  %v890_v7 = vadd.f32 %v1356_v56, %v1779_v8  ;;  %v1364_v62 = vpop.f32.mrb[38].mxu1  ;;  %v881_v0 = vpop.f32.mrb[39].mxu0 }
 0x142   :  { %v963_v1 = vld [vmem:[#allocation2 + $0x10] sm:$0xff]  ;;  %v939_v57 = vadd.f32 %v919_v49, %v56_v42  ;;  %v929_v3 = vadd.f32 %v879_v50, %v46_v46  ;;  %v922_v4 = vadd.f32 %v1364_v62, %v1787_v6  ;;  %v882_v5 = vadd.f32 %v881_v0, %v1775_v58  ;;  %v913_v53 = vpop.f32.mrb[39].mxu1  ;;  %v1040_v46 = vld [vmem:[%s1975_s4 + $0x8] sm:$0xff] }
 0x143   :  { %v986_v8 = vmul.f32 %v1806_v48, %v963_v1  ;;  %v971_v10 = vld [vmem:[#allocation2 + $0x50] sm:$0xff]  ;;  %v961_v11 = vld [vmem:[#allocation2] sm:$0xff]  ;;  %948 = vst.msk [vmem:[#allocation2 + $0x30] sm:$0xff] %vm25_vm0, %v931_v59  ;;  %v937_v12 = vadd.f32 %v911_v60, %v54_v51  ;;  %v932_v13 = vadd.f32 %v890_v7, %v49_v55  ;;  %v914_v14 = vadd.f32 %v913_v53, %v1785_v54  ;;  %v1048_v55 = vld [vmem:[%s1975_s4 + $0x48] sm:$0xff] }
 0x144   :  { %v994_v15 = vmul.f32 %v1806_v48, %v971_v10  ;;  %v984_v16 = vmul.f32 %v1806_v48, %v961_v11  ;;  %v969_v17 = vld [vmem:[#allocation2 + $0x40] sm:$0xff]  ;;  %v964_v6 = vld [vmem:[#allocation2 + $0x18] sm:$0xff]  ;;  %956 = vst.msk [vmem:[#allocation2 + $0x70] sm:$0xff] %vm25_vm0, %v939_v57  ;;  %946 = vst.msk [vmem:[#allocation2 + $0x20] sm:$0xff] %vm25_vm0, %v929_v3  ;;  %v940_v58 = vadd.f32 %v922_v4, %v57_v61 }
 0x145   :  { %v930_v18 = vadd.f32 %v882_v5, %v47_v63  ;;  %v1009_v19 = vadd.f32 %v1814_v2, %v986_v8  ;;  %v992_v20 = vmul.f32 %v1806_v48, %v969_v17  ;;  %v987_v23 = vmul.f32 %v1806_v48, %v964_v6  ;;  %v972_v24 = vld [vmem:[#allocation2 + $0x58] sm:$0xff]  ;;  %v962_v54 = vld [vmem:[#allocation2 + $0x8] sm:$0xff]  ;;  %954 = vst.msk [vmem:[#allocation2 + $0x60] sm:$0xff] %vm25_vm0, %v937_v12 }
 0x146   :  { %949 = vst.msk [vmem:[#allocation2 + $0x38] sm:$0xff] %vm25_vm0, %v932_v13  ;;  %v938_v25 = vadd.f32 %v914_v14, %v55_v9  ;;  %v1017_v27 = vadd.f32 %v1814_v2, %v994_v15  ;;  %v1007_v28 = vadd.f32 %v1814_v2, %v984_v16  ;;  %v995_v31 = vmul.f32 %v1806_v48, %v972_v24  ;;  %v970_v43 = vld [vmem:[#allocation2 + $0x48] sm:$0xff] }
 0x147   :  { %v985_v32 = vmul.f32 %v1806_v48, %v962_v54  ;;  %957 = vst.msk [vmem:[#allocation2 + $0x78] sm:$0xff] %vm25_vm0, %v940_v58  ;;  %947 = vst.msk [vmem:[#allocation2 + $0x28] sm:$0xff] %vm25_vm0, %v930_v18  ;;  %v1025_v33 = vmax.f32 %v1009_v19, 0.0  ;;  %v1015_v36 = vadd.f32 %v1814_v2, %v992_v20  ;;  %v1010_v37 = vadd.f32 %v1814_v2, %v987_v23  ;;  %v1045_v20 = vld [vmem:[%s1975_s4 + $0x30] sm:$0xff] }
 0x148   :  { %v993_v29 = vmul.f32 %v1806_v48, %v970_v43  ;;  %955 = vst.msk [vmem:[#allocation2 + $0x68] sm:$0xff] %vm25_vm0, %v938_v25  ;;  %v1033_v39 = vmax.f32 %v1017_v27, 0.0  ;;  %v1023_v40 = vmax.f32 %v1007_v28, 0.0  ;;  %v1018_v38 = vadd.f32 %v1814_v2, %v995_v31  ;;  %v1053_v27 = vld [vmem:[%s1975_s4 + $0x70] sm:$0xff]  ;;  %v1043_v28 = vld [vmem:[%s1975_s4 + $0x20] sm:$0xff] }
 0x149   :  { %v1008_v30 = vadd.f32 %v1814_v2, %v985_v32  ;;  %v1057_v41 = vadd.f32 %v1041_v26, %v1025_v33  ;;  %v1031_v22 = vmax.f32 %v1015_v36, 0.0  ;;  %v1026_v42 = vmax.f32 %v1010_v37, 0.0  ;;  %v1046_v36 = vld [vmem:[%s1975_s4 + $0x38] sm:$0xff] }
 0x14a   :  { %v1016_v47 = vadd.f32 %v1814_v2, %v993_v29  ;;  %v1065_v49 = vadd.f32 %v1049_v34, %v1033_v39  ;;  %v1055_v50 = vadd.f32 %v1039_v35, %v1023_v40  ;;  %v1034_v51 = vmax.f32 %v1018_v38, 0.0  ;;  %v967_v56 = vld [vmem:[#allocation2 + $0x30] sm:$0xff]  ;;  %v1051_v35 = vld [vmem:[%s1975_s4 + $0x60] sm:$0xff] }
 0x14b   :  { %v1024_v52 = vmax.f32 %v1008_v30, 0.0  ;;  %v1073_v59 = vmax.f32 %v1057_v41, 0.0  ;;  %v1063_v60 = vadd.f32 %v1047_v44, %v1031_v22  ;;  %v1058_v7 = vadd.f32 %v1042_v21, %v1026_v42  ;;  %v975_v62 = vld [vmem:[#allocation2 + $0x70] sm:$0xff]  ;;  %v965_v63 = vld [vmem:[#allocation2 + $0x20] sm:$0xff]  ;;  %v1044_v21 = vld [vmem:[%s1975_s4 + $0x28] sm:$0xff] }
 0x14c   :  { %v1032_v61 = vmax.f32 %v1016_v47, 0.0  ;;  %v1081_v0 = vmax.f32 %v1065_v49, 0.0  ;;  %v1071_v1 = vmax.f32 %v1055_v50, 0.0  ;;  %v1066_v57 = vadd.f32 %v1050_v45, %v1034_v51  ;;  %v973_v4 = vld [vmem:[#allocation2 + $0x60] sm:$0xff]  ;;  %v1052_v45 = vld [vmem:[%s1975_s4 + $0x68] sm:$0xff] }
 0x14d   :  { %v1056_v3 = vadd.f32 %v1040_v46, %v1024_v52  ;;  %v968_v5 = vld [vmem:[#allocation2 + $0x38] sm:$0xff]  ;;  %1089 = vst.msk [vmem:[%s1976_s5 + $0x10] sm:$0xff] %vm25_vm0, %v1073_v59  ;;  %v1079_v9 = vmax.f32 %v1063_v60, 0.0  ;;  %v1074_v53 = vmax.f32 %v1058_v7, 0.0  ;;  %v990_v10 = vmul.f32 %v1806_v48, %v967_v56 }
 0x14e   :  { %v1064_v8 = vadd.f32 %v1048_v55, %v1032_v61  ;;  %v976_v11 = vld [vmem:[#allocation2 + $0x78] sm:$0xff]  ;;  %v966_v12 = vld [vmem:[#allocation2 + $0x28] sm:$0xff]  ;;  %1097 = vst.msk [vmem:[%s1976_s5 + $0x50] sm:$0xff] %vm25_vm0, %v1081_v0  ;;  %1087 = vst.msk [vmem:[%s1976_s5] sm:$0xff] %vm25_vm0, %v1071_v1  ;;  %v1082_v13 = vmax.f32 %v1066_v57, 0.0  ;;  %v998_v15 = vmul.f32 %v1806_v48, %v975_v62  ;;  %v988_v16 = vmul.f32 %v1806_v48, %v965_v63 }
 0x14f   :  { %v1072_v14 = vmax.f32 %v1056_v3, 0.0  ;;  %v974_v17 = vld [vmem:[#allocation2 + $0x68] sm:$0xff]  ;;  %1095 = vst.msk [vmem:[%s1976_s5 + $0x40] sm:$0xff] %vm25_vm0, %v1079_v9  ;;  %1090 = vst.msk [vmem:[%s1976_s5 + $0x18] sm:$0xff] %vm25_vm0, %v1074_v53  ;;  %v1013_v58 = vadd.f32 %v1814_v2, %v990_v10  ;;  %v996_v18 = vmul.f32 %v1806_v48, %v973_v4  ;;  %v991_v19 = vmul.f32 %v1806_v48, %v968_v5 }
 0x150   :  { %v1080_v6 = vmax.f32 %v1064_v8, 0.0  ;;  %1098 = vst.msk [vmem:[%s1976_s5 + $0x58] sm:$0xff] %vm25_vm0, %v1082_v13  ;;  %v1021_v23 = vadd.f32 %v1814_v2, %v998_v15  ;;  %v1011_v24 = vadd.f32 %v1814_v2, %v988_v16  ;;  %v999_v54 = vmul.f32 %v1806_v48, %v976_v11 }
 0x151   :  { %1088 = vst.msk [vmem:[%s1976_s5 + $0x8] sm:$0xff] %vm25_vm0, %v1072_v14  ;;  %v989_v25 = vmul.f32 %v1806_v48, %v966_v12  ;;  %v1029_v26 = vmax.f32 %v1013_v58, 0.0  ;;  %v1019_v31 = vadd.f32 %v1814_v2, %v996_v18  ;;  %v1014_v32 = vadd.f32 %v1814_v2, %v991_v19 }
 0x152   :  { %1096 = vst.msk [vmem:[%s1976_s5 + $0x48] sm:$0xff] %vm25_vm0, %v1080_v6  ;;  %v997_v43 = vmul.f32 %v1806_v48, %v974_v17  ;;  %v1037_v33 = vmax.f32 %v1021_v23, 0.0  ;;  %v1027_v34 = vmax.f32 %v1011_v24, 0.0  ;;  %v1022_v37 = vadd.f32 %v1814_v2, %v999_v54  ;;  %v1054_v48 = vld [vmem:[%s1975_s4 + $0x78] sm:$0xff] }
 0x153   :  { %v1012_v29 = vadd.f32 %v1814_v2, %v989_v25  ;;  %v1061_v39 = vadd.f32 %v1045_v20, %v1029_v26  ;;  %v1035_v40 = vmax.f32 %v1019_v31, 0.0  ;;  %v1030_v44 = vmax.f32 %v1014_v32, 0.0 }
 0x154   :  { %v1020_v38 = vadd.f32 %v1814_v2, %v997_v43  ;;  %v1069_v30 = vadd.f32 %v1053_v27, %v1037_v33  ;;  %v1059_v41 = vadd.f32 %v1043_v28, %v1027_v34  ;;  %v1038_v22 = vmax.f32 %v1022_v37, 0.0 }
 0x155   :  { %v1028_v42 = vmax.f32 %v1012_v29, 0.0  ;;  %v1077_v46 = vmax.f32 %v1061_v39, 0.0  ;;  %v1067_v47 = vadd.f32 %v1051_v35, %v1035_v40  ;;  %v1062_v49 = vadd.f32 %v1046_v36, %v1030_v44 }
 0x156   :  { %v1036_v50 = vmax.f32 %v1020_v38, 0.0  ;;  %v1085_v51 = vmax.f32 %v1069_v30, 0.0  ;;  %v1075_v52 = vmax.f32 %v1059_v41, 0.0  ;;  %v1070_v55 = vadd.f32 %v1054_v48, %v1038_v22 }
 0x157   :  { %v1060_v56 = vadd.f32 %v1044_v21, %v1028_v42  ;;  %1093 = vst.msk [vmem:[%s1976_s5 + $0x30] sm:$0xff] %vm25_vm0, %v1077_v46  ;;  %v1083_v2 = vmax.f32 %v1067_v47, 0.0  ;;  %v1078_v59 = vmax.f32 %v1062_v49, 0.0 }
 0x158   :  { %v1068_v60 = vadd.f32 %v1052_v45, %v1036_v50  ;;  %1101 = vst.msk [vmem:[%s1976_s5 + $0x70] sm:$0xff] %vm25_vm0, %v1085_v51  ;;  %1091 = vst.msk [vmem:[%s1976_s5 + $0x20] sm:$0xff] %vm25_vm0, %v1075_v52  ;;  %v1086_v7 = vmax.f32 %v1070_v55, 0.0 }
 0x159   :  { %v1076_v61 = vmax.f32 %v1060_v56, 0.0  ;;  %1099 = vst.msk [vmem:[%s1976_s5 + $0x60] sm:$0xff] %vm25_vm0, %v1083_v2  ;;  %1094 = vst.msk [vmem:[%s1976_s5 + $0x38] sm:$0xff] %vm25_vm0, %v1078_v59 }
 0x15a   :  { %v1084_v62 = vmax.f32 %v1068_v60, 0.0  ;;  %1102 = vst.msk [vmem:[%s1976_s5 + $0x78] sm:$0xff] %vm25_vm0, %v1086_v7 }
 0x15b   :  { %1092 = vst.msk [vmem:[%s1976_s5 + $0x28] sm:$0xff] %vm25_vm0, %v1076_v61 }
 0x15c   :  { %1100 = vst.msk [vmem:[%s1976_s5 + $0x68] sm:$0xff] %vm25_vm0, %v1084_v62 }

// kernel: _lambda_.19
= control target key start
LH: loop header
LB: loop body
LE: loop exit
PB: predicated region body
PF: predicated region fallthrough
CT: control target
= control target key end

     0   :  { %s995_s1 = inlined_call_operand.vmem [shape: bf16[640,128], index: 1, kind: input, shape index: {}]   ;;  %s996_s0 = inlined_call_operand.vmem [shape: bf16[32,640], index: 0, kind: input, shape index: {}]   ;;  %s997_s2 = inlined_call_operand.vmem [shape: f32[1,128], index: 2, kind: input, shape index: {}]   ;;  %s998_s3 = inlined_call_operand.vmem [shape: f32[1,128], index: 3, kind: input, shape index: {}]   ;;  %s999_s4 = inlined_call_operand.vmem [shape: f32[32,128], index: 4, kind: output, shape index: {}]  }
   0x1   :  { %v748_v0 = vld [vmem:[%s995_s1 + $0x40] sm:$0xff]   ;;  %v752_v4 = vld [vmem:[%s995_s1 + $0x48] sm:$0xff]   ;;  %v756_v8 = vld [vmem:[%s995_s1 + $0x50] sm:$0xff]  }
   0x2   :  { %v749_v1 = vld [vmem:[%s995_s1 + $0xc0] sm:$0xff]   ;;  %662 = vmatprep.subr.bf16.mxu0 %v748_v0  ;;  %v753_v5 = vld [vmem:[%s995_s1 + $0xc8] sm:$0xff]   ;;  %v757_v9 = vld [vmem:[%s995_s1 + $0xd0] sm:$0xff]  }
   0x3   :  { %v750_v2 = vld [vmem:[%s995_s1] sm:$0xff]   ;;  %690 = vmatprep.subr.bf16.mxu1 %v749_v1  ;;  %v754_v6 = vld [vmem:[%s995_s1 + $0x8] sm:$0xff]   ;;  %v758_v10 = vld [vmem:[%s995_s1 + $0x10] sm:$0xff]  }
   0x4   :  { %v751_v3 = vld [vmem:[%s995_s1 + $0x80] sm:$0xff]   ;;  %663 = vmatpush3.bf16.msra.mxu0 %v750_v2  ;;  %v755_v7 = vld [vmem:[%s995_s1 + $0x88] sm:$0xff]   ;;  %v759_v11 = vld [vmem:[%s995_s1 + $0x90] sm:$0xff]  }
   0x5   :  { %691 = vmatpush3.bf16.msra.mxu1 %v751_v3  ;;  %664 = vmatprep.subr.bf16.mxu0 %v752_v4  ;;  %v760_v12 = vld [vmem:[%s995_s1 + $0x58] sm:$0xff]   ;;  %v764_v16 = vld [vmem:[%s995_s1 + $0x60] sm:$0xff]   ;;  %v768_v20 = vld [vmem:[%s995_s1 + $0x68] sm:$0xff]  }
   0x6   :  { %692 = vmatprep.subr.bf16.mxu1 %v753_v5  ;;  %v761_v13 = vld [vmem:[%s995_s1 + $0xd8] sm:$0xff]   ;;  %v765_v17 = vld [vmem:[%s995_s1 + $0xe0] sm:$0xff]   ;;  %v769_v21 = vld [vmem:[%s995_s1 + $0xe8] sm:$0xff]  }
   0x7   :  { %v762_v14 = vld [vmem:[%s995_s1 + $0x18] sm:$0xff]   ;;  %v766_v18 = vld [vmem:[%s995_s1 + $0x20] sm:$0xff]   ;;  %v770_v22 = vld [vmem:[%s995_s1 + $0x28] sm:$0xff]  }
   0x8   :  { %665 = vmatpush3.bf16.msra.mxu0 %v754_v6  ;;  %v763_v15 = vld [vmem:[%s995_s1 + $0x98] sm:$0xff]   ;;  %v767_v19 = vld [vmem:[%s995_s1 + $0xa0] sm:$0xff]   ;;  %v771_v23 = vld [vmem:[%s995_s1 + $0xa8] sm:$0xff]  }
   0x9   :  { %693 = vmatpush3.bf16.msra.mxu1 %v755_v7  ;;  %666 = vmatprep.subr.bf16.mxu0 %v756_v8  ;;  %v772_v24 = vld [vmem:[%s995_s1 + $0x70] sm:$0xff]   ;;  %v776_v28 = vld [vmem:[%s995_s1 + $0x78] sm:$0xff]   ;;  %v785_v35 = vld [vmem:[%s996_s0 + $0xc] ss:$20 sps:$4 sm:$0xff]  }
   0xa   :  { %694 = vmatprep.subr.bf16.mxu1 %v757_v9  ;;  %v773_v25 = vld [vmem:[%s995_s1 + $0xf0] sm:$0xff]   ;;  %v777_v29 = vld [vmem:[%s995_s1 + $0xf8] sm:$0xff]   ;;  %v786_v36 = vld [vmem:[%s995_s1 + $0x100] sm:$0xff]   ;;  %495 = vmatprep.mubr.bf16.mxu1 %v785_v35 }
   0xb   :  { %v774_v26 = vld [vmem:[%s995_s1 + $0x30] sm:$0xff]   ;;  %v778_v30 = vld [vmem:[%s995_s1 + $0x38] sm:$0xff]   ;;  %v787_v37 = vld [vmem:[%s995_s1 + $0x108] sm:$0xff]  }
   0xc   :  { %667 = vmatpush3.bf16.msra.mxu0 %v758_v10  ;;  %v775_v27 = vld [vmem:[%s995_s1 + $0xb0] sm:$0xff]   ;;  %v779_v31 = vld [vmem:[%s995_s1 + $0xb8] sm:$0xff]   ;;  %v791_v39 = vld [vmem:[%s996_s0 + $0x2c] ss:$20 sps:$4 sm:$0xff]  }
   0xd   :  { %695 = vmatpush3.bf16.msra.mxu1 %v759_v11  ;;  %668 = vmatprep.subr.bf16.mxu0 %v760_v12  ;;  %v780_v32 = vld [vmem:[%s996_s0] ss:$20 sps:$4 sm:$0xff]   ;;  %v782_v33 = vld [vmem:[%s996_s0 + $0x4] ss:$20 sps:$4 sm:$0xff]   ;;  %v783_v34 = vld [vmem:[%s996_s0 + $0x8] ss:$20 sps:$4 sm:$0xff]  }
   0xe   :  { %696 = vmatprep.subr.bf16.mxu1 %v761_v13  ;;  %446 = vmatprep.mubr.bf16.mxu0 %v782_v33  ;;  %v788_v38 = vld [vmem:[%s995_s1 + $0x110] sm:$0xff]   ;;  %v789_v41 = vld [vmem:[%s995_s1 + $0x118] sm:$0xff]   ;;  %v790_v45 = vld [vmem:[%s995_s1 + $0x120] sm:$0xff]  }
   0xf   :  { %v793_v40 = vld [vmem:[%s996_s0 + $0x34] ss:$20 sps:$4 sm:$0xff]   ;;  %v797_v43 = vld [vmem:[%s996_s0 + $0x30] ss:$20 sps:$4 sm:$0xff]   ;;  %v799_v48 = vld [vmem:[%s995_s1 + $0x138] sm:$0xff]  }
  0x10   :  { %669 = vmatpush3.bf16.msra.mxu0 %v762_v14  ;;  %v796_v42 = vld [vmem:[%s996_s0 + $0x28] ss:$20 sps:$4 sm:$0xff]   ;;  %v800_v44 = vld [vmem:[%s996_s0 + $0x10] ss:$20 sps:$4 sm:$0xff]   ;;  %v801_v49 = vld [vmem:[%s996_s0 + $0x38] ss:$20 sps:$4 sm:$0xff]  }
  0x11   :  { %697 = vmatpush3.bf16.msra.mxu1 %v763_v15  ;;  %670 = vmatprep.subr.bf16.mxu0 %v764_v16  ;;  %v795_v46 = vld [vmem:[%s995_s1 + $0x128] sm:$0xff]   ;;  %v798_v47 = vld [vmem:[%s995_s1 + $0x130] sm:$0xff]   ;;  %v660_v15 = vld [vmem:[%s997_s2] ss:$0 sm:$0xff] }
  0x12   :  { %698 = vmatprep.subr.bf16.mxu1 %v765_v17 }
  0x14   :  { %671 = vmatpush3.bf16.msra.mxu0 %v766_v18  ;;  %v661_v18 = vld [vmem:[%s998_s3] ss:$0 sm:$0xff] }
  0x15   :  { %699 = vmatpush3.bf16.msra.mxu1 %v767_v19  ;;  %672 = vmatprep.subr.bf16.mxu0 %v768_v20 }
  0x16   :  { %700 = vmatprep.subr.bf16.mxu1 %v769_v21 }
  0x18   :  { %673 = vmatpush3.bf16.msra.mxu0 %v770_v22 }
  0x19   :  { %701 = vmatpush3.bf16.msra.mxu1 %v771_v23  ;;  %674 = vmatprep.subr.bf16.mxu0 %v772_v24 }
  0x1a   :  { %702 = vmatprep.subr.bf16.mxu1 %v773_v25 }
  0x1c   :  { %675 = vmatpush3.bf16.msra.mxu0 %v774_v26 }
  0x1d   :  { %703 = vmatpush3.bf16.msra.mxu1 %v775_v27  ;;  %676 = vmatprep.subr.bf16.mxu0 %v776_v28 }
  0x1e   :  { %704 = vmatprep.subr.bf16.mxu1 %v777_v29 }
  0x20   :  { %677 = vmatpush3.bf16.msra.mxu0 %v778_v30 }
  0x21   :  { %705 = vmatpush3.bf16.msra.mxu1 %v779_v31  ;;  %728 = vmatprep.subr.bf16.mxu0 %v786_v36 }
  0x23   :  { %447 = vmatmul.mubr.bf16.vlgmr.msra.gmra.mrb[0].mxu0 %v780_v32 }
  0x24   :  { %496 = vmatmul.mubr.bf16.vlgmr.msra.gmra.mrb[0].mxu1 %v783_v34  ;;  %729 = vmatpush3.bf16.msra.mxu0 %v786_v36 }
  0x25   :  { %730 = vmatprep.subr.bf16.mxu0 %v787_v37  ;;  %454 = vmatprep.mubr.bf16.mxu0 %v791_v39 }
  0x26   :  { %503 = vmatprep.mubr.bf16.mxu1 %v793_v40 }
  0x28   :  { %731 = vmatpush3.bf16.msra.mxu0 %v787_v37 }
  0x29   :  { %732 = vmatprep.subr.bf16.mxu0 %v788_v38 }
  0x2b   :  { %455 = vmatmul.mubr.bf16.gmra.mrb[4].mxu0 %v796_v42 }
  0x2c   :  { %504 = vmatmul.mubr.bf16.gmra.mrb[4].mxu1 %v797_v43  ;;  %733 = vmatpush3.bf16.msra.mxu0 %v788_v38 }
  0x2d   :  { %734 = vmatprep.subr.bf16.mxu0 %v789_v41  ;;  %744 = vmatprep.mubr.bf16.mxu0 %v800_v44 }
  0x30   :  { %735 = vmatpush3.bf16.msra.mxu0 %v789_v41 }
  0x31   :  { %736 = vmatprep.subr.bf16.mxu0 %v790_v45 }
  0x34   :  { %737 = vmatpush3.bf16.msra.mxu0 %v790_v45 }
  0x35   :  { %738 = vmatprep.subr.bf16.mxu0 %v795_v46 }
  0x38   :  { %739 = vmatpush3.bf16.msra.mxu0 %v795_v46 }
  0x39   :  { %740 = vmatprep.subr.bf16.mxu0 %v798_v47 }
  0x3c   :  { %741 = vmatpush3.bf16.msra.mxu0 %v798_v47 }
  0x3d   :  { %742 = vmatprep.subr.bf16.mxu0 %v799_v48 }
  0x40   :  { %743 = vmatpush3.bf16.msra.mxu0 %v799_v48 }
  0x43   :  { %745 = vmatmul.mubr.bf16.vlgmr.msra.gmra.mrb[8].mxu0 %v801_v49 }
  0xf6   :  { %v678_v50 = vpop.f32.mrb[0].mxu0 }
  0xf7   :  { %v706_v51 = vpop.f32.mrb[0].mxu1  ;;  %v679_v52 = vpop.f32.mrb[1].mxu0 }
  0xf8   :  { %v680_v53 = vadd.f32 %v679_v52, %v678_v50  ;;  %v707_v54 = vpop.f32.mrb[1].mxu1  ;;  %v681_v55 = vpop.f32.mrb[2].mxu0 }
  0xf9   :  { %v708_v56 = vadd.f32 %v707_v54, %v706_v51  ;;  %v709_v57 = vpop.f32.mrb[2].mxu1  ;;  %v682_v58 = vpop.f32.mrb[3].mxu0 }
  0xfa   :  { %v683_v59 = vadd.f32 %v682_v58, %v681_v55  ;;  %v710_v60 = vpop.f32.mrb[3].mxu1 }
  0xfb   :  { %v711_v61 = vadd.f32 %v710_v60, %v709_v57  ;;  %v498_v62 = vadd.f32 %v708_v56, %v680_v53 }
  0xfd   :  { %v501_v63 = vadd.f32 %v711_v61, %v683_v59 }
  0xfe   :  { %v684_v0 = vpop.f32.mrb[4].mxu0 }
  0xff   :  { %v712_v1 = vpop.f32.mrb[4].mxu1  ;;  %v685_v2 = vpop.f32.mrb[5].mxu0 }
 0x100   :  { %v686_v3 = vadd.f32 %v685_v2, %v684_v0  ;;  %v713_v4 = vpop.f32.mrb[5].mxu1  ;;  %v687_v5 = vpop.f32.mrb[6].mxu0 }
 0x101   :  { %v714_v6 = vadd.f32 %v713_v4, %v712_v1  ;;  %v715_v7 = vpop.f32.mrb[6].mxu1  ;;  %v688_v8 = vpop.f32.mrb[7].mxu0 }
 0x102   :  { %v689_v9 = vadd.f32 %v688_v8, %v687_v5  ;;  %v716_v10 = vpop.f32.mrb[7].mxu1 }
 0x103   :  { %v717_v11 = vadd.f32 %v716_v10, %v715_v7  ;;  %v506_v12 = vadd.f32 %v714_v6, %v686_v3 }
 0x105   :  { %v509_v13 = vadd.f32 %v717_v11, %v689_v9 }
 0x116   :  { %v746_v14 = vpop.f32.mrb[8].mxu0 }
 0x117   :  { %v555_v16 = vadd.f32 %v746_v14, %v506_v12  ;;  %v546_v17 = vpop.f32.mrb[9].mxu0 }
 0x118   :  { %v547_v19 = vadd.f32 %v546_v17, %v498_v62  ;;  %v747_v20 = vpop.f32.mrb[10].mxu0 }
 0x119   :  { %v585_v21 = vmul.f32 %v660_v15, %v555_v16  ;;  %v558_v22 = vadd.f32 %v747_v20, %v509_v13  ;;  %v549_v23 = vpop.f32.mrb[11].mxu0 }
 0x11a   :  { %v583_v24 = vmul.f32 %v660_v15, %v547_v19  ;;  %v550_v25 = vadd.f32 %v549_v23, %v501_v63 }
 0x11b   :  { %v596_v26 = vadd.f32 %v661_v18, %v585_v21  ;;  %v586_v27 = vmul.f32 %v660_v15, %v558_v22 }
 0x11c   :  { %v594_v28 = vadd.f32 %v661_v18, %v583_v24  ;;  %v584_v29 = vmul.f32 %v660_v15, %v550_v25 }
 0x11d   :  { %v600_v30 = vmax.f32 %v596_v26, 0.0  ;;  %v597_v31 = vadd.f32 %v661_v18, %v586_v27 }
 0x11e   :  { %v598_v32 = vmax.f32 %v594_v28, 0.0  ;;  %v595_v33 = vadd.f32 %v661_v18, %v584_v29 }
 0x11f   :  { %604 = vst [vmem:[%s999_s4 + $0x10] sm:$0xff] %v600_v30  ;;  %v601_v34 = vmax.f32 %v597_v31, 0.0 }
 0x120   :  { %602 = vst [vmem:[%s999_s4] sm:$0xff] %v598_v32  ;;  %v599_v35 = vmax.f32 %v595_v33, 0.0 }
 0x121   :  { %605 = vst [vmem:[%s999_s4 + $0x18] sm:$0xff] %v601_v34 }
 0x122   :  { %603 = vst [vmem:[%s999_s4 + $0x8] sm:$0xff] %v599_v35 }

// kernel: _lambda_.18
= control target key start
LH: loop header
LB: loop body
LE: loop exit
PB: predicated region body
PF: predicated region fallthrough
CT: control target
= control target key end

     0   :  { %s329_s1 = inlined_call_operand.vmem [shape: bf16[128,128], index: 1, kind: input, shape index: {}]   ;;  %s330_s0 = inlined_call_operand.vmem [shape: bf16[32,128], index: 0, kind: input, shape index: {}]   ;;  %s331_s2 = inlined_call_operand.vmem [shape: f32[1,128], index: 2, kind: input, shape index: {}]   ;;  %s332_s3 = inlined_call_operand.vmem [shape: f32[1,128], index: 3, kind: input, shape index: {}]   ;;  %s333_s4 = inlined_call_operand.vmem [shape: f32[32,128], index: 4, kind: output, shape index: {}]  }
   0x1   :  { %v246_v0 = vld [vmem:[%s329_s1] sm:$0xff]   ;;  %v247_v1 = vld [vmem:[%s329_s1 + $0x8] sm:$0xff]   ;;  %v248_v2 = vld [vmem:[%s329_s1 + $0x10] sm:$0xff]  }
   0x2   :  { %226 = vmatprep.subr.bf16.mxu0 %v246_v0  ;;  %v249_v3 = vld [vmem:[%s329_s1 + $0x18] sm:$0xff]   ;;  %v254_v4 = vld [vmem:[%s330_s0] sm:$0xff]   ;;  %v251_v6 = vld [vmem:[%s329_s1 + $0x28] sm:$0xff]  }
   0x3   :  { %227 = vmatpush3.bf16.msra.mxu0 %v246_v0  ;;  %242 = vmatprep.mubr.bf16.mxu0 %v254_v4  ;;  %v250_v5 = vld [vmem:[%s329_s1 + $0x20] sm:$0xff]   ;;  %v252_v7 = vld [vmem:[%s329_s1 + $0x30] sm:$0xff]   ;;  %v253_v8 = vld [vmem:[%s329_s1 + $0x38] sm:$0xff]  }
   0x4   :  { %228 = vmatprep.subr.bf16.mxu0 %v247_v1  ;;  %v255_v9 = vld [vmem:[%s330_s0 + $0x8] sm:$0xff]   ;;  %v214_v10 = vld [vmem:[%s331_s2] ss:$0 sm:$0xff] }
   0x5   :  { %v215_v12 = vld [vmem:[%s332_s3] ss:$0 sm:$0xff] }
   0x7   :  { %229 = vmatpush3.bf16.msra.mxu0 %v247_v1 }
   0x8   :  { %230 = vmatprep.subr.bf16.mxu0 %v248_v2 }
   0xb   :  { %231 = vmatpush3.bf16.msra.mxu0 %v248_v2 }
   0xc   :  { %232 = vmatprep.subr.bf16.mxu0 %v249_v3 }
   0xf   :  { %233 = vmatpush3.bf16.msra.mxu0 %v249_v3 }
  0x10   :  { %234 = vmatprep.subr.bf16.mxu0 %v250_v5 }
  0x13   :  { %235 = vmatpush3.bf16.msra.mxu0 %v250_v5 }
  0x14   :  { %236 = vmatprep.subr.bf16.mxu0 %v251_v6 }
  0x17   :  { %237 = vmatpush3.bf16.msra.mxu0 %v251_v6 }
  0x18   :  { %238 = vmatprep.subr.bf16.mxu0 %v252_v7 }
  0x1b   :  { %239 = vmatpush3.bf16.msra.mxu0 %v252_v7 }
  0x1c   :  { %240 = vmatprep.subr.bf16.mxu0 %v253_v8 }
  0x1f   :  { %241 = vmatpush3.bf16.msra.mxu0 %v253_v8 }
  0x22   :  { %243 = vmatmul.mubr.bf16.vlgmr.msra.gmra.mrb[0].mxu0 %v255_v9 }
  0xf5   :  { %v244_v11 = vpop.f32.mrb[0].mxu0 }
  0xf6   :  { %v183_v13 = vmul.f32 %v244_v11, %v214_v10  ;;  %v144_v14 = vpop.f32.mrb[1].mxu0 }
  0xf7   :  { %v181_v15 = vmul.f32 %v214_v10, %v144_v14  ;;  %v245_v16 = vpop.f32.mrb[2].mxu0 }
  0xf8   :  { %v194_v17 = vadd.f32 %v215_v12, %v183_v13  ;;  %v184_v18 = vmul.f32 %v245_v16, %v214_v10  ;;  %v147_v19 = vpop.f32.mrb[3].mxu0 }
  0xf9   :  { %v192_v20 = vadd.f32 %v215_v12, %v181_v15  ;;  %v182_v21 = vmul.f32 %v214_v10, %v147_v19 }
  0xfa   :  { %198 = vst [vmem:[%s333_s4 + $0x10] sm:$0xff] %v194_v17  ;;  %v195_v22 = vadd.f32 %v215_v12, %v184_v18 }
  0xfb   :  { %196 = vst [vmem:[%s333_s4] sm:$0xff] %v192_v20  ;;  %v193_v23 = vadd.f32 %v215_v12, %v182_v21 }
  0xfc   :  { %199 = vst [vmem:[%s333_s4 + $0x18] sm:$0xff] %v195_v22 }
  0xfd   :  { %197 = vst [vmem:[%s333_s4 + $0x8] sm:$0xff] %v193_v23 }

// kernel: _lambda_.20
= control target key start
LH: loop header
LB: loop body
LE: loop exit
PB: predicated region body
PF: predicated region fallthrough
CT: control target
= control target key end

     0   :  { %s1203_s18 = smov 0   ;;  %s1205_s19 = smov 0   ;;  %s1334_s0 = inlined_call_operand.vmem [shape: bf16[32,1152], index: 0, kind: input, shape index: {}]   ;;  %s1335_s1 = inlined_call_operand.vmem [shape: bf16[1152,128], index: 1, kind: input, shape index: {}]   ;;  %s1336_s2 = inlined_call_operand.vmem [shape: f32[1,128], index: 2, kind: input, shape index: {}]   ;;  %s1337_s3 = inlined_call_operand.vmem [shape: f32[1,128], index: 3, kind: input, shape index: {}]   ;;  %s1338_s4 = inlined_call_operand.vmem [shape: f32[32,128], index: 4, kind: input, shape index: {}]   ;;  %s1339_s5 = inlined_call_operand.vmem [shape: f32[32,128], index: 5, kind: output, shape index: {}]  }
   0x1   :  { %s1207_s20 = smov 0   ;;  %s1209_s21 = smov 0  }
   0x2   :  { %s1211_s22 = smov 0  }
   0x3 LB: > { %s27_s23 = sadd.s32 1, %s1166_s21  ;;  %p50_p1 = scmp.ne.s32.totalorder %s1158_s19, %s1154_s18  ;;  %s1170_s22 = sphi %s1211_s22, %s15_s22   ;;  %s1166_s21 = sphi %s1209_s21, %s1343_s21   ;;  %s1162_s20 = sphi %s1207_s20, %s1342_s20   ;;  %s1158_s19 = sphi %s1205_s19, %s1341_s19   ;;  %s1154_s18 = sphi %s1203_s18, %s1340_s18  }
   0x4   : > { %p28_p0 = scmp.ge.s32.totalorder %s27_s23, 3  ;;  %p51_p2 = scmp.eq.s32.totalorder %s1170_s22, 0 }
   0x5   : > { %s43_s25 = sadd.s32 1, %s1158_s19  ;;  %p948_p5 = scmp.ge.s32.totalorder %s1170_s22, 3 }
   0x6   : > { %s1345_s23 = smov (%p28_p0, %s27_s23), 0  ;;  %p52_p3 = por %p51_p2, %p50_p1 }
   0x7   : > { %s39_s24 = ssub.s32 %s1166_s21, %s1345_s23  ;;  %236 = sbr.rel (%p948_p5) target bundleno = 23 (0x17), region = 28 }
   0x8   : > { %p41_p4 = scmp.eq.s32.totalorder %s39_s24, 0 }
   0xa   : > { %s1238_s26 = scalar_select %p41_p4, %s1158_s19, %s43_s25  }
   0xe   : > { %239 = sbr.rel (!%p52_p3) target bundleno = 23 (0x17), region = 32  ;;  %s241_s27 = sand.u32 (%p52_p3), 1, %s1158_s19  }
   0xf   : > { %s998_s28 = smul.u32 (%p52_p3), 12, %s1166_s21 }
  0x10   : > { %s1057_s29 = smul.u32 (%p52_p3), 48, %s241_s27 }
  0x11   : > { %s249_s7 = scalar_lea.vmem (%p52_p3), %s1334_s0, %s998_s28 }
  0x12   : > { %v264_v0 = vld [vmem:[%s249_s7] sm:$0xff] (%p52_p3)  ;;  %v268_v2 = vld [vmem:[%s249_s7 + $0x48] sm:$0xff] (%p52_p3)  ;;  %s243_s8 = scalar_lea.vmem (%p52_p3), [#allocation3], %s1057_s29  ;;  %v954_v6 = vld [vmem:[%s249_s7 + $0x50] sm:$0xf] (%p52_p3) }
  0x13   : > { %v266_v1 = vld [vmem:[%s249_s7 + $0x24] sm:$0xff] (%p52_p3)  ;;  %265 = vst [vmem:[%s243_s8] sm:$0xff] (%p52_p3), %v264_v0  ;;  %269 = vst [vmem:[%s243_s8 + $0x18] sm:$0xff] (%p52_p3), %v268_v2  ;;  %v270_v3 = vld [vmem:[%s249_s7 + $0x6c] sm:$0xff] (%p52_p3) }
  0x14   : > { %267 = vst [vmem:[%s243_s8 + $0xc] sm:$0xff] (%p52_p3), %v266_v1  ;;  %v950_v4 = vld [vmem:[%s249_s7 + $0x8] sm:$0xf] (%p52_p3)  ;;  %v952_v5 = vld [vmem:[%s249_s7 + $0x2c] sm:$0xf] (%p52_p3)  ;;  %271 = vst [vmem:[%s243_s8 + $0x24] sm:$0xff] (%p52_p3), %v270_v3 }
  0x15   : > { %951 = vst [vmem:[%s243_s8 + $0x8] sm:$0xf] %v950_v4  ;;  %953 = vst [vmem:[%s243_s8 + $0x14] sm:$0xf] %v952_v5  ;;  %v956_v7 = vld [vmem:[%s249_s7 + $0x74] sm:$0xf] }
  0x16   : > { %955 = vst [vmem:[%s243_s8 + $0x20] sm:$0xf] %v954_v6  ;;  %957 = vst [vmem:[%s243_s8 + $0x2c] sm:$0xf] %v956_v7 }
  0x17 PF: > { %p958_p6 = scmp.ge.s32.totalorder %s1170_s22, 1  ;;  %p303_p7 = scmp.lt.s32.totalorder %s1170_s22, 4 }
  0x19   : > { %p304_p8 = pnand %p958_p6, %p303_p7 }
  0x1a   : > { %s310_s9 = sand.u32 (!%p304_p8), 1, %s1154_s18   ;;  %s364_s10 = smul.u32 (!%p304_p8), 48, %s1162_s20 }
  0x1b   : > { %307 = sbr.rel (%p304_p8) target bundleno = 322 (0x142), region = 62  ;;  %p960_p10 = scmp.ne.s32.totalorder (!%p304_p8), %s1162_s20, 0 }
  0x1c   : > { %s1058_s11 = smul.u32 (!%p304_p8), 48, %s310_s9  ;;  %p365_p9 = scmp.lt.s32.totalorder (!%p304_p8), %s364_s10, 143 }
  0x1e   : > { %s1255_s16 = scalar_lea.vmem (!%p304_p8), [#allocation3], %s1058_s11 }
  0x22   : > { %s1347_s10 = smov (!%p365_p9, %s364_s10), 143  ;;  %401 = sbr.rel (%p960_p10) target bundleno = 41 (0x29), region = 70 }
  0x23   : > { %s959_s12 = sshll.u32 %s1347_s10, 2  ;;  %v1172_v8 = vmov (!%p960_p10), 0.0  }
  0x24   : > { %s1253_s15 = scalar_lea.vmem %s1335_s1, %s959_s12  ;;  %402 = vst [vmem:[#allocation2] sm:$0xff] (!%p960_p10), %v1172_v8  ;;  %403 = vst [vmem:[#allocation2 + $0x8] sm:$0xff] (!%p960_p10), %v1172_v8 }
  0x25   : > { %404 = vst [vmem:[#allocation2 + $0x10] sm:$0xff] (!%p960_p10), %v1172_v8  ;;  %405 = vst [vmem:[#allocation2 + $0x18] sm:$0xff] (!%p960_p10), %v1172_v8 }
  0x29 PF: > { %v1100_v9 = vld [vmem:[%s1253_s15 + $0x40] sm:$0xff]   ;;  %v1103_v12 = vld [vmem:[%s1253_s15 + $0x48] sm:$0xff]   ;;  %v1106_v15 = vld [vmem:[%s1253_s15 + $0x50] sm:$0xff]   ;;  %p991_p11 = scmp.ne.s32.totalorder %s1162_s20, 2 }
  0x2a   : > { %v1101_v10 = vld [vmem:[%s1253_s15] sm:$0xff]   ;;  %999 = vmatprep.subr.bf16.mxu0 %v1100_v9  ;;  %v1104_v13 = vld [vmem:[%s1253_s15 + $0x8] sm:$0xff]   ;;  %v1107_v16 = vld [vmem:[%s1253_s15 + $0x10] sm:$0xff]  }
  0x2b   : > { %v1102_v11 = vld [vmem:[%s1253_s15 + $0x80] sm:$0xff]   ;;  %1000 = vmatpush3.bf16.msra.mxu0 %v1101_v10  ;;  %v1105_v14 = vld [vmem:[%s1253_s15 + $0x88] sm:$0xff]   ;;  %v1108_v17 = vld [vmem:[%s1253_s15 + $0x90] sm:$0xff]  }
  0x2c   : > { %1037 = vmatprep.subr.bf16.mxu1 %v1102_v11  ;;  %1001 = vmatprep.subr.bf16.mxu0 %v1103_v12  ;;  %v1109_v18 = vld [vmem:[%s1253_s15 + $0x58] sm:$0xff]   ;;  %v1112_v21 = vld [vmem:[%s1253_s15 + $0x60] sm:$0xff]   ;;  %v1115_v24 = vld [vmem:[%s1253_s15 + $0x68] sm:$0xff]  }
  0x2d   : > { %1038 = vmatpush3.bf16.msra.mxu1 %v1102_v11  ;;  %v1110_v19 = vld [vmem:[%s1253_s15 + $0x18] sm:$0xff]   ;;  %v1114_v22 = vld [vmem:[%s1253_s15 + $0xa0] sm:$0xff]   ;;  %v1117_v25 = vld [vmem:[%s1253_s15 + $0xa8] sm:$0xff]  }
  0x2e   : > { %1039 = vmatprep.subr.bf16.mxu1 %v1105_v14  ;;  %v1111_v20 = vld [vmem:[%s1253_s15 + $0x98] sm:$0xff]   ;;  %v1113_v23 = vld [vmem:[%s1253_s15 + $0x20] sm:$0xff]   ;;  %v1116_v26 = vld [vmem:[%s1253_s15 + $0x28] sm:$0xff]  }
  0x2f   : > { %1002 = vmatpush3.bf16.msra.mxu0 %v1104_v13  ;;  %v1118_v27 = vld [vmem:[%s1253_s15 + $0x70] sm:$0xff]   ;;  %v1121_v30 = vld [vmem:[%s1253_s15 + $0x78] sm:$0xff]   ;;  %v406_v45 = vld [vmem:[#allocation2] sm:$0xff] }
  0x30   : > { %1003 = vmatprep.subr.bf16.mxu0 %v1106_v15  ;;  %v1119_v28 = vld [vmem:[%s1253_s15 + $0x30] sm:$0xff]   ;;  %v1123_v31 = vld [vmem:[%s1253_s15 + $0xb8] sm:$0xff]   ;;  %v407_v50 = vld [vmem:[#allocation2 + $0x8] sm:$0xff] }
  0x31   : > { %1040 = vmatpush3.bf16.msra.mxu1 %v1105_v14  ;;  %v1120_v29 = vld [vmem:[%s1253_s15 + $0xb0] sm:$0xff]   ;;  %v1122_v34 = vld [vmem:[%s1253_s15 + $0x38] sm:$0xff]   ;;  %v992_v4 = vld [vmem:[%s1336_s2] ss:$0 sm:$0xff] (!%p991_p11) }
  0x32   : > { %1041 = vmatprep.subr.bf16.mxu1 %v1108_v17  ;;  %v1126_v32 = vld [vmem:[%s1255_s16 + $0x4] ss:$12 sps:$4 sm:$0xff]   ;;  %v1127_v33 = vld [vmem:[%s1255_s16 + $0x8] ss:$12 sps:$4 sm:$0xff]   ;;  %v1124_v35 = vld [vmem:[%s1255_s16] ss:$12 sps:$4 sm:$0xff]  }
  0x33   : > { %1004 = vmatpush3.bf16.msra.mxu0 %v1107_v16  ;;  %674 = vmatprep.mubr.bf16.mxu0 %v1126_v32  ;;  %v1129_v36 = vld [vmem:[%s1255_s16 + $0x1c] ss:$12 sps:$4 sm:$0xff]   ;;  %v1128_v37 = vld [vmem:[%s1255_s16 + $0x20] ss:$12 sps:$4 sm:$0xff]   ;;  %v1131_v38 = vld [vmem:[%s1255_s16 + $0x18] ss:$12 sps:$4 sm:$0xff]  }
  0x34   : > { %1005 = vmatprep.subr.bf16.mxu0 %v1109_v18  ;;  %1053 = vmatprep.mubr.bf16.mxu1 %v1127_v33  ;;  %v408_v59 = vld [vmem:[#allocation2 + $0x10] sm:$0xff]  ;;  %v409_v63 = vld [vmem:[#allocation2 + $0x18] sm:$0xff]  ;;  %v993_v5 = vld [vmem:[%s1337_s3] ss:$0 sm:$0xff] (!%p991_p11) }
  0x35   : > { %1042 = vmatpush3.bf16.msra.mxu1 %v1108_v17  ;;  %v782_v14 = vld [vmem:[%s1338_s4] sm:$0xff] (!%p991_p11)  ;;  %v783_v17 = vld [vmem:[%s1338_s4 + $0x8] sm:$0xff] (!%p991_p11) }
  0x36   : > { %1043 = vmatprep.subr.bf16.mxu1 %v1111_v20 }
  0x37   : > { %1006 = vmatpush3.bf16.msra.mxu0 %v1110_v19 }
  0x38   : > { %1007 = vmatprep.subr.bf16.mxu0 %v1112_v21  ;;  %v784_v21 = vld [vmem:[%s1338_s4 + $0x10] sm:$0xff] (!%p991_p11) }
  0x39   : > { %1044 = vmatpush3.bf16.msra.mxu1 %v1111_v20 }
  0x3a   : > { %1045 = vmatprep.subr.bf16.mxu1 %v1114_v22 }
  0x3b   : > { %1008 = vmatpush3.bf16.msra.mxu0 %v1113_v23 }
  0x3c   : > { %1009 = vmatprep.subr.bf16.mxu0 %v1115_v24 }
  0x3d   : > { %1046 = vmatpush3.bf16.msra.mxu1 %v1114_v22  ;;  %v785_v22 = vld [vmem:[%s1338_s4 + $0x18] sm:$0xff] (!%p991_p11) }
  0x3e   : > { %1047 = vmatprep.subr.bf16.mxu1 %v1117_v25 }
  0x3f   : > { %1010 = vmatpush3.bf16.msra.mxu0 %v1116_v26 }
  0x40   : > { %1011 = vmatprep.subr.bf16.mxu0 %v1118_v27 }
  0x41   : > { %1048 = vmatpush3.bf16.msra.mxu1 %v1117_v25 }
  0x42   : > { %1049 = vmatprep.subr.bf16.mxu1 %v1120_v29 }
  0x43   : > { %1012 = vmatpush3.bf16.msra.mxu0 %v1119_v28 }
  0x44   : > { %1013 = vmatprep.subr.bf16.mxu0 %v1121_v30 }
  0x45   : > { %1050 = vmatpush3.bf16.msra.mxu1 %v1120_v29 }
  0x46   : > { %1051 = vmatprep.subr.bf16.mxu1 %v1123_v31 }
  0x47   : > { %1014 = vmatpush3.bf16.msra.mxu0 %v1122_v34 }
  0x49   : > { %1052 = vmatpush3.bf16.msra.mxu1 %v1123_v31 }
  0x4a   : > { %675 = vmatmul.mubr.bf16.vlgmr.msra.gmra.mrb[0].mxu0 %v1124_v35 }
  0x4b   : > { %682 = vmatprep.mubr.bf16.mxu0 %v1129_v36 }
  0x4c   : > { %1054 = vmatmul.mubr.bf16.vlgmr.msra.gmra.mrb[0].mxu1 %v1128_v37 }
  0x52   : > { %683 = vmatmul.mubr.bf16.gmra.mrb[4].mxu0 %v1131_v38 }
 0x11d   : > { %v1015_v39 = vpop.f32.mrb[0].mxu0 }
 0x11e   : > { %v1016_v40 = vpop.f32.mrb[1].mxu0 }
 0x11f   : > { %v1017_v41 = vadd.f32 %v1016_v40, %v1015_v39  ;;  %v1018_v42 = vpop.f32.mrb[2].mxu0  ;;  %v1055_v43 = vpop.f32.mrb[0].mxu1 }
 0x120   : > { %v1019_v44 = vpop.f32.mrb[3].mxu0  ;;  %v725_v46 = vpop.f32.mrb[1].mxu1 }
 0x121   : > { %v1020_v47 = vadd.f32 %v1019_v44, %v1018_v42  ;;  %v726_v48 = vadd.f32 %v1017_v41, %v725_v46  ;;  %v1056_v49 = vpop.f32.mrb[2].mxu1 }
 0x122   : > { %v728_v51 = vpop.f32.mrb[3].mxu1 }
 0x123   : > { %v740_v52 = vadd.f32 %v726_v48, %v406_v45  ;;  %v729_v53 = vadd.f32 %v1020_v47, %v728_v51 }
 0x125   : > { %744 = vst [vmem:[#allocation2] sm:$0xff] %v740_v52  ;;  %v741_v54 = vadd.f32 %v729_v53, %v407_v50  ;;  %v1021_v55 = vpop.f32.mrb[4].mxu0 }
 0x126   : > { %v1022_v56 = vpop.f32.mrb[5].mxu0 }
 0x127   : > { %745 = vst [vmem:[#allocation2 + $0x8] sm:$0xff] %v741_v54  ;;  %v1023_v57 = vadd.f32 %v1022_v56, %v1021_v55  ;;  %v1024_v58 = vpop.f32.mrb[6].mxu0 }
 0x128   : > { %v1025_v60 = vpop.f32.mrb[7].mxu0 }
 0x129   : > { %v734_v61 = vadd.f32 %v1055_v43, %v1023_v57  ;;  %v1026_v62 = vadd.f32 %v1025_v60, %v1024_v58  ;;  %751 = sbr.rel (%p991_p11) target bundleno = 322 (0x142), region = 74 }
 0x12b   : > { %v742_v0 = vadd.f32 %v734_v61, %v408_v59  ;;  %v737_v1 = vadd.f32 %v1056_v49, %v1026_v62 }
 0x12c   : > { %v752_v3 = vld [vmem:[#allocation2] sm:$0xff] (!%p991_p11) }
 0x12d   : > { %746 = vst [vmem:[#allocation2 + $0x10] sm:$0xff] %v742_v0  ;;  %v743_v2 = vadd.f32 %v737_v1, %v409_v63  ;;  %v763_v6 = vmul.f32 (!%p991_p11), %v992_v4, %v752_v3 }
 0x12e   : > { %v753_v7 = vld [vmem:[#allocation2 + $0x8] sm:$0xff] (!%p991_p11) }
 0x12f   : > { %747 = vst [vmem:[#allocation2 + $0x18] sm:$0xff] %v743_v2  ;;  %v764_v8 = vmul.f32 (!%p991_p11), %v992_v4, %v753_v7  ;;  %v774_v11 = vadd.f32 (!%p991_p11), %v993_v5, %v763_v6 }
 0x131   : > { %v775_v15 = vadd.f32 %v993_v5, %v764_v8  ;;  %v778_v16 = vmax.f32 %v774_v11, 0.0 }
 0x133   : > { %v779_v20 = vmax.f32 %v775_v15, 0.0  ;;  %v786_v23 = vadd.f32 %v782_v14, %v778_v16 }
 0x134   : > { %v754_v9 = vld [vmem:[#allocation2 + $0x10] sm:$0xff] }
 0x135   : > { %v765_v12 = vmul.f32 %v992_v4, %v754_v9  ;;  %v787_v26 = vadd.f32 %v783_v17, %v779_v20  ;;  %v790_v27 = vmax.f32 %v786_v23, 0.0 }
 0x136   : > { %v755_v10 = vld [vmem:[#allocation2 + $0x18] sm:$0xff] }
 0x137   : > { %v766_v13 = vmul.f32 %v992_v4, %v755_v10  ;;  %v776_v18 = vadd.f32 %v993_v5, %v765_v12  ;;  %v791_v30 = vmax.f32 %v787_v26, 0.0  ;;  %794 = vst [vmem:[%s1339_s5] sm:$0xff] %v790_v27 }
 0x139   : > { %v777_v19 = vadd.f32 %v993_v5, %v766_v13  ;;  %v780_v24 = vmax.f32 %v776_v18, 0.0  ;;  %795 = vst [vmem:[%s1339_s5 + $0x8] sm:$0xff] %v791_v30 }
 0x13b   : > { %v781_v25 = vmax.f32 %v777_v19, 0.0  ;;  %v788_v28 = vadd.f32 %v784_v21, %v780_v24 }
 0x13d   : > { %v789_v29 = vadd.f32 %v785_v22, %v781_v25  ;;  %v792_v31 = vmax.f32 %v788_v28, 0.0 }
 0x13f   : > { %v793_v32 = vmax.f32 %v789_v29, 0.0  ;;  %796 = vst [vmem:[%s1339_s5 + $0x10] sm:$0xff] %v792_v31 }
 0x141   : > { %797 = vst [vmem:[%s1339_s5 + $0x18] sm:$0xff] %v793_v32 }
 0x142 PF: > { %s15_s22 = sadd.s32 1, %s1170_s22   ;;  %s1340_s18 = smov %s1158_s19 }
 0x143   : > { %p12_p12 = scmp.ge.s32.totalorder %s15_s22, 5   ;;  %s1341_s19 = smov %s1238_s26 }
 0x144   : > { %s1342_s20 = smov %s1166_s21  ;;  %s1343_s21 = smov %s1345_s23 }
 0x145   :  { %14 = sbr.rel (!%p12_p12) target bundleno = 3 (0x3), region = 127 }

// kernel: _lambda_.22
= control target key start
LH: loop header
LB: loop body
LE: loop exit
PB: predicated region body
PF: predicated region fallthrough
CT: control target
= control target key end

     0   :  { %s1105_s15 = smov 0   ;;  %s1107_s16 = smov 0   ;;  %s1210_s0 = inlined_call_operand.vmem [shape: bf16[8,1152], index: 0, kind: input, shape index: {}]   ;;  %s1211_s1 = inlined_call_operand.vmem [shape: bf16[1152,256], index: 1, kind: input, shape index: {}]   ;;  %s1212_s2 = inlined_call_operand.vmem [shape: f32[1,256], index: 2, kind: input, shape index: {}]   ;;  %s1213_s3 = inlined_call_operand.vmem [shape: f32[1,256], index: 3, kind: input, shape index: {}]   ;;  %s1214_s4 = inlined_call_operand.vmem [shape: f32[8,256], index: 4, kind: output, shape index: {}]  }
   0x1   :  { %s1109_s17 = smov 0  }
   0x2 LB: > { %s26_s18 = sadd.s32 1, %s1072_s16  ;;  %p891_p0 = scmp.ge.s32.totalorder %s1076_s17, 1  ;;  %s1076_s17 = sphi %s1109_s17, %s14_s17   ;;  %s1072_s16 = sphi %s1107_s16, %s1216_s16   ;;  %s1068_s15 = sphi %s1105_s15, %s1215_s15  }
   0x3   : > { %p27_p1 = scmp.ge.s32.totalorder %s26_s18, 3  ;;  %p229_p2 = scmp.lt.s32.totalorder %s1076_s17, 4 }
   0x5   : > { %s1218_s18 = smov (%p27_p1, %s26_s18), 0  ;;  %p230_p3 = pnand %p891_p0, %p229_p2 }
   0x6   : > { %s281_s19 = smul.u32 (!%p230_p3), 3, %s1068_s15  ;;  %p895_p6 = scmp.ne.s32.totalorder (!%p230_p3), %s1068_s15, 0 }
   0x7   : > { %233 = sbr.rel (%p230_p3) target bundleno = 321 (0x141), region = 36 }
   0x8   : > { %s291_s20 = smul.u32 (!%p230_p3), 48, %s1068_s15  ;;  %p284_p4 = scmp.lt.s32.totalorder (!%p230_p3), %s281_s19, 8 }
   0xa   : > { %p293_p5 = scmp.lt.s32.totalorder (!%p230_p3), %s291_s20, 143 }
   0xe   : > { %s1220_s19 = smov (!%p284_p4, %s281_s19), 8  ;;  %s1222_s20 = smov (!%p293_p5, %s291_s20), 143 }
   0xf   : > { %s892_s21 = sshll.u32 %s1220_s19, 2  ;;  %s952_s25 = sshll.u32 %s1222_s20, 3  ;;  %v1078_v0 = vmov (!%p895_p6), 0.0  }
  0x10   : > { %s1130_s24 = scalar_lea.vmem %s1210_s0, %s892_s21  ;;  %s1135_s28 = scalar_lea.vmem %s1211_s1, %s952_s25  ;;  %328 = vst [vmem:[#allocation2] sm:$0xff] (!%p895_p6), %v1078_v0  ;;  %329 = vst [vmem:[#allocation2 + $0x8] sm:$0xff] (!%p895_p6), %v1078_v0 }
  0x11   : > { %327 = sbr.rel (%p895_p6) target bundleno = 24 (0x18), region = 40 }
  0x18 PF: > { %v979_v1 = vld [vmem:[%s1135_s28 + $0x4] ss:$8 sps:$4 sm:$0xff]   ;;  %v981_v2 = vld [vmem:[%s1135_s28] ss:$8 sps:$4 sm:$0xff]   ;;  %v1079_v3 = vmov 0   ;;  %p947_p7 = scmp.ne.s32.totalorder %s1068_s15, 2 }
  0x19   : > { %706 = vmatprep.mubr.bf16.mxu1 %v1079_v3  ;;  %633 = vmatprep.subr.bf16.mxu0 %v979_v1  ;;  %v982_v4 = vld [vmem:[%s1135_s28 + $0x14] ss:$8 sps:$4 sm:$0xff]   ;;  %v984_v5 = vld [vmem:[%s1135_s28 + $0x10] ss:$8 sps:$4 sm:$0xff]   ;;  %v985_v6 = vld [vmem:[%s1135_s28 + $0x24] ss:$8 sps:$4 sm:$0xff]  }
  0x1a   : > { %634 = vmatpush1.bf16.msra.mxu0 %v981_v2  ;;  %v987_v7 = vld [vmem:[%s1135_s28 + $0x20] ss:$8 sps:$4 sm:$0xff]   ;;  %v988_v8 = vld [vmem:[%s1135_s28 + $0x34] ss:$8 sps:$4 sm:$0xff]   ;;  %v990_v9 = vld [vmem:[%s1135_s28 + $0x30] ss:$8 sps:$4 sm:$0xff]  }
  0x1b   : > { %635 = vmatprep.subr.bf16.mxu0 %v982_v4  ;;  %v1003_v10 = vld [vmem:[%s1135_s28 + $0x104] ss:$8 sps:$4 sm:$0xff]   ;;  %v1005_v11 = vld [vmem:[%s1135_s28 + $0x100] ss:$8 sps:$4 sm:$0xff]   ;;  %v1009_v13 = vld [vmem:[%s1135_s28 + $0x114] ss:$8 sps:$4 sm:$0xff]   ;;  %v727_v4 = vlaneseq (!%p947_p7) }
  0x1c   : > { %v991_v12 = vld [vmem:[%s1135_s28 + $0x44] ss:$8 sps:$4 sm:$0xff]   ;;  %674 = vmatprep.subr.bf16.mxu1 %v1003_v10  ;;  %v1011_v14 = vld [vmem:[%s1135_s28 + $0x110] ss:$8 sps:$4 sm:$0xff]   ;;  %v993_v15 = vld [vmem:[%s1135_s28 + $0x40] ss:$8 sps:$4 sm:$0xff]  }
  0x1d   : > { %675 = vmatpush1.bf16.msra.mxu1 %v1005_v11  ;;  %v994_v16 = vld [vmem:[%s1135_s28 + $0x54] ss:$8 sps:$4 sm:$0xff]   ;;  %v1015_v17 = vld [vmem:[%s1135_s28 + $0x124] ss:$8 sps:$4 sm:$0xff]   ;;  %v1017_v18 = vld [vmem:[%s1135_s28 + $0x120] ss:$8 sps:$4 sm:$0xff]  }
  0x1e   : > { %636 = vmatpush1.bf16.msra.mxu0 %v984_v5  ;;  %676 = vmatprep.subr.bf16.mxu1 %v1009_v13  ;;  %v996_v19 = vld [vmem:[%s1135_s28 + $0x50] ss:$8 sps:$4 sm:$0xff]   ;;  %v1021_v20 = vld [vmem:[%s1135_s28 + $0x134] ss:$8 sps:$4 sm:$0xff]   ;;  %v997_v21 = vld [vmem:[%s1135_s28 + $0x64] ss:$8 sps:$4 sm:$0xff]  }
  0x1f   : > { %637 = vmatprep.subr.bf16.mxu0 %v985_v6  ;;  %v1023_v22 = vld [vmem:[%s1135_s28 + $0x130] ss:$8 sps:$4 sm:$0xff]   ;;  %v999_v23 = vld [vmem:[%s1135_s28 + $0x60] ss:$8 sps:$4 sm:$0xff]   ;;  %v1027_v24 = vld [vmem:[%s1135_s28 + $0x144] ss:$8 sps:$4 sm:$0xff]  }
  0x20   : > { %v1000_v25 = vld [vmem:[%s1135_s28 + $0x74] ss:$8 sps:$4 sm:$0xff]   ;;  %v1029_v26 = vld [vmem:[%s1135_s28 + $0x140] ss:$8 sps:$4 sm:$0xff]   ;;  %v1002_v27 = vld [vmem:[%s1135_s28 + $0x70] ss:$8 sps:$4 sm:$0xff]  }
  0x21   : > { %677 = vmatpush1.bf16.msra.mxu1 %v1011_v14  ;;  %v1033_v28 = vld [vmem:[%s1135_s28 + $0x154] ss:$8 sps:$4 sm:$0xff]   ;;  %v1006_v29 = vld [vmem:[%s1135_s28 + $0x84] ss:$8 sps:$4 sm:$0xff]   ;;  %v1035_v30 = vld [vmem:[%s1135_s28 + $0x150] ss:$8 sps:$4 sm:$0xff]  }
  0x22   : > { %638 = vmatpush1.bf16.msra.mxu0 %v987_v7  ;;  %678 = vmatprep.subr.bf16.mxu1 %v1015_v17  ;;  %v1008_v31 = vld [vmem:[%s1135_s28 + $0x80] ss:$8 sps:$4 sm:$0xff]   ;;  %v1039_v32 = vld [vmem:[%s1135_s28 + $0x164] ss:$8 sps:$4 sm:$0xff]   ;;  %v1012_v33 = vld [vmem:[%s1135_s28 + $0x94] ss:$8 sps:$4 sm:$0xff]  }
  0x23   : > { %639 = vmatprep.subr.bf16.mxu0 %v988_v8  ;;  %v332_v34 = vld [vmem:[%s1130_s24] sm:$0xff]  ;;  %v1014_v37 = vld [vmem:[%s1135_s28 + $0x90] ss:$8 sps:$4 sm:$0xff]   ;;  %v1045_v38 = vld [vmem:[%s1135_s28 + $0x174] ss:$8 sps:$4 sm:$0xff]   ;;  %v728_v5 = vshrl.u32 (!%p947_p7), %v727_v4, 7 }
  0x24   : > { %v897_v35 = vcombine.high %v332_v34, %v332_v34  ;;  %v1041_v36 = vld [vmem:[%s1135_s28 + $0x160] ss:$8 sps:$4 sm:$0xff]   ;;  %v1018_v39 = vld [vmem:[%s1135_s28 + $0xa4] ss:$8 sps:$4 sm:$0xff]   ;;  %v1047_v40 = vld [vmem:[%s1135_s28 + $0x170] ss:$8 sps:$4 sm:$0xff]   ;;  %v896_v53 = vcombine.low %v332_v34, %v332_v34 }
  0x25   : > { %679 = vmatpush1.bf16.msra.mxu1 %v1017_v18  ;;  %v1020_v41 = vld [vmem:[%s1135_s28 + $0xa0] ss:$8 sps:$4 sm:$0xff]   ;;  %v1024_v42 = vld [vmem:[%s1135_s28 + $0xb4] ss:$8 sps:$4 sm:$0xff]   ;;  %v1026_v44 = vld [vmem:[%s1135_s28 + $0xb0] ss:$8 sps:$4 sm:$0xff]  }
  0x26   : > { %640 = vmatpush1.bf16.msra.mxu0 %v990_v9  ;;  %680 = vmatprep.subr.bf16.mxu1 %v1021_v20  ;;  %v1051_v43 = vld [vmem:[%s1130_s24 + $0x8] ss:$0 sps:$4 sm:$0xff]   ;;  %v1030_v45 = vld [vmem:[%s1135_s28 + $0xc4] ss:$8 sps:$4 sm:$0xff]   ;;  %v1036_v47 = vld [vmem:[%s1135_s28 + $0xd4] ss:$8 sps:$4 sm:$0xff]  }
  0x27   : > { %641 = vmatprep.subr.bf16.mxu0 %v991_v12  ;;  %665 = vmatprep.mubr.bf16.mxu0 %v897_v35  ;;  %v1032_v46 = vld [vmem:[%s1135_s28 + $0xc0] ss:$8 sps:$4 sm:$0xff]   ;;  %v1038_v48 = vld [vmem:[%s1135_s28 + $0xd0] ss:$8 sps:$4 sm:$0xff]   ;;  %v1042_v49 = vld [vmem:[%s1135_s28 + $0xe4] ss:$8 sps:$4 sm:$0xff]  }
  0x28   : > { %v1044_v50 = vld [vmem:[%s1135_s28 + $0xe0] ss:$8 sps:$4 sm:$0xff]   ;;  %v1048_v51 = vld [vmem:[%s1135_s28 + $0xf4] ss:$8 sps:$4 sm:$0xff]   ;;  %v1050_v52 = vld [vmem:[%s1135_s28 + $0xf0] ss:$8 sps:$4 sm:$0xff]  }
  0x29   : > { %681 = vmatpush1.bf16.msra.mxu1 %v1023_v22  ;;  %v330_v58 = vld [vmem:[#allocation2] sm:$0xff]  ;;  %v331_v61 = vld [vmem:[#allocation2 + $0x8] sm:$0xff]  ;;  %v729_v8 = vsub.s32 (!%p947_p7), 0, %v728_v5  ;;  %v733_v9 = vsub.s32 (!%p947_p7), 1, %v728_v5 }
  0x2a   : > { %642 = vmatpush1.bf16.msra.mxu0 %v993_v15  ;;  %682 = vmatprep.subr.bf16.mxu1 %v1027_v24  ;;  %v725_v6 = vld [vmem:[%s1212_s2] sm:$0x3] (!%p947_p7) }
  0x2b   : > { %643 = vmatprep.subr.bf16.mxu0 %v994_v16  ;;  %v739_v7 = vld [vmem:[%s1213_s3] sm:$0x3] (!%p947_p7)  ;;  %v730_v12 = vrot.slane (!%p947_p7), %v725_v6, %v729_v8  ;;  %v734_v14 = vrot.slane (!%p947_p7), %v725_v6, %v733_v9 }
  0x2c   : > { %v744_v13 = vrot.slane (!%p947_p7), %v739_v7, %v729_v8  ;;  %v748_v15 = vrot.slane (!%p947_p7), %v739_v7, %v733_v9 }
  0x2d   : > { %683 = vmatpush1.bf16.msra.mxu1 %v1029_v26 }
  0x2e   : > { %644 = vmatpush1.bf16.msra.mxu0 %v996_v19  ;;  %684 = vmatprep.subr.bf16.mxu1 %v1033_v28 }
  0x2f   : > { %645 = vmatprep.subr.bf16.mxu0 %v997_v21 }
  0x31   : > { %685 = vmatpush1.bf16.msra.mxu1 %v1035_v30 }
  0x32   : > { %646 = vmatpush1.bf16.msra.mxu0 %v999_v23  ;;  %686 = vmatprep.subr.bf16.mxu1 %v1039_v32 }
  0x33   : > { %647 = vmatprep.subr.bf16.mxu0 %v1000_v25 }
  0x35   : > { %687 = vmatpush1.bf16.msra.mxu1 %v1041_v36 }
  0x36   : > { %648 = vmatpush1.bf16.msra.mxu0 %v1002_v27  ;;  %688 = vmatprep.subr.bf16.mxu1 %v1045_v38 }
  0x37   : > { %649 = vmatprep.subr.bf16.mxu0 %v1006_v29 }
  0x39   : > { %689 = vmatpush1.bf16.msra.mxu1 %v1047_v40 }
  0x3a   : > { %650 = vmatpush1.bf16.msra.mxu0 %v1008_v31 }
  0x3b   : > { %651 = vmatprep.subr.bf16.mxu0 %v1012_v33 }
  0x3c   : > { %707 = vmatmul.mubr.bf16.vlgmr.msra.gmra.mrb[0].mxu1 %v1051_v43 }
  0x3e   : > { %652 = vmatpush1.bf16.msra.mxu0 %v1014_v37 }
  0x3f   : > { %653 = vmatprep.subr.bf16.mxu0 %v1018_v39 }
  0x42   : > { %654 = vmatpush1.bf16.msra.mxu0 %v1020_v41 }
  0x43   : > { %655 = vmatprep.subr.bf16.mxu0 %v1024_v42 }
  0x46   : > { %656 = vmatpush1.bf16.msra.mxu0 %v1026_v44 }
  0x47   : > { %657 = vmatprep.subr.bf16.mxu0 %v1030_v45 }
  0x4a   : > { %658 = vmatpush1.bf16.msra.mxu0 %v1032_v46 }
  0x4b   : > { %659 = vmatprep.subr.bf16.mxu0 %v1036_v47 }
  0x4e   : > { %660 = vmatpush1.bf16.msra.mxu0 %v1038_v48 }
  0x4f   : > { %661 = vmatprep.subr.bf16.mxu0 %v1042_v49 }
  0x52   : > { %662 = vmatpush1.bf16.msra.mxu0 %v1044_v50 }
  0x53   : > { %663 = vmatprep.subr.bf16.mxu0 %v1048_v51 }
  0x56   : > { %664 = vmatpush1.bf16.msra.mxu0 %v1050_v52 }
  0x59   : > { %666 = vmatmul.mubr.bf16.vlgmr.msra.gmra.mrb[0].mxu0 %v896_v53 }
 0x10f   : > { %v708_v54 = vpop.f32.mrb[0].mxu1 }
 0x110   : > { %v710_v55 = vpop.f32.mrb[1].mxu1 }
 0x111   : > { %v712_v56 = vpop.f32.mrb[2].mxu1 }
 0x112   : > { %v713_v57 = vpop.f32.mrb[3].mxu1 }
 0x12c   : > { %v667_v59 = vpop.f32.mrb[0].mxu0  ;;  %722 = sbr.rel (%p947_p7) target bundleno = 321 (0x141), region = 44 }
 0x12d   : > { %v709_v60 = vadd.f32 %v708_v54, %v667_v59  ;;  %v669_v62 = vpop.f32.mrb[1].mxu0 }
 0x12e   : > { %v711_v63 = vadd.f32 %v710_v55, %v669_v62  ;;  %v671_v0 = vpop.f32.mrb[2].mxu0 }
 0x12f   : > { %v715_v1 = vadd.f32 %v709_v60, %v330_v58  ;;  %v672_v2 = vpop.f32.mrb[3].mxu0 }
 0x130   : > { %v716_v3 = vadd.f32 %v711_v63, %v331_v61 }
 0x131   : > { %717 = vst [vmem:[#allocation2] sm:$0xff] %v715_v1 }
 0x132   : > { %718 = vst [vmem:[#allocation2 + $0x8] sm:$0xff] %v716_v3 }
 0x138   : > { %v723_v10 = vld [vmem:[#allocation2] sm:$0xff] }
 0x139   : > { %v724_v11 = vld [vmem:[#allocation2 + $0x8] sm:$0xff]  ;;  %v737_v16 = vmul.f32 %v730_v12, %v723_v10 }
 0x13a   : > { %v738_v17 = vmul.f32 %v734_v14, %v724_v11 }
 0x13b   : > { %v751_v18 = vadd.f32 %v744_v13, %v737_v16 }
 0x13c   : > { %v752_v19 = vadd.f32 %v748_v15, %v738_v17 }
 0x13d   : > { %v753_v20 = vmax.f32 %v751_v18, 0.0 }
 0x13e   : > { %v754_v21 = vmax.f32 %v752_v19, 0.0 }
 0x13f   : > { %755 = vst [vmem:[%s1214_s4] sm:$0xff] %v753_v20 }
 0x140   : > { %756 = vst [vmem:[%s1214_s4 + $0x8] sm:$0xff] %v754_v21 }
 0x141 PF: > { %s14_s17 = sadd.s32 1, %s1076_s17   ;;  %s1215_s15 = smov %s1072_s16 }
 0x142   : > { %p11_p8 = scmp.ge.s32.totalorder %s14_s17, 5   ;;  %s1216_s16 = smov %s1218_s18 }
 0x144   :  { %13 = sbr.rel (!%p11_p8) target bundleno = 2 (0x2), region = 83 }

// kernel: _lambda_.21
= control target key start
LH: loop header
LB: loop body
LE: loop exit
PB: predicated region body
PF: predicated region fallthrough
CT: control target
= control target key end

     0   :  { %v248_v1 = vmov 0   ;;  %v175_v18 = vlaneseq  ;;  %s337_s1 = inlined_call_operand.vmem [shape: bf16[128,256], index: 1, kind: input, shape index: {}]   ;;  %s338_s0 = inlined_call_operand.vmem [shape: bf16[8,128], index: 0, kind: input, shape index: {}]   ;;  %s339_s2 = inlined_call_operand.vmem [shape: f32[1,256], index: 2, kind: input, shape index: {}]   ;;  %s340_s3 = inlined_call_operand.vmem [shape: f32[1,256], index: 3, kind: input, shape index: {}]   ;;  %s341_s4 = inlined_call_operand.vmem [shape: f32[8,256], index: 4, kind: output, shape index: {}]  }
   0x1   :  { %v224_v0 = vld [vmem:[%s337_s1 + $0x4] ss:$8 sps:$4 sm:$0xff]   ;;  %155 = vmatprep.mubr.bf16.mxu0 %v248_v1  ;;  %v226_v2 = vld [vmem:[%s337_s1] ss:$8 sps:$4 sm:$0xff]   ;;  %v227_v3 = vld [vmem:[%s337_s1 + $0x14] ss:$8 sps:$4 sm:$0xff]  }
   0x2   :  { %123 = vmatprep.subr.bf16.mxu0 %v224_v0  ;;  %v229_v4 = vld [vmem:[%s337_s1 + $0x10] ss:$8 sps:$4 sm:$0xff]   ;;  %v230_v5 = vld [vmem:[%s337_s1 + $0x24] ss:$8 sps:$4 sm:$0xff]   ;;  %v232_v6 = vld [vmem:[%s337_s1 + $0x20] ss:$8 sps:$4 sm:$0xff]  }
   0x3   :  { %124 = vmatpush1.bf16.msra.mxu0 %v226_v2  ;;  %v233_v7 = vld [vmem:[%s337_s1 + $0x34] ss:$8 sps:$4 sm:$0xff]   ;;  %v235_v8 = vld [vmem:[%s337_s1 + $0x30] ss:$8 sps:$4 sm:$0xff]   ;;  %v236_v9 = vld [vmem:[%s337_s1 + $0x44] ss:$8 sps:$4 sm:$0xff]  }
   0x4   :  { %125 = vmatprep.subr.bf16.mxu0 %v227_v3  ;;  %v238_v10 = vld [vmem:[%s337_s1 + $0x40] ss:$8 sps:$4 sm:$0xff]   ;;  %v239_v11 = vld [vmem:[%s337_s1 + $0x54] ss:$8 sps:$4 sm:$0xff]   ;;  %v241_v12 = vld [vmem:[%s337_s1 + $0x50] ss:$8 sps:$4 sm:$0xff]  }
   0x5   :  { %v242_v13 = vld [vmem:[%s337_s1 + $0x64] ss:$8 sps:$4 sm:$0xff]   ;;  %v244_v14 = vld [vmem:[%s337_s1 + $0x60] ss:$8 sps:$4 sm:$0xff]   ;;  %v245_v15 = vld [vmem:[%s337_s1 + $0x74] ss:$8 sps:$4 sm:$0xff]  }
   0x6   :  { %v247_v16 = vld [vmem:[%s337_s1 + $0x70] ss:$8 sps:$4 sm:$0xff]   ;;  %v26_v17 = vld [vmem:[%s338_s0] sm:$0xf]  ;;  %v176_v19 = vshrl.u32 %v175_v18, 7 }
   0x7   :  { %126 = vmatpush1.bf16.msra.mxu0 %v229_v4  ;;  %v173_v21 = vld [vmem:[%s339_s2] sm:$0x3] }
   0x8   :  { %127 = vmatprep.subr.bf16.mxu0 %v230_v5  ;;  %v177_v20 = vsub.s32 0, %v176_v19  ;;  %v181_v22 = vsub.s32 1, %v176_v19  ;;  %v187_v23 = vld [vmem:[%s340_s3] sm:$0x3] }
   0xa   :  { %v178_v24 = vrot.slane %v173_v21, %v177_v20  ;;  %v182_v25 = vrot.slane %v173_v21, %v181_v22  ;;  %v192_v26 = vrot.slane %v187_v23, %v177_v20  ;;  %v196_v28 = vrot.slane %v187_v23, %v181_v22 }
   0xb   :  { %128 = vmatpush1.bf16.msra.mxu0 %v232_v6 }
   0xc   :  { %129 = vmatprep.subr.bf16.mxu0 %v233_v7 }
   0xf   :  { %130 = vmatpush1.bf16.msra.mxu0 %v235_v8 }
  0x10   :  { %131 = vmatprep.subr.bf16.mxu0 %v236_v9 }
  0x13   :  { %132 = vmatpush1.bf16.msra.mxu0 %v238_v10 }
  0x14   :  { %133 = vmatprep.subr.bf16.mxu0 %v239_v11 }
  0x17   :  { %134 = vmatpush1.bf16.msra.mxu0 %v241_v12 }
  0x18   :  { %135 = vmatprep.subr.bf16.mxu0 %v242_v13 }
  0x1b   :  { %136 = vmatpush1.bf16.msra.mxu0 %v244_v14 }
  0x1c   :  { %137 = vmatprep.subr.bf16.mxu0 %v245_v15 }
  0x1f   :  { %138 = vmatpush1.bf16.msra.mxu0 %v247_v16 }
  0x22   :  { %156 = vmatmul.mubr.bf16.vlgmr.msra.gmra.mrb[0].mxu0 %v26_v17 }
  0xf5   :  { %v157_v27 = vpop.f32.mrb[0].mxu0 }
  0xf6   :  { %v185_v29 = vmul.f32 %v178_v24, %v157_v27  ;;  %v159_v30 = vpop.f32.mrb[1].mxu0 }
  0xf7   :  { %v186_v31 = vmul.f32 %v182_v25, %v159_v30  ;;  %v161_v32 = vpop.f32.mrb[2].mxu0 }
  0xf8   :  { %v199_v33 = vadd.f32 %v192_v26, %v185_v29  ;;  %v162_v34 = vpop.f32.mrb[3].mxu0 }
  0xf9   :  { %v200_v35 = vadd.f32 %v196_v28, %v186_v31 }
  0xfa   :  { %201 = vst [vmem:[%s341_s4] sm:$0xff] %v199_v33 }
  0xfb   :  { %202 = vst [vmem:[%s341_s4 + $0x8] sm:$0xff] %v200_v35 }

// kernel: _lambda_.23
= control target key start
LH: loop header
LB: loop body
LE: loop exit
PB: predicated region body
PF: predicated region fallthrough
CT: control target
= control target key end

     0   :  { %s1664_s18 = smov 0   ;;  %s1666_s19 = smov 0   ;;  %s1830_s0 = inlined_call_operand.vmem [shape: bf16[8,2304], index: 0, kind: input, shape index: {}]   ;;  %s1831_s1 = inlined_call_operand.vmem [shape: bf16[2304,256], index: 1, kind: input, shape index: {}]   ;;  %s1832_s2 = inlined_call_operand.vmem [shape: f32[1,256], index: 2, kind: input, shape index: {}]   ;;  %s1833_s3 = inlined_call_operand.vmem [shape: f32[1,256], index: 3, kind: input, shape index: {}]   ;;  %s1834_s4 = inlined_call_operand.vmem [shape: f32[8,256], index: 4, kind: input, shape index: {}]   ;;  %s1835_s5 = inlined_call_operand.vmem [shape: f32[8,256], index: 5, kind: output, shape index: {}]  }
   0x1   :  { %s1668_s20 = smov 0  }
   0x2 LB: > { %s27_s21 = sadd.s32 1, %s1627_s19  ;;  %p1321_p0 = scmp.ge.s32.totalorder %s1631_s20, 1  ;;  %s1631_s20 = sphi %s1668_s20, %s15_s20   ;;  %s1627_s19 = sphi %s1666_s19, %s1837_s19   ;;  %s1623_s18 = sphi %s1664_s18, %s1836_s18  }
   0x3   : > { %p28_p1 = scmp.ge.s32.totalorder %s27_s21, 3  ;;  %p271_p2 = scmp.lt.s32.totalorder %s1631_s20, 4 }
   0x5   : > { %s1839_s21 = smov (%p28_p1, %s27_s21), 0  ;;  %p272_p3 = pnand %p1321_p0, %p271_p2 }
   0x6   : > { %s334_s22 = smul.u32 (!%p272_p3), 6, %s1623_s18  ;;  %p1325_p6 = scmp.ne.s32.totalorder (!%p272_p3), %s1623_s18, 0 }
   0x7   : > { %275 = sbr.rel (%p272_p3) target bundleno = 389 (0x185), region = 40 }
   0x8   : > { %s344_s23 = smul.u32 (!%p272_p3), 96, %s1623_s18  ;;  %p337_p4 = scmp.lt.s32.totalorder (!%p272_p3), %s334_s22, 17 }
   0xa   : > { %p346_p5 = scmp.lt.s32.totalorder (!%p272_p3), %s344_s23, 287 }
   0xe   : > { %s1841_s22 = smov (!%p337_p4, %s334_s22), 17  ;;  %s1843_s23 = smov (!%p346_p5, %s344_s23), 287 }
   0xf   : > { %s1322_s24 = sshll.u32 %s1841_s22, 2  ;;  %s1433_s28 = sshll.u32 %s1843_s23, 3  ;;  %v1633_v0 = vmov (!%p1325_p6), 0.0  }
  0x10   : > { %s1689_s27 = scalar_lea.vmem %s1830_s0, %s1322_s24  ;;  %s1694_s6 = scalar_lea.vmem %s1831_s1, %s1433_s28  ;;  %390 = vst [vmem:[#allocation2] sm:$0xff] (!%p1325_p6), %v1633_v0  ;;  %391 = vst [vmem:[#allocation2 + $0x8] sm:$0xff] (!%p1325_p6), %v1633_v0 }
  0x11   : > { %389 = sbr.rel (%p1325_p6) target bundleno = 24 (0x18), region = 44 }
  0x18 PF: > { %v1459_v1 = vld [vmem:[%s1694_s6 + $0x4] ss:$8 sps:$4 sm:$0xff]   ;;  %v1463_v3 = vld [vmem:[%s1694_s6] ss:$8 sps:$4 sm:$0xff]   ;;  %v1465_v5 = vld [vmem:[%s1694_s6 + $0x14] ss:$8 sps:$4 sm:$0xff]  }
  0x19   : > { %v1461_v2 = vld [vmem:[%s1694_s6 + $0x104] ss:$8 sps:$4 sm:$0xff]   ;;  %994 = vmatprep.subr.bf16.mxu0 %v1459_v1  ;;  %v1464_v4 = vld [vmem:[%s1694_s6 + $0x100] ss:$8 sps:$4 sm:$0xff]   ;;  %v1467_v6 = vld [vmem:[%s1694_s6 + $0x114] ss:$8 sps:$4 sm:$0xff]  }
  0x1a   : > { %1035 = vmatprep.subr.bf16.mxu1 %v1461_v2  ;;  %995 = vmatpush1.bf16.msra.mxu0 %v1463_v3  ;;  %v1469_v7 = vld [vmem:[%s1694_s6 + $0x10] ss:$8 sps:$4 sm:$0xff]   ;;  %v1471_v9 = vld [vmem:[%s1694_s6 + $0x24] ss:$8 sps:$4 sm:$0xff]   ;;  %v1475_v11 = vld [vmem:[%s1694_s6 + $0x20] ss:$8 sps:$4 sm:$0xff]  }
  0x1b   : > { %1036 = vmatpush1.bf16.msra.mxu1 %v1464_v4  ;;  %996 = vmatprep.subr.bf16.mxu0 %v1465_v5  ;;  %v1470_v8 = vld [vmem:[%s1694_s6 + $0x110] ss:$8 sps:$4 sm:$0xff]   ;;  %v1473_v10 = vld [vmem:[%s1694_s6 + $0x124] ss:$8 sps:$4 sm:$0xff]   ;;  %v1476_v12 = vld [vmem:[%s1694_s6 + $0x120] ss:$8 sps:$4 sm:$0xff]  }
  0x1c   : > { %1037 = vmatprep.subr.bf16.mxu1 %v1467_v6  ;;  %v1477_v13 = vld [vmem:[%s1694_s6 + $0x34] ss:$8 sps:$4 sm:$0xff]   ;;  %v1481_v15 = vld [vmem:[%s1694_s6 + $0x30] ss:$8 sps:$4 sm:$0xff]   ;;  %v1483_v17 = vld [vmem:[%s1694_s6 + $0x44] ss:$8 sps:$4 sm:$0xff]  }
  0x1d   : > { %v1479_v14 = vld [vmem:[%s1694_s6 + $0x134] ss:$8 sps:$4 sm:$0xff]   ;;  %v1482_v16 = vld [vmem:[%s1694_s6 + $0x130] ss:$8 sps:$4 sm:$0xff]   ;;  %v1485_v18 = vld [vmem:[%s1694_s6 + $0x144] ss:$8 sps:$4 sm:$0xff]  }
  0x1e   : > { %997 = vmatpush1.bf16.msra.mxu0 %v1469_v7  ;;  %v1487_v19 = vld [vmem:[%s1694_s6 + $0x40] ss:$8 sps:$4 sm:$0xff]   ;;  %v1489_v21 = vld [vmem:[%s1694_s6 + $0x54] ss:$8 sps:$4 sm:$0xff]   ;;  %v1493_v23 = vld [vmem:[%s1694_s6 + $0x50] ss:$8 sps:$4 sm:$0xff]  }
  0x1f   : > { %1038 = vmatpush1.bf16.msra.mxu1 %v1470_v8  ;;  %998 = vmatprep.subr.bf16.mxu0 %v1471_v9  ;;  %v1488_v20 = vld [vmem:[%s1694_s6 + $0x140] ss:$8 sps:$4 sm:$0xff]   ;;  %v1491_v22 = vld [vmem:[%s1694_s6 + $0x154] ss:$8 sps:$4 sm:$0xff]   ;;  %v1494_v24 = vld [vmem:[%s1694_s6 + $0x150] ss:$8 sps:$4 sm:$0xff]  }
  0x20   : > { %1039 = vmatprep.subr.bf16.mxu1 %v1473_v10  ;;  %v1495_v25 = vld [vmem:[%s1694_s6 + $0x64] ss:$8 sps:$4 sm:$0xff]   ;;  %v1499_v27 = vld [vmem:[%s1694_s6 + $0x60] ss:$8 sps:$4 sm:$0xff]   ;;  %v1501_v29 = vld [vmem:[%s1694_s6 + $0x74] ss:$8 sps:$4 sm:$0xff]  }
  0x21   : > { %v1497_v26 = vld [vmem:[%s1694_s6 + $0x164] ss:$8 sps:$4 sm:$0xff]   ;;  %v1500_v28 = vld [vmem:[%s1694_s6 + $0x160] ss:$8 sps:$4 sm:$0xff]   ;;  %v1503_v30 = vld [vmem:[%s1694_s6 + $0x174] ss:$8 sps:$4 sm:$0xff]  }
  0x22   : > { %999 = vmatpush1.bf16.msra.mxu0 %v1475_v11  ;;  %v1505_v31 = vld [vmem:[%s1694_s6 + $0x70] ss:$8 sps:$4 sm:$0xff]   ;;  %v1507_v33 = vld [vmem:[%s1694_s6 + $0x84] ss:$8 sps:$4 sm:$0xff]   ;;  %v1511_v35 = vld [vmem:[%s1694_s6 + $0x80] ss:$8 sps:$4 sm:$0xff]  }
  0x23   : > { %1040 = vmatpush1.bf16.msra.mxu1 %v1476_v12  ;;  %1000 = vmatprep.subr.bf16.mxu0 %v1477_v13  ;;  %v1506_v32 = vld [vmem:[%s1694_s6 + $0x170] ss:$8 sps:$4 sm:$0xff]   ;;  %v1509_v34 = vld [vmem:[%s1694_s6 + $0x184] ss:$8 sps:$4 sm:$0xff]   ;;  %v1512_v36 = vld [vmem:[%s1694_s6 + $0x180] ss:$8 sps:$4 sm:$0xff]  }
  0x24   : > { %1041 = vmatprep.subr.bf16.mxu1 %v1479_v14  ;;  %v1513_v37 = vld [vmem:[%s1694_s6 + $0x94] ss:$8 sps:$4 sm:$0xff]   ;;  %v1517_v39 = vld [vmem:[%s1694_s6 + $0x90] ss:$8 sps:$4 sm:$0xff]   ;;  %v1519_v41 = vld [vmem:[%s1694_s6 + $0xa4] ss:$8 sps:$4 sm:$0xff]  }
  0x25   : > { %v1515_v38 = vld [vmem:[%s1694_s6 + $0x194] ss:$8 sps:$4 sm:$0xff]   ;;  %v1518_v40 = vld [vmem:[%s1694_s6 + $0x190] ss:$8 sps:$4 sm:$0xff]   ;;  %v1521_v42 = vld [vmem:[%s1694_s6 + $0x1a4] ss:$8 sps:$4 sm:$0xff]  }
  0x26   : > { %1001 = vmatpush1.bf16.msra.mxu0 %v1481_v15  ;;  %v1523_v43 = vld [vmem:[%s1694_s6 + $0xa0] ss:$8 sps:$4 sm:$0xff]   ;;  %v1525_v45 = vld [vmem:[%s1694_s6 + $0xb4] ss:$8 sps:$4 sm:$0xff]   ;;  %v1529_v50 = vld [vmem:[%s1694_s6 + $0xb0] ss:$8 sps:$4 sm:$0xff]  }
  0x27   : > { %1042 = vmatpush1.bf16.msra.mxu1 %v1482_v16  ;;  %1002 = vmatprep.subr.bf16.mxu0 %v1483_v17  ;;  %v1524_v44 = vld [vmem:[%s1694_s6 + $0x1a0] ss:$8 sps:$4 sm:$0xff]   ;;  %v1527_v46 = vld [vmem:[%s1694_s6 + $0x1b4] ss:$8 sps:$4 sm:$0xff]   ;;  %v1530_v51 = vld [vmem:[%s1694_s6 + $0x1b0] ss:$8 sps:$4 sm:$0xff]  }
  0x28   : > { %1043 = vmatprep.subr.bf16.mxu1 %v1485_v18  ;;  %v394_v47 = vld [vmem:[%s1689_s27] sm:$0xff]  ;;  %v395_v49 = vld [vmem:[%s1689_s27 + $0x8] sm:$0xff]  ;;  %v1537_v57 = vld [vmem:[%s1694_s6 + $0xd4] ss:$8 sps:$4 sm:$0xff]   ;;  %p1428_p7 = scmp.ne.s32.totalorder %s1623_s18, 2 }
  0x29   : > { %v1327_v48 = vcombine.high %v394_v47, %v394_v47  ;;  %v1329_v52 = vcombine.high %v395_v49, %v395_v49  ;;  %v1531_v53 = vld [vmem:[%s1694_s6 + $0xc4] ss:$8 sps:$4 sm:$0xff]   ;;  %v1535_v55 = vld [vmem:[%s1694_s6 + $0xc0] ss:$8 sps:$4 sm:$0xff]   ;;  %v1539_v58 = vld [vmem:[%s1694_s6 + $0x1d4] ss:$8 sps:$4 sm:$0xff]   ;;  %v1326_v6 = vcombine.low %v394_v47, %v394_v47  ;;  %v1328_v7 = vcombine.low %v395_v49, %v395_v49 }
  0x2a   : > { %1003 = vmatpush1.bf16.msra.mxu0 %v1487_v19  ;;  %v1533_v54 = vld [vmem:[%s1694_s6 + $0x1c4] ss:$8 sps:$4 sm:$0xff]   ;;  %v1536_v56 = vld [vmem:[%s1694_s6 + $0x1c0] ss:$8 sps:$4 sm:$0xff]   ;;  %v1541_v59 = vld [vmem:[%s1694_s6 + $0xd0] ss:$8 sps:$4 sm:$0xff]  }
  0x2b   : > { %1044 = vmatpush1.bf16.msra.mxu1 %v1488_v20  ;;  %1004 = vmatprep.subr.bf16.mxu0 %v1489_v21  ;;  %v1542_v60 = vld [vmem:[%s1694_s6 + $0x1d0] ss:$8 sps:$4 sm:$0xff]   ;;  %v1543_v61 = vld [vmem:[%s1694_s6 + $0xe4] ss:$8 sps:$4 sm:$0xff]   ;;  %v1547_v63 = vld [vmem:[%s1694_s6 + $0xe0] ss:$8 sps:$4 sm:$0xff]  }
  0x2c   : > { %1045 = vmatprep.subr.bf16.mxu1 %v1491_v22  ;;  %1026 = vmatprep.mubr.bf16.mxu0 %v1327_v48  ;;  %v1545_v62 = vld [vmem:[%s1694_s6 + $0x1e4] ss:$8 sps:$4 sm:$0xff]   ;;  %v1548_v0 = vld [vmem:[%s1694_s6 + $0x1e0] ss:$8 sps:$4 sm:$0xff]   ;;  %v1549_v1 = vld [vmem:[%s1694_s6 + $0xf4] ss:$8 sps:$4 sm:$0xff]  }
  0x2d   : > { %1067 = vmatprep.mubr.bf16.mxu1 %v1329_v52  ;;  %v1551_v2 = vld [vmem:[%s1694_s6 + $0x1f4] ss:$8 sps:$4 sm:$0xff]   ;;  %v1553_v3 = vld [vmem:[%s1694_s6 + $0xf0] ss:$8 sps:$4 sm:$0xff]   ;;  %v1561_v5 = vld [vmem:[%s1694_s6 + $0x204] ss:$8 sps:$4 sm:$0xff]  }
  0x2e   : > { %1005 = vmatpush1.bf16.msra.mxu0 %v1493_v23  ;;  %v1554_v4 = vld [vmem:[%s1694_s6 + $0x1f0] ss:$8 sps:$4 sm:$0xff]   ;;  %v1559_v8 = vld [vmem:[%s1694_s6 + $0x200] ss:$8 sps:$4 sm:$0xff]   ;;  %v1564_v10 = vld [vmem:[%s1694_s6 + $0x214] ss:$8 sps:$4 sm:$0xff]  }
  0x2f   : > { %1046 = vmatpush1.bf16.msra.mxu1 %v1494_v24  ;;  %1006 = vmatprep.subr.bf16.mxu0 %v1495_v25  ;;  %v1766_v9 = vld [vmem:[%s1689_s27 + $0x10] sm:$0xff]  ;;  %v1567_v13 = vld [vmem:[%s1694_s6 + $0x224] ss:$8 sps:$4 sm:$0xff]   ;;  %v1565_v14 = vld [vmem:[%s1694_s6 + $0x220] ss:$8 sps:$4 sm:$0xff]  }
  0x30   : > { %1047 = vmatprep.subr.bf16.mxu1 %v1497_v26  ;;  %v1331_v11 = vcombine.high %v1766_v9, %v1766_v9  ;;  %v1562_v12 = vld [vmem:[%s1694_s6 + $0x210] ss:$8 sps:$4 sm:$0xff]   ;;  %v1570_v15 = vld [vmem:[%s1694_s6 + $0x234] ss:$8 sps:$4 sm:$0xff]   ;;  %v1573_v17 = vld [vmem:[%s1694_s6 + $0x244] ss:$8 sps:$4 sm:$0xff]  }
  0x31   : > { %v1568_v16 = vld [vmem:[%s1694_s6 + $0x230] ss:$8 sps:$4 sm:$0xff]   ;;  %v1571_v18 = vld [vmem:[%s1694_s6 + $0x240] ss:$8 sps:$4 sm:$0xff]   ;;  %v1576_v19 = vld [vmem:[%s1694_s6 + $0x254] ss:$8 sps:$4 sm:$0xff]  }
  0x32   : > { %1007 = vmatpush1.bf16.msra.mxu0 %v1499_v27  ;;  %v1574_v20 = vld [vmem:[%s1694_s6 + $0x250] ss:$8 sps:$4 sm:$0xff]   ;;  %v1579_v21 = vld [vmem:[%s1694_s6 + $0x264] ss:$8 sps:$4 sm:$0xff]   ;;  %v1577_v22 = vld [vmem:[%s1694_s6 + $0x260] ss:$8 sps:$4 sm:$0xff]  }
  0x33   : > { %1048 = vmatpush1.bf16.msra.mxu1 %v1500_v28  ;;  %1008 = vmatprep.subr.bf16.mxu0 %v1501_v29  ;;  %v1582_v23 = vld [vmem:[%s1694_s6 + $0x274] ss:$8 sps:$4 sm:$0xff]   ;;  %v1580_v24 = vld [vmem:[%s1694_s6 + $0x270] ss:$8 sps:$4 sm:$0xff]   ;;  %v1585_v25 = vld [vmem:[%s1694_s6 + $0x284] ss:$8 sps:$4 sm:$0xff]  }
  0x34   : > { %1049 = vmatprep.subr.bf16.mxu1 %v1503_v30  ;;  %v1583_v26 = vld [vmem:[%s1694_s6 + $0x280] ss:$8 sps:$4 sm:$0xff]   ;;  %v1588_v27 = vld [vmem:[%s1694_s6 + $0x294] ss:$8 sps:$4 sm:$0xff]   ;;  %v1586_v28 = vld [vmem:[%s1694_s6 + $0x290] ss:$8 sps:$4 sm:$0xff]  }
  0x35   : > { %v1591_v29 = vld [vmem:[%s1694_s6 + $0x2a4] ss:$8 sps:$4 sm:$0xff]   ;;  %v1589_v30 = vld [vmem:[%s1694_s6 + $0x2a0] ss:$8 sps:$4 sm:$0xff]  }
  0x36   : > { %1009 = vmatpush1.bf16.msra.mxu0 %v1505_v31  ;;  %v1594_v31 = vld [vmem:[%s1694_s6 + $0x2b4] ss:$8 sps:$4 sm:$0xff]   ;;  %v392_v52 = vld [vmem:[#allocation2] sm:$0xff] }
  0x37   : > { %1050 = vmatpush1.bf16.msra.mxu1 %v1506_v32  ;;  %1010 = vmatprep.subr.bf16.mxu0 %v1507_v33  ;;  %v1592_v32 = vld [vmem:[%s1694_s6 + $0x2b0] ss:$8 sps:$4 sm:$0xff]   ;;  %v1597_v33 = vld [vmem:[%s1694_s6 + $0x2c4] ss:$8 sps:$4 sm:$0xff]  }
  0x38   : > { %1051 = vmatprep.subr.bf16.mxu1 %v1509_v34  ;;  %v1595_v34 = vld [vmem:[%s1694_s6 + $0x2c0] ss:$8 sps:$4 sm:$0xff]  }
  0x3a   : > { %1011 = vmatpush1.bf16.msra.mxu0 %v1511_v35  ;;  %v1600_v35 = vld [vmem:[%s1694_s6 + $0x2d4] ss:$8 sps:$4 sm:$0xff]  }
  0x3b   : > { %1052 = vmatpush1.bf16.msra.mxu1 %v1512_v36  ;;  %1012 = vmatprep.subr.bf16.mxu0 %v1513_v37  ;;  %v1598_v36 = vld [vmem:[%s1694_s6 + $0x2d0] ss:$8 sps:$4 sm:$0xff]   ;;  %v1603_v37 = vld [vmem:[%s1694_s6 + $0x2e4] ss:$8 sps:$4 sm:$0xff]  }
  0x3c   : > { %1053 = vmatprep.subr.bf16.mxu1 %v1515_v38  ;;  %v1601_v38 = vld [vmem:[%s1694_s6 + $0x2e0] ss:$8 sps:$4 sm:$0xff]  }
  0x3e   : > { %1013 = vmatpush1.bf16.msra.mxu0 %v1517_v39  ;;  %v1606_v39 = vld [vmem:[%s1694_s6 + $0x2f4] ss:$8 sps:$4 sm:$0xff]  }
  0x3f   : > { %1054 = vmatpush1.bf16.msra.mxu1 %v1518_v40  ;;  %1014 = vmatprep.subr.bf16.mxu0 %v1519_v41  ;;  %v1604_v40 = vld [vmem:[%s1694_s6 + $0x2f0] ss:$8 sps:$4 sm:$0xff]   ;;  %v1330_v41 = vcombine.low %v1766_v9, %v1766_v9 }
  0x40   : > { %1055 = vmatprep.subr.bf16.mxu1 %v1521_v42 }
  0x42   : > { %1015 = vmatpush1.bf16.msra.mxu0 %v1523_v43 }
  0x43   : > { %1056 = vmatpush1.bf16.msra.mxu1 %v1524_v44  ;;  %1016 = vmatprep.subr.bf16.mxu0 %v1525_v45 }
  0x44   : > { %1057 = vmatprep.subr.bf16.mxu1 %v1527_v46 }
  0x46   : > { %1017 = vmatpush1.bf16.msra.mxu0 %v1529_v50 }
  0x47   : > { %1058 = vmatpush1.bf16.msra.mxu1 %v1530_v51  ;;  %1018 = vmatprep.subr.bf16.mxu0 %v1531_v53 }
  0x48   : > { %1059 = vmatprep.subr.bf16.mxu1 %v1533_v54 }
  0x4a   : > { %1019 = vmatpush1.bf16.msra.mxu0 %v1535_v55  ;;  %v393_v55 = vld [vmem:[#allocation2 + $0x8] sm:$0xff] }
  0x4b   : > { %1060 = vmatpush1.bf16.msra.mxu1 %v1536_v56  ;;  %1020 = vmatprep.subr.bf16.mxu0 %v1537_v57 }
  0x4c   : > { %1061 = vmatprep.subr.bf16.mxu1 %v1539_v58 }
  0x4e   : > { %1021 = vmatpush1.bf16.msra.mxu0 %v1541_v59 }
  0x4f   : > { %1062 = vmatpush1.bf16.msra.mxu1 %v1542_v60  ;;  %1022 = vmatprep.subr.bf16.mxu0 %v1543_v61 }
  0x50   : > { %1063 = vmatprep.subr.bf16.mxu1 %v1545_v62  ;;  %v1129_v62 = vlaneseq (!%p1428_p7) }
  0x52   : > { %1023 = vmatpush1.bf16.msra.mxu0 %v1547_v63  ;;  %v1130_v63 = vshrl.u32 (!%p1428_p7), %v1129_v62, 7 }
  0x53   : > { %1064 = vmatpush1.bf16.msra.mxu1 %v1548_v0  ;;  %1024 = vmatprep.subr.bf16.mxu0 %v1549_v1  ;;  %v1127_v0 = vld [vmem:[%s1832_s2] sm:$0x3] (!%p1428_p7) }
  0x54   : > { %1065 = vmatprep.subr.bf16.mxu1 %v1551_v2  ;;  %v1141_v1 = vld [vmem:[%s1833_s3] sm:$0x3] (!%p1428_p7)  ;;  %v1131_v2 = vsub.s32 (!%p1428_p7), 0, %v1130_v63 }
  0x56   : > { %1025 = vmatpush1.bf16.msra.mxu0 %v1553_v3  ;;  %v1135_v3 = vsub.s32 (!%p1428_p7), 1, %v1130_v63 }
  0x57   : > { %1066 = vmatpush1.bf16.msra.mxu1 %v1554_v4  ;;  %1076 = vmatprep.subr.bf16.mxu0 %v1561_v5 }
  0x58   : > { %v1150_v9 = vrot.slane (!%p1428_p7), %v1141_v1, %v1135_v3 }
  0x59   : > { %1027 = vmatmul.mubr.bf16.vlgmr.msra.gmra.mrb[0].mxu0 %v1326_v6  ;;  %v1132_v6 = vrot.slane (!%p1428_p7), %v1127_v0, %v1131_v2 }
  0x5a   : > { %1068 = vmatmul.mubr.bf16.vlgmr.msra.gmra.mrb[0].mxu1 %v1328_v7  ;;  %1077 = vmatpush1.bf16.msra.mxu0 %v1559_v8  ;;  %v1146_v7 = vrot.slane (!%p1428_p7), %v1141_v1, %v1131_v2  ;;  %v1136_v8 = vrot.slane (!%p1428_p7), %v1127_v0, %v1135_v3 }
  0x5b   : > { %1108 = vmatprep.mubr.bf16.mxu0 %v1331_v11  ;;  %1078 = vmatprep.subr.bf16.mxu0 %v1564_v10 }
  0x5e   : > { %1079 = vmatpush1.bf16.msra.mxu0 %v1562_v12 }
  0x5f   : > { %1080 = vmatprep.subr.bf16.mxu0 %v1567_v13 }
  0x62   : > { %1081 = vmatpush1.bf16.msra.mxu0 %v1565_v14  ;;  %v1157_v14 = vld [vmem:[%s1834_s4] sm:$0xff] (!%p1428_p7) }
  0x63   : > { %1082 = vmatprep.subr.bf16.mxu0 %v1570_v15  ;;  %v1158_v15 = vld [vmem:[%s1834_s4 + $0x8] sm:$0xff] (!%p1428_p7) }
  0x66   : > { %1083 = vmatpush1.bf16.msra.mxu0 %v1568_v16 }
  0x67   : > { %1084 = vmatprep.subr.bf16.mxu0 %v1573_v17 }
  0x6a   : > { %1085 = vmatpush1.bf16.msra.mxu0 %v1571_v18 }
  0x6b   : > { %1086 = vmatprep.subr.bf16.mxu0 %v1576_v19 }
  0x6e   : > { %1087 = vmatpush1.bf16.msra.mxu0 %v1574_v20 }
  0x6f   : > { %1088 = vmatprep.subr.bf16.mxu0 %v1579_v21 }
  0x72   : > { %1089 = vmatpush1.bf16.msra.mxu0 %v1577_v22 }
  0x73   : > { %1090 = vmatprep.subr.bf16.mxu0 %v1582_v23 }
  0x76   : > { %1091 = vmatpush1.bf16.msra.mxu0 %v1580_v24 }
  0x77   : > { %1092 = vmatprep.subr.bf16.mxu0 %v1585_v25 }
  0x7a   : > { %1093 = vmatpush1.bf16.msra.mxu0 %v1583_v26 }
  0x7b   : > { %1094 = vmatprep.subr.bf16.mxu0 %v1588_v27 }
  0x7e   : > { %1095 = vmatpush1.bf16.msra.mxu0 %v1586_v28 }
  0x7f   : > { %1096 = vmatprep.subr.bf16.mxu0 %v1591_v29 }
  0x82   : > { %1097 = vmatpush1.bf16.msra.mxu0 %v1589_v30 }
  0x83   : > { %1098 = vmatprep.subr.bf16.mxu0 %v1594_v31 }
  0x86   : > { %1099 = vmatpush1.bf16.msra.mxu0 %v1592_v32 }
  0x87   : > { %1100 = vmatprep.subr.bf16.mxu0 %v1597_v33 }
  0x8a   : > { %1101 = vmatpush1.bf16.msra.mxu0 %v1595_v34 }
  0x8b   : > { %1102 = vmatprep.subr.bf16.mxu0 %v1600_v35 }
  0x8e   : > { %1103 = vmatpush1.bf16.msra.mxu0 %v1598_v36 }
  0x8f   : > { %1104 = vmatprep.subr.bf16.mxu0 %v1603_v37 }
  0x92   : > { %1105 = vmatpush1.bf16.msra.mxu0 %v1601_v38 }
  0x93   : > { %1106 = vmatprep.subr.bf16.mxu0 %v1606_v39 }
  0x96   : > { %1107 = vmatpush1.bf16.msra.mxu0 %v1604_v40 }
  0x99   : > { %1109 = vmatmul.mubr.bf16.vlgmr.msra.gmra.mrb[4].mxu0 %v1330_v41 }
 0x12c   : > { %v1028_v42 = vpop.f32.mrb[0].mxu0 }
 0x12d   : > { %v1069_v43 = vpop.f32.mrb[0].mxu1  ;;  %v1030_v45 = vpop.f32.mrb[1].mxu0 }
 0x12e   : > { %v1070_v44 = vadd.f32 %v1069_v43, %v1028_v42  ;;  %v1071_v46 = vpop.f32.mrb[1].mxu1  ;;  %v1032_v48 = vpop.f32.mrb[2].mxu0 }
 0x12f   : > { %v1072_v47 = vadd.f32 %v1071_v46, %v1030_v45  ;;  %v1073_v49 = vpop.f32.mrb[2].mxu1  ;;  %v1033_v50 = vpop.f32.mrb[3].mxu0 }
 0x130   : > { %v1074_v51 = vpop.f32.mrb[3].mxu1 }
 0x16c   : > { %v1110_v53 = vpop.f32.mrb[4].mxu0  ;;  %1124 = sbr.rel (%p1428_p7) target bundleno = 389 (0x185), region = 48 }
 0x16d   : > { %v1111_v54 = vadd.f32 %v1110_v53, %v1070_v44  ;;  %v1112_v56 = vpop.f32.mrb[5].mxu0 }
 0x16e   : > { %v1113_v57 = vadd.f32 %v1112_v56, %v1072_v47  ;;  %v1114_v58 = vpop.f32.mrb[6].mxu0 }
 0x16f   : > { %v1117_v59 = vadd.f32 %v1111_v54, %v392_v52  ;;  %v1115_v60 = vpop.f32.mrb[7].mxu0 }
 0x170   : > { %v1118_v61 = vadd.f32 %v1113_v57, %v393_v55 }
 0x171   : > { %1119 = vst [vmem:[#allocation2] sm:$0xff] %v1117_v59 }
 0x172   : > { %1120 = vst [vmem:[#allocation2 + $0x8] sm:$0xff] %v1118_v61 }
 0x178   : > { %v1125_v4 = vld [vmem:[#allocation2] sm:$0xff] }
 0x179   : > { %v1126_v5 = vld [vmem:[#allocation2 + $0x8] sm:$0xff]  ;;  %v1139_v10 = vmul.f32 %v1132_v6, %v1125_v4 }
 0x17a   : > { %v1140_v11 = vmul.f32 %v1136_v8, %v1126_v5 }
 0x17b   : > { %v1153_v12 = vadd.f32 %v1146_v7, %v1139_v10 }
 0x17c   : > { %v1154_v13 = vadd.f32 %v1150_v9, %v1140_v11 }
 0x17d   : > { %v1155_v16 = vmax.f32 %v1153_v12, 0.0 }
 0x17e   : > { %v1156_v17 = vmax.f32 %v1154_v13, 0.0 }
 0x17f   : > { %v1159_v18 = vadd.f32 %v1157_v14, %v1155_v16 }
 0x180   : > { %v1160_v19 = vadd.f32 %v1158_v15, %v1156_v17 }
 0x181   : > { %v1161_v20 = vmax.f32 %v1159_v18, 0.0 }
 0x182   : > { %v1162_v21 = vmax.f32 %v1160_v19, 0.0 }
 0x183   : > { %1163 = vst [vmem:[%s1835_s5] sm:$0xff] %v1161_v20 }
 0x184   : > { %1164 = vst [vmem:[%s1835_s5 + $0x8] sm:$0xff] %v1162_v21 }
 0x185 PF: > { %s15_s20 = sadd.s32 1, %s1631_s20   ;;  %s1836_s18 = smov %s1627_s19 }
 0x186   : > { %p12_p8 = scmp.ge.s32.totalorder %s15_s20, 5   ;;  %s1837_s19 = smov %s1839_s21 }
 0x188   :  { %14 = sbr.rel (!%p12_p8) target bundleno = 2 (0x2), region = 90 }

// kernel: _lambda_.25
= control target key start
LH: loop header
LB: loop body
LE: loop exit
PB: predicated region body
PF: predicated region fallthrough
CT: control target
= control target key end

     0   :  { %s2040_s15 = smov 0   ;;  %s2042_s16 = smov 0   ;;  %s2464_s0 = inlined_call_operand.vmem [shape: bf16[8,2304], index: 0, kind: input, shape index: {}]   ;;  %s2465_s1 = inlined_call_operand.vmem [shape: bf16[2304,512], index: 1, kind: input, shape index: {}]   ;;  %s2466_s2 = inlined_call_operand.vmem [shape: f32[1,512], index: 2, kind: input, shape index: {}]   ;;  %s2467_s3 = inlined_call_operand.vmem [shape: f32[1,512], index: 3, kind: input, shape index: {}]   ;;  %s2468_s4 = inlined_call_operand.vmem [shape: f32[8,512], index: 4, kind: output, shape index: {}]  }
   0x1   :  { %s2044_s17 = smov 0   ;;  %s2046_s18 = smov 0  }
   0x2   :  { %s2048_s19 = smov 0   ;;  %s2050_s20 = smov 0  }
   0x3   :  { %s2052_s21 = smov 0  }
   0x4 LB: > { %s26_s22 = sadd.s32 1, %s2004_s19  ;;  %s29_s23 = sadd.s32 1, %s2008_s20  ;;  %s2012_s21 = sphi %s2052_s21, %s14_s21   ;;  %s2008_s20 = sphi %s2050_s20, %s2474_s20   ;;  %s2004_s19 = sphi %s2048_s19, %s2473_s19   ;;  %s2000_s18 = sphi %s2046_s18, %s2472_s18   ;;  %s1996_s17 = sphi %s2044_s17, %s2471_s17   ;;  %s1992_s16 = sphi %s2042_s16, %s2470_s16   ;;  %s1988_s15 = sphi %s2040_s15, %s2469_s15  }
   0x5   : > { %p27_p0 = scmp.ge.s32.totalorder %s26_s22, 3  ;;  %p77_p1 = scmp.ne.s32.totalorder %s1992_s16, %s1988_s15 }
   0x6   : > { %p78_p2 = scmp.eq.s32.totalorder %s2012_s21, 0  ;;  %s70_s27 = sadd.s32 1, %s1992_s16 }
   0x7   : > { %s2476_s22 = smov (%p27_p0, %s26_s22), 0  ;;  %s2478_s23 = smov (!%p27_p0, %s29_s23), %s2008_s20 }
   0x8   : > { %p79_p3 = por %p78_p2, %p77_p1  ;;  %p31_p4 = scmp.ge.s32.totalorder %s2478_s23, 2 }
   0x9   : > { %s65_s24 = ssub.s32 %s2004_s19, %s2476_s22  ;;  %p1632_p6 = scmp.ge.s32.totalorder %s2012_s21, 6 }
   0xa   : > { %s2480_s23 = smov (%p31_p4, %s2478_s23), 0 }
   0xb   : > { %s66_s25 = ssub.s32 %s2008_s20, %s2480_s23  ;;  %183 = sbr.rel (%p1632_p6) target bundleno = 74 (0x4a), region = 16 }
   0xc   : > { %s67_s26 = sor.u32 %s66_s25, %s65_s24 }
   0xd   : > { %p68_p5 = scmp.eq.s32.totalorder %s67_s26, 0 }
   0xf   : > { %s2091_s28 = scalar_select %p68_p5, %s1992_s16, %s70_s27  }
  0x12   : > { %199 = sbr.rel (!%p79_p3) target bundleno = 74 (0x4a), region = 24  ;;  %s201_s29 = sand.u32 (%p79_p3), 1, %s1992_s16  }
  0x13   : > { %s1749_s30 = smul.u32 (%p79_p3), 768, %s201_s29  ;;  %s1633_s5 = sshll.u32 (%p79_p3), %s2008_s20, 1 }
  0x14   : > { %s1748_s6 = smul.u32 (%p79_p3), 384, %s2004_s19 }
  0x15   : > { %s2105_s12 = scalar_lea.vmem (%p79_p3), [#allocation3], %s1749_s30 }
  0x16   : > { %s207_s7 = sadd.s32 (%p79_p3), %s1748_s6, %s1633_s5 }
  0x17   : > { %s1635_s8 = sshll.u32 (%p79_p3), %s207_s7, 2 }
  0x18   : > { %s2100_s11 = scalar_lea.vmem (%p79_p3), %s2465_s1, %s1635_s8 }
  0x19   : > { %v427_v0 = vld [vmem:[%s2100_s11] sm:$0xff]  ;;  %v429_v1 = vld [vmem:[%s2100_s11 + $0x10] sm:$0xff] }
  0x1a   : > { %v431_v2 = vld [vmem:[%s2100_s11 + $0x20] sm:$0xff]  ;;  %428 = vst [vmem:[%s2105_s12] sm:$0xff] %v427_v0  ;;  %430 = vst [vmem:[%s2105_s12 + $0x8] sm:$0xff] %v429_v1  ;;  %v433_v3 = vld [vmem:[%s2100_s11 + $0x30] sm:$0xff] }
  0x1b   : > { %432 = vst [vmem:[%s2105_s12 + $0x10] sm:$0xff] %v431_v2  ;;  %v435_v4 = vld [vmem:[%s2100_s11 + $0x40] sm:$0xff]  ;;  %v437_v5 = vld [vmem:[%s2100_s11 + $0x50] sm:$0xff]  ;;  %434 = vst [vmem:[%s2105_s12 + $0x18] sm:$0xff] %v433_v3 }
  0x1c   : > { %436 = vst [vmem:[%s2105_s12 + $0x20] sm:$0xff] %v435_v4  ;;  %438 = vst [vmem:[%s2105_s12 + $0x28] sm:$0xff] %v437_v5  ;;  %v439_v6 = vld [vmem:[%s2100_s11 + $0x60] sm:$0xff]  ;;  %v441_v7 = vld [vmem:[%s2100_s11 + $0x70] sm:$0xff] }
  0x1d   : > { %v443_v8 = vld [vmem:[%s2100_s11 + $0x80] sm:$0xff]  ;;  %440 = vst [vmem:[%s2105_s12 + $0x30] sm:$0xff] %v439_v6  ;;  %442 = vst [vmem:[%s2105_s12 + $0x38] sm:$0xff] %v441_v7  ;;  %v445_v9 = vld [vmem:[%s2100_s11 + $0x90] sm:$0xff] }
  0x1e   : > { %444 = vst [vmem:[%s2105_s12 + $0x40] sm:$0xff] %v443_v8  ;;  %v447_v10 = vld [vmem:[%s2100_s11 + $0xa0] sm:$0xff]  ;;  %v449_v11 = vld [vmem:[%s2100_s11 + $0xb0] sm:$0xff]  ;;  %446 = vst [vmem:[%s2105_s12 + $0x48] sm:$0xff] %v445_v9 }
  0x1f   : > { %448 = vst [vmem:[%s2105_s12 + $0x50] sm:$0xff] %v447_v10  ;;  %450 = vst [vmem:[%s2105_s12 + $0x58] sm:$0xff] %v449_v11  ;;  %v451_v12 = vld [vmem:[%s2100_s11 + $0xc0] sm:$0xff]  ;;  %v453_v13 = vld [vmem:[%s2100_s11 + $0xd0] sm:$0xff] }
  0x20   : > { %v455_v14 = vld [vmem:[%s2100_s11 + $0xe0] sm:$0xff]  ;;  %452 = vst [vmem:[%s2105_s12 + $0x60] sm:$0xff] %v451_v12  ;;  %454 = vst [vmem:[%s2105_s12 + $0x68] sm:$0xff] %v453_v13  ;;  %v457_v15 = vld [vmem:[%s2100_s11 + $0xf0] sm:$0xff] }
  0x21   : > { %456 = vst [vmem:[%s2105_s12 + $0x70] sm:$0xff] %v455_v14  ;;  %v459_v16 = vld [vmem:[%s2100_s11 + $0x100] sm:$0xff]  ;;  %v461_v17 = vld [vmem:[%s2100_s11 + $0x110] sm:$0xff]  ;;  %458 = vst [vmem:[%s2105_s12 + $0x78] sm:$0xff] %v457_v15 }
  0x22   : > { %460 = vst [vmem:[%s2105_s12 + $0x80] sm:$0xff] %v459_v16  ;;  %462 = vst [vmem:[%s2105_s12 + $0x88] sm:$0xff] %v461_v17  ;;  %v463_v18 = vld [vmem:[%s2100_s11 + $0x120] sm:$0xff]  ;;  %v465_v19 = vld [vmem:[%s2100_s11 + $0x130] sm:$0xff] }
  0x23   : > { %v467_v20 = vld [vmem:[%s2100_s11 + $0x140] sm:$0xff]  ;;  %464 = vst [vmem:[%s2105_s12 + $0x90] sm:$0xff] %v463_v18  ;;  %466 = vst [vmem:[%s2105_s12 + $0x98] sm:$0xff] %v465_v19  ;;  %v469_v21 = vld [vmem:[%s2100_s11 + $0x150] sm:$0xff] }
  0x24   : > { %468 = vst [vmem:[%s2105_s12 + $0xa0] sm:$0xff] %v467_v20  ;;  %v471_v22 = vld [vmem:[%s2100_s11 + $0x160] sm:$0xff]  ;;  %v473_v23 = vld [vmem:[%s2100_s11 + $0x170] sm:$0xff]  ;;  %470 = vst [vmem:[%s2105_s12 + $0xa8] sm:$0xff] %v469_v21 }
  0x25   : > { %472 = vst [vmem:[%s2105_s12 + $0xb0] sm:$0xff] %v471_v22  ;;  %474 = vst [vmem:[%s2105_s12 + $0xb8] sm:$0xff] %v473_v23  ;;  %v475_v24 = vld [vmem:[%s2100_s11 + $0x180] sm:$0xff]  ;;  %v477_v25 = vld [vmem:[%s2100_s11 + $0x190] sm:$0xff] }
  0x26   : > { %v479_v26 = vld [vmem:[%s2100_s11 + $0x1a0] sm:$0xff]  ;;  %476 = vst [vmem:[%s2105_s12 + $0xc0] sm:$0xff] %v475_v24  ;;  %478 = vst [vmem:[%s2105_s12 + $0xc8] sm:$0xff] %v477_v25  ;;  %v481_v27 = vld [vmem:[%s2100_s11 + $0x1b0] sm:$0xff] }
  0x27   : > { %480 = vst [vmem:[%s2105_s12 + $0xd0] sm:$0xff] %v479_v26  ;;  %v483_v28 = vld [vmem:[%s2100_s11 + $0x1c0] sm:$0xff]  ;;  %v485_v29 = vld [vmem:[%s2100_s11 + $0x1d0] sm:$0xff]  ;;  %482 = vst [vmem:[%s2105_s12 + $0xd8] sm:$0xff] %v481_v27 }
  0x28   : > { %484 = vst [vmem:[%s2105_s12 + $0xe0] sm:$0xff] %v483_v28  ;;  %486 = vst [vmem:[%s2105_s12 + $0xe8] sm:$0xff] %v485_v29  ;;  %v487_v30 = vld [vmem:[%s2100_s11 + $0x1e0] sm:$0xff]  ;;  %v489_v31 = vld [vmem:[%s2100_s11 + $0x1f0] sm:$0xff] }
  0x29   : > { %v491_v32 = vld [vmem:[%s2100_s11 + $0x200] sm:$0xff]  ;;  %488 = vst [vmem:[%s2105_s12 + $0xf0] sm:$0xff] %v487_v30  ;;  %490 = vst [vmem:[%s2105_s12 + $0xf8] sm:$0xff] %v489_v31  ;;  %v493_v33 = vld [vmem:[%s2100_s11 + $0x210] sm:$0xff] }
  0x2a   : > { %492 = vst [vmem:[%s2105_s12 + $0x100] sm:$0xff] %v491_v32  ;;  %v495_v34 = vld [vmem:[%s2100_s11 + $0x220] sm:$0xff]  ;;  %v497_v35 = vld [vmem:[%s2100_s11 + $0x230] sm:$0xff]  ;;  %494 = vst [vmem:[%s2105_s12 + $0x108] sm:$0xff] %v493_v33 }
  0x2b   : > { %496 = vst [vmem:[%s2105_s12 + $0x110] sm:$0xff] %v495_v34  ;;  %498 = vst [vmem:[%s2105_s12 + $0x118] sm:$0xff] %v497_v35  ;;  %v499_v36 = vld [vmem:[%s2100_s11 + $0x240] sm:$0xff]  ;;  %v501_v37 = vld [vmem:[%s2100_s11 + $0x250] sm:$0xff] }
  0x2c   : > { %v503_v38 = vld [vmem:[%s2100_s11 + $0x260] sm:$0xff]  ;;  %500 = vst [vmem:[%s2105_s12 + $0x120] sm:$0xff] %v499_v36  ;;  %502 = vst [vmem:[%s2105_s12 + $0x128] sm:$0xff] %v501_v37  ;;  %v505_v39 = vld [vmem:[%s2100_s11 + $0x270] sm:$0xff] }
  0x2d   : > { %504 = vst [vmem:[%s2105_s12 + $0x130] sm:$0xff] %v503_v38  ;;  %v507_v40 = vld [vmem:[%s2100_s11 + $0x280] sm:$0xff]  ;;  %v509_v41 = vld [vmem:[%s2100_s11 + $0x290] sm:$0xff]  ;;  %506 = vst [vmem:[%s2105_s12 + $0x138] sm:$0xff] %v505_v39 }
  0x2e   : > { %508 = vst [vmem:[%s2105_s12 + $0x140] sm:$0xff] %v507_v40  ;;  %510 = vst [vmem:[%s2105_s12 + $0x148] sm:$0xff] %v509_v41  ;;  %v511_v42 = vld [vmem:[%s2100_s11 + $0x2a0] sm:$0xff]  ;;  %v513_v43 = vld [vmem:[%s2100_s11 + $0x2b0] sm:$0xff] }
  0x2f   : > { %v515_v44 = vld [vmem:[%s2100_s11 + $0x2c0] sm:$0xff]  ;;  %512 = vst [vmem:[%s2105_s12 + $0x150] sm:$0xff] %v511_v42  ;;  %514 = vst [vmem:[%s2105_s12 + $0x158] sm:$0xff] %v513_v43  ;;  %v517_v45 = vld [vmem:[%s2100_s11 + $0x2d0] sm:$0xff] }
  0x30   : > { %516 = vst [vmem:[%s2105_s12 + $0x160] sm:$0xff] %v515_v44  ;;  %v519_v46 = vld [vmem:[%s2100_s11 + $0x2e0] sm:$0xff]  ;;  %v521_v47 = vld [vmem:[%s2100_s11 + $0x2f0] sm:$0xff]  ;;  %518 = vst [vmem:[%s2105_s12 + $0x168] sm:$0xff] %v517_v45 }
  0x31   : > { %520 = vst [vmem:[%s2105_s12 + $0x170] sm:$0xff] %v519_v46  ;;  %522 = vst [vmem:[%s2105_s12 + $0x178] sm:$0xff] %v521_v47  ;;  %v523_v48 = vld [vmem:[%s2100_s11 + $0x300] sm:$0xff]  ;;  %v525_v49 = vld [vmem:[%s2100_s11 + $0x310] sm:$0xff] }
  0x32   : > { %v527_v50 = vld [vmem:[%s2100_s11 + $0x320] sm:$0xff]  ;;  %524 = vst [vmem:[%s2105_s12 + $0x180] sm:$0xff] %v523_v48  ;;  %526 = vst [vmem:[%s2105_s12 + $0x188] sm:$0xff] %v525_v49  ;;  %v529_v51 = vld [vmem:[%s2100_s11 + $0x330] sm:$0xff] }
  0x33   : > { %528 = vst [vmem:[%s2105_s12 + $0x190] sm:$0xff] %v527_v50  ;;  %v531_v52 = vld [vmem:[%s2100_s11 + $0x340] sm:$0xff]  ;;  %v533_v53 = vld [vmem:[%s2100_s11 + $0x350] sm:$0xff]  ;;  %530 = vst [vmem:[%s2105_s12 + $0x198] sm:$0xff] %v529_v51 }
  0x34   : > { %532 = vst [vmem:[%s2105_s12 + $0x1a0] sm:$0xff] %v531_v52  ;;  %534 = vst [vmem:[%s2105_s12 + $0x1a8] sm:$0xff] %v533_v53  ;;  %v535_v54 = vld [vmem:[%s2100_s11 + $0x360] sm:$0xff]  ;;  %v537_v55 = vld [vmem:[%s2100_s11 + $0x370] sm:$0xff] }
  0x35   : > { %v539_v56 = vld [vmem:[%s2100_s11 + $0x380] sm:$0xff]  ;;  %536 = vst [vmem:[%s2105_s12 + $0x1b0] sm:$0xff] %v535_v54  ;;  %538 = vst [vmem:[%s2105_s12 + $0x1b8] sm:$0xff] %v537_v55  ;;  %v541_v57 = vld [vmem:[%s2100_s11 + $0x390] sm:$0xff] }
  0x36   : > { %540 = vst [vmem:[%s2105_s12 + $0x1c0] sm:$0xff] %v539_v56  ;;  %v543_v58 = vld [vmem:[%s2100_s11 + $0x3a0] sm:$0xff]  ;;  %v545_v59 = vld [vmem:[%s2100_s11 + $0x3b0] sm:$0xff]  ;;  %542 = vst [vmem:[%s2105_s12 + $0x1c8] sm:$0xff] %v541_v57 }
  0x37   : > { %544 = vst [vmem:[%s2105_s12 + $0x1d0] sm:$0xff] %v543_v58  ;;  %546 = vst [vmem:[%s2105_s12 + $0x1d8] sm:$0xff] %v545_v59  ;;  %v547_v60 = vld [vmem:[%s2100_s11 + $0x3c0] sm:$0xff]  ;;  %v549_v61 = vld [vmem:[%s2100_s11 + $0x3d0] sm:$0xff] }
  0x38   : > { %v551_v62 = vld [vmem:[%s2100_s11 + $0x3e0] sm:$0xff]  ;;  %548 = vst [vmem:[%s2105_s12 + $0x1e0] sm:$0xff] %v547_v60  ;;  %550 = vst [vmem:[%s2105_s12 + $0x1e8] sm:$0xff] %v549_v61  ;;  %v553_v63 = vld [vmem:[%s2100_s11 + $0x3f0] sm:$0xff] }
  0x39   : > { %552 = vst [vmem:[%s2105_s12 + $0x1f0] sm:$0xff] %v551_v62  ;;  %v555_v0 = vld [vmem:[%s2100_s11 + $0x400] sm:$0xff]  ;;  %v557_v1 = vld [vmem:[%s2100_s11 + $0x410] sm:$0xff]  ;;  %554 = vst [vmem:[%s2105_s12 + $0x1f8] sm:$0xff] %v553_v63 }
  0x3a   : > { %556 = vst [vmem:[%s2105_s12 + $0x200] sm:$0xff] %v555_v0  ;;  %558 = vst [vmem:[%s2105_s12 + $0x208] sm:$0xff] %v557_v1  ;;  %v559_v2 = vld [vmem:[%s2100_s11 + $0x420] sm:$0xff]  ;;  %v561_v3 = vld [vmem:[%s2100_s11 + $0x430] sm:$0xff] }
  0x3b   : > { %v563_v4 = vld [vmem:[%s2100_s11 + $0x440] sm:$0xff]  ;;  %560 = vst [vmem:[%s2105_s12 + $0x210] sm:$0xff] %v559_v2  ;;  %562 = vst [vmem:[%s2105_s12 + $0x218] sm:$0xff] %v561_v3  ;;  %v565_v5 = vld [vmem:[%s2100_s11 + $0x450] sm:$0xff] }
  0x3c   : > { %564 = vst [vmem:[%s2105_s12 + $0x220] sm:$0xff] %v563_v4  ;;  %v567_v6 = vld [vmem:[%s2100_s11 + $0x460] sm:$0xff]  ;;  %v569_v7 = vld [vmem:[%s2100_s11 + $0x470] sm:$0xff]  ;;  %566 = vst [vmem:[%s2105_s12 + $0x228] sm:$0xff] %v565_v5 }
  0x3d   : > { %568 = vst [vmem:[%s2105_s12 + $0x230] sm:$0xff] %v567_v6  ;;  %570 = vst [vmem:[%s2105_s12 + $0x238] sm:$0xff] %v569_v7  ;;  %v571_v8 = vld [vmem:[%s2100_s11 + $0x480] sm:$0xff]  ;;  %v573_v9 = vld [vmem:[%s2100_s11 + $0x490] sm:$0xff] }
  0x3e   : > { %v575_v10 = vld [vmem:[%s2100_s11 + $0x4a0] sm:$0xff]  ;;  %572 = vst [vmem:[%s2105_s12 + $0x240] sm:$0xff] %v571_v8  ;;  %574 = vst [vmem:[%s2105_s12 + $0x248] sm:$0xff] %v573_v9  ;;  %v577_v11 = vld [vmem:[%s2100_s11 + $0x4b0] sm:$0xff] }
  0x3f   : > { %576 = vst [vmem:[%s2105_s12 + $0x250] sm:$0xff] %v575_v10  ;;  %v579_v12 = vld [vmem:[%s2100_s11 + $0x4c0] sm:$0xff]  ;;  %v581_v13 = vld [vmem:[%s2100_s11 + $0x4d0] sm:$0xff]  ;;  %578 = vst [vmem:[%s2105_s12 + $0x258] sm:$0xff] %v577_v11 }
  0x40   : > { %580 = vst [vmem:[%s2105_s12 + $0x260] sm:$0xff] %v579_v12  ;;  %582 = vst [vmem:[%s2105_s12 + $0x268] sm:$0xff] %v581_v13  ;;  %v583_v14 = vld [vmem:[%s2100_s11 + $0x4e0] sm:$0xff]  ;;  %v585_v15 = vld [vmem:[%s2100_s11 + $0x4f0] sm:$0xff] }
  0x41   : > { %v587_v16 = vld [vmem:[%s2100_s11 + $0x500] sm:$0xff]  ;;  %584 = vst [vmem:[%s2105_s12 + $0x270] sm:$0xff] %v583_v14  ;;  %586 = vst [vmem:[%s2105_s12 + $0x278] sm:$0xff] %v585_v15  ;;  %v589_v17 = vld [vmem:[%s2100_s11 + $0x510] sm:$0xff] }
  0x42   : > { %588 = vst [vmem:[%s2105_s12 + $0x280] sm:$0xff] %v587_v16  ;;  %v591_v18 = vld [vmem:[%s2100_s11 + $0x520] sm:$0xff]  ;;  %v593_v19 = vld [vmem:[%s2100_s11 + $0x530] sm:$0xff]  ;;  %590 = vst [vmem:[%s2105_s12 + $0x288] sm:$0xff] %v589_v17 }
  0x43   : > { %592 = vst [vmem:[%s2105_s12 + $0x290] sm:$0xff] %v591_v18  ;;  %594 = vst [vmem:[%s2105_s12 + $0x298] sm:$0xff] %v593_v19  ;;  %v595_v20 = vld [vmem:[%s2100_s11 + $0x540] sm:$0xff]  ;;  %v597_v21 = vld [vmem:[%s2100_s11 + $0x550] sm:$0xff] }
  0x44   : > { %v599_v22 = vld [vmem:[%s2100_s11 + $0x560] sm:$0xff]  ;;  %596 = vst [vmem:[%s2105_s12 + $0x2a0] sm:$0xff] %v595_v20  ;;  %598 = vst [vmem:[%s2105_s12 + $0x2a8] sm:$0xff] %v597_v21  ;;  %v601_v23 = vld [vmem:[%s2100_s11 + $0x570] sm:$0xff] }
  0x45   : > { %600 = vst [vmem:[%s2105_s12 + $0x2b0] sm:$0xff] %v599_v22  ;;  %v603_v24 = vld [vmem:[%s2100_s11 + $0x580] sm:$0xff]  ;;  %v605_v25 = vld [vmem:[%s2100_s11 + $0x590] sm:$0xff]  ;;  %602 = vst [vmem:[%s2105_s12 + $0x2b8] sm:$0xff] %v601_v23 }
  0x46   : > { %604 = vst [vmem:[%s2105_s12 + $0x2c0] sm:$0xff] %v603_v24  ;;  %606 = vst [vmem:[%s2105_s12 + $0x2c8] sm:$0xff] %v605_v25  ;;  %v607_v26 = vld [vmem:[%s2100_s11 + $0x5a0] sm:$0xff]  ;;  %v609_v27 = vld [vmem:[%s2100_s11 + $0x5b0] sm:$0xff] }
  0x47   : > { %v611_v28 = vld [vmem:[%s2100_s11 + $0x5c0] sm:$0xff]  ;;  %608 = vst [vmem:[%s2105_s12 + $0x2d0] sm:$0xff] %v607_v26  ;;  %610 = vst [vmem:[%s2105_s12 + $0x2d8] sm:$0xff] %v609_v27  ;;  %v613_v29 = vld [vmem:[%s2100_s11 + $0x5d0] sm:$0xff] }
  0x48   : > { %612 = vst [vmem:[%s2105_s12 + $0x2e0] sm:$0xff] %v611_v28  ;;  %v615_v30 = vld [vmem:[%s2100_s11 + $0x5e0] sm:$0xff]  ;;  %v617_v31 = vld [vmem:[%s2100_s11 + $0x5f0] sm:$0xff]  ;;  %614 = vst [vmem:[%s2105_s12 + $0x2e8] sm:$0xff] %v613_v29 }
  0x49   : > { %616 = vst [vmem:[%s2105_s12 + $0x2f0] sm:$0xff] %v615_v30  ;;  %618 = vst [vmem:[%s2105_s12 + $0x2f8] sm:$0xff] %v617_v31 }
  0x4a PF: > { %p1636_p7 = scmp.ge.s32.totalorder %s2012_s21, 1  ;;  %p639_p8 = scmp.lt.s32.totalorder %s2012_s21, 7 }
  0x4c   : > { %p640_p9 = pnand %p1636_p7, %p639_p8 }
  0x4d   : > { %s646_s13 = sand.u32 (!%p640_p9), 1, %s1988_s15   ;;  %s692_s14 = smul.u32 (!%p640_p9), 6, %s1996_s17 }
  0x4e   : > { %643 = sbr.rel (%p640_p9) target bundleno = 456 (0x1c8), region = 70  ;;  %s1638_s25 = sshll.u32 (!%p640_p9), %s2000_s18, 1 }
  0x4f   : > { %s1750_s24 = smul.u32 (!%p640_p9), 768, %s646_s13  ;;  %p695_p10 = scmp.lt.s32.totalorder (!%p640_p9), %s692_s14, 17 }
  0x50   : > { %p705_p11 = scmp.lt.s32.totalorder (!%p640_p9), %s1638_s25, 3  ;;  %p1642_p12 = scmp.ne.s32.totalorder (!%p640_p9), %s1996_s17, 0 }
  0x51   : > { %s2322_s13 = scalar_lea.vmem (!%p640_p9), [#allocation3], %s1750_s24 }
  0x55   : > { %s2482_s14 = smov (!%p695_p10, %s692_s14), 17  ;;  %s2484_s25 = smov (!%p705_p11, %s1638_s25), 3 }
  0x56   : > { %s1637_s26 = sshll.u32 %s2482_s14, 2  ;;  %s707_s15 = scalar_lea.vmem %s2466_s2, %s2484_s25  ;;  %v2014_v32 = vmov (!%p1642_p12), 0.0  }
  0x57   : > { %s2306_s30 = scalar_lea.vmem %s2464_s0, %s1637_s26  ;;  %s712_s8 = scalar_lea.vmem %s2467_s3, %s2484_s25  ;;  %728 = vst [vmem:[#allocation2] sm:$0xff] (!%p1642_p12), %v2014_v32  ;;  %729 = vst [vmem:[#allocation2 + $0x8] sm:$0xff] (!%p1642_p12), %v2014_v32 }
  0x58   : > { %s1641_s9 = sshll.u32 %s2484_s25, 3  ;;  %727 = sbr.rel (%p1642_p12) target bundleno = 95 (0x5f), region = 78 }
  0x59   : > { %s2320_s12 = scalar_lea.vmem %s2468_s4, %s1641_s9 }
  0x5f PF: > { %v1808_v33 = vld [vmem:[%s2322_s13 + $0x4] ss:$8 sps:$4 sm:$0xff]   ;;  %v1812_v35 = vld [vmem:[%s2322_s13] ss:$8 sps:$4 sm:$0xff]   ;;  %v1814_v37 = vld [vmem:[%s2322_s13 + $0x14] ss:$8 sps:$4 sm:$0xff]  }
  0x60   : > { %v1810_v34 = vld [vmem:[%s2322_s13 + $0x104] ss:$8 sps:$4 sm:$0xff]   ;;  %1332 = vmatprep.subr.bf16.mxu0 %v1808_v33  ;;  %v1813_v36 = vld [vmem:[%s2322_s13 + $0x100] ss:$8 sps:$4 sm:$0xff]   ;;  %v1816_v38 = vld [vmem:[%s2322_s13 + $0x114] ss:$8 sps:$4 sm:$0xff]  }
  0x61   : > { %1373 = vmatprep.subr.bf16.mxu1 %v1810_v34  ;;  %1333 = vmatpush1.bf16.msra.mxu0 %v1812_v35  ;;  %v1818_v39 = vld [vmem:[%s2322_s13 + $0x10] ss:$8 sps:$4 sm:$0xff]   ;;  %v1820_v41 = vld [vmem:[%s2322_s13 + $0x24] ss:$8 sps:$4 sm:$0xff]   ;;  %v1824_v43 = vld [vmem:[%s2322_s13 + $0x20] ss:$8 sps:$4 sm:$0xff]  }
  0x62   : > { %1374 = vmatpush1.bf16.msra.mxu1 %v1813_v36  ;;  %1334 = vmatprep.subr.bf16.mxu0 %v1814_v37  ;;  %v1819_v40 = vld [vmem:[%s2322_s13 + $0x110] ss:$8 sps:$4 sm:$0xff]   ;;  %v1822_v42 = vld [vmem:[%s2322_s13 + $0x124] ss:$8 sps:$4 sm:$0xff]   ;;  %v1825_v44 = vld [vmem:[%s2322_s13 + $0x120] ss:$8 sps:$4 sm:$0xff]  }
  0x63   : > { %1375 = vmatprep.subr.bf16.mxu1 %v1816_v38  ;;  %v1826_v45 = vld [vmem:[%s2322_s13 + $0x34] ss:$8 sps:$4 sm:$0xff]   ;;  %v1830_v47 = vld [vmem:[%s2322_s13 + $0x30] ss:$8 sps:$4 sm:$0xff]   ;;  %v1832_v49 = vld [vmem:[%s2322_s13 + $0x44] ss:$8 sps:$4 sm:$0xff]  }
  0x64   : > { %v1828_v46 = vld [vmem:[%s2322_s13 + $0x134] ss:$8 sps:$4 sm:$0xff]   ;;  %v1831_v48 = vld [vmem:[%s2322_s13 + $0x130] ss:$8 sps:$4 sm:$0xff]   ;;  %v1834_v50 = vld [vmem:[%s2322_s13 + $0x144] ss:$8 sps:$4 sm:$0xff]  }
  0x65   : > { %1335 = vmatpush1.bf16.msra.mxu0 %v1818_v39  ;;  %v1836_v51 = vld [vmem:[%s2322_s13 + $0x40] ss:$8 sps:$4 sm:$0xff]   ;;  %v1838_v53 = vld [vmem:[%s2322_s13 + $0x54] ss:$8 sps:$4 sm:$0xff]   ;;  %v1842_v55 = vld [vmem:[%s2322_s13 + $0x50] ss:$8 sps:$4 sm:$0xff]  }
  0x66   : > { %1376 = vmatpush1.bf16.msra.mxu1 %v1819_v40  ;;  %1336 = vmatprep.subr.bf16.mxu0 %v1820_v41  ;;  %v1837_v52 = vld [vmem:[%s2322_s13 + $0x140] ss:$8 sps:$4 sm:$0xff]   ;;  %v1840_v54 = vld [vmem:[%s2322_s13 + $0x154] ss:$8 sps:$4 sm:$0xff]   ;;  %v1843_v56 = vld [vmem:[%s2322_s13 + $0x150] ss:$8 sps:$4 sm:$0xff]  }
  0x67   : > { %1377 = vmatprep.subr.bf16.mxu1 %v1822_v42  ;;  %v1844_v57 = vld [vmem:[%s2322_s13 + $0x64] ss:$8 sps:$4 sm:$0xff]   ;;  %v1848_v59 = vld [vmem:[%s2322_s13 + $0x60] ss:$8 sps:$4 sm:$0xff]   ;;  %v1850_v61 = vld [vmem:[%s2322_s13 + $0x74] ss:$8 sps:$4 sm:$0xff]  }
  0x68   : > { %v1846_v58 = vld [vmem:[%s2322_s13 + $0x164] ss:$8 sps:$4 sm:$0xff]   ;;  %v1849_v60 = vld [vmem:[%s2322_s13 + $0x160] ss:$8 sps:$4 sm:$0xff]   ;;  %v1852_v62 = vld [vmem:[%s2322_s13 + $0x174] ss:$8 sps:$4 sm:$0xff]  }
  0x69   : > { %1337 = vmatpush1.bf16.msra.mxu0 %v1824_v43  ;;  %v1854_v63 = vld [vmem:[%s2322_s13 + $0x70] ss:$8 sps:$4 sm:$0xff]   ;;  %v1856_v1 = vld [vmem:[%s2322_s13 + $0x84] ss:$8 sps:$4 sm:$0xff]   ;;  %v1860_v3 = vld [vmem:[%s2322_s13 + $0x80] ss:$8 sps:$4 sm:$0xff]  }
  0x6a   : > { %1378 = vmatpush1.bf16.msra.mxu1 %v1825_v44  ;;  %1338 = vmatprep.subr.bf16.mxu0 %v1826_v45  ;;  %v1855_v0 = vld [vmem:[%s2322_s13 + $0x170] ss:$8 sps:$4 sm:$0xff]   ;;  %v1858_v2 = vld [vmem:[%s2322_s13 + $0x184] ss:$8 sps:$4 sm:$0xff]   ;;  %v1861_v4 = vld [vmem:[%s2322_s13 + $0x180] ss:$8 sps:$4 sm:$0xff]  }
  0x6b   : > { %1379 = vmatprep.subr.bf16.mxu1 %v1828_v46  ;;  %v1862_v5 = vld [vmem:[%s2322_s13 + $0x94] ss:$8 sps:$4 sm:$0xff]   ;;  %v1866_v7 = vld [vmem:[%s2322_s13 + $0x90] ss:$8 sps:$4 sm:$0xff]   ;;  %v1868_v9 = vld [vmem:[%s2322_s13 + $0xa4] ss:$8 sps:$4 sm:$0xff]  }
  0x6c   : > { %v1864_v6 = vld [vmem:[%s2322_s13 + $0x194] ss:$8 sps:$4 sm:$0xff]   ;;  %v1867_v8 = vld [vmem:[%s2322_s13 + $0x190] ss:$8 sps:$4 sm:$0xff]   ;;  %v1870_v10 = vld [vmem:[%s2322_s13 + $0x1a4] ss:$8 sps:$4 sm:$0xff]  }
  0x6d   : > { %1339 = vmatpush1.bf16.msra.mxu0 %v1830_v47  ;;  %v1872_v11 = vld [vmem:[%s2322_s13 + $0xa0] ss:$8 sps:$4 sm:$0xff]   ;;  %v1874_v13 = vld [vmem:[%s2322_s13 + $0xb4] ss:$8 sps:$4 sm:$0xff]   ;;  %v1878_v18 = vld [vmem:[%s2322_s13 + $0xb0] ss:$8 sps:$4 sm:$0xff]  }
  0x6e   : > { %1380 = vmatpush1.bf16.msra.mxu1 %v1831_v48  ;;  %1340 = vmatprep.subr.bf16.mxu0 %v1832_v49  ;;  %v1873_v12 = vld [vmem:[%s2322_s13 + $0x1a0] ss:$8 sps:$4 sm:$0xff]   ;;  %v1876_v14 = vld [vmem:[%s2322_s13 + $0x1b4] ss:$8 sps:$4 sm:$0xff]   ;;  %v1879_v19 = vld [vmem:[%s2322_s13 + $0x1b0] ss:$8 sps:$4 sm:$0xff]  }
  0x6f   : > { %1381 = vmatprep.subr.bf16.mxu1 %v1834_v50  ;;  %v732_v15 = vld [vmem:[%s2306_s30] sm:$0xff]  ;;  %v733_v17 = vld [vmem:[%s2306_s30 + $0x8] sm:$0xff]  ;;  %v1880_v21 = vld [vmem:[%s2322_s13 + $0xc4] ss:$8 sps:$4 sm:$0xff]   ;;  %p1745_p13 = scmp.ne.s32.totalorder %s1996_s17, 2 }
  0x70   : > { %v1644_v16 = vcombine.high %v732_v15, %v732_v15  ;;  %v1646_v20 = vcombine.high %v733_v17, %v733_v17  ;;  %v1882_v22 = vld [vmem:[%s2322_s13 + $0x1c4] ss:$8 sps:$4 sm:$0xff]   ;;  %v1884_v23 = vld [vmem:[%s2322_s13 + $0xc0] ss:$8 sps:$4 sm:$0xff]   ;;  %v1886_v25 = vld [vmem:[%s2322_s13 + $0xd4] ss:$8 sps:$4 sm:$0xff]   ;;  %v1643_v38 = vcombine.low %v732_v15, %v732_v15  ;;  %v1645_v39 = vcombine.low %v733_v17, %v733_v17 }
  0x71   : > { %1341 = vmatpush1.bf16.msra.mxu0 %v1836_v51  ;;  %v1885_v24 = vld [vmem:[%s2322_s13 + $0x1c0] ss:$8 sps:$4 sm:$0xff]   ;;  %v1888_v26 = vld [vmem:[%s2322_s13 + $0x1d4] ss:$8 sps:$4 sm:$0xff]   ;;  %v1890_v27 = vld [vmem:[%s2322_s13 + $0xd0] ss:$8 sps:$4 sm:$0xff]  }
  0x72   : > { %1382 = vmatpush1.bf16.msra.mxu1 %v1837_v52  ;;  %1342 = vmatprep.subr.bf16.mxu0 %v1838_v53  ;;  %v1891_v28 = vld [vmem:[%s2322_s13 + $0x1d0] ss:$8 sps:$4 sm:$0xff]   ;;  %v1892_v29 = vld [vmem:[%s2322_s13 + $0xe4] ss:$8 sps:$4 sm:$0xff]   ;;  %v1896_v31 = vld [vmem:[%s2322_s13 + $0xe0] ss:$8 sps:$4 sm:$0xff]  }
  0x73   : > { %1383 = vmatprep.subr.bf16.mxu1 %v1840_v54  ;;  %1364 = vmatprep.mubr.bf16.mxu0 %v1644_v16  ;;  %v1894_v30 = vld [vmem:[%s2322_s13 + $0x1e4] ss:$8 sps:$4 sm:$0xff]   ;;  %v1897_v32 = vld [vmem:[%s2322_s13 + $0x1e0] ss:$8 sps:$4 sm:$0xff]   ;;  %v1898_v33 = vld [vmem:[%s2322_s13 + $0xf4] ss:$8 sps:$4 sm:$0xff]  }
  0x74   : > { %1405 = vmatprep.mubr.bf16.mxu1 %v1646_v20  ;;  %v1900_v34 = vld [vmem:[%s2322_s13 + $0x1f4] ss:$8 sps:$4 sm:$0xff]   ;;  %v1902_v35 = vld [vmem:[%s2322_s13 + $0xf0] ss:$8 sps:$4 sm:$0xff]   ;;  %v1910_v37 = vld [vmem:[%s2322_s13 + $0x204] ss:$8 sps:$4 sm:$0xff]  }
  0x75   : > { %1343 = vmatpush1.bf16.msra.mxu0 %v1842_v55  ;;  %v1903_v36 = vld [vmem:[%s2322_s13 + $0x1f0] ss:$8 sps:$4 sm:$0xff]   ;;  %v1908_v40 = vld [vmem:[%s2322_s13 + $0x200] ss:$8 sps:$4 sm:$0xff]   ;;  %v1913_v42 = vld [vmem:[%s2322_s13 + $0x214] ss:$8 sps:$4 sm:$0xff]  }
  0x76   : > { %1384 = vmatpush1.bf16.msra.mxu1 %v1843_v56  ;;  %1344 = vmatprep.subr.bf16.mxu0 %v1844_v57  ;;  %v2394_v41 = vld [vmem:[%s2306_s30 + $0x10] sm:$0xff]  ;;  %v1911_v44 = vld [vmem:[%s2322_s13 + $0x210] ss:$8 sps:$4 sm:$0xff]   ;;  %v1919_v47 = vld [vmem:[%s2322_s13 + $0x234] ss:$8 sps:$4 sm:$0xff]  }
  0x77   : > { %1385 = vmatprep.subr.bf16.mxu1 %v1846_v58  ;;  %v1648_v43 = vcombine.high %v2394_v41, %v2394_v41  ;;  %v1916_v45 = vld [vmem:[%s2322_s13 + $0x224] ss:$8 sps:$4 sm:$0xff]   ;;  %v1914_v46 = vld [vmem:[%s2322_s13 + $0x220] ss:$8 sps:$4 sm:$0xff]   ;;  %v1917_v48 = vld [vmem:[%s2322_s13 + $0x230] ss:$8 sps:$4 sm:$0xff]  }
  0x78   : > { %v1922_v49 = vld [vmem:[%s2322_s13 + $0x244] ss:$8 sps:$4 sm:$0xff]   ;;  %v1920_v50 = vld [vmem:[%s2322_s13 + $0x240] ss:$8 sps:$4 sm:$0xff]   ;;  %v1925_v51 = vld [vmem:[%s2322_s13 + $0x254] ss:$8 sps:$4 sm:$0xff]  }
  0x79   : > { %1345 = vmatpush1.bf16.msra.mxu0 %v1848_v59  ;;  %v1923_v52 = vld [vmem:[%s2322_s13 + $0x250] ss:$8 sps:$4 sm:$0xff]   ;;  %v1928_v53 = vld [vmem:[%s2322_s13 + $0x264] ss:$8 sps:$4 sm:$0xff]   ;;  %v1926_v54 = vld [vmem:[%s2322_s13 + $0x260] ss:$8 sps:$4 sm:$0xff]  }
  0x7a   : > { %1386 = vmatpush1.bf16.msra.mxu1 %v1849_v60  ;;  %1346 = vmatprep.subr.bf16.mxu0 %v1850_v61  ;;  %v1931_v55 = vld [vmem:[%s2322_s13 + $0x274] ss:$8 sps:$4 sm:$0xff]   ;;  %v1929_v56 = vld [vmem:[%s2322_s13 + $0x270] ss:$8 sps:$4 sm:$0xff]   ;;  %v1934_v57 = vld [vmem:[%s2322_s13 + $0x284] ss:$8 sps:$4 sm:$0xff]  }
  0x7b   : > { %1387 = vmatprep.subr.bf16.mxu1 %v1852_v62  ;;  %v1932_v58 = vld [vmem:[%s2322_s13 + $0x280] ss:$8 sps:$4 sm:$0xff]   ;;  %v1937_v59 = vld [vmem:[%s2322_s13 + $0x294] ss:$8 sps:$4 sm:$0xff]   ;;  %v1935_v60 = vld [vmem:[%s2322_s13 + $0x290] ss:$8 sps:$4 sm:$0xff]  }
  0x7c   : > { %v1940_v61 = vld [vmem:[%s2322_s13 + $0x2a4] ss:$8 sps:$4 sm:$0xff]   ;;  %v1938_v62 = vld [vmem:[%s2322_s13 + $0x2a0] ss:$8 sps:$4 sm:$0xff]   ;;  %v730_v20 = vld [vmem:[#allocation2] sm:$0xff] }
  0x7d   : > { %1347 = vmatpush1.bf16.msra.mxu0 %v1854_v63  ;;  %v1943_v63 = vld [vmem:[%s2322_s13 + $0x2b4] ss:$8 sps:$4 sm:$0xff]  }
  0x7e   : > { %1388 = vmatpush1.bf16.msra.mxu1 %v1855_v0  ;;  %1348 = vmatprep.subr.bf16.mxu0 %v1856_v1  ;;  %v1941_v0 = vld [vmem:[%s2322_s13 + $0x2b0] ss:$8 sps:$4 sm:$0xff]   ;;  %v1946_v1 = vld [vmem:[%s2322_s13 + $0x2c4] ss:$8 sps:$4 sm:$0xff]  }
  0x7f   : > { %1389 = vmatprep.subr.bf16.mxu1 %v1858_v2  ;;  %v1944_v2 = vld [vmem:[%s2322_s13 + $0x2c0] ss:$8 sps:$4 sm:$0xff]  }
  0x81   : > { %1349 = vmatpush1.bf16.msra.mxu0 %v1860_v3  ;;  %v1949_v3 = vld [vmem:[%s2322_s13 + $0x2d4] ss:$8 sps:$4 sm:$0xff]  }
  0x82   : > { %1390 = vmatpush1.bf16.msra.mxu1 %v1861_v4  ;;  %1350 = vmatprep.subr.bf16.mxu0 %v1862_v5  ;;  %v1947_v4 = vld [vmem:[%s2322_s13 + $0x2d0] ss:$8 sps:$4 sm:$0xff]   ;;  %v1952_v5 = vld [vmem:[%s2322_s13 + $0x2e4] ss:$8 sps:$4 sm:$0xff]  }
  0x83   : > { %1391 = vmatprep.subr.bf16.mxu1 %v1864_v6  ;;  %v1950_v6 = vld [vmem:[%s2322_s13 + $0x2e0] ss:$8 sps:$4 sm:$0xff]  }
  0x85   : > { %1351 = vmatpush1.bf16.msra.mxu0 %v1866_v7  ;;  %v1955_v7 = vld [vmem:[%s2322_s13 + $0x2f4] ss:$8 sps:$4 sm:$0xff]  }
  0x86   : > { %1392 = vmatpush1.bf16.msra.mxu1 %v1867_v8  ;;  %1352 = vmatprep.subr.bf16.mxu0 %v1868_v9  ;;  %v1953_v8 = vld [vmem:[%s2322_s13 + $0x2f0] ss:$8 sps:$4 sm:$0xff]   ;;  %v1647_v9 = vcombine.low %v2394_v41, %v2394_v41 }
  0x87   : > { %1393 = vmatprep.subr.bf16.mxu1 %v1870_v10 }
  0x89   : > { %1353 = vmatpush1.bf16.msra.mxu0 %v1872_v11 }
  0x8a   : > { %1394 = vmatpush1.bf16.msra.mxu1 %v1873_v12  ;;  %1354 = vmatprep.subr.bf16.mxu0 %v1874_v13 }
  0x8b   : > { %1395 = vmatprep.subr.bf16.mxu1 %v1876_v14 }
  0x8d   : > { %1355 = vmatpush1.bf16.msra.mxu0 %v1878_v18 }
  0x8e   : > { %1396 = vmatpush1.bf16.msra.mxu1 %v1879_v19  ;;  %1356 = vmatprep.subr.bf16.mxu0 %v1880_v21 }
  0x8f   : > { %1397 = vmatprep.subr.bf16.mxu1 %v1882_v22 }
  0x91   : > { %1357 = vmatpush1.bf16.msra.mxu0 %v1884_v23  ;;  %v731_v23 = vld [vmem:[#allocation2 + $0x8] sm:$0xff] }
  0x92   : > { %1398 = vmatpush1.bf16.msra.mxu1 %v1885_v24  ;;  %1358 = vmatprep.subr.bf16.mxu0 %v1886_v25 }
  0x93   : > { %1399 = vmatprep.subr.bf16.mxu1 %v1888_v26 }
  0x95   : > { %1359 = vmatpush1.bf16.msra.mxu0 %v1890_v27 }
  0x96   : > { %1400 = vmatpush1.bf16.msra.mxu1 %v1891_v28  ;;  %1360 = vmatprep.subr.bf16.mxu0 %v1892_v29 }
  0x97   : > { %1401 = vmatprep.subr.bf16.mxu1 %v1894_v30  ;;  %v1467_v30 = vlaneseq (!%p1745_p13) }
  0x99   : > { %1361 = vmatpush1.bf16.msra.mxu0 %v1896_v31  ;;  %v1468_v31 = vshrl.u32 (!%p1745_p13), %v1467_v30, 7 }
  0x9a   : > { %1402 = vmatpush1.bf16.msra.mxu1 %v1897_v32  ;;  %1362 = vmatprep.subr.bf16.mxu0 %v1898_v33  ;;  %v1465_v32 = vld [vmem:[%s707_s15] sm:$0x3] (!%p1745_p13) }
  0x9b   : > { %1403 = vmatprep.subr.bf16.mxu1 %v1900_v34  ;;  %v1479_v33 = vld [vmem:[%s712_s8] sm:$0x3] (!%p1745_p13)  ;;  %v1469_v34 = vsub.s32 (!%p1745_p13), 0, %v1468_v31 }
  0x9d   : > { %1363 = vmatpush1.bf16.msra.mxu0 %v1902_v35  ;;  %v1473_v35 = vsub.s32 (!%p1745_p13), 1, %v1468_v31 }
  0x9e   : > { %1404 = vmatpush1.bf16.msra.mxu1 %v1903_v36  ;;  %1414 = vmatprep.subr.bf16.mxu0 %v1910_v37 }
  0x9f   : > { %v1488_v41 = vrot.slane (!%p1745_p13), %v1479_v33, %v1473_v35 }
  0xa0   : > { %1365 = vmatmul.mubr.bf16.vlgmr.msra.gmra.mrb[0].mxu0 %v1643_v38  ;;  %v1470_v38 = vrot.slane (!%p1745_p13), %v1465_v32, %v1469_v34 }
  0xa1   : > { %1406 = vmatmul.mubr.bf16.vlgmr.msra.gmra.mrb[0].mxu1 %v1645_v39  ;;  %1415 = vmatpush1.bf16.msra.mxu0 %v1908_v40  ;;  %v1484_v39 = vrot.slane (!%p1745_p13), %v1479_v33, %v1469_v34  ;;  %v1474_v40 = vrot.slane (!%p1745_p13), %v1465_v32, %v1473_v35 }
  0xa2   : > { %1446 = vmatprep.mubr.bf16.mxu0 %v1648_v43  ;;  %1416 = vmatprep.subr.bf16.mxu0 %v1913_v42 }
  0xa5   : > { %1417 = vmatpush1.bf16.msra.mxu0 %v1911_v44 }
  0xa6   : > { %1418 = vmatprep.subr.bf16.mxu0 %v1916_v45 }
  0xa9   : > { %1419 = vmatpush1.bf16.msra.mxu0 %v1914_v46 }
  0xaa   : > { %1420 = vmatprep.subr.bf16.mxu0 %v1919_v47 }
  0xad   : > { %1421 = vmatpush1.bf16.msra.mxu0 %v1917_v48 }
  0xae   : > { %1422 = vmatprep.subr.bf16.mxu0 %v1922_v49 }
  0xb1   : > { %1423 = vmatpush1.bf16.msra.mxu0 %v1920_v50 }
  0xb2   : > { %1424 = vmatprep.subr.bf16.mxu0 %v1925_v51 }
  0xb5   : > { %1425 = vmatpush1.bf16.msra.mxu0 %v1923_v52 }
  0xb6   : > { %1426 = vmatprep.subr.bf16.mxu0 %v1928_v53 }
  0xb9   : > { %1427 = vmatpush1.bf16.msra.mxu0 %v1926_v54 }
  0xba   : > { %1428 = vmatprep.subr.bf16.mxu0 %v1931_v55 }
  0xbd   : > { %1429 = vmatpush1.bf16.msra.mxu0 %v1929_v56 }
  0xbe   : > { %1430 = vmatprep.subr.bf16.mxu0 %v1934_v57 }
  0xc1   : > { %1431 = vmatpush1.bf16.msra.mxu0 %v1932_v58 }
  0xc2   : > { %1432 = vmatprep.subr.bf16.mxu0 %v1937_v59 }
  0xc5   : > { %1433 = vmatpush1.bf16.msra.mxu0 %v1935_v60 }
  0xc6   : > { %1434 = vmatprep.subr.bf16.mxu0 %v1940_v61 }
  0xc9   : > { %1435 = vmatpush1.bf16.msra.mxu0 %v1938_v62 }
  0xca   : > { %1436 = vmatprep.subr.bf16.mxu0 %v1943_v63 }
  0xcd   : > { %1437 = vmatpush1.bf16.msra.mxu0 %v1941_v0 }
  0xce   : > { %1438 = vmatprep.subr.bf16.mxu0 %v1946_v1 }
  0xd1   : > { %1439 = vmatpush1.bf16.msra.mxu0 %v1944_v2 }
  0xd2   : > { %1440 = vmatprep.subr.bf16.mxu0 %v1949_v3 }
  0xd5   : > { %1441 = vmatpush1.bf16.msra.mxu0 %v1947_v4 }
  0xd6   : > { %1442 = vmatprep.subr.bf16.mxu0 %v1952_v5 }
  0xd9   : > { %1443 = vmatpush1.bf16.msra.mxu0 %v1950_v6 }
  0xda   : > { %1444 = vmatprep.subr.bf16.mxu0 %v1955_v7 }
  0xdd   : > { %1445 = vmatpush1.bf16.msra.mxu0 %v1953_v8 }
  0xe0   : > { %1447 = vmatmul.mubr.bf16.vlgmr.msra.gmra.mrb[4].mxu0 %v1647_v9 }
 0x173   : > { %v1366_v10 = vpop.f32.mrb[0].mxu0 }
 0x174   : > { %v1407_v11 = vpop.f32.mrb[0].mxu1  ;;  %v1368_v13 = vpop.f32.mrb[1].mxu0 }
 0x175   : > { %v1408_v12 = vadd.f32 %v1407_v11, %v1366_v10  ;;  %v1409_v14 = vpop.f32.mrb[1].mxu1  ;;  %v1370_v16 = vpop.f32.mrb[2].mxu0 }
 0x176   : > { %v1410_v15 = vadd.f32 %v1409_v14, %v1368_v13  ;;  %v1411_v17 = vpop.f32.mrb[2].mxu1  ;;  %v1371_v18 = vpop.f32.mrb[3].mxu0 }
 0x177   : > { %v1412_v19 = vpop.f32.mrb[3].mxu1 }
 0x1b3   : > { %v1448_v21 = vpop.f32.mrb[4].mxu0  ;;  %1462 = sbr.rel (%p1745_p13) target bundleno = 456 (0x1c8), region = 82 }
 0x1b4   : > { %v1449_v22 = vadd.f32 %v1448_v21, %v1408_v12  ;;  %v1450_v24 = vpop.f32.mrb[5].mxu0 }
 0x1b5   : > { %v1451_v25 = vadd.f32 %v1450_v24, %v1410_v15  ;;  %v1452_v26 = vpop.f32.mrb[6].mxu0 }
 0x1b6   : > { %v1455_v27 = vadd.f32 %v1449_v22, %v730_v20  ;;  %v1453_v28 = vpop.f32.mrb[7].mxu0 }
 0x1b7   : > { %v1456_v29 = vadd.f32 %v1451_v25, %v731_v23 }
 0x1b8   : > { %1457 = vst [vmem:[#allocation2] sm:$0xff] %v1455_v27 }
 0x1b9   : > { %1458 = vst [vmem:[#allocation2 + $0x8] sm:$0xff] %v1456_v29 }
 0x1bf   : > { %v1463_v36 = vld [vmem:[#allocation2] sm:$0xff] }
 0x1c0   : > { %v1464_v37 = vld [vmem:[#allocation2 + $0x8] sm:$0xff]  ;;  %v1477_v42 = vmul.f32 %v1470_v38, %v1463_v36 }
 0x1c1   : > { %v1478_v43 = vmul.f32 %v1474_v40, %v1464_v37 }
 0x1c2   : > { %v1491_v44 = vadd.f32 %v1484_v39, %v1477_v42 }
 0x1c3   : > { %v1492_v45 = vadd.f32 %v1488_v41, %v1478_v43 }
 0x1c4   : > { %v1493_v46 = vmax.f32 %v1491_v44, 0.0 }
 0x1c5   : > { %v1494_v47 = vmax.f32 %v1492_v45, 0.0 }
 0x1c6   : > { %1495 = vst [vmem:[%s2320_s12] sm:$0xff] %v1493_v46 }
 0x1c7   : > { %1496 = vst [vmem:[%s2320_s12 + $0x8] sm:$0xff] %v1494_v47 }
 0x1c8 PF: > { %s14_s21 = sadd.s32 1, %s2012_s21   ;;  %s2469_s15 = smov %s1992_s16 }
 0x1c9   : > { %p11_p0 = scmp.ge.s32.totalorder %s14_s21, 8   ;;  %s2470_s16 = smov %s2091_s28 }
 0x1ca   : > { %s2471_s17 = smov %s2004_s19  ;;  %s2472_s18 = smov %s2008_s20 }
 0x1cb   : > { %s2473_s19 = smov %s2476_s22  ;;  %s2474_s20 = smov %s2480_s23 }
 0x1cc   :  { %13 = sbr.rel (!%p11_p0) target bundleno = 4 (0x4), region = 126 }

// kernel: _lambda_.24
= control target key start
LH: loop header
LB: loop body
LE: loop exit
PB: predicated region body
PF: predicated region fallthrough
CT: control target
= control target key end

     0   :  { %s1094_s15 = smov 0   ;;  %s1096_s16 = smov 0   ;;  %s1276_s0 = inlined_call_operand.vmem [shape: bf16[8,256], index: 0, kind: input, shape index: {}]   ;;  %s1277_s1 = inlined_call_operand.vmem [shape: bf16[256,512], index: 1, kind: input, shape index: {}]   ;;  %s1278_s2 = inlined_call_operand.vmem [shape: f32[1,512], index: 2, kind: input, shape index: {}]   ;;  %s1279_s3 = inlined_call_operand.vmem [shape: f32[1,512], index: 3, kind: input, shape index: {}]   ;;  %s1280_s4 = inlined_call_operand.vmem [shape: f32[8,512], index: 4, kind: output, shape index: {}]  }
   0x1   :  { %s1098_s17 = smov 0   ;;  %s1100_s18 = smov 0  }
   0x2   :  { %s1102_s19 = smov 0  }
   0x3 LB: > { %s29_s20 = sadd.s32 1, %s1063_s18  ;;  %p77_p1 = scmp.ne.s32.totalorder %s1055_s16, %s1051_s15  ;;  %s1067_s19 = sphi %s1102_s19, %s14_s19   ;;  %s1063_s18 = sphi %s1100_s18, %s1284_s18   ;;  %s1059_s17 = sphi %s1098_s17, %s1283_s17   ;;  %s1055_s16 = sphi %s1096_s16, %s1282_s16   ;;  %s1051_s15 = sphi %s1094_s15, %s1281_s15  }
   0x4   : > { %p31_p0 = scmp.ge.s32.totalorder %s29_s20, 2  ;;  %p78_p2 = scmp.eq.s32.totalorder %s1067_s19, 0 }
   0x5   : > { %s70_s22 = sadd.s32 1, %s1055_s16  ;;  %p892_p5 = scmp.ge.s32.totalorder %s1067_s19, 2 }
   0x6   : > { %s1286_s20 = smov (%p31_p0, %s29_s20), 0  ;;  %p79_p3 = por %p78_p2, %p77_p1 }
   0x7   : > { %s66_s21 = ssub.s32 %s1063_s18, %s1286_s20  ;;  %196 = sbr.rel (%p892_p5) target bundleno = 34 (0x22), region = 20 }
   0x8   : > { %p68_p4 = scmp.eq.s32.totalorder %s66_s21, 0 }
   0xa   : > { %s1129_s23 = scalar_select %p68_p4, %s1055_s16, %s70_s22  }
   0xe   : > { %199 = sbr.rel (!%p79_p3) target bundleno = 34 (0x22), region = 24  ;;  %s201_s24 = sand.u32 (%p79_p3), 1, %s1055_s16  }
   0xf   : > { %s938_s25 = sshll.u32 (%p79_p3), %s1063_s18, 3  ;;  %s893_s26 = sshll.u32 (%p79_p3), %s201_s24, 8 }
  0x10   : > { %s1137_s29 = scalar_lea.vmem (%p79_p3), %s1277_s1, %s938_s25  ;;  %s1142_s30 = scalar_lea.vmem (%p79_p3), [#allocation3], %s893_s26 }
  0x11   : > { %v299_v0 = vld [vmem:[%s1137_s29] sm:$0xff] (%p79_p3)  ;;  %v301_v1 = vld [vmem:[%s1137_s29 + $0x10] sm:$0xff] (%p79_p3) }
  0x12   : > { %v303_v2 = vld [vmem:[%s1137_s29 + $0x20] sm:$0xff] (%p79_p3)  ;;  %300 = vst [vmem:[%s1142_s30] sm:$0xff] (%p79_p3), %v299_v0  ;;  %302 = vst [vmem:[%s1142_s30 + $0x8] sm:$0xff] (%p79_p3), %v301_v1  ;;  %v305_v3 = vld [vmem:[%s1137_s29 + $0x30] sm:$0xff] (%p79_p3) }
  0x13   : > { %304 = vst [vmem:[%s1142_s30 + $0x10] sm:$0xff] (%p79_p3), %v303_v2  ;;  %v307_v4 = vld [vmem:[%s1137_s29 + $0x40] sm:$0xff] (%p79_p3)  ;;  %v309_v5 = vld [vmem:[%s1137_s29 + $0x50] sm:$0xff] (%p79_p3)  ;;  %306 = vst [vmem:[%s1142_s30 + $0x18] sm:$0xff] (%p79_p3), %v305_v3 }
  0x14   : > { %308 = vst [vmem:[%s1142_s30 + $0x20] sm:$0xff] (%p79_p3), %v307_v4  ;;  %310 = vst [vmem:[%s1142_s30 + $0x28] sm:$0xff] (%p79_p3), %v309_v5  ;;  %v311_v6 = vld [vmem:[%s1137_s29 + $0x60] sm:$0xff] (%p79_p3)  ;;  %v313_v7 = vld [vmem:[%s1137_s29 + $0x70] sm:$0xff] (%p79_p3) }
  0x15   : > { %v315_v8 = vld [vmem:[%s1137_s29 + $0x80] sm:$0xff]  ;;  %312 = vst [vmem:[%s1142_s30 + $0x30] sm:$0xff] %v311_v6  ;;  %314 = vst [vmem:[%s1142_s30 + $0x38] sm:$0xff] %v313_v7  ;;  %v317_v9 = vld [vmem:[%s1137_s29 + $0x90] sm:$0xff] }
  0x16   : > { %316 = vst [vmem:[%s1142_s30 + $0x40] sm:$0xff] %v315_v8  ;;  %v319_v10 = vld [vmem:[%s1137_s29 + $0xa0] sm:$0xff]  ;;  %v321_v11 = vld [vmem:[%s1137_s29 + $0xb0] sm:$0xff]  ;;  %318 = vst [vmem:[%s1142_s30 + $0x48] sm:$0xff] %v317_v9 }
  0x17   : > { %320 = vst [vmem:[%s1142_s30 + $0x50] sm:$0xff] %v319_v10  ;;  %322 = vst [vmem:[%s1142_s30 + $0x58] sm:$0xff] %v321_v11  ;;  %v323_v12 = vld [vmem:[%s1137_s29 + $0xc0] sm:$0xff]  ;;  %v325_v13 = vld [vmem:[%s1137_s29 + $0xd0] sm:$0xff] }
  0x18   : > { %v327_v14 = vld [vmem:[%s1137_s29 + $0xe0] sm:$0xff]  ;;  %324 = vst [vmem:[%s1142_s30 + $0x60] sm:$0xff] %v323_v12  ;;  %326 = vst [vmem:[%s1142_s30 + $0x68] sm:$0xff] %v325_v13  ;;  %v329_v15 = vld [vmem:[%s1137_s29 + $0xf0] sm:$0xff] }
  0x19   : > { %328 = vst [vmem:[%s1142_s30 + $0x70] sm:$0xff] %v327_v14  ;;  %v331_v16 = vld [vmem:[%s1137_s29 + $0x100] sm:$0xff]  ;;  %v333_v17 = vld [vmem:[%s1137_s29 + $0x110] sm:$0xff]  ;;  %330 = vst [vmem:[%s1142_s30 + $0x78] sm:$0xff] %v329_v15 }
  0x1a   : > { %332 = vst [vmem:[%s1142_s30 + $0x80] sm:$0xff] %v331_v16  ;;  %334 = vst [vmem:[%s1142_s30 + $0x88] sm:$0xff] %v333_v17  ;;  %v335_v18 = vld [vmem:[%s1137_s29 + $0x120] sm:$0xff]  ;;  %v337_v19 = vld [vmem:[%s1137_s29 + $0x130] sm:$0xff] }
  0x1b   : > { %v339_v20 = vld [vmem:[%s1137_s29 + $0x140] sm:$0xff]  ;;  %336 = vst [vmem:[%s1142_s30 + $0x90] sm:$0xff] %v335_v18  ;;  %338 = vst [vmem:[%s1142_s30 + $0x98] sm:$0xff] %v337_v19  ;;  %v341_v21 = vld [vmem:[%s1137_s29 + $0x150] sm:$0xff] }
  0x1c   : > { %340 = vst [vmem:[%s1142_s30 + $0xa0] sm:$0xff] %v339_v20  ;;  %v343_v22 = vld [vmem:[%s1137_s29 + $0x160] sm:$0xff]  ;;  %v345_v23 = vld [vmem:[%s1137_s29 + $0x170] sm:$0xff]  ;;  %342 = vst [vmem:[%s1142_s30 + $0xa8] sm:$0xff] %v341_v21 }
  0x1d   : > { %344 = vst [vmem:[%s1142_s30 + $0xb0] sm:$0xff] %v343_v22  ;;  %346 = vst [vmem:[%s1142_s30 + $0xb8] sm:$0xff] %v345_v23  ;;  %v347_v24 = vld [vmem:[%s1137_s29 + $0x180] sm:$0xff]  ;;  %v349_v25 = vld [vmem:[%s1137_s29 + $0x190] sm:$0xff] }
  0x1e   : > { %v351_v26 = vld [vmem:[%s1137_s29 + $0x1a0] sm:$0xff]  ;;  %348 = vst [vmem:[%s1142_s30 + $0xc0] sm:$0xff] %v347_v24  ;;  %350 = vst [vmem:[%s1142_s30 + $0xc8] sm:$0xff] %v349_v25  ;;  %v353_v27 = vld [vmem:[%s1137_s29 + $0x1b0] sm:$0xff] }
  0x1f   : > { %352 = vst [vmem:[%s1142_s30 + $0xd0] sm:$0xff] %v351_v26  ;;  %v355_v28 = vld [vmem:[%s1137_s29 + $0x1c0] sm:$0xff]  ;;  %v357_v29 = vld [vmem:[%s1137_s29 + $0x1d0] sm:$0xff]  ;;  %354 = vst [vmem:[%s1142_s30 + $0xd8] sm:$0xff] %v353_v27 }
  0x20   : > { %356 = vst [vmem:[%s1142_s30 + $0xe0] sm:$0xff] %v355_v28  ;;  %358 = vst [vmem:[%s1142_s30 + $0xe8] sm:$0xff] %v357_v29  ;;  %v359_v30 = vld [vmem:[%s1137_s29 + $0x1e0] sm:$0xff]  ;;  %v361_v31 = vld [vmem:[%s1137_s29 + $0x1f0] sm:$0xff] }
  0x21   : > { %360 = vst [vmem:[%s1142_s30 + $0xf0] sm:$0xff] %v359_v30  ;;  %362 = vst [vmem:[%s1142_s30 + $0xf8] sm:$0xff] %v361_v31 }
  0x22 PF: > { %p896_p6 = scmp.ge.s32.totalorder %s1067_s19, 1  ;;  %p383_p7 = scmp.lt.s32.totalorder %s1067_s19, 3 }
  0x24   : > { %p384_p8 = pnand %p896_p6, %p383_p7 }
  0x25   : > { %s390_s5 = sand.u32 (!%p384_p8), 1, %s1051_s15   ;;  %v1211_v32 = vld [vmem:[%s1276_s0] sm:$0xff] (!%p384_p8)  ;;  %s898_s10 = sshll.u32 (!%p384_p8), %s1059_s17, 1  ;;  %v728_v3 = vlaneseq (!%p384_p8) }
  0x26   : > { %387 = sbr.rel (%p384_p8) target bundleno = 323 (0x143), region = 70  ;;  %s897_s8 = sshll.u32 (!%p384_p8), %s390_s5, 8  ;;  %v903_v33 = vcombine.high (!%p384_p8), %v1211_v32, %v1211_v32  ;;  %v902_v2 = vcombine.low (!%p384_p8), %v1211_v32, %v1211_v32 }
  0x27   : > { %s1215_s9 = scalar_lea.vmem (!%p384_p8), [#allocation3], %s897_s8  ;;  %p449_p9 = scmp.lt.s32.totalorder (!%p384_p8), %s898_s10, 3  ;;  %v729_v4 = vshrl.u32 (!%p384_p8), %v728_v3, 7 }
  0x28   : > { %v979_v34 = vld [vmem:[%s1215_s9 + $0x4] ss:$8 sps:$4 sm:$0xff] (!%p384_p8)   ;;  %708 = vmatprep.mubr.bf16.mxu0 (!%p384_p8), %v903_v33  ;;  %v981_v35 = vld [vmem:[%s1215_s9] ss:$8 sps:$4 sm:$0xff] (!%p384_p8)   ;;  %v982_v36 = vld [vmem:[%s1215_s9 + $0x14] ss:$8 sps:$4 sm:$0xff] (!%p384_p8)  }
  0x29   : > { %676 = vmatprep.subr.bf16.mxu0 (!%p384_p8), %v979_v34  ;;  %v984_v37 = vld [vmem:[%s1215_s9 + $0x10] ss:$8 sps:$4 sm:$0xff] (!%p384_p8)   ;;  %v985_v38 = vld [vmem:[%s1215_s9 + $0x24] ss:$8 sps:$4 sm:$0xff] (!%p384_p8)   ;;  %v987_v39 = vld [vmem:[%s1215_s9 + $0x20] ss:$8 sps:$4 sm:$0xff] (!%p384_p8)  }
  0x2a   : > { %677 = vmatpush1.bf16.msra.mxu0 (!%p384_p8), %v981_v35  ;;  %v988_v40 = vld [vmem:[%s1215_s9 + $0x34] ss:$8 sps:$4 sm:$0xff] (!%p384_p8)   ;;  %v990_v41 = vld [vmem:[%s1215_s9 + $0x30] ss:$8 sps:$4 sm:$0xff] (!%p384_p8)   ;;  %v991_v42 = vld [vmem:[%s1215_s9 + $0x44] ss:$8 sps:$4 sm:$0xff] (!%p384_p8)  }
  0x2b   : > { %678 = vmatprep.subr.bf16.mxu0 (!%p384_p8), %v982_v36  ;;  %v993_v43 = vld [vmem:[%s1215_s9 + $0x40] ss:$8 sps:$4 sm:$0xff] (!%p384_p8)   ;;  %v994_v44 = vld [vmem:[%s1215_s9 + $0x54] ss:$8 sps:$4 sm:$0xff] (!%p384_p8)   ;;  %v996_v45 = vld [vmem:[%s1215_s9 + $0x50] ss:$8 sps:$4 sm:$0xff] (!%p384_p8)  }
  0x2c   : > { %v997_v46 = vld [vmem:[%s1215_s9 + $0x64] ss:$8 sps:$4 sm:$0xff] (!%p384_p8)   ;;  %v999_v47 = vld [vmem:[%s1215_s9 + $0x60] ss:$8 sps:$4 sm:$0xff] (!%p384_p8)   ;;  %v1000_v48 = vld [vmem:[%s1215_s9 + $0x74] ss:$8 sps:$4 sm:$0xff] (!%p384_p8)  }
  0x2d   : > { %v1002_v49 = vld [vmem:[%s1215_s9 + $0x70] ss:$8 sps:$4 sm:$0xff]   ;;  %v1003_v50 = vld [vmem:[%s1215_s9 + $0x84] ss:$8 sps:$4 sm:$0xff]   ;;  %v1005_v51 = vld [vmem:[%s1215_s9 + $0x80] ss:$8 sps:$4 sm:$0xff]  }
  0x2e   : > { %679 = vmatpush1.bf16.msra.mxu0 %v984_v37  ;;  %v1006_v52 = vld [vmem:[%s1215_s9 + $0x94] ss:$8 sps:$4 sm:$0xff]   ;;  %v1008_v53 = vld [vmem:[%s1215_s9 + $0x90] ss:$8 sps:$4 sm:$0xff]   ;;  %v1009_v54 = vld [vmem:[%s1215_s9 + $0xa4] ss:$8 sps:$4 sm:$0xff]  }
  0x2f   : > { %680 = vmatprep.subr.bf16.mxu0 %v985_v38  ;;  %v1011_v55 = vld [vmem:[%s1215_s9 + $0xa0] ss:$8 sps:$4 sm:$0xff]   ;;  %v1012_v56 = vld [vmem:[%s1215_s9 + $0xb4] ss:$8 sps:$4 sm:$0xff]   ;;  %v1014_v57 = vld [vmem:[%s1215_s9 + $0xb0] ss:$8 sps:$4 sm:$0xff]  }
  0x30   : > { %v1015_v58 = vld [vmem:[%s1215_s9 + $0xc4] ss:$8 sps:$4 sm:$0xff]   ;;  %v1017_v59 = vld [vmem:[%s1215_s9 + $0xc0] ss:$8 sps:$4 sm:$0xff]   ;;  %v1018_v60 = vld [vmem:[%s1215_s9 + $0xd4] ss:$8 sps:$4 sm:$0xff]  }
  0x31   : > { %v1020_v61 = vld [vmem:[%s1215_s9 + $0xd0] ss:$8 sps:$4 sm:$0xff]   ;;  %v1021_v62 = vld [vmem:[%s1215_s9 + $0xe4] ss:$8 sps:$4 sm:$0xff]   ;;  %v1023_v63 = vld [vmem:[%s1215_s9 + $0xe0] ss:$8 sps:$4 sm:$0xff]  }
  0x32   : > { %681 = vmatpush1.bf16.msra.mxu0 %v987_v39  ;;  %v1024_v0 = vld [vmem:[%s1215_s9 + $0xf4] ss:$8 sps:$4 sm:$0xff]   ;;  %v1026_v1 = vld [vmem:[%s1215_s9 + $0xf0] ss:$8 sps:$4 sm:$0xff]   ;;  %s1288_s10 = smov (!%p449_p9, %s898_s10), 3  ;;  %v730_v5 = vsub.s32 0, %v729_v4 }
  0x33   : > { %682 = vmatprep.subr.bf16.mxu0 %v988_v40  ;;  %s451_s13 = scalar_lea.vmem %s1278_s2, %s1288_s10  ;;  %s456_s21 = scalar_lea.vmem %s1279_s3, %s1288_s10  ;;  %v734_v7 = vsub.s32 1, %v729_v4 }
  0x34   : > { %v726_v6 = vld [vmem:[%s451_s13] sm:$0x3]  ;;  %s901_s22 = sshll.u32 %s1288_s10, 3 }
  0x35   : > { %v740_v8 = vld [vmem:[%s456_s21] sm:$0x3]  ;;  %v731_v9 = vrot.slane %v726_v6, %v730_v5  ;;  %v735_v10 = vrot.slane %v726_v6, %v734_v7  ;;  %s466_s25 = scalar_lea.vmem %s1280_s4, %s901_s22 }
  0x36   : > { %683 = vmatpush1.bf16.msra.mxu0 %v990_v41  ;;  %v745_v11 = vrot.slane %v740_v8, %v730_v5  ;;  %v749_v13 = vrot.slane %v740_v8, %v734_v7 }
  0x37   : > { %684 = vmatprep.subr.bf16.mxu0 %v991_v42 }
  0x3a   : > { %685 = vmatpush1.bf16.msra.mxu0 %v993_v43 }
  0x3b   : > { %686 = vmatprep.subr.bf16.mxu0 %v994_v44 }
  0x3e   : > { %687 = vmatpush1.bf16.msra.mxu0 %v996_v45 }
  0x3f   : > { %688 = vmatprep.subr.bf16.mxu0 %v997_v46 }
  0x42   : > { %689 = vmatpush1.bf16.msra.mxu0 %v999_v47 }
  0x43   : > { %690 = vmatprep.subr.bf16.mxu0 %v1000_v48 }
  0x46   : > { %691 = vmatpush1.bf16.msra.mxu0 %v1002_v49 }
  0x47   : > { %692 = vmatprep.subr.bf16.mxu0 %v1003_v50 }
  0x4a   : > { %693 = vmatpush1.bf16.msra.mxu0 %v1005_v51 }
  0x4b   : > { %694 = vmatprep.subr.bf16.mxu0 %v1006_v52 }
  0x4e   : > { %695 = vmatpush1.bf16.msra.mxu0 %v1008_v53 }
  0x4f   : > { %696 = vmatprep.subr.bf16.mxu0 %v1009_v54 }
  0x52   : > { %697 = vmatpush1.bf16.msra.mxu0 %v1011_v55 }
  0x53   : > { %698 = vmatprep.subr.bf16.mxu0 %v1012_v56 }
  0x56   : > { %699 = vmatpush1.bf16.msra.mxu0 %v1014_v57 }
  0x57   : > { %700 = vmatprep.subr.bf16.mxu0 %v1015_v58 }
  0x5a   : > { %701 = vmatpush1.bf16.msra.mxu0 %v1017_v59 }
  0x5b   : > { %702 = vmatprep.subr.bf16.mxu0 %v1018_v60 }
  0x5e   : > { %703 = vmatpush1.bf16.msra.mxu0 %v1020_v61 }
  0x5f   : > { %704 = vmatprep.subr.bf16.mxu0 %v1021_v62 }
  0x62   : > { %705 = vmatpush1.bf16.msra.mxu0 %v1023_v63 }
  0x63   : > { %706 = vmatprep.subr.bf16.mxu0 %v1024_v0 }
  0x66   : > { %707 = vmatpush1.bf16.msra.mxu0 %v1026_v1 }
  0x69   : > { %709 = vmatmul.mubr.bf16.vlgmr.msra.gmra.mrb[0].mxu0 %v902_v2 }
 0x13c   : > { %v710_v12 = vpop.f32.mrb[0].mxu0 }
 0x13d   : > { %v738_v14 = vmul.f32 %v731_v9, %v710_v12  ;;  %v712_v15 = vpop.f32.mrb[1].mxu0 }
 0x13e   : > { %v739_v16 = vmul.f32 %v735_v10, %v712_v15  ;;  %v714_v17 = vpop.f32.mrb[2].mxu0 }
 0x13f   : > { %v752_v18 = vadd.f32 %v745_v11, %v738_v14  ;;  %v715_v19 = vpop.f32.mrb[3].mxu0 }
 0x140   : > { %v753_v20 = vadd.f32 %v749_v13, %v739_v16 }
 0x141   : > { %754 = vst [vmem:[%s466_s25] sm:$0xff] %v752_v18 }
 0x142   : > { %755 = vst [vmem:[%s466_s25 + $0x8] sm:$0xff] %v753_v20 }
 0x143 PF: > { %s14_s19 = sadd.s32 1, %s1067_s19   ;;  %s1281_s15 = smov %s1055_s16 }
 0x144   : > { %p11_p10 = scmp.ge.s32.totalorder %s14_s19, 4   ;;  %s1282_s16 = smov %s1129_s23 }
 0x145   : > { %s1283_s17 = smov %s1063_s18  ;;  %s1284_s18 = smov %s1286_s20 }
 0x146   :  { %13 = sbr.rel (!%p11_p10) target bundleno = 3 (0x3), region = 126 }

// kernel: _lambda_.26
= control target key start
LH: loop header
LB: loop body
LE: loop exit
PB: predicated region body
PF: predicated region fallthrough
CT: control target
= control target key end

     0   :  { %s2565_s0 = inlined_call_operand.vmem [shape: bf16[8,4608], index: 0, kind: input, shape index: {}]   ;;  %s2566_s1 = inlined_call_operand.vmem [shape: bf16[4608,512], index: 1, kind: input, shape index: {}]   ;;  %s2567_s2 = inlined_call_operand.vmem [shape: f32[1,512], index: 2, kind: input, shape index: {}]   ;;  %s2568_s3 = inlined_call_operand.vmem [shape: f32[1,512], index: 3, kind: input, shape index: {}]   ;;  %s2569_s4 = inlined_call_operand.vmem [shape: f32[8,512], index: 4, kind: input, shape index: {}]   ;;  %s2570_s5 = inlined_call_operand.vmem [shape: f32[8,512], index: 5, kind: output, shape index: {}]  }
   0x1   :  { %2571 = sst [smem:[#allocation4_spill]] %s2566_s1 }
   0x2   :  { %s2134_s18 = smov 0   ;;  %s2136_s19 = smov 0  }
   0x3   :  { %s2138_s20 = smov 0   ;;  %s2140_s21 = smov 0  }
   0x4   :  { %s2142_s22 = smov 0   ;;  %s2144_s23 = smov 0  }
   0x5   :  { %s2146_s24 = smov 0  }
   0x6 LB: > { %s27_s25 = sadd.s32 1, %s2093_s22  ;;  %s30_s26 = sadd.s32 1, %s2097_s23  ;;  %s2101_s24 = sphi %s2146_s24, %s15_s24   ;;  %s2097_s23 = sphi %s2144_s23, %s2578_s23   ;;  %s2093_s22 = sphi %s2142_s22, %s2577_s22   ;;  %s2089_s21 = sphi %s2140_s21, %s2576_s21   ;;  %s2085_s20 = sphi %s2138_s20, %s2575_s20   ;;  %s2081_s19 = sphi %s2136_s19, %s2574_s19   ;;  %s2077_s18 = sphi %s2134_s18, %s2573_s18  }
   0x7   : > { %p28_p0 = scmp.ge.s32.totalorder %s27_s25, 6  ;;  %p78_p1 = scmp.ne.s32.totalorder %s2081_s19, %s2077_s18 }
   0x8   : > { %p79_p2 = scmp.eq.s32.totalorder %s2101_s24, 0  ;;  %s71_s30 = sadd.s32 1, %s2081_s19 }
   0x9   : > { %s2580_s25 = smov (%p28_p0, %s27_s25), 0  ;;  %s2582_s26 = smov (!%p28_p0, %s30_s26), %s2097_s23 }
   0xa   : > { %p80_p3 = por %p79_p2, %p78_p1  ;;  %p32_p4 = scmp.ge.s32.totalorder %s2582_s26, 2 }
   0xb   : > { %s66_s27 = ssub.s32 %s2093_s22, %s2580_s25  ;;  %p1719_p6 = scmp.ge.s32.totalorder %s2101_s24, 12 }
   0xc   : > { %s2584_s26 = smov (%p32_p4, %s2582_s26), 0 }
   0xd   : > { %s67_s28 = ssub.s32 %s2097_s23, %s2584_s26  ;;  %212 = sbr.rel (%p1719_p6) target bundleno = 78 (0x4e), region = 16 }
   0xe   : > { %s68_s29 = sor.u32 %s67_s28, %s66_s27 }
   0xf   : > { %p69_p5 = scmp.eq.s32.totalorder %s68_s29, 0 }
  0x11   : > { %s2185_s6 = scalar_select %p69_p5, %s2081_s19, %s71_s30  }
  0x14   : > { %228 = sbr.rel (!%p80_p3) target bundleno = 78 (0x4e), region = 24  ;;  %s230_s7 = sand.u32 (%p80_p3), 1, %s2081_s19  }
  0x15   : > { %s1838_s8 = smul.u32 (%p80_p3), 768, %s230_s7  ;;  %s1720_s9 = sshll.u32 (%p80_p3), %s2097_s23, 1 }
  0x16   : > { %s1837_s10 = smul.u32 (%p80_p3), 384, %s2093_s22  ;;  %s2572_s1 = sld [smem:[#allocation4_spill]] (%p80_p3) }
  0x17   : > { %s2199_s16 = scalar_lea.vmem (%p80_p3), [#allocation3], %s1838_s8 }
  0x18   : > { %s236_s11 = sadd.s32 (%p80_p3), %s1837_s10, %s1720_s9 }
  0x19   : > { %s1722_s12 = sshll.u32 (%p80_p3), %s236_s11, 2 }
  0x1c   : > { %s2194_s15 = scalar_lea.vmem %s2572_s1, %s1722_s12 }
  0x1d   : > { %v456_v0 = vld [vmem:[%s2194_s15] sm:$0xff]  ;;  %v458_v1 = vld [vmem:[%s2194_s15 + $0x10] sm:$0xff] }
  0x1e   : > { %v460_v2 = vld [vmem:[%s2194_s15 + $0x20] sm:$0xff]  ;;  %457 = vst [vmem:[%s2199_s16] sm:$0xff] %v456_v0  ;;  %459 = vst [vmem:[%s2199_s16 + $0x8] sm:$0xff] %v458_v1  ;;  %v462_v3 = vld [vmem:[%s2194_s15 + $0x30] sm:$0xff] }
  0x1f   : > { %461 = vst [vmem:[%s2199_s16 + $0x10] sm:$0xff] %v460_v2  ;;  %v464_v4 = vld [vmem:[%s2194_s15 + $0x40] sm:$0xff]  ;;  %v466_v5 = vld [vmem:[%s2194_s15 + $0x50] sm:$0xff]  ;;  %463 = vst [vmem:[%s2199_s16 + $0x18] sm:$0xff] %v462_v3 }
  0x20   : > { %465 = vst [vmem:[%s2199_s16 + $0x20] sm:$0xff] %v464_v4  ;;  %467 = vst [vmem:[%s2199_s16 + $0x28] sm:$0xff] %v466_v5  ;;  %v468_v6 = vld [vmem:[%s2194_s15 + $0x60] sm:$0xff]  ;;  %v470_v7 = vld [vmem:[%s2194_s15 + $0x70] sm:$0xff] }
  0x21   : > { %v472_v8 = vld [vmem:[%s2194_s15 + $0x80] sm:$0xff]  ;;  %469 = vst [vmem:[%s2199_s16 + $0x30] sm:$0xff] %v468_v6  ;;  %471 = vst [vmem:[%s2199_s16 + $0x38] sm:$0xff] %v470_v7  ;;  %v474_v9 = vld [vmem:[%s2194_s15 + $0x90] sm:$0xff] }
  0x22   : > { %473 = vst [vmem:[%s2199_s16 + $0x40] sm:$0xff] %v472_v8  ;;  %v476_v10 = vld [vmem:[%s2194_s15 + $0xa0] sm:$0xff]  ;;  %v478_v11 = vld [vmem:[%s2194_s15 + $0xb0] sm:$0xff]  ;;  %475 = vst [vmem:[%s2199_s16 + $0x48] sm:$0xff] %v474_v9 }
  0x23   : > { %477 = vst [vmem:[%s2199_s16 + $0x50] sm:$0xff] %v476_v10  ;;  %479 = vst [vmem:[%s2199_s16 + $0x58] sm:$0xff] %v478_v11  ;;  %v480_v12 = vld [vmem:[%s2194_s15 + $0xc0] sm:$0xff]  ;;  %v482_v13 = vld [vmem:[%s2194_s15 + $0xd0] sm:$0xff] }
  0x24   : > { %v484_v14 = vld [vmem:[%s2194_s15 + $0xe0] sm:$0xff]  ;;  %481 = vst [vmem:[%s2199_s16 + $0x60] sm:$0xff] %v480_v12  ;;  %483 = vst [vmem:[%s2199_s16 + $0x68] sm:$0xff] %v482_v13  ;;  %v486_v15 = vld [vmem:[%s2194_s15 + $0xf0] sm:$0xff] }
  0x25   : > { %485 = vst [vmem:[%s2199_s16 + $0x70] sm:$0xff] %v484_v14  ;;  %v488_v16 = vld [vmem:[%s2194_s15 + $0x100] sm:$0xff]  ;;  %v490_v17 = vld [vmem:[%s2194_s15 + $0x110] sm:$0xff]  ;;  %487 = vst [vmem:[%s2199_s16 + $0x78] sm:$0xff] %v486_v15 }
  0x26   : > { %489 = vst [vmem:[%s2199_s16 + $0x80] sm:$0xff] %v488_v16  ;;  %491 = vst [vmem:[%s2199_s16 + $0x88] sm:$0xff] %v490_v17  ;;  %v492_v18 = vld [vmem:[%s2194_s15 + $0x120] sm:$0xff]  ;;  %v494_v19 = vld [vmem:[%s2194_s15 + $0x130] sm:$0xff] }
  0x27   : > { %v496_v20 = vld [vmem:[%s2194_s15 + $0x140] sm:$0xff]  ;;  %493 = vst [vmem:[%s2199_s16 + $0x90] sm:$0xff] %v492_v18  ;;  %495 = vst [vmem:[%s2199_s16 + $0x98] sm:$0xff] %v494_v19  ;;  %v498_v21 = vld [vmem:[%s2194_s15 + $0x150] sm:$0xff] }
  0x28   : > { %497 = vst [vmem:[%s2199_s16 + $0xa0] sm:$0xff] %v496_v20  ;;  %v500_v22 = vld [vmem:[%s2194_s15 + $0x160] sm:$0xff]  ;;  %v502_v23 = vld [vmem:[%s2194_s15 + $0x170] sm:$0xff]  ;;  %499 = vst [vmem:[%s2199_s16 + $0xa8] sm:$0xff] %v498_v21 }
  0x29   : > { %501 = vst [vmem:[%s2199_s16 + $0xb0] sm:$0xff] %v500_v22  ;;  %503 = vst [vmem:[%s2199_s16 + $0xb8] sm:$0xff] %v502_v23  ;;  %v504_v24 = vld [vmem:[%s2194_s15 + $0x180] sm:$0xff]  ;;  %v506_v25 = vld [vmem:[%s2194_s15 + $0x190] sm:$0xff] }
  0x2a   : > { %v508_v26 = vld [vmem:[%s2194_s15 + $0x1a0] sm:$0xff]  ;;  %505 = vst [vmem:[%s2199_s16 + $0xc0] sm:$0xff] %v504_v24  ;;  %507 = vst [vmem:[%s2199_s16 + $0xc8] sm:$0xff] %v506_v25  ;;  %v510_v27 = vld [vmem:[%s2194_s15 + $0x1b0] sm:$0xff] }
  0x2b   : > { %509 = vst [vmem:[%s2199_s16 + $0xd0] sm:$0xff] %v508_v26  ;;  %v512_v28 = vld [vmem:[%s2194_s15 + $0x1c0] sm:$0xff]  ;;  %v514_v29 = vld [vmem:[%s2194_s15 + $0x1d0] sm:$0xff]  ;;  %511 = vst [vmem:[%s2199_s16 + $0xd8] sm:$0xff] %v510_v27 }
  0x2c   : > { %513 = vst [vmem:[%s2199_s16 + $0xe0] sm:$0xff] %v512_v28  ;;  %515 = vst [vmem:[%s2199_s16 + $0xe8] sm:$0xff] %v514_v29  ;;  %v516_v30 = vld [vmem:[%s2194_s15 + $0x1e0] sm:$0xff]  ;;  %v518_v31 = vld [vmem:[%s2194_s15 + $0x1f0] sm:$0xff] }
  0x2d   : > { %v520_v32 = vld [vmem:[%s2194_s15 + $0x200] sm:$0xff]  ;;  %517 = vst [vmem:[%s2199_s16 + $0xf0] sm:$0xff] %v516_v30  ;;  %519 = vst [vmem:[%s2199_s16 + $0xf8] sm:$0xff] %v518_v31  ;;  %v522_v33 = vld [vmem:[%s2194_s15 + $0x210] sm:$0xff] }
  0x2e   : > { %521 = vst [vmem:[%s2199_s16 + $0x100] sm:$0xff] %v520_v32  ;;  %v524_v34 = vld [vmem:[%s2194_s15 + $0x220] sm:$0xff]  ;;  %v526_v35 = vld [vmem:[%s2194_s15 + $0x230] sm:$0xff]  ;;  %523 = vst [vmem:[%s2199_s16 + $0x108] sm:$0xff] %v522_v33 }
  0x2f   : > { %525 = vst [vmem:[%s2199_s16 + $0x110] sm:$0xff] %v524_v34  ;;  %527 = vst [vmem:[%s2199_s16 + $0x118] sm:$0xff] %v526_v35  ;;  %v528_v36 = vld [vmem:[%s2194_s15 + $0x240] sm:$0xff]  ;;  %v530_v37 = vld [vmem:[%s2194_s15 + $0x250] sm:$0xff] }
  0x30   : > { %v532_v38 = vld [vmem:[%s2194_s15 + $0x260] sm:$0xff]  ;;  %529 = vst [vmem:[%s2199_s16 + $0x120] sm:$0xff] %v528_v36  ;;  %531 = vst [vmem:[%s2199_s16 + $0x128] sm:$0xff] %v530_v37  ;;  %v534_v39 = vld [vmem:[%s2194_s15 + $0x270] sm:$0xff] }
  0x31   : > { %533 = vst [vmem:[%s2199_s16 + $0x130] sm:$0xff] %v532_v38  ;;  %v536_v40 = vld [vmem:[%s2194_s15 + $0x280] sm:$0xff]  ;;  %v538_v41 = vld [vmem:[%s2194_s15 + $0x290] sm:$0xff]  ;;  %535 = vst [vmem:[%s2199_s16 + $0x138] sm:$0xff] %v534_v39 }
  0x32   : > { %537 = vst [vmem:[%s2199_s16 + $0x140] sm:$0xff] %v536_v40  ;;  %539 = vst [vmem:[%s2199_s16 + $0x148] sm:$0xff] %v538_v41  ;;  %v540_v42 = vld [vmem:[%s2194_s15 + $0x2a0] sm:$0xff]  ;;  %v542_v43 = vld [vmem:[%s2194_s15 + $0x2b0] sm:$0xff] }
  0x33   : > { %v544_v44 = vld [vmem:[%s2194_s15 + $0x2c0] sm:$0xff]  ;;  %541 = vst [vmem:[%s2199_s16 + $0x150] sm:$0xff] %v540_v42  ;;  %543 = vst [vmem:[%s2199_s16 + $0x158] sm:$0xff] %v542_v43  ;;  %v546_v45 = vld [vmem:[%s2194_s15 + $0x2d0] sm:$0xff] }
  0x34   : > { %545 = vst [vmem:[%s2199_s16 + $0x160] sm:$0xff] %v544_v44  ;;  %v548_v46 = vld [vmem:[%s2194_s15 + $0x2e0] sm:$0xff]  ;;  %v550_v47 = vld [vmem:[%s2194_s15 + $0x2f0] sm:$0xff]  ;;  %547 = vst [vmem:[%s2199_s16 + $0x168] sm:$0xff] %v546_v45 }
  0x35   : > { %549 = vst [vmem:[%s2199_s16 + $0x170] sm:$0xff] %v548_v46  ;;  %551 = vst [vmem:[%s2199_s16 + $0x178] sm:$0xff] %v550_v47  ;;  %v552_v48 = vld [vmem:[%s2194_s15 + $0x300] sm:$0xff]  ;;  %v554_v49 = vld [vmem:[%s2194_s15 + $0x310] sm:$0xff] }
  0x36   : > { %v556_v50 = vld [vmem:[%s2194_s15 + $0x320] sm:$0xff]  ;;  %553 = vst [vmem:[%s2199_s16 + $0x180] sm:$0xff] %v552_v48  ;;  %555 = vst [vmem:[%s2199_s16 + $0x188] sm:$0xff] %v554_v49  ;;  %v558_v51 = vld [vmem:[%s2194_s15 + $0x330] sm:$0xff] }
  0x37   : > { %557 = vst [vmem:[%s2199_s16 + $0x190] sm:$0xff] %v556_v50  ;;  %v560_v52 = vld [vmem:[%s2194_s15 + $0x340] sm:$0xff]  ;;  %v562_v53 = vld [vmem:[%s2194_s15 + $0x350] sm:$0xff]  ;;  %559 = vst [vmem:[%s2199_s16 + $0x198] sm:$0xff] %v558_v51 }
  0x38   : > { %561 = vst [vmem:[%s2199_s16 + $0x1a0] sm:$0xff] %v560_v52  ;;  %563 = vst [vmem:[%s2199_s16 + $0x1a8] sm:$0xff] %v562_v53  ;;  %v564_v54 = vld [vmem:[%s2194_s15 + $0x360] sm:$0xff]  ;;  %v566_v55 = vld [vmem:[%s2194_s15 + $0x370] sm:$0xff] }
  0x39   : > { %v568_v56 = vld [vmem:[%s2194_s15 + $0x380] sm:$0xff]  ;;  %565 = vst [vmem:[%s2199_s16 + $0x1b0] sm:$0xff] %v564_v54  ;;  %567 = vst [vmem:[%s2199_s16 + $0x1b8] sm:$0xff] %v566_v55  ;;  %v570_v57 = vld [vmem:[%s2194_s15 + $0x390] sm:$0xff] }
  0x3a   : > { %569 = vst [vmem:[%s2199_s16 + $0x1c0] sm:$0xff] %v568_v56  ;;  %v572_v58 = vld [vmem:[%s2194_s15 + $0x3a0] sm:$0xff]  ;;  %v574_v59 = vld [vmem:[%s2194_s15 + $0x3b0] sm:$0xff]  ;;  %571 = vst [vmem:[%s2199_s16 + $0x1c8] sm:$0xff] %v570_v57 }
  0x3b   : > { %573 = vst [vmem:[%s2199_s16 + $0x1d0] sm:$0xff] %v572_v58  ;;  %575 = vst [vmem:[%s2199_s16 + $0x1d8] sm:$0xff] %v574_v59  ;;  %v576_v60 = vld [vmem:[%s2194_s15 + $0x3c0] sm:$0xff]  ;;  %v578_v61 = vld [vmem:[%s2194_s15 + $0x3d0] sm:$0xff] }
  0x3c   : > { %v580_v62 = vld [vmem:[%s2194_s15 + $0x3e0] sm:$0xff]  ;;  %577 = vst [vmem:[%s2199_s16 + $0x1e0] sm:$0xff] %v576_v60  ;;  %579 = vst [vmem:[%s2199_s16 + $0x1e8] sm:$0xff] %v578_v61  ;;  %v582_v63 = vld [vmem:[%s2194_s15 + $0x3f0] sm:$0xff] }
  0x3d   : > { %581 = vst [vmem:[%s2199_s16 + $0x1f0] sm:$0xff] %v580_v62  ;;  %v584_v0 = vld [vmem:[%s2194_s15 + $0x400] sm:$0xff]  ;;  %v586_v1 = vld [vmem:[%s2194_s15 + $0x410] sm:$0xff]  ;;  %583 = vst [vmem:[%s2199_s16 + $0x1f8] sm:$0xff] %v582_v63 }
  0x3e   : > { %585 = vst [vmem:[%s2199_s16 + $0x200] sm:$0xff] %v584_v0  ;;  %587 = vst [vmem:[%s2199_s16 + $0x208] sm:$0xff] %v586_v1  ;;  %v588_v2 = vld [vmem:[%s2194_s15 + $0x420] sm:$0xff]  ;;  %v590_v3 = vld [vmem:[%s2194_s15 + $0x430] sm:$0xff] }
  0x3f   : > { %v592_v4 = vld [vmem:[%s2194_s15 + $0x440] sm:$0xff]  ;;  %589 = vst [vmem:[%s2199_s16 + $0x210] sm:$0xff] %v588_v2  ;;  %591 = vst [vmem:[%s2199_s16 + $0x218] sm:$0xff] %v590_v3  ;;  %v594_v5 = vld [vmem:[%s2194_s15 + $0x450] sm:$0xff] }
  0x40   : > { %593 = vst [vmem:[%s2199_s16 + $0x220] sm:$0xff] %v592_v4  ;;  %v596_v6 = vld [vmem:[%s2194_s15 + $0x460] sm:$0xff]  ;;  %v598_v7 = vld [vmem:[%s2194_s15 + $0x470] sm:$0xff]  ;;  %595 = vst [vmem:[%s2199_s16 + $0x228] sm:$0xff] %v594_v5 }
  0x41   : > { %597 = vst [vmem:[%s2199_s16 + $0x230] sm:$0xff] %v596_v6  ;;  %599 = vst [vmem:[%s2199_s16 + $0x238] sm:$0xff] %v598_v7  ;;  %v600_v8 = vld [vmem:[%s2194_s15 + $0x480] sm:$0xff]  ;;  %v602_v9 = vld [vmem:[%s2194_s15 + $0x490] sm:$0xff] }
  0x42   : > { %v604_v10 = vld [vmem:[%s2194_s15 + $0x4a0] sm:$0xff]  ;;  %601 = vst [vmem:[%s2199_s16 + $0x240] sm:$0xff] %v600_v8  ;;  %603 = vst [vmem:[%s2199_s16 + $0x248] sm:$0xff] %v602_v9  ;;  %v606_v11 = vld [vmem:[%s2194_s15 + $0x4b0] sm:$0xff] }
  0x43   : > { %605 = vst [vmem:[%s2199_s16 + $0x250] sm:$0xff] %v604_v10  ;;  %v608_v12 = vld [vmem:[%s2194_s15 + $0x4c0] sm:$0xff]  ;;  %v610_v13 = vld [vmem:[%s2194_s15 + $0x4d0] sm:$0xff]  ;;  %607 = vst [vmem:[%s2199_s16 + $0x258] sm:$0xff] %v606_v11 }
  0x44   : > { %609 = vst [vmem:[%s2199_s16 + $0x260] sm:$0xff] %v608_v12  ;;  %611 = vst [vmem:[%s2199_s16 + $0x268] sm:$0xff] %v610_v13  ;;  %v612_v14 = vld [vmem:[%s2194_s15 + $0x4e0] sm:$0xff]  ;;  %v614_v15 = vld [vmem:[%s2194_s15 + $0x4f0] sm:$0xff] }
  0x45   : > { %v616_v16 = vld [vmem:[%s2194_s15 + $0x500] sm:$0xff]  ;;  %613 = vst [vmem:[%s2199_s16 + $0x270] sm:$0xff] %v612_v14  ;;  %615 = vst [vmem:[%s2199_s16 + $0x278] sm:$0xff] %v614_v15  ;;  %v618_v17 = vld [vmem:[%s2194_s15 + $0x510] sm:$0xff] }
  0x46   : > { %617 = vst [vmem:[%s2199_s16 + $0x280] sm:$0xff] %v616_v16  ;;  %v620_v18 = vld [vmem:[%s2194_s15 + $0x520] sm:$0xff]  ;;  %v622_v19 = vld [vmem:[%s2194_s15 + $0x530] sm:$0xff]  ;;  %619 = vst [vmem:[%s2199_s16 + $0x288] sm:$0xff] %v618_v17 }
  0x47   : > { %621 = vst [vmem:[%s2199_s16 + $0x290] sm:$0xff] %v620_v18  ;;  %623 = vst [vmem:[%s2199_s16 + $0x298] sm:$0xff] %v622_v19  ;;  %v624_v20 = vld [vmem:[%s2194_s15 + $0x540] sm:$0xff]  ;;  %v626_v21 = vld [vmem:[%s2194_s15 + $0x550] sm:$0xff] }
  0x48   : > { %v628_v22 = vld [vmem:[%s2194_s15 + $0x560] sm:$0xff]  ;;  %625 = vst [vmem:[%s2199_s16 + $0x2a0] sm:$0xff] %v624_v20  ;;  %627 = vst [vmem:[%s2199_s16 + $0x2a8] sm:$0xff] %v626_v21  ;;  %v630_v23 = vld [vmem:[%s2194_s15 + $0x570] sm:$0xff] }
  0x49   : > { %629 = vst [vmem:[%s2199_s16 + $0x2b0] sm:$0xff] %v628_v22  ;;  %v632_v24 = vld [vmem:[%s2194_s15 + $0x580] sm:$0xff]  ;;  %v634_v25 = vld [vmem:[%s2194_s15 + $0x590] sm:$0xff]  ;;  %631 = vst [vmem:[%s2199_s16 + $0x2b8] sm:$0xff] %v630_v23 }
  0x4a   : > { %633 = vst [vmem:[%s2199_s16 + $0x2c0] sm:$0xff] %v632_v24  ;;  %635 = vst [vmem:[%s2199_s16 + $0x2c8] sm:$0xff] %v634_v25  ;;  %v636_v26 = vld [vmem:[%s2194_s15 + $0x5a0] sm:$0xff]  ;;  %v638_v27 = vld [vmem:[%s2194_s15 + $0x5b0] sm:$0xff] }
  0x4b   : > { %v640_v28 = vld [vmem:[%s2194_s15 + $0x5c0] sm:$0xff]  ;;  %637 = vst [vmem:[%s2199_s16 + $0x2d0] sm:$0xff] %v636_v26  ;;  %639 = vst [vmem:[%s2199_s16 + $0x2d8] sm:$0xff] %v638_v27  ;;  %v642_v29 = vld [vmem:[%s2194_s15 + $0x5d0] sm:$0xff] }
  0x4c   : > { %641 = vst [vmem:[%s2199_s16 + $0x2e0] sm:$0xff] %v640_v28  ;;  %v644_v30 = vld [vmem:[%s2194_s15 + $0x5e0] sm:$0xff]  ;;  %v646_v31 = vld [vmem:[%s2194_s15 + $0x5f0] sm:$0xff]  ;;  %643 = vst [vmem:[%s2199_s16 + $0x2e8] sm:$0xff] %v642_v29 }
  0x4d   : > { %645 = vst [vmem:[%s2199_s16 + $0x2f0] sm:$0xff] %v644_v30  ;;  %647 = vst [vmem:[%s2199_s16 + $0x2f8] sm:$0xff] %v646_v31 }
  0x4e PF: > { %p1723_p7 = scmp.ge.s32.totalorder %s2101_s24, 1  ;;  %p681_p8 = scmp.lt.s32.totalorder %s2101_s24, 13 }
  0x50   : > { %p682_p9 = pnand %p1723_p7, %p681_p8 }
  0x51   : > { %s688_s17 = sand.u32 (!%p682_p9), 1, %s2077_s18   ;;  %s745_s27 = smul.u32 (!%p682_p9), 6, %s2085_s20 }
  0x52   : > { %685 = sbr.rel (%p682_p9) target bundleno = 466 (0x1d2), region = 74  ;;  %s1725_s29 = sshll.u32 (!%p682_p9), %s2089_s21, 1 }
  0x53   : > { %s1839_s28 = smul.u32 (!%p682_p9), 768, %s688_s17  ;;  %p748_p10 = scmp.lt.s32.totalorder (!%p682_p9), %s745_s27, 35 }
  0x54   : > { %p758_p11 = scmp.lt.s32.totalorder (!%p682_p9), %s1725_s29, 3  ;;  %p1731_p12 = scmp.ne.s32.totalorder (!%p682_p9), %s2085_s20, 0 }
  0x59   : > { %s2586_s27 = smov (!%p748_p10, %s745_s27), 35  ;;  %s2588_s29 = smov (!%p758_p11, %s1725_s29), 3 }
  0x5a   : > { %s1724_s30 = sshll.u32 %s2586_s27, 2  ;;  %s760_s18 = scalar_lea.vmem %s2567_s2, %s2588_s29  ;;  %v2103_v32 = vmov (!%p1731_p12), 0.0  }
  0x5b   : > { %s2400_s9 = scalar_lea.vmem %s2565_s0, %s1724_s30  ;;  %s765_s13 = scalar_lea.vmem %s2568_s3, %s2588_s29  ;;  %791 = vst [vmem:[#allocation2] sm:$0xff] (!%p1731_p12), %v2103_v32  ;;  %792 = vst [vmem:[#allocation2 + $0x8] sm:$0xff] (!%p1731_p12), %v2103_v32 }
  0x5c   : > { %s1728_s14 = sshll.u32 %s2588_s29, 3  ;;  %s2421_s30 = scalar_lea.vmem [#allocation3], %s1839_s28 }
  0x5d   : > { %s2414_s17 = scalar_lea.vmem %s2569_s4, %s1728_s14  ;;  %s2419_s7 = scalar_lea.vmem %s2570_s5, %s1728_s14 }
  0x5e   : > { %790 = sbr.rel (%p1731_p12) target bundleno = 101 (0x65), region = 82 }
  0x65 PF: > { %v1897_v33 = vld [vmem:[%s2421_s30 + $0x4] ss:$8 sps:$4 sm:$0xff]   ;;  %v1901_v35 = vld [vmem:[%s2421_s30] ss:$8 sps:$4 sm:$0xff]   ;;  %v1903_v37 = vld [vmem:[%s2421_s30 + $0x14] ss:$8 sps:$4 sm:$0xff]  }
  0x66   : > { %v1899_v34 = vld [vmem:[%s2421_s30 + $0x104] ss:$8 sps:$4 sm:$0xff]   ;;  %1395 = vmatprep.subr.bf16.mxu0 %v1897_v33  ;;  %v1902_v36 = vld [vmem:[%s2421_s30 + $0x100] ss:$8 sps:$4 sm:$0xff]   ;;  %v1905_v38 = vld [vmem:[%s2421_s30 + $0x114] ss:$8 sps:$4 sm:$0xff]  }
  0x67   : > { %1436 = vmatprep.subr.bf16.mxu1 %v1899_v34  ;;  %1396 = vmatpush1.bf16.msra.mxu0 %v1901_v35  ;;  %v1907_v39 = vld [vmem:[%s2421_s30 + $0x10] ss:$8 sps:$4 sm:$0xff]   ;;  %v1909_v41 = vld [vmem:[%s2421_s30 + $0x24] ss:$8 sps:$4 sm:$0xff]   ;;  %v1913_v43 = vld [vmem:[%s2421_s30 + $0x20] ss:$8 sps:$4 sm:$0xff]  }
  0x68   : > { %1437 = vmatpush1.bf16.msra.mxu1 %v1902_v36  ;;  %1397 = vmatprep.subr.bf16.mxu0 %v1903_v37  ;;  %v1908_v40 = vld [vmem:[%s2421_s30 + $0x110] ss:$8 sps:$4 sm:$0xff]   ;;  %v1911_v42 = vld [vmem:[%s2421_s30 + $0x124] ss:$8 sps:$4 sm:$0xff]   ;;  %v1914_v44 = vld [vmem:[%s2421_s30 + $0x120] ss:$8 sps:$4 sm:$0xff]  }
  0x69   : > { %1438 = vmatprep.subr.bf16.mxu1 %v1905_v38  ;;  %v1915_v45 = vld [vmem:[%s2421_s30 + $0x34] ss:$8 sps:$4 sm:$0xff]   ;;  %v1919_v47 = vld [vmem:[%s2421_s30 + $0x30] ss:$8 sps:$4 sm:$0xff]   ;;  %v1921_v49 = vld [vmem:[%s2421_s30 + $0x44] ss:$8 sps:$4 sm:$0xff]  }
  0x6a   : > { %v1917_v46 = vld [vmem:[%s2421_s30 + $0x134] ss:$8 sps:$4 sm:$0xff]   ;;  %v1920_v48 = vld [vmem:[%s2421_s30 + $0x130] ss:$8 sps:$4 sm:$0xff]   ;;  %v1923_v50 = vld [vmem:[%s2421_s30 + $0x144] ss:$8 sps:$4 sm:$0xff]  }
  0x6b   : > { %1398 = vmatpush1.bf16.msra.mxu0 %v1907_v39  ;;  %v1925_v51 = vld [vmem:[%s2421_s30 + $0x40] ss:$8 sps:$4 sm:$0xff]   ;;  %v1927_v53 = vld [vmem:[%s2421_s30 + $0x54] ss:$8 sps:$4 sm:$0xff]   ;;  %v1931_v55 = vld [vmem:[%s2421_s30 + $0x50] ss:$8 sps:$4 sm:$0xff]  }
  0x6c   : > { %1439 = vmatpush1.bf16.msra.mxu1 %v1908_v40  ;;  %1399 = vmatprep.subr.bf16.mxu0 %v1909_v41  ;;  %v1926_v52 = vld [vmem:[%s2421_s30 + $0x140] ss:$8 sps:$4 sm:$0xff]   ;;  %v1929_v54 = vld [vmem:[%s2421_s30 + $0x154] ss:$8 sps:$4 sm:$0xff]   ;;  %v1932_v56 = vld [vmem:[%s2421_s30 + $0x150] ss:$8 sps:$4 sm:$0xff]  }
  0x6d   : > { %1440 = vmatprep.subr.bf16.mxu1 %v1911_v42  ;;  %v1933_v57 = vld [vmem:[%s2421_s30 + $0x64] ss:$8 sps:$4 sm:$0xff]   ;;  %v1937_v59 = vld [vmem:[%s2421_s30 + $0x60] ss:$8 sps:$4 sm:$0xff]   ;;  %v1939_v61 = vld [vmem:[%s2421_s30 + $0x74] ss:$8 sps:$4 sm:$0xff]  }
  0x6e   : > { %v1935_v58 = vld [vmem:[%s2421_s30 + $0x164] ss:$8 sps:$4 sm:$0xff]   ;;  %v1938_v60 = vld [vmem:[%s2421_s30 + $0x160] ss:$8 sps:$4 sm:$0xff]   ;;  %v1941_v62 = vld [vmem:[%s2421_s30 + $0x174] ss:$8 sps:$4 sm:$0xff]  }
  0x6f   : > { %1400 = vmatpush1.bf16.msra.mxu0 %v1913_v43  ;;  %v1943_v63 = vld [vmem:[%s2421_s30 + $0x70] ss:$8 sps:$4 sm:$0xff]   ;;  %v1945_v1 = vld [vmem:[%s2421_s30 + $0x84] ss:$8 sps:$4 sm:$0xff]   ;;  %v1949_v3 = vld [vmem:[%s2421_s30 + $0x80] ss:$8 sps:$4 sm:$0xff]  }
  0x70   : > { %1441 = vmatpush1.bf16.msra.mxu1 %v1914_v44  ;;  %1401 = vmatprep.subr.bf16.mxu0 %v1915_v45  ;;  %v1944_v0 = vld [vmem:[%s2421_s30 + $0x170] ss:$8 sps:$4 sm:$0xff]   ;;  %v1947_v2 = vld [vmem:[%s2421_s30 + $0x184] ss:$8 sps:$4 sm:$0xff]   ;;  %v1950_v4 = vld [vmem:[%s2421_s30 + $0x180] ss:$8 sps:$4 sm:$0xff]  }
  0x71   : > { %1442 = vmatprep.subr.bf16.mxu1 %v1917_v46  ;;  %v1951_v5 = vld [vmem:[%s2421_s30 + $0x94] ss:$8 sps:$4 sm:$0xff]   ;;  %v1955_v7 = vld [vmem:[%s2421_s30 + $0x90] ss:$8 sps:$4 sm:$0xff]   ;;  %v1957_v9 = vld [vmem:[%s2421_s30 + $0xa4] ss:$8 sps:$4 sm:$0xff]  }
  0x72   : > { %v1953_v6 = vld [vmem:[%s2421_s30 + $0x194] ss:$8 sps:$4 sm:$0xff]   ;;  %v1956_v8 = vld [vmem:[%s2421_s30 + $0x190] ss:$8 sps:$4 sm:$0xff]   ;;  %v1959_v10 = vld [vmem:[%s2421_s30 + $0x1a4] ss:$8 sps:$4 sm:$0xff]  }
  0x73   : > { %1402 = vmatpush1.bf16.msra.mxu0 %v1919_v47  ;;  %v1961_v11 = vld [vmem:[%s2421_s30 + $0xa0] ss:$8 sps:$4 sm:$0xff]   ;;  %v1963_v13 = vld [vmem:[%s2421_s30 + $0xb4] ss:$8 sps:$4 sm:$0xff]   ;;  %v1967_v18 = vld [vmem:[%s2421_s30 + $0xb0] ss:$8 sps:$4 sm:$0xff]  }
  0x74   : > { %1443 = vmatpush1.bf16.msra.mxu1 %v1920_v48  ;;  %1403 = vmatprep.subr.bf16.mxu0 %v1921_v49  ;;  %v1962_v12 = vld [vmem:[%s2421_s30 + $0x1a0] ss:$8 sps:$4 sm:$0xff]   ;;  %v1965_v14 = vld [vmem:[%s2421_s30 + $0x1b4] ss:$8 sps:$4 sm:$0xff]   ;;  %v1968_v19 = vld [vmem:[%s2421_s30 + $0x1b0] ss:$8 sps:$4 sm:$0xff]  }
  0x75   : > { %1444 = vmatprep.subr.bf16.mxu1 %v1923_v50  ;;  %v795_v15 = vld [vmem:[%s2400_s9] sm:$0xff]  ;;  %v796_v17 = vld [vmem:[%s2400_s9 + $0x8] sm:$0xff]  ;;  %v1969_v21 = vld [vmem:[%s2421_s30 + $0xc4] ss:$8 sps:$4 sm:$0xff]   ;;  %p1834_p13 = scmp.ne.s32.totalorder %s2085_s20, 5 }
  0x76   : > { %v1733_v16 = vcombine.high %v795_v15, %v795_v15  ;;  %v1735_v20 = vcombine.high %v796_v17, %v796_v17  ;;  %v1971_v22 = vld [vmem:[%s2421_s30 + $0x1c4] ss:$8 sps:$4 sm:$0xff]   ;;  %v1973_v23 = vld [vmem:[%s2421_s30 + $0xc0] ss:$8 sps:$4 sm:$0xff]   ;;  %v1975_v25 = vld [vmem:[%s2421_s30 + $0xd4] ss:$8 sps:$4 sm:$0xff]   ;;  %v1732_v38 = vcombine.low %v795_v15, %v795_v15  ;;  %v1734_v39 = vcombine.low %v796_v17, %v796_v17 }
  0x77   : > { %1404 = vmatpush1.bf16.msra.mxu0 %v1925_v51  ;;  %v1974_v24 = vld [vmem:[%s2421_s30 + $0x1c0] ss:$8 sps:$4 sm:$0xff]   ;;  %v1977_v26 = vld [vmem:[%s2421_s30 + $0x1d4] ss:$8 sps:$4 sm:$0xff]   ;;  %v1979_v27 = vld [vmem:[%s2421_s30 + $0xd0] ss:$8 sps:$4 sm:$0xff]  }
  0x78   : > { %1445 = vmatpush1.bf16.msra.mxu1 %v1926_v52  ;;  %1405 = vmatprep.subr.bf16.mxu0 %v1927_v53  ;;  %v1980_v28 = vld [vmem:[%s2421_s30 + $0x1d0] ss:$8 sps:$4 sm:$0xff]   ;;  %v1981_v29 = vld [vmem:[%s2421_s30 + $0xe4] ss:$8 sps:$4 sm:$0xff]   ;;  %v1985_v31 = vld [vmem:[%s2421_s30 + $0xe0] ss:$8 sps:$4 sm:$0xff]  }
  0x79   : > { %1446 = vmatprep.subr.bf16.mxu1 %v1929_v54  ;;  %1427 = vmatprep.mubr.bf16.mxu0 %v1733_v16  ;;  %v1983_v30 = vld [vmem:[%s2421_s30 + $0x1e4] ss:$8 sps:$4 sm:$0xff]   ;;  %v1986_v32 = vld [vmem:[%s2421_s30 + $0x1e0] ss:$8 sps:$4 sm:$0xff]   ;;  %v1987_v33 = vld [vmem:[%s2421_s30 + $0xf4] ss:$8 sps:$4 sm:$0xff]  }
  0x7a   : > { %1468 = vmatprep.mubr.bf16.mxu1 %v1735_v20  ;;  %v1989_v34 = vld [vmem:[%s2421_s30 + $0x1f4] ss:$8 sps:$4 sm:$0xff]   ;;  %v1991_v35 = vld [vmem:[%s2421_s30 + $0xf0] ss:$8 sps:$4 sm:$0xff]   ;;  %v1999_v37 = vld [vmem:[%s2421_s30 + $0x204] ss:$8 sps:$4 sm:$0xff]  }
  0x7b   : > { %1406 = vmatpush1.bf16.msra.mxu0 %v1931_v55  ;;  %v1992_v36 = vld [vmem:[%s2421_s30 + $0x1f0] ss:$8 sps:$4 sm:$0xff]   ;;  %v1997_v40 = vld [vmem:[%s2421_s30 + $0x200] ss:$8 sps:$4 sm:$0xff]   ;;  %v2002_v42 = vld [vmem:[%s2421_s30 + $0x214] ss:$8 sps:$4 sm:$0xff]  }
  0x7c   : > { %1447 = vmatpush1.bf16.msra.mxu1 %v1932_v56  ;;  %1407 = vmatprep.subr.bf16.mxu0 %v1933_v57  ;;  %v2493_v41 = vld [vmem:[%s2400_s9 + $0x10] sm:$0xff]  ;;  %v2000_v44 = vld [vmem:[%s2421_s30 + $0x210] ss:$8 sps:$4 sm:$0xff]   ;;  %v2008_v47 = vld [vmem:[%s2421_s30 + $0x234] ss:$8 sps:$4 sm:$0xff]  }
  0x7d   : > { %1448 = vmatprep.subr.bf16.mxu1 %v1935_v58  ;;  %v1737_v43 = vcombine.high %v2493_v41, %v2493_v41  ;;  %v2005_v45 = vld [vmem:[%s2421_s30 + $0x224] ss:$8 sps:$4 sm:$0xff]   ;;  %v2003_v46 = vld [vmem:[%s2421_s30 + $0x220] ss:$8 sps:$4 sm:$0xff]   ;;  %v2006_v48 = vld [vmem:[%s2421_s30 + $0x230] ss:$8 sps:$4 sm:$0xff]  }
  0x7e   : > { %v2011_v49 = vld [vmem:[%s2421_s30 + $0x244] ss:$8 sps:$4 sm:$0xff]   ;;  %v2009_v50 = vld [vmem:[%s2421_s30 + $0x240] ss:$8 sps:$4 sm:$0xff]   ;;  %v2014_v51 = vld [vmem:[%s2421_s30 + $0x254] ss:$8 sps:$4 sm:$0xff]  }
  0x7f   : > { %1408 = vmatpush1.bf16.msra.mxu0 %v1937_v59  ;;  %v2012_v52 = vld [vmem:[%s2421_s30 + $0x250] ss:$8 sps:$4 sm:$0xff]   ;;  %v2017_v53 = vld [vmem:[%s2421_s30 + $0x264] ss:$8 sps:$4 sm:$0xff]   ;;  %v2015_v54 = vld [vmem:[%s2421_s30 + $0x260] ss:$8 sps:$4 sm:$0xff]  }
  0x80   : > { %1449 = vmatpush1.bf16.msra.mxu1 %v1938_v60  ;;  %1409 = vmatprep.subr.bf16.mxu0 %v1939_v61  ;;  %v2020_v55 = vld [vmem:[%s2421_s30 + $0x274] ss:$8 sps:$4 sm:$0xff]   ;;  %v2018_v56 = vld [vmem:[%s2421_s30 + $0x270] ss:$8 sps:$4 sm:$0xff]   ;;  %v2023_v57 = vld [vmem:[%s2421_s30 + $0x284] ss:$8 sps:$4 sm:$0xff]  }
  0x81   : > { %1450 = vmatprep.subr.bf16.mxu1 %v1941_v62  ;;  %v2021_v58 = vld [vmem:[%s2421_s30 + $0x280] ss:$8 sps:$4 sm:$0xff]   ;;  %v2026_v59 = vld [vmem:[%s2421_s30 + $0x294] ss:$8 sps:$4 sm:$0xff]   ;;  %v2024_v60 = vld [vmem:[%s2421_s30 + $0x290] ss:$8 sps:$4 sm:$0xff]  }
  0x82   : > { %v2029_v61 = vld [vmem:[%s2421_s30 + $0x2a4] ss:$8 sps:$4 sm:$0xff]   ;;  %v2027_v62 = vld [vmem:[%s2421_s30 + $0x2a0] ss:$8 sps:$4 sm:$0xff]   ;;  %v793_v20 = vld [vmem:[#allocation2] sm:$0xff] }
  0x83   : > { %1410 = vmatpush1.bf16.msra.mxu0 %v1943_v63  ;;  %v2032_v63 = vld [vmem:[%s2421_s30 + $0x2b4] ss:$8 sps:$4 sm:$0xff]  }
  0x84   : > { %1451 = vmatpush1.bf16.msra.mxu1 %v1944_v0  ;;  %1411 = vmatprep.subr.bf16.mxu0 %v1945_v1  ;;  %v2030_v0 = vld [vmem:[%s2421_s30 + $0x2b0] ss:$8 sps:$4 sm:$0xff]   ;;  %v2035_v1 = vld [vmem:[%s2421_s30 + $0x2c4] ss:$8 sps:$4 sm:$0xff]  }
  0x85   : > { %1452 = vmatprep.subr.bf16.mxu1 %v1947_v2  ;;  %v2033_v2 = vld [vmem:[%s2421_s30 + $0x2c0] ss:$8 sps:$4 sm:$0xff]  }
  0x87   : > { %1412 = vmatpush1.bf16.msra.mxu0 %v1949_v3  ;;  %v2038_v3 = vld [vmem:[%s2421_s30 + $0x2d4] ss:$8 sps:$4 sm:$0xff]  }
  0x88   : > { %1453 = vmatpush1.bf16.msra.mxu1 %v1950_v4  ;;  %1413 = vmatprep.subr.bf16.mxu0 %v1951_v5  ;;  %v2036_v4 = vld [vmem:[%s2421_s30 + $0x2d0] ss:$8 sps:$4 sm:$0xff]   ;;  %v2041_v5 = vld [vmem:[%s2421_s30 + $0x2e4] ss:$8 sps:$4 sm:$0xff]  }
  0x89   : > { %1454 = vmatprep.subr.bf16.mxu1 %v1953_v6  ;;  %v2039_v6 = vld [vmem:[%s2421_s30 + $0x2e0] ss:$8 sps:$4 sm:$0xff]  }
  0x8b   : > { %1414 = vmatpush1.bf16.msra.mxu0 %v1955_v7  ;;  %v2044_v7 = vld [vmem:[%s2421_s30 + $0x2f4] ss:$8 sps:$4 sm:$0xff]  }
  0x8c   : > { %1455 = vmatpush1.bf16.msra.mxu1 %v1956_v8  ;;  %1415 = vmatprep.subr.bf16.mxu0 %v1957_v9  ;;  %v2042_v8 = vld [vmem:[%s2421_s30 + $0x2f0] ss:$8 sps:$4 sm:$0xff]   ;;  %v1736_v9 = vcombine.low %v2493_v41, %v2493_v41 }
  0x8d   : > { %1456 = vmatprep.subr.bf16.mxu1 %v1959_v10 }
  0x8f   : > { %1416 = vmatpush1.bf16.msra.mxu0 %v1961_v11 }
  0x90   : > { %1457 = vmatpush1.bf16.msra.mxu1 %v1962_v12  ;;  %1417 = vmatprep.subr.bf16.mxu0 %v1963_v13 }
  0x91   : > { %1458 = vmatprep.subr.bf16.mxu1 %v1965_v14 }
  0x93   : > { %1418 = vmatpush1.bf16.msra.mxu0 %v1967_v18 }
  0x94   : > { %1459 = vmatpush1.bf16.msra.mxu1 %v1968_v19  ;;  %1419 = vmatprep.subr.bf16.mxu0 %v1969_v21 }
  0x95   : > { %1460 = vmatprep.subr.bf16.mxu1 %v1971_v22 }
  0x97   : > { %1420 = vmatpush1.bf16.msra.mxu0 %v1973_v23  ;;  %v794_v23 = vld [vmem:[#allocation2 + $0x8] sm:$0xff] }
  0x98   : > { %1461 = vmatpush1.bf16.msra.mxu1 %v1974_v24  ;;  %1421 = vmatprep.subr.bf16.mxu0 %v1975_v25 }
  0x99   : > { %1462 = vmatprep.subr.bf16.mxu1 %v1977_v26 }
  0x9b   : > { %1422 = vmatpush1.bf16.msra.mxu0 %v1979_v27 }
  0x9c   : > { %1463 = vmatpush1.bf16.msra.mxu1 %v1980_v28  ;;  %1423 = vmatprep.subr.bf16.mxu0 %v1981_v29 }
  0x9d   : > { %1464 = vmatprep.subr.bf16.mxu1 %v1983_v30  ;;  %v1530_v30 = vlaneseq (!%p1834_p13) }
  0x9f   : > { %1424 = vmatpush1.bf16.msra.mxu0 %v1985_v31  ;;  %v1531_v31 = vshrl.u32 (!%p1834_p13), %v1530_v30, 7 }
  0xa0   : > { %1465 = vmatpush1.bf16.msra.mxu1 %v1986_v32  ;;  %1425 = vmatprep.subr.bf16.mxu0 %v1987_v33  ;;  %v1528_v32 = vld [vmem:[%s760_s18] sm:$0x3] (!%p1834_p13) }
  0xa1   : > { %1466 = vmatprep.subr.bf16.mxu1 %v1989_v34  ;;  %v1542_v33 = vld [vmem:[%s765_s13] sm:$0x3] (!%p1834_p13)  ;;  %v1532_v34 = vsub.s32 (!%p1834_p13), 0, %v1531_v31 }
  0xa3   : > { %1426 = vmatpush1.bf16.msra.mxu0 %v1991_v35  ;;  %v1536_v35 = vsub.s32 (!%p1834_p13), 1, %v1531_v31 }
  0xa4   : > { %1467 = vmatpush1.bf16.msra.mxu1 %v1992_v36  ;;  %1477 = vmatprep.subr.bf16.mxu0 %v1999_v37 }
  0xa5   : > { %v1551_v41 = vrot.slane (!%p1834_p13), %v1542_v33, %v1536_v35 }
  0xa6   : > { %1428 = vmatmul.mubr.bf16.vlgmr.msra.gmra.mrb[0].mxu0 %v1732_v38  ;;  %v1533_v38 = vrot.slane (!%p1834_p13), %v1528_v32, %v1532_v34 }
  0xa7   : > { %1469 = vmatmul.mubr.bf16.vlgmr.msra.gmra.mrb[0].mxu1 %v1734_v39  ;;  %1478 = vmatpush1.bf16.msra.mxu0 %v1997_v40  ;;  %v1547_v39 = vrot.slane (!%p1834_p13), %v1542_v33, %v1532_v34  ;;  %v1537_v40 = vrot.slane (!%p1834_p13), %v1528_v32, %v1536_v35 }
  0xa8   : > { %1509 = vmatprep.mubr.bf16.mxu0 %v1737_v43  ;;  %1479 = vmatprep.subr.bf16.mxu0 %v2002_v42 }
  0xab   : > { %1480 = vmatpush1.bf16.msra.mxu0 %v2000_v44 }
  0xac   : > { %1481 = vmatprep.subr.bf16.mxu0 %v2005_v45 }
  0xaf   : > { %1482 = vmatpush1.bf16.msra.mxu0 %v2003_v46  ;;  %v1558_v46 = vld [vmem:[%s2414_s17] sm:$0xff] (!%p1834_p13) }
  0xb0   : > { %1483 = vmatprep.subr.bf16.mxu0 %v2008_v47  ;;  %v1559_v47 = vld [vmem:[%s2414_s17 + $0x8] sm:$0xff] (!%p1834_p13) }
  0xb3   : > { %1484 = vmatpush1.bf16.msra.mxu0 %v2006_v48 }
  0xb4   : > { %1485 = vmatprep.subr.bf16.mxu0 %v2011_v49 }
  0xb7   : > { %1486 = vmatpush1.bf16.msra.mxu0 %v2009_v50 }
  0xb8   : > { %1487 = vmatprep.subr.bf16.mxu0 %v2014_v51 }
  0xbb   : > { %1488 = vmatpush1.bf16.msra.mxu0 %v2012_v52 }
  0xbc   : > { %1489 = vmatprep.subr.bf16.mxu0 %v2017_v53 }
  0xbf   : > { %1490 = vmatpush1.bf16.msra.mxu0 %v2015_v54 }
  0xc0   : > { %1491 = vmatprep.subr.bf16.mxu0 %v2020_v55 }
  0xc3   : > { %1492 = vmatpush1.bf16.msra.mxu0 %v2018_v56 }
  0xc4   : > { %1493 = vmatprep.subr.bf16.mxu0 %v2023_v57 }
  0xc7   : > { %1494 = vmatpush1.bf16.msra.mxu0 %v2021_v58 }
  0xc8   : > { %1495 = vmatprep.subr.bf16.mxu0 %v2026_v59 }
  0xcb   : > { %1496 = vmatpush1.bf16.msra.mxu0 %v2024_v60 }
  0xcc   : > { %1497 = vmatprep.subr.bf16.mxu0 %v2029_v61 }
  0xcf   : > { %1498 = vmatpush1.bf16.msra.mxu0 %v2027_v62 }
  0xd0   : > { %1499 = vmatprep.subr.bf16.mxu0 %v2032_v63 }
  0xd3   : > { %1500 = vmatpush1.bf16.msra.mxu0 %v2030_v0 }
  0xd4   : > { %1501 = vmatprep.subr.bf16.mxu0 %v2035_v1 }
  0xd7   : > { %1502 = vmatpush1.bf16.msra.mxu0 %v2033_v2 }
  0xd8   : > { %1503 = vmatprep.subr.bf16.mxu0 %v2038_v3 }
  0xdb   : > { %1504 = vmatpush1.bf16.msra.mxu0 %v2036_v4 }
  0xdc   : > { %1505 = vmatprep.subr.bf16.mxu0 %v2041_v5 }
  0xdf   : > { %1506 = vmatpush1.bf16.msra.mxu0 %v2039_v6 }
  0xe0   : > { %1507 = vmatprep.subr.bf16.mxu0 %v2044_v7 }
  0xe3   : > { %1508 = vmatpush1.bf16.msra.mxu0 %v2042_v8 }
  0xe6   : > { %1510 = vmatmul.mubr.bf16.vlgmr.msra.gmra.mrb[4].mxu0 %v1736_v9 }
 0x179   : > { %v1429_v10 = vpop.f32.mrb[0].mxu0 }
 0x17a   : > { %v1470_v11 = vpop.f32.mrb[0].mxu1  ;;  %v1431_v13 = vpop.f32.mrb[1].mxu0 }
 0x17b   : > { %v1471_v12 = vadd.f32 %v1470_v11, %v1429_v10  ;;  %v1472_v14 = vpop.f32.mrb[1].mxu1  ;;  %v1433_v16 = vpop.f32.mrb[2].mxu0 }
 0x17c   : > { %v1473_v15 = vadd.f32 %v1472_v14, %v1431_v13  ;;  %v1474_v17 = vpop.f32.mrb[2].mxu1  ;;  %v1434_v18 = vpop.f32.mrb[3].mxu0 }
 0x17d   : > { %v1475_v19 = vpop.f32.mrb[3].mxu1 }
 0x1b9   : > { %v1511_v21 = vpop.f32.mrb[4].mxu0  ;;  %1525 = sbr.rel (%p1834_p13) target bundleno = 466 (0x1d2), region = 86 }
 0x1ba   : > { %v1512_v22 = vadd.f32 %v1511_v21, %v1471_v12  ;;  %v1513_v24 = vpop.f32.mrb[5].mxu0 }
 0x1bb   : > { %v1514_v25 = vadd.f32 %v1513_v24, %v1473_v15  ;;  %v1515_v26 = vpop.f32.mrb[6].mxu0 }
 0x1bc   : > { %v1518_v27 = vadd.f32 %v1512_v22, %v793_v20  ;;  %v1516_v28 = vpop.f32.mrb[7].mxu0 }
 0x1bd   : > { %v1519_v29 = vadd.f32 %v1514_v25, %v794_v23 }
 0x1be   : > { %1520 = vst [vmem:[#allocation2] sm:$0xff] %v1518_v27 }
 0x1bf   : > { %1521 = vst [vmem:[#allocation2 + $0x8] sm:$0xff] %v1519_v29 }
 0x1c5   : > { %v1526_v36 = vld [vmem:[#allocation2] sm:$0xff] }
 0x1c6   : > { %v1527_v37 = vld [vmem:[#allocation2 + $0x8] sm:$0xff]  ;;  %v1540_v42 = vmul.f32 %v1533_v38, %v1526_v36 }
 0x1c7   : > { %v1541_v43 = vmul.f32 %v1537_v40, %v1527_v37 }
 0x1c8   : > { %v1554_v44 = vadd.f32 %v1547_v39, %v1540_v42 }
 0x1c9   : > { %v1555_v45 = vadd.f32 %v1551_v41, %v1541_v43 }
 0x1ca   : > { %v1556_v48 = vmax.f32 %v1554_v44, 0.0 }
 0x1cb   : > { %v1557_v49 = vmax.f32 %v1555_v45, 0.0 }
 0x1cc   : > { %v1560_v50 = vadd.f32 %v1558_v46, %v1556_v48 }
 0x1cd   : > { %v1561_v51 = vadd.f32 %v1559_v47, %v1557_v49 }
 0x1ce   : > { %v1562_v52 = vmax.f32 %v1560_v50, 0.0 }
 0x1cf   : > { %v1563_v53 = vmax.f32 %v1561_v51, 0.0 }
 0x1d0   : > { %1564 = vst [vmem:[%s2419_s7] sm:$0xff] %v1562_v52 }
 0x1d1   : > { %1565 = vst [vmem:[%s2419_s7 + $0x8] sm:$0xff] %v1563_v53 }
 0x1d2 PF: > { %s15_s24 = sadd.s32 1, %s2101_s24   ;;  %s2573_s18 = smov %s2081_s19 }
 0x1d3   : > { %p12_p0 = scmp.ge.s32.totalorder %s15_s24, 14   ;;  %s2574_s19 = smov %s2185_s6 }
 0x1d4   : > { %s2575_s20 = smov %s2093_s22  ;;  %s2576_s21 = smov %s2097_s23 }
 0x1d5   : > { %s2577_s22 = smov %s2580_s25  ;;  %s2578_s23 = smov %s2584_s26 }
 0x1d6   :  { %14 = sbr.rel (!%p12_p0) target bundleno = 6 (0x6), region = 133 }

// kernel: _lambda_.27
= control target key start
LH: loop header
LB: loop body
LE: loop exit
PB: predicated region body
PF: predicated region fallthrough
CT: control target
= control target key end

     0   :  { %s92_s0 = inlined_call_operand.vmem [shape: f32[2,1,512], index: 0, kind: input, shape index: {}]   ;;  %s93_s1 = inlined_call_operand.hbm [shape: f32[2,512], index: 1, kind: output, shape index: {}]  }
   0x1   :  { %v41_v0 = vld [vmem:[%s92_s0] sm:$0xff]  }
   0x2   :  { %6 = vsyncpa [#allocation3], 0  ;;  %s66_s8 = smov [#allocation2]   ;;  %39 = vst.sshfl [vmem:[#allocation2] sm:$0xff pattern:$0x75316420] %v41_v0 }
   0x3   :  { %s31_s9 = sshll.u32 %s66_s8, 4  ;;  %s32_s9 = int_to_ptr.vmem [resolvable:$true] %s31_s9 }
   0x4   :  { %s42_s10 = scalar_lea.vmem %s32_s9, 128  ;;  %p47_p1 = scmp.lt.s32.totalorder %s32_s9, %s32_s9 }
   0x5   :  { %p43_p0 = scmp.ne.s32.totalorder %s32_s9, %s42_s10  ;;  %p48_p2 = scmp.lt.s32.totalorder %s42_s10, %s42_s10 }
   0x7   :  { %p49_p3 = por %p48_p2, %p47_p1 }
   0x9   :  { %p50_p4 = pnand %p49_p3, %p43_p0 }
   0xb   :  { %53 = shalt.err (!%p50_p4)
}
   0xc   :  { %s54_s13 = scalar_lea.hbm %s93_s1, 128 }
   0xd   :  { %p55_p5 = scmp.ne.s32.totalorder %s93_s1, %s54_s13  ;;  %p58_p6 = scmp.lt.u32.totalorder %s54_s13, %s93_s1 }
   0xf   :  { %p60_p7 = pnand %p58_p6, %p55_p5 }
  0x11   :  { %63 = shalt.err (!%p60_p7)
}
  0x12   :  { %34 = dma.vmem_to_hbm [thread:$0]  %s32_s9, 128, %s93_s1, [#allocation3]  }
  0x13   :  { %64 = dma.done.wait [#allocation3], 128  }
  0x14   :  { %65 = vsyncadd [#allocation3], 4294967168 }
  0x15   :  { %38 = vsyncpa [#allocation3], 1 }

</bundles_post_ra>
